<compile_context>
chip_gen: v7x
topology: tpu7x:2x2x1
jax: 0.10.0
libtpu: 0.0.40
codegen_flags: <defaults>
</compile_context>

<pallas_src>
import functools

import jax
import jax.numpy as jnp
from jax import lax
from jax.experimental import pallas as pl
from jax.experimental.pallas import tpu as pltpu


def _round_up(x, m):
    return (x + m - 1) // m * m


_VMEM_LIMIT = 32 * 1024 * 1024  # safe on v5e/v6e/v7x (v7x physical VMEM = 64 MiB)


# ----------------------------------------------------------------------------
# Pallas kernels
# ----------------------------------------------------------------------------
def _matmul_bias_kernel(a_ref, w_ref, b_ref, o_ref, acc_ref, *, activation):
    """Tiled o = a @ w + b (optionally tanh). bf16 operands, f32 accumulator."""
    @pl.when(pl.program_id(2) == 0)
    def _():
        acc_ref[...] = jnp.zeros_like(acc_ref)

    acc_ref[...] += jnp.dot(a_ref[...], w_ref[...],
                            preferred_element_type=jnp.float32)

    @pl.when(pl.program_id(2) == pl.num_programs(2) - 1)
    def _():
        out = acc_ref[...] + b_ref[...]
        if activation == "tanh":
            out = jnp.tanh(out)
        o_ref[...] = out


def _adain_kernel(x_ref, s_ref, b_ref, o_ref, *, eps, relu):
    """x:(1,HW,C). Single-pass mean/var over HW (unbiased, torch.var default),
    per-(n,c) affine, optional ReLU."""
    x = x_ref[...]
    hw = x.shape[1]
    s1 = jnp.sum(x, axis=1, keepdims=True)
    s2 = jnp.sum(x * x, axis=1, keepdims=True)
    mean = s1 * (1.0 / hw)
    var = (s2 - s1 * mean) * (1.0 / max(hw - 1, 1))
    y = (x - mean) * lax.rsqrt(var + eps)
    y = y * s_ref[...] + b_ref[...]
    if relu:
        y = jnp.maximum(y, 0.0)
    o_ref[...] = y


def _adain_res_kernel(x_ref, s_ref, b_ref, res_ref, o_ref, *, eps):
    """AdaIN followed by residual add (tail of ResidualBlock)."""
    x = x_ref[...]
    hw = x.shape[1]
    s1 = jnp.sum(x, axis=1, keepdims=True)
    s2 = jnp.sum(x * x, axis=1, keepdims=True)
    mean = s1 * (1.0 / hw)
    var = (s2 - s1 * mean) * (1.0 / max(hw - 1, 1))
    y = (x - mean) * lax.rsqrt(var + eps)
    y = y * s_ref[...] + b_ref[...]
    o_ref[...] = y + res_ref[...]


# ----------------------------------------------------------------------------
# Pallas wrappers
# ----------------------------------------------------------------------------
def _matmul_bias(a, w2d, b, activation=None):
    """a:(M,Ka) (bf16, Ka may already be 128-padded), w2d:(Kw,N), b:(N,) -> (M,N) f32."""
    M, Ka = a.shape
    Kw, N = w2d.shape
    Kp = _round_up(max(Ka, Kw), 128)
    Np = _round_up(N, 128)
    tn = 256 if Np % 256 == 0 else 128
    tk = 256 if Kp % 256 == 0 else 128
    if M >= 512:
        tm = 512
    elif M >= 256:
        tm = 256
    else:
        tm = _round_up(M, 8)
    Mp = _round_up(M, tm)

    a_p = a.astype(jnp.bfloat16)
    if (Mp, Kp) != (M, Ka):
        a_p = jnp.pad(a_p, ((0, Mp - M), (0, Kp - Ka)))
    w_p = w2d.astype(jnp.bfloat16)
    if (Kp, Np) != (Kw, N):
        w_p = jnp.pad(w_p, ((0, Kp - Kw), (0, Np - N)))
    b_p = b.reshape(1, N).astype(jnp.float32)
    if Np != N:
        b_p = jnp.pad(b_p, ((0, 0), (0, Np - N)))

    grid = (Mp // tm, Np // tn, Kp // tk)
    cost = pl.CostEstimate(
        flops=2 * Mp * Np * Kp,
        transcendentals=Mp * Np if activation == "tanh" else 0,
        bytes_accessed=2 * (Mp * Kp + Kp * Np) + 4 * Mp * Np,
    )
    out = pl.pallas_call(
        functools.partial(_matmul_bias_kernel, activation=activation),
        out_shape=jax.ShapeDtypeStruct((Mp, Np), jnp.float32),
        grid_spec=pltpu.PrefetchScalarGridSpec(
            num_scalar_prefetch=0,
            grid=grid,
            in_specs=[
                pl.BlockSpec((tm, tk), lambda i, j, k: (i, k)),
                pl.BlockSpec((tk, tn), lambda i, j, k: (k, j)),
                pl.BlockSpec((1, tn), lambda i, j, k: (0, j)),
            ],
            out_specs=pl.BlockSpec((tm, tn), lambda i, j, k: (i, j)),
            scratch_shapes=[pltpu.VMEM((tm, tn), jnp.float32)],
        ),
        compiler_params=pltpu.CompilerParams(
            dimension_semantics=("parallel", "parallel", "arbitrary"),
            vmem_limit_bytes=_VMEM_LIMIT,
        ),
        cost_estimate=cost,
    )(a_p, w_p, b_p)
    return out[:M, :N]


def _im2col_nhwc(xb, kh, kw, stride):
    """xb: padded NHWC bf16 -> patches (N*Ho*Wo, Kp) with (kh,kw,Cin) flattening,
    zero-padded along K to a multiple of 128 in the same concat."""
    N, H, W, C = xb.shape
    Ho = (H - kh) // stride + 1
    Wo = (W - kw) // stride + 1
    cols = [xb[:, i:i + Ho * stride:stride, j:j + Wo * stride:stride, :]
            for i in range(kh) for j in range(kw)]
    K = kh * kw * C
    Kp = _round_up(K, 128)
    if Kp > K:
        cols.append(jnp.zeros((N, Ho, Wo, Kp - K), jnp.bfloat16))
    patches = jnp.concatenate(cols, axis=-1).reshape(N * Ho * Wo, Kp)
    return patches, Ho, Wo


def conv2d(x, w2d, b, *, kh, kw, stride=1, padding=0, pad_mode="zeros",
           activation=None):
    """PyTorch-equivalent nn.Conv2d forward, NHWC activations.
    w2d: pre-converted (kh*kw*Cin, Cout) bf16 matmul weight."""
    xb = x.astype(jnp.bfloat16)
    if padding > 0:
        mode = "reflect" if pad_mode == "reflect" else "constant"
        xb = jnp.pad(xb, ((0, 0), (padding, padding), (padding, padding), (0, 0)),
                     mode=mode)
    N = xb.shape[0]
    Cout = w2d.shape[1]
    patches, Ho, Wo = _im2col_nhwc(xb, kh, kw, stride)
    out = _matmul_bias(patches, w2d, b, activation)
    return out.reshape(N, Ho, Wo, Cout)


def conv_transpose2d(x, w_phase, b4):
    """nn.ConvTranspose2d(k=3, s=2, p=1, op=1), NHWC, via sub-pixel phase
    decomposition: one 2x2 conv on the un-dilated input produces all 4 output
    phases (columns grouped phase-major), then results are interleaved."""
    N, H, W, Cin = x.shape
    Cout = w_phase.shape[1] // 4
    xb = jnp.pad(x.astype(jnp.bfloat16), ((0, 0), (0, 1), (0, 1), (0, 0)))
    patches, _, _ = _im2col_nhwc(xb, 2, 2, 1)             # (N*H*W, 4*Cin padded)
    out = _matmul_bias(patches, w_phase, b4)              # (N*H*W, 4*Cout)
    out = out.reshape(N, H, W, 2, 2, Cout)                # (n, r, c, py, px, co)
    out = out.transpose(0, 1, 3, 2, 4, 5)                 # (n, r, py, c, px, co)
    return out.reshape(N, 2 * H, 2 * W, Cout)


def adain(x, months, ap, *, eps=1e-5, relu=False, residual=None):
    """AdaIN: scale/bias = Linear(1,C)(months); instance-normalize x (unbiased var),
    NHWC layout, fused affine + optional ReLU / residual add."""
    sw, sb, bw, bb = ap                                    # sw,bw: (C,1); sb,bb: (C,)
    N, H, W, C = x.shape
    HW = H * W
    m = months.reshape(N, 1).astype(jnp.float32)
    scale = (m @ sw.T + sb[None, :]).reshape(N, 1, C)
    bias = (m @ bw.T + bb[None, :]).reshape(N, 1, C)
    x3 = x.reshape(N, HW, C)

    x_spec = pl.BlockSpec((1, HW, C), lambda n: (n, 0, 0))
    sb_spec = pl.BlockSpec((1, 1, C), lambda n: (n, 0, 0))
    cparams = pltpu.CompilerParams(dimension_semantics=("parallel",),
                                   vmem_limit_bytes=_VMEM_LIMIT)
    if residual is None:
        out = pl.pallas_call(
            functools.partial(_adain_kernel, eps=eps, relu=relu),
            out_shape=jax.ShapeDtypeStruct((N, HW, C), jnp.float32),
            grid_spec=pltpu.PrefetchScalarGridSpec(
                num_scalar_prefetch=0, grid=(N,),
                in_specs=[x_spec, sb_spec, sb_spec],
                out_specs=x_spec),
            compiler_params=cparams,
        )(x3, scale, bias)
    else:
        out = pl.pallas_call(
            functools.partial(_adain_res_kernel, eps=eps),
            out_shape=jax.ShapeDtypeStruct((N, HW, C), jnp.float32),
            grid_spec=pltpu.PrefetchScalarGridSpec(
                num_scalar_prefetch=0, grid=(N,),
                in_specs=[x_spec, sb_spec, sb_spec, x_spec],
                out_specs=x_spec),
            compiler_params=cparams,
        )(x3, scale, bias, residual.reshape(N, HW, C))
    return out.reshape(N, H, W, C)


# ----------------------------------------------------------------------------
# Weight layout pre-conversion (done once at init, not per forward call)
# ----------------------------------------------------------------------------
def _conv_w2d(w):
    """(Cout, Cin, kh, kw) torch conv weight -> (kh*kw*Cin, Cout) bf16 matmul weight
    (matches the NHWC (kh,kw,Cin) patch flattening)."""
    cout = w.shape[0]
    return jnp.transpose(w, (2, 3, 1, 0)).reshape(-1, cout).astype(jnp.bfloat16)


def _convT_phase_w(w):
    """(Cin, Cout, 3, 3) torch ConvTranspose2d weight (s=2, p=1, op=1)
    -> (4*Cin, 4*Cout) bf16 combined sub-pixel phase weight for one 2x2 conv.
    Rows ordered (dy*2+dx, Cin) to match NHWC patch flattening; columns
    ordered (phase, Cout) with phase = py*2+px."""
    cin, cout = w.shape[0], w.shape[1]
    W = jnp.zeros((4 * cin, 4 * cout), jnp.float32)
    for py in range(2):
        for px in range(2):
            phase = py * 2 + px
            for dy in range(2):
                if py == 0 and dy == 1:   # even output rows only use dy=0
                    continue
                ky = 1 + py - 2 * dy
                for dx in range(2):
                    if px == 0 and dx == 1:
                        continue
                    kx = 1 + px - 2 * dx
                    r0 = (dy * 2 + dx) * cin
                    W = W.at[r0:r0 + cin,
                             phase * cout:(phase + 1) * cout].set(w[:, :, ky, kx])
    return W.astype(jnp.bfloat16)


# ----------------------------------------------------------------------------
# Parameter init (deterministic, synthetic)
# ----------------------------------------------------------------------------
def init_params(key, *, input_nc, output_nc, ngf, n_down, n_blocks):
    keys = iter(jax.random.split(key, 256))

    def nrm(shape, scale=0.05):
        return jax.random.normal(next(keys), shape, jnp.float32) * scale

    def adain_p(c):
        # (scale.weight, scale.bias, bias.weight, bias.bias)
        return (nrm((c, 1)), 1.0 + nrm((c,)), nrm((c, 1)), nrm((c,)))

    p = {}
    p["init_w2d"] = _conv_w2d(nrm((ngf, input_nc, 7, 7)))
    p["init_b"] = nrm((ngf,))
    p["init_adain"] = adain_p(ngf)
    p["down"] = []
    for i in range(n_down):
        cin = ngf * (2 ** i)
        cout = cin * 2
        p["down"].append({"w2d": _conv_w2d(nrm((cout, cin, 3, 3))),
                          "b": nrm((cout,)), "adain": adain_p(cout)})
    cb = ngf * (2 ** n_down)
    p["res"] = []
    for _ in range(n_blocks):
        p["res"].append({"w2d1": _conv_w2d(nrm((cb, cb, 3, 3))), "b1": nrm((cb,)),
                         "adain1": adain_p(cb),
                         "w2d2": _conv_w2d(nrm((cb, cb, 3, 3))), "b2": nrm((cb,)),
                         "adain2": adain_p(cb)})
    p["up"] = []
    for i in range(n_down):
        cin = ngf * (2 ** (n_down - i))
        cout = cin // 2
        b = nrm((cout,))
        # torch ConvTranspose2d weight layout is (Cin, Cout, kh, kw)
        p["up"].append({"w_phase": _convT_phase_w(nrm((cin, cout, 3, 3))),
                        "b4": jnp.tile(b, 4), "adain": adain_p(cout)})
    p["final_w2d"] = _conv_w2d(nrm((output_nc, ngf, 7, 7)))
    p["final_b"] = nrm((output_nc,))
    return p


# ----------------------------------------------------------------------------
# GlobalGenerator forward == Pix2PixHD.forward
# ----------------------------------------------------------------------------
def pix2pixhd_forward(params, x, months, *, n_down=3, n_blocks=6):
    # NCHW (PyTorch) -> NHWC internal layout (single transpose in, single out)
    x = jnp.transpose(x, (0, 2, 3, 1))
    # initial: ReflectionPad2d(3) + Conv2d(k=7) -> AdaIN -> ReLU
    x = conv2d(x, params["init_w2d"], params["init_b"], kh=7, kw=7,
               padding=3, pad_mode="reflect")
    x = adain(x, months, params["init_adain"], relu=True)
    # downsampling: Conv2d(k=3, s=2, p=1) -> AdaIN -> ReLU
    for i in range(n_down):
        p = params["down"][i]
        x = conv2d(x, p["w2d"], p["b"], kh=3, kw=3, stride=2, padding=1)
        x = adain(x, months, p["adain"], relu=True)
    # residual blocks
    for i in range(n_blocks):
        p = params["res"][i]
        residual = x
        out = conv2d(x, p["w2d1"], p["b1"], kh=3, kw=3, padding=1)
        out = adain(out, months, p["adain1"], relu=True)
        out = conv2d(out, p["w2d2"], p["b2"], kh=3, kw=3, padding=1)
        x = adain(out, months, p["adain2"], residual=residual)
    # upsampling: ConvTranspose2d(k=3, s=2, p=1, op=1) -> AdaIN -> ReLU
    for i in range(n_down):
        p = params["up"][i]
        x = conv_transpose2d(x, p["w_phase"], p["b4"])
        x = adain(x, months, p["adain"], relu=True)
    # final: ReflectionPad2d(3) + Conv2d(k=7) + Tanh (tanh fused into matmul epilogue)
    x = conv2d(x, params["final_w2d"], params["final_b"], kh=7, kw=7,
               padding=3, pad_mode="reflect", activation="tanh")
    return jnp.transpose(x, (0, 3, 1, 2))   # back to NCHW

# TODO(synk): MultiscaleDiscriminator and (pretrained) VGG19 are constructed in
# Pix2PixHD.__init__ but never used by Pix2PixHD.forward, so they are omitted.


if __name__ == "__main__":
    INPUT_NC, OUTPUT_NC, NGF = 3, 3, 8
    N_DOWN, N_BLOCKS = 3, 6
    B, H, W = 2, 32, 32

    key = jax.random.PRNGKey(0)
    kx, km, kp = jax.random.split(key, 3)
    x = jax.random.normal(kx, (B, INPUT_NC, H, W), dtype=jnp.float32)
    months = jax.random.uniform(km, (B,), dtype=jnp.float32) * 12.0

    params = init_params(kp, input_nc=INPUT_NC, output_nc=OUTPUT_NC, ngf=NGF,
                         n_down=N_DOWN, n_blocks=N_BLOCKS)

    fwd = jax.jit(functools.partial(pix2pixhd_forward,
                                    n_down=N_DOWN, n_blocks=N_BLOCKS))
    out = jax.block_until_ready(fwd(params, x, months))

    assert out.shape == (B, OUTPUT_NC, H, W), out.shape
    assert out.dtype == jnp.float32
    assert bool(jnp.all(jnp.isfinite(out)))
    assert bool(jnp.all(jnp.abs(out) <= 1.0 + 1e-6))  # tanh output range
    print("KERNEL_OK")
</pallas_src>

<mosaic_0001>
module attributes {stable_mosaic.version = 11 : i64} {
  func.func @_matmul_bias_kernel(%arg0: i32, %arg1: i32, %arg2: i32, %arg3: memref<512x256xbf16, #tpu.memory_space<vmem>>, %arg4: memref<256x128xbf16, #tpu.memory_space<vmem>>, %arg5: memref<1x128xf32, #tpu.memory_space<vmem>>, %arg6: memref<512x128xf32, #tpu.memory_space<vmem>>, %arg7: memref<512x128xf32, #tpu.memory_space<vmem>>) attributes {dimension_semantics = [#tpu.dimension_semantics<parallel>, #tpu.dimension_semantics<parallel>, #tpu.dimension_semantics<arbitrary>], iteration_bounds = array<i64: 4, 1, 1>, scalar_prefetch = 0 : i64, scratch_operands = 1 : i64, tpu.core_type = #tpu.core_type<tc>, window_params = [{transform_indices = @transform_0, window_bounds = array<i64: 512, 256>}, {transform_indices = @transform_1, window_bounds = array<i64: 256, 128>}, {transform_indices = @transform_2, window_bounds = array<i64: 1, 128>}, {transform_indices = @transform_3, window_bounds = array<i64: 512, 128>}]} {
    %c0_i32 = arith.constant 0 : i32
    %0 = arith.cmpi eq, %arg2, %c0_i32 : i32
    %1 = arith.extui %0 : i1 to i32
    %c0_i32_0 = arith.constant 0 : i32
    %2 = arith.cmpi ne, %1, %c0_i32_0 : i32
    scf.if %2 {
      %cst_10 = arith.constant 0.000000e+00 : f32
      %12 = vector.broadcast %cst_10 : f32 to vector<512x128xf32>
      %c0_11 = arith.constant 0 : index
      %c0_12 = arith.constant 0 : index
      %13 = vector.load %arg7[%c0_11, %c0_12] : memref<512x128xf32, #tpu.memory_space<vmem>>, vector<512x128xf32>
      tpu.vector_store %arg7[%c0_11, %c0_12], %12 {strides = array<i32>} : memref<512x128xf32, #tpu.memory_space<vmem>>, vector<512x128xf32>,
    } else {
    }
    %c0 = arith.constant 0 : index
    %c0_1 = arith.constant 0 : index
    %3 = vector.load %arg7[%c0, %c0_1] : memref<512x128xf32, #tpu.memory_space<vmem>>, vector<512x128xf32>
    %c0_2 = arith.constant 0 : index
    %c0_3 = arith.constant 0 : index
    %4 = vector.load %arg3[%c0_2, %c0_3] : memref<512x256xbf16, #tpu.memory_space<vmem>>, vector<512x256xbf16>
    %c0_4 = arith.constant 0 : index
    %c0_5 = arith.constant 0 : index
    %5 = vector.load %arg4[%c0_4, %c0_5] : memref<256x128xbf16, #tpu.memory_space<vmem>>, vector<256x128xbf16>
    %cst = arith.constant dense<0.000000e+00> : vector<512x128xf32>
    %6 = tpu.matmul %4, %5, %cst {dimension_numbers = #tpu.dot_dimension_numbers<[1], [0], [0], [1], [0, 0, 1, 1], [], []>} : vector<512x256xbf16>, vector<256x128xbf16>, vector<512x128xf32> -> vector<512x128xf32>
    %7 = arith.addf %3, %6 : vector<512x128xf32>
    %c0_6 = arith.constant 0 : index
    %c0_7 = arith.constant 0 : index
    %8 = vector.load %arg7[%c0_6, %c0_7] : memref<512x128xf32, #tpu.memory_space<vmem>>, vector<512x128xf32>
    tpu.vector_store %arg7[%c0_6, %c0_7], %7 {strides = array<i32>} : memref<512x128xf32, #tpu.memory_space<vmem>>, vector<512x128xf32>,
    %c0_i32_8 = arith.constant 0 : i32
    %9 = arith.cmpi eq, %arg2, %c0_i32_8 : i32
    %10 = arith.extui %9 : i1 to i32
    %c0_i32_9 = arith.constant 0 : i32
    %11 = arith.cmpi ne, %10, %c0_i32_9 : i32
    scf.if %11 {
      %c0_10 = arith.constant 0 : index
      %c0_11 = arith.constant 0 : index
      %12 = vector.load %arg7[%c0_10, %c0_11] : memref<512x128xf32, #tpu.memory_space<vmem>>, vector<512x128xf32>
      %c0_12 = arith.constant 0 : index
      %c0_13 = arith.constant 0 : index
      %13 = vector.load %arg5[%c0_12, %c0_13] : memref<1x128xf32, #tpu.memory_space<vmem>>, vector<1x128xf32>
      %14 = vector.broadcast %13 : vector<1x128xf32> to vector<512x128xf32>
      %15 = arith.addf %12, %14 : vector<512x128xf32>
      %c0_14 = arith.constant 0 : index
      %c0_15 = arith.constant 0 : index
      %16 = vector.load %arg6[%c0_14, %c0_15] : memref<512x128xf32, #tpu.memory_space<vmem>>, vector<512x128xf32>
      tpu.vector_store %arg6[%c0_14, %c0_15], %15 {strides = array<i32>} : memref<512x128xf32, #tpu.memory_space<vmem>>, vector<512x128xf32>,
    } else {
    }
    return
  }
  func.func @transform_0(%arg0: i32, %arg1: i32, %arg2: i32) -> (i32, i32) {
    %c0_i32 = arith.constant 0 : i32
    return %arg0, %arg2 : i32, i32
  }
  func.func @transform_1(%arg0: i32, %arg1: i32, %arg2: i32) -> (i32, i32) {
    %c0_i32 = arith.constant 0 : i32
    return %arg2, %arg1 : i32, i32
  }
  func.func @transform_2(%arg0: i32, %arg1: i32, %arg2: i32) -> (i32, i32) {
    %c0_i32 = arith.constant 0 : i32
    %c0_i32_0 = arith.constant 0 : i32
    return %c0_i32, %arg1 : i32, i32
  }
  func.func @transform_3(%arg0: i32, %arg1: i32, %arg2: i32) -> (i32, i32) {
    %c0_i32 = arith.constant 0 : i32
    return %arg0, %arg1 : i32, i32
  }
}

module attributes {stable_mosaic.version = 11 : i64} {
  func.func @_adain_kernel(%arg0: i32, %arg1: memref<1x1024x8xf32, #tpu.memory_space<vmem>>, %arg2: memref<1x1x8xf32, #tpu.memory_space<vmem>>, %arg3: memref<1x1x8xf32, #tpu.memory_space<vmem>>, %arg4: memref<1x1024x8xf32, #tpu.memory_space<vmem>>) attributes {dimension_semantics = [#tpu.dimension_semantics<parallel>], iteration_bounds = array<i64: 2>, scalar_prefetch = 0 : i64, scratch_operands = 0 : i64, tpu.core_type = #tpu.core_type<tc>, window_params = [{transform_indices = @transform_0, window_bounds = array<i64: 1, 1024, 8>}, {transform_indices = @transform_1, window_bounds = array<i64: 1, 1, 8>}, {transform_indices = @transform_2, window_bounds = array<i64: 1, 1, 8>}, {transform_indices = @transform_3, window_bounds = array<i64: 1, 1024, 8>}]} {
    %c0 = arith.constant 0 : index
    %c0_0 = arith.constant 0 : index
    %c0_1 = arith.constant 0 : index
    %0 = vector.load %arg1[%c0, %c0_0, %c0_1] : memref<1x1024x8xf32, #tpu.memory_space<vmem>>, vector<1x1024x8xf32>
    %cst = arith.constant dense<0.000000e+00> : vector<1x8xf32>
    %1 = vector.multi_reduction <add>, %0, %cst [1] : vector<1x1024x8xf32> to vector<1x8xf32>
    %2 = vector.shape_cast %1 : vector<1x8xf32> to vector<1x1x8xf32>
    %3 = arith.mulf %0, %0 : vector<1x1024x8xf32>
    %cst_2 = arith.constant dense<0.000000e+00> : vector<1x8xf32>
    %4 = vector.multi_reduction <add>, %3, %cst_2 [1] : vector<1x1024x8xf32> to vector<1x8xf32>
    %5 = vector.shape_cast %4 : vector<1x8xf32> to vector<1x1x8xf32>
    %cst_3 = arith.constant 9.765625E-4 : f32
    %6 = vector.broadcast %cst_3 : f32 to vector<1x1x8xf32>
    %7 = arith.mulf %2, %6 : vector<1x1x8xf32>
    %8 = arith.mulf %2, %7 : vector<1x1x8xf32>
    %9 = arith.subf %5, %8 : vector<1x1x8xf32>
    %cst_4 = arith.constant 9.77517105E-4 : f32
    %10 = vector.broadcast %cst_4 : f32 to vector<1x1x8xf32>
    %11 = arith.mulf %9, %10 : vector<1x1x8xf32>
    %12 = vector.broadcast %7 : vector<1x1x8xf32> to vector<1x1024x8xf32>
    %13 = arith.subf %0, %12 : vector<1x1024x8xf32>
    %cst_5 = arith.constant 9.99999974E-6 : f32
    %14 = vector.broadcast %cst_5 : f32 to vector<1x1x8xf32>
    %15 = arith.addf %11, %14 : vector<1x1x8xf32>
    %16 = math.rsqrt %15 : vector<1x1x8xf32>
    %17 = vector.broadcast %16 : vector<1x1x8xf32> to vector<1x1024x8xf32>
    %18 = arith.mulf %13, %17 : vector<1x1024x8xf32>
    %c0_6 = arith.constant 0 : index
    %c0_7 = arith.constant 0 : index
    %c0_8 = arith.constant 0 : index
    %19 = vector.load %arg2[%c0_6, %c0_7, %c0_8] : memref<1x1x8xf32, #tpu.memory_space<vmem>>, vector<1x1x8xf32>
    %20 = vector.broadcast %19 : vector<1x1x8xf32> to vector<1x1024x8xf32>
    %21 = arith.mulf %18, %20 : vector<1x1024x8xf32>
    %c0_9 = arith.constant 0 : index
    %c0_10 = arith.constant 0 : index
    %c0_11 = arith.constant 0 : index
    %22 = vector.load %arg3[%c0_9, %c0_10, %c0_11] : memref<1x1x8xf32, #tpu.memory_space<vmem>>, vector<1x1x8xf32>
    %23 = vector.broadcast %22 : vector<1x1x8xf32> to vector<1x1024x8xf32>
    %24 = arith.addf %21, %23 : vector<1x1024x8xf32>
    %cst_12 = arith.constant 0.000000e+00 : f32
    %25 = vector.broadcast %cst_12 : f32 to vector<1x1024x8xf32>
    %26 = arith.maximumf %24, %25 : vector<1x1024x8xf32>
    %c0_13 = arith.constant 0 : index
    %c0_14 = arith.constant 0 : index
    %c0_15 = arith.constant 0 : index
    %27 = vector.load %arg4[%c0_13, %c0_14, %c0_15] : memref<1x1024x8xf32, #tpu.memory_space<vmem>>, vector<1x1024x8xf32>
    tpu.vector_store %arg4[%c0_13, %c0_14, %c0_15], %26 {strides = array<i32>} : memref<1x1024x8xf32, #tpu.memory_space<vmem>>, vector<1x1024x8xf32>,
    return
  }
  func.func @transform_0(%arg0: i32) -> (i32, i32, i32) {
    %c0_i32 = arith.constant 0 : i32
    %c0_i32_0 = arith.constant 0 : i32
    %c0_i32_1 = arith.constant 0 : i32
    return %arg0, %c0_i32, %c0_i32_0 : i32, i32, i32
  }
  func.func @transform_1(%arg0: i32) -> (i32, i32, i32) {
    %c0_i32 = arith.constant 0 : i32
    %c0_i32_0 = arith.constant 0 : i32
    %c0_i32_1 = arith.constant 0 : i32
    return %arg0, %c0_i32, %c0_i32_0 : i32, i32, i32
  }
  func.func @transform_2(%arg0: i32) -> (i32, i32, i32) {
    %c0_i32 = arith.constant 0 : i32
    %c0_i32_0 = arith.constant 0 : i32
    %c0_i32_1 = arith.constant 0 : i32
    return %arg0, %c0_i32, %c0_i32_0 : i32, i32, i32
  }
  func.func @transform_3(%arg0: i32) -> (i32, i32, i32) {
    %c0_i32 = arith.constant 0 : i32
    %c0_i32_0 = arith.constant 0 : i32
    %c0_i32_1 = arith.constant 0 : i32
    return %arg0, %c0_i32, %c0_i32_0 : i32, i32, i32
  }
}

module attributes {stable_mosaic.version = 11 : i64} {
  func.func @_matmul_bias_kernel(%arg0: i32, %arg1: i32, %arg2: i32, %arg3: memref<512x128xbf16, #tpu.memory_space<vmem>>, %arg4: memref<128x128xbf16, #tpu.memory_space<vmem>>, %arg5: memref<1x128xf32, #tpu.memory_space<vmem>>, %arg6: memref<512x128xf32, #tpu.memory_space<vmem>>, %arg7: memref<512x128xf32, #tpu.memory_space<vmem>>) attributes {dimension_semantics = [#tpu.dimension_semantics<parallel>, #tpu.dimension_semantics<parallel>, #tpu.dimension_semantics<arbitrary>], iteration_bounds = array<i64: 1, 1, 1>, scalar_prefetch = 0 : i64, scratch_operands = 1 : i64, tpu.core_type = #tpu.core_type<tc>, window_params = [{transform_indices = @transform_0, window_bounds = array<i64: 512, 128>}, {transform_indices = @transform_1, window_bounds = array<i64: 128, 128>}, {transform_indices = @transform_2, window_bounds = array<i64: 1, 128>}, {transform_indices = @transform_3, window_bounds = array<i64: 512, 128>}]} {
    %c0_i32 = arith.constant 0 : i32
    %0 = arith.cmpi eq, %arg2, %c0_i32 : i32
    %1 = arith.extui %0 : i1 to i32
    %c0_i32_0 = arith.constant 0 : i32
    %2 = arith.cmpi ne, %1, %c0_i32_0 : i32
    scf.if %2 {
      %cst_10 = arith.constant 0.000000e+00 : f32
      %12 = vector.broadcast %cst_10 : f32 to vector<512x128xf32>
      %c0_11 = arith.constant 0 : index
      %c0_12 = arith.constant 0 : index
      %13 = vector.load %arg7[%c0_11, %c0_12] : memref<512x128xf32, #tpu.memory_space<vmem>>, vector<512x128xf32>
      tpu.vector_store %arg7[%c0_11, %c0_12], %12 {strides = array<i32>} : memref<512x128xf32, #tpu.memory_space<vmem>>, vector<512x128xf32>,
    } else {
    }
    %c0 = arith.constant 0 : index
    %c0_1 = arith.constant 0 : index
    %3 = vector.load %arg7[%c0, %c0_1] : memref<512x128xf32, #tpu.memory_space<vmem>>, vector<512x128xf32>
    %c0_2 = arith.constant 0 : index
    %c0_3 = arith.constant 0 : index
    %4 = vector.load %arg3[%c0_2, %c0_3] : memref<512x128xbf16, #tpu.memory_space<vmem>>, vector<512x128xbf16>
    %c0_4 = arith.constant 0 : index
    %c0_5 = arith.constant 0 : index
    %5 = vector.load %arg4[%c0_4, %c0_5] : memref<128x128xbf16, #tpu.memory_space<vmem>>, vector<128x128xbf16>
    %cst = arith.constant dense<0.000000e+00> : vector<512x128xf32>
    %6 = tpu.matmul %4, %5, %cst {dimension_numbers = #tpu.dot_dimension_numbers<[1], [0], [0], [1], [0, 0, 1, 1], [], []>} : vector<512x128xbf16>, vector<128x128xbf16>, vector<512x128xf32> -> vector<512x128xf32>
    %7 = arith.addf %3, %6 : vector<512x128xf32>
    %c0_6 = arith.constant 0 : index
    %c0_7 = arith.constant 0 : index
    %8 = vector.load %arg7[%c0_6, %c0_7] : memref<512x128xf32, #tpu.memory_space<vmem>>, vector<512x128xf32>
    tpu.vector_store %arg7[%c0_6, %c0_7], %7 {strides = array<i32>} : memref<512x128xf32, #tpu.memory_space<vmem>>, vector<512x128xf32>,
    %c0_i32_8 = arith.constant 0 : i32
    %9 = arith.cmpi eq, %arg2, %c0_i32_8 : i32
    %10 = arith.extui %9 : i1 to i32
    %c0_i32_9 = arith.constant 0 : i32
    %11 = arith.cmpi ne, %10, %c0_i32_9 : i32
    scf.if %11 {
      %c0_10 = arith.constant 0 : index
      %c0_11 = arith.constant 0 : index
      %12 = vector.load %arg7[%c0_10, %c0_11] : memref<512x128xf32, #tpu.memory_space<vmem>>, vector<512x128xf32>
      %c0_12 = arith.constant 0 : index
      %c0_13 = arith.constant 0 : index
      %13 = vector.load %arg5[%c0_12, %c0_13] : memref<1x128xf32, #tpu.memory_space<vmem>>, vector<1x128xf32>
      %14 = vector.broadcast %13 : vector<1x128xf32> to vector<512x128xf32>
      %15 = arith.addf %12, %14 : vector<512x128xf32>
      %c0_14 = arith.constant 0 : index
      %c0_15 = arith.constant 0 : index
      %16 = vector.load %arg6[%c0_14, %c0_15] : memref<512x128xf32, #tpu.memory_space<vmem>>, vector<512x128xf32>
      tpu.vector_store %arg6[%c0_14, %c0_15], %15 {strides = array<i32>} : memref<512x128xf32, #tpu.memory_space<vmem>>, vector<512x128xf32>,
    } else {
    }
    return
  }
  func.func @transform_0(%arg0: i32, %arg1: i32, %arg2: i32) -> (i32, i32) {
    %c0_i32 = arith.constant 0 : i32
    return %arg0, %arg2 : i32, i32
  }
  func.func @transform_1(%arg0: i32, %arg1: i32, %arg2: i32) -> (i32, i32) {
    %c0_i32 = arith.constant 0 : i32
    return %arg2, %arg1 : i32, i32
  }
  func.func @transform_2(%arg0: i32, %arg1: i32, %arg2: i32) -> (i32, i32) {
    %c0_i32 = arith.constant 0 : i32
    %c0_i32_0 = arith.constant 0 : i32
    return %c0_i32, %arg1 : i32, i32
  }
  func.func @transform_3(%arg0: i32, %arg1: i32, %arg2: i32) -> (i32, i32) {
    %c0_i32 = arith.constant 0 : i32
    return %arg0, %arg1 : i32, i32
  }
}

module attributes {stable_mosaic.version = 11 : i64} {
  func.func @_adain_kernel(%arg0: i32, %arg1: memref<1x256x16xf32, #tpu.memory_space<vmem>>, %arg2: memref<1x1x16xf32, #tpu.memory_space<vmem>>, %arg3: memref<1x1x16xf32, #tpu.memory_space<vmem>>, %arg4: memref<1x256x16xf32, #tpu.memory_space<vmem>>) attributes {dimension_semantics = [#tpu.dimension_semantics<parallel>], iteration_bounds = array<i64: 2>, scalar_prefetch = 0 : i64, scratch_operands = 0 : i64, tpu.core_type = #tpu.core_type<tc>, window_params = [{transform_indices = @transform_0, window_bounds = array<i64: 1, 256, 16>}, {transform_indices = @transform_1, window_bounds = array<i64: 1, 1, 16>}, {transform_indices = @transform_2, window_bounds = array<i64: 1, 1, 16>}, {transform_indices = @transform_3, window_bounds = array<i64: 1, 256, 16>}]} {
    %c0 = arith.constant 0 : index
    %c0_0 = arith.constant 0 : index
    %c0_1 = arith.constant 0 : index
    %0 = vector.load %arg1[%c0, %c0_0, %c0_1] : memref<1x256x16xf32, #tpu.memory_space<vmem>>, vector<1x256x16xf32>
    %cst = arith.constant dense<0.000000e+00> : vector<1x16xf32>
    %1 = vector.multi_reduction <add>, %0, %cst [1] : vector<1x256x16xf32> to vector<1x16xf32>
    %2 = vector.shape_cast %1 : vector<1x16xf32> to vector<1x1x16xf32>
    %3 = arith.mulf %0, %0 : vector<1x256x16xf32>
    %cst_2 = arith.constant dense<0.000000e+00> : vector<1x16xf32>
    %4 = vector.multi_reduction <add>, %3, %cst_2 [1] : vector<1x256x16xf32> to vector<1x16xf32>
    %5 = vector.shape_cast %4 : vector<1x16xf32> to vector<1x1x16xf32>
    %cst_3 = arith.constant 3.906250e-03 : f32
    %6 = vector.broadcast %cst_3 : f32 to vector<1x1x16xf32>
    %7 = arith.mulf %2, %6 : vector<1x1x16xf32>
    %8 = arith.mulf %2, %7 : vector<1x1x16xf32>
    %9 = arith.subf %5, %8 : vector<1x1x16xf32>
    %cst_4 = arith.constant 0.00392156886 : f32
    %10 = vector.broadcast %cst_4 : f32 to vector<1x1x16xf32>
    %11 = arith.mulf %9, %10 : vector<1x1x16xf32>
    %12 = vector.broadcast %7 : vector<1x1x16xf32> to vector<1x256x16xf32>
    %13 = arith.subf %0, %12 : vector<1x256x16xf32>
    %cst_5 = arith.constant 9.99999974E-6 : f32
    %14 = vector.broadcast %cst_5 : f32 to vector<1x1x16xf32>
    %15 = arith.addf %11, %14 : vector<1x1x16xf32>
    %16 = math.rsqrt %15 : vector<1x1x16xf32>
    %17 = vector.broadcast %16 : vector<1x1x16xf32> to vector<1x256x16xf32>
    %18 = arith.mulf %13, %17 : vector<1x256x16xf32>
    %c0_6 = arith.constant 0 : index
    %c0_7 = arith.constant 0 : index
    %c0_8 = arith.constant 0 : index
    %19 = vector.load %arg2[%c0_6, %c0_7, %c0_8] : memref<1x1x16xf32, #tpu.memory_space<vmem>>, vector<1x1x16xf32>
    %20 = vector.broadcast %19 : vector<1x1x16xf32> to vector<1x256x16xf32>
    %21 = arith.mulf %18, %20 : vector<1x256x16xf32>
    %c0_9 = arith.constant 0 : index
    %c0_10 = arith.constant 0 : index
    %c0_11 = arith.constant 0 : index
    %22 = vector.load %arg3[%c0_9, %c0_10, %c0_11] : memref<1x1x16xf32, #tpu.memory_space<vmem>>, vector<1x1x16xf32>
    %23 = vector.broadcast %22 : vector<1x1x16xf32> to vector<1x256x16xf32>
    %24 = arith.addf %21, %23 : vector<1x256x16xf32>
    %cst_12 = arith.constant 0.000000e+00 : f32
    %25 = vector.broadcast %cst_12 : f32 to vector<1x256x16xf32>
    %26 = arith.maximumf %24, %25 : vector<1x256x16xf32>
    %c0_13 = arith.constant 0 : index
    %c0_14 = arith.constant 0 : index
    %c0_15 = arith.constant 0 : index
    %27 = vector.load %arg4[%c0_13, %c0_14, %c0_15] : memref<1x256x16xf32, #tpu.memory_space<vmem>>, vector<1x256x16xf32>
    tpu.vector_store %arg4[%c0_13, %c0_14, %c0_15], %26 {strides = array<i32>} : memref<1x256x16xf32, #tpu.memory_space<vmem>>, vector<1x256x16xf32>,
    return
  }
  func.func @transform_0(%arg0: i32) -> (i32, i32, i32) {
    %c0_i32 = arith.constant 0 : i32
    %c0_i32_0 = arith.constant 0 : i32
    %c0_i32_1 = arith.constant 0 : i32
    return %arg0, %c0_i32, %c0_i32_0 : i32, i32, i32
  }
  func.func @transform_1(%arg0: i32) -> (i32, i32, i32) {
    %c0_i32 = arith.constant 0 : i32
    %c0_i32_0 = arith.constant 0 : i32
    %c0_i32_1 = arith.constant 0 : i32
    return %arg0, %c0_i32, %c0_i32_0 : i32, i32, i32
  }
  func.func @transform_2(%arg0: i32) -> (i32, i32, i32) {
    %c0_i32 = arith.constant 0 : i32
    %c0_i32_0 = arith.constant 0 : i32
    %c0_i32_1 = arith.constant 0 : i32
    return %arg0, %c0_i32, %c0_i32_0 : i32, i32, i32
  }
  func.func @transform_3(%arg0: i32) -> (i32, i32, i32) {
    %c0_i32 = arith.constant 0 : i32
    %c0_i32_0 = arith.constant 0 : i32
    %c0_i32_1 = arith.constant 0 : i32
    return %arg0, %c0_i32, %c0_i32_0 : i32, i32, i32
  }
}

module attributes {stable_mosaic.version = 11 : i64} {
  func.func @_matmul_bias_kernel(%arg0: i32, %arg1: i32, %arg2: i32, %arg3: memref<128x256xbf16, #tpu.memory_space<vmem>>, %arg4: memref<256x128xbf16, #tpu.memory_space<vmem>>, %arg5: memref<1x128xf32, #tpu.memory_space<vmem>>, %arg6: memref<128x128xf32, #tpu.memory_space<vmem>>, %arg7: memref<128x128xf32, #tpu.memory_space<vmem>>) attributes {dimension_semantics = [#tpu.dimension_semantics<parallel>, #tpu.dimension_semantics<parallel>, #tpu.dimension_semantics<arbitrary>], iteration_bounds = array<i64: 1, 1, 1>, scalar_prefetch = 0 : i64, scratch_operands = 1 : i64, tpu.core_type = #tpu.core_type<tc>, window_params = [{transform_indices = @transform_0, window_bounds = array<i64: 128, 256>}, {transform_indices = @transform_1, window_bounds = array<i64: 256, 128>}, {transform_indices = @transform_2, window_bounds = array<i64: 1, 128>}, {transform_indices = @transform_3, window_bounds = array<i64: 128, 128>}]} {
    %c0_i32 = arith.constant 0 : i32
    %0 = arith.cmpi eq, %arg2, %c0_i32 : i32
    %1 = arith.extui %0 : i1 to i32
    %c0_i32_0 = arith.constant 0 : i32
    %2 = arith.cmpi ne, %1, %c0_i32_0 : i32
    scf.if %2 {
      %cst_10 = arith.constant 0.000000e+00 : f32
      %12 = vector.broadcast %cst_10 : f32 to vector<128x128xf32>
      %c0_11 = arith.constant 0 : index
      %c0_12 = arith.constant 0 : index
      %13 = vector.load %arg7[%c0_11, %c0_12] : memref<128x128xf32, #tpu.memory_space<vmem>>, vector<128x128xf32>
      tpu.vector_store %arg7[%c0_11, %c0_12], %12 {strides = array<i32>} : memref<128x128xf32, #tpu.memory_space<vmem>>, vector<128x128xf32>,
    } else {
    }
    %c0 = arith.constant 0 : index
    %c0_1 = arith.constant 0 : index
    %3 = vector.load %arg7[%c0, %c0_1] : memref<128x128xf32, #tpu.memory_space<vmem>>, vector<128x128xf32>
    %c0_2 = arith.constant 0 : index
    %c0_3 = arith.constant 0 : index
    %4 = vector.load %arg3[%c0_2, %c0_3] : memref<128x256xbf16, #tpu.memory_space<vmem>>, vector<128x256xbf16>
    %c0_4 = arith.constant 0 : index
    %c0_5 = arith.constant 0 : index
    %5 = vector.load %arg4[%c0_4, %c0_5] : memref<256x128xbf16, #tpu.memory_space<vmem>>, vector<256x128xbf16>
    %cst = arith.constant dense<0.000000e+00> : vector<128x128xf32>
    %6 = tpu.matmul %4, %5, %cst {dimension_numbers = #tpu.dot_dimension_numbers<[1], [0], [0], [1], [0, 0, 1, 1], [], []>} : vector<128x256xbf16>, vector<256x128xbf16>, vector<128x128xf32> -> vector<128x128xf32>
    %7 = arith.addf %3, %6 : vector<128x128xf32>
    %c0_6 = arith.constant 0 : index
    %c0_7 = arith.constant 0 : index
    %8 = vector.load %arg7[%c0_6, %c0_7] : memref<128x128xf32, #tpu.memory_space<vmem>>, vector<128x128xf32>
    tpu.vector_store %arg7[%c0_6, %c0_7], %7 {strides = array<i32>} : memref<128x128xf32, #tpu.memory_space<vmem>>, vector<128x128xf32>,
    %c0_i32_8 = arith.constant 0 : i32
    %9 = arith.cmpi eq, %arg2, %c0_i32_8 : i32
    %10 = arith.extui %9 : i1 to i32
    %c0_i32_9 = arith.constant 0 : i32
    %11 = arith.cmpi ne, %10, %c0_i32_9 : i32
    scf.if %11 {
      %c0_10 = arith.constant 0 : index
      %c0_11 = arith.constant 0 : index
      %12 = vector.load %arg7[%c0_10, %c0_11] : memref<128x128xf32, #tpu.memory_space<vmem>>, vector<128x128xf32>
      %c0_12 = arith.constant 0 : index
      %c0_13 = arith.constant 0 : index
      %13 = vector.load %arg5[%c0_12, %c0_13] : memref<1x128xf32, #tpu.memory_space<vmem>>, vector<1x128xf32>
      %14 = vector.broadcast %13 : vector<1x128xf32> to vector<128x128xf32>
      %15 = arith.addf %12, %14 : vector<128x128xf32>
      %c0_14 = arith.constant 0 : index
      %c0_15 = arith.constant 0 : index
      %16 = vector.load %arg6[%c0_14, %c0_15] : memref<128x128xf32, #tpu.memory_space<vmem>>, vector<128x128xf32>
      tpu.vector_store %arg6[%c0_14, %c0_15], %15 {strides = array<i32>} : memref<128x128xf32, #tpu.memory_space<vmem>>, vector<128x128xf32>,
    } else {
    }
    return
  }
  func.func @transform_0(%arg0: i32, %arg1: i32, %arg2: i32) -> (i32, i32) {
    %c0_i32 = arith.constant 0 : i32
    return %arg0, %arg2 : i32, i32
  }
  func.func @transform_1(%arg0: i32, %arg1: i32, %arg2: i32) -> (i32, i32) {
    %c0_i32 = arith.constant 0 : i32
    return %arg2, %arg1 : i32, i32
  }
  func.func @transform_2(%arg0: i32, %arg1: i32, %arg2: i32) -> (i32, i32) {
    %c0_i32 = arith.constant 0 : i32
    %c0_i32_0 = arith.constant 0 : i32
    return %c0_i32, %arg1 : i32, i32
  }
  func.func @transform_3(%arg0: i32, %arg1: i32, %arg2: i32) -> (i32, i32) {
    %c0_i32 = arith.constant 0 : i32
    return %arg0, %arg1 : i32, i32
  }
}

module attributes {stable_mosaic.version = 11 : i64} {
  func.func @_adain_kernel(%arg0: i32, %arg1: memref<1x64x32xf32, #tpu.memory_space<vmem>>, %arg2: memref<1x1x32xf32, #tpu.memory_space<vmem>>, %arg3: memref<1x1x32xf32, #tpu.memory_space<vmem>>, %arg4: memref<1x64x32xf32, #tpu.memory_space<vmem>>) attributes {dimension_semantics = [#tpu.dimension_semantics<parallel>], iteration_bounds = array<i64: 2>, scalar_prefetch = 0 : i64, scratch_operands = 0 : i64, tpu.core_type = #tpu.core_type<tc>, window_params = [{transform_indices = @transform_0, window_bounds = array<i64: 1, 64, 32>}, {transform_indices = @transform_1, window_bounds = array<i64: 1, 1, 32>}, {transform_indices = @transform_2, window_bounds = array<i64: 1, 1, 32>}, {transform_indices = @transform_3, window_bounds = array<i64: 1, 64, 32>}]} {
    %c0 = arith.constant 0 : index
    %c0_0 = arith.constant 0 : index
    %c0_1 = arith.constant 0 : index
    %0 = vector.load %arg1[%c0, %c0_0, %c0_1] : memref<1x64x32xf32, #tpu.memory_space<vmem>>, vector<1x64x32xf32>
    %cst = arith.constant dense<0.000000e+00> : vector<1x32xf32>
    %1 = vector.multi_reduction <add>, %0, %cst [1] : vector<1x64x32xf32> to vector<1x32xf32>
    %2 = vector.shape_cast %1 : vector<1x32xf32> to vector<1x1x32xf32>
    %3 = arith.mulf %0, %0 : vector<1x64x32xf32>
    %cst_2 = arith.constant dense<0.000000e+00> : vector<1x32xf32>
    %4 = vector.multi_reduction <add>, %3, %cst_2 [1] : vector<1x64x32xf32> to vector<1x32xf32>
    %5 = vector.shape_cast %4 : vector<1x32xf32> to vector<1x1x32xf32>
    %cst_3 = arith.constant 1.562500e-02 : f32
    %6 = vector.broadcast %cst_3 : f32 to vector<1x1x32xf32>
    %7 = arith.mulf %2, %6 : vector<1x1x32xf32>
    %8 = arith.mulf %2, %7 : vector<1x1x32xf32>
    %9 = arith.subf %5, %8 : vector<1x1x32xf32>
    %cst_4 = arith.constant 0.0158730168 : f32
    %10 = vector.broadcast %cst_4 : f32 to vector<1x1x32xf32>
    %11 = arith.mulf %9, %10 : vector<1x1x32xf32>
    %12 = vector.broadcast %7 : vector<1x1x32xf32> to vector<1x64x32xf32>
    %13 = arith.subf %0, %12 : vector<1x64x32xf32>
    %cst_5 = arith.constant 9.99999974E-6 : f32
    %14 = vector.broadcast %cst_5 : f32 to vector<1x1x32xf32>
    %15 = arith.addf %11, %14 : vector<1x1x32xf32>
    %16 = math.rsqrt %15 : vector<1x1x32xf32>
    %17 = vector.broadcast %16 : vector<1x1x32xf32> to vector<1x64x32xf32>
    %18 = arith.mulf %13, %17 : vector<1x64x32xf32>
    %c0_6 = arith.constant 0 : index
    %c0_7 = arith.constant 0 : index
    %c0_8 = arith.constant 0 : index
    %19 = vector.load %arg2[%c0_6, %c0_7, %c0_8] : memref<1x1x32xf32, #tpu.memory_space<vmem>>, vector<1x1x32xf32>
    %20 = vector.broadcast %19 : vector<1x1x32xf32> to vector<1x64x32xf32>
    %21 = arith.mulf %18, %20 : vector<1x64x32xf32>
    %c0_9 = arith.constant 0 : index
    %c0_10 = arith.constant 0 : index
    %c0_11 = arith.constant 0 : index
    %22 = vector.load %arg3[%c0_9, %c0_10, %c0_11] : memref<1x1x32xf32, #tpu.memory_space<vmem>>, vector<1x1x32xf32>
    %23 = vector.broadcast %22 : vector<1x1x32xf32> to vector<1x64x32xf32>
    %24 = arith.addf %21, %23 : vector<1x64x32xf32>
    %cst_12 = arith.constant 0.000000e+00 : f32
    %25 = vector.broadcast %cst_12 : f32 to vector<1x64x32xf32>
    %26 = arith.maximumf %24, %25 : vector<1x64x32xf32>
    %c0_13 = arith.constant 0 : index
    %c0_14 = arith.constant 0 : index
    %c0_15 = arith.constant 0 : index
    %27 = vector.load %arg4[%c0_13, %c0_14, %c0_15] : memref<1x64x32xf32, #tpu.memory_space<vmem>>, vector<1x64x32xf32>
    tpu.vector_store %arg4[%c0_13, %c0_14, %c0_15], %26 {strides = array<i32>} : memref<1x64x32xf32, #tpu.memory_space<vmem>>, vector<1x64x32xf32>,
    return
  }
  func.func @transform_0(%arg0: i32) -> (i32, i32, i32) {
    %c0_i32 = arith.constant 0 : i32
    %c0_i32_0 = arith.constant 0 : i32
    %c0_i32_1 = arith.constant 0 : i32
    return %arg0, %c0_i32, %c0_i32_0 : i32, i32, i32
  }
  func.func @transform_1(%arg0: i32) -> (i32, i32, i32) {
    %c0_i32 = arith.constant 0 : i32
    %c0_i32_0 = arith.constant 0 : i32
    %c0_i32_1 = arith.constant 0 : i32
    return %arg0, %c0_i32, %c0_i32_0 : i32, i32, i32
  }
  func.func @transform_2(%arg0: i32) -> (i32, i32, i32) {
    %c0_i32 = arith.constant 0 : i32
    %c0_i32_0 = arith.constant 0 : i32
    %c0_i32_1 = arith.constant 0 : i32
    return %arg0, %c0_i32, %c0_i32_0 : i32, i32, i32
  }
  func.func @transform_3(%arg0: i32) -> (i32, i32, i32) {
    %c0_i32 = arith.constant 0 : i32
    %c0_i32_0 = arith.constant 0 : i32
    %c0_i32_1 = arith.constant 0 : i32
    return %arg0, %c0_i32, %c0_i32_0 : i32, i32, i32
  }
}

module attributes {stable_mosaic.version = 11 : i64} {
  func.func @_matmul_bias_kernel(%arg0: i32, %arg1: i32, %arg2: i32, %arg3: memref<32x128xbf16, #tpu.memory_space<vmem>>, %arg4: memref<128x128xbf16, #tpu.memory_space<vmem>>, %arg5: memref<1x128xf32, #tpu.memory_space<vmem>>, %arg6: memref<32x128xf32, #tpu.memory_space<vmem>>, %arg7: memref<32x128xf32, #tpu.memory_space<vmem>>) attributes {dimension_semantics = [#tpu.dimension_semantics<parallel>, #tpu.dimension_semantics<parallel>, #tpu.dimension_semantics<arbitrary>], iteration_bounds = array<i64: 1, 1, 3>, scalar_prefetch = 0 : i64, scratch_operands = 1 : i64, tpu.core_type = #tpu.core_type<tc>, window_params = [{transform_indices = @transform_0, window_bounds = array<i64: 32, 128>}, {transform_indices = @transform_1, window_bounds = array<i64: 128, 128>}, {transform_indices = @transform_2, window_bounds = array<i64: 1, 128>}, {transform_indices = @transform_3, window_bounds = array<i64: 32, 128>}]} {
    %c0_i32 = arith.constant 0 : i32
    %0 = arith.cmpi eq, %arg2, %c0_i32 : i32
    %1 = arith.extui %0 : i1 to i32
    %c0_i32_0 = arith.constant 0 : i32
    %2 = arith.cmpi ne, %1, %c0_i32_0 : i32
    scf.if %2 {
      %cst_9 = arith.constant 0.000000e+00 : f32
      %12 = vector.broadcast %cst_9 : f32 to vector<32x128xf32>
      %c0_10 = arith.constant 0 : index
      %c0_11 = arith.constant 0 : index
      %13 = vector.load %arg7[%c0_10, %c0_11] : memref<32x128xf32, #tpu.memory_space<vmem>>, vector<32x128xf32>
      tpu.vector_store %arg7[%c0_10, %c0_11], %12 {strides = array<i32>} : memref<32x128xf32, #tpu.memory_space<vmem>>, vector<32x128xf32>,
    } else {
    }
    %c0 = arith.constant 0 : index
    %c0_1 = arith.constant 0 : index
    %3 = vector.load %arg7[%c0, %c0_1] : memref<32x128xf32, #tpu.memory_space<vmem>>, vector<32x128xf32>
    %c0_2 = arith.constant 0 : index
    %c0_3 = arith.constant 0 : index
    %4 = vector.load %arg3[%c0_2, %c0_3] : memref<32x128xbf16, #tpu.memory_space<vmem>>, vector<32x128xbf16>
    %c0_4 = arith.constant 0 : index
    %c0_5 = arith.constant 0 : index
    %5 = vector.load %arg4[%c0_4, %c0_5] : memref<128x128xbf16, #tpu.memory_space<vmem>>, vector<128x128xbf16>
    %cst = arith.constant dense<0.000000e+00> : vector<32x128xf32>
    %6 = tpu.matmul %4, %5, %cst {dimension_numbers = #tpu.dot_dimension_numbers<[1], [0], [0], [1], [0, 0, 1, 1], [], []>} : vector<32x128xbf16>, vector<128x128xbf16>, vector<32x128xf32> -> vector<32x128xf32>
    %7 = arith.addf %3, %6 : vector<32x128xf32>
    %c0_6 = arith.constant 0 : index
    %c0_7 = arith.constant 0 : index
    %8 = vector.load %arg7[%c0_6, %c0_7] : memref<32x128xf32, #tpu.memory_space<vmem>>, vector<32x128xf32>
    tpu.vector_store %arg7[%c0_6, %c0_7], %7 {strides = array<i32>} : memref<32x128xf32, #tpu.memory_space<vmem>>, vector<32x128xf32>,
    %c2_i32 = arith.constant 2 : i32
    %9 = arith.cmpi eq, %arg2, %c2_i32 : i32
    %10 = arith.extui %9 : i1 to i32
    %c0_i32_8 = arith.constant 0 : i32
    %11 = arith.cmpi ne, %10, %c0_i32_8 : i32
    scf.if %11 {
      %c0_9 = arith.constant 0 : index
      %c0_10 = arith.constant 0 : index
      %12 = vector.load %arg7[%c0_9, %c0_10] : memref<32x128xf32, #tpu.memory_space<vmem>>, vector<32x128xf32>
      %c0_11 = arith.constant 0 : index
      %c0_12 = arith.constant 0 : index
      %13 = vector.load %arg5[%c0_11, %c0_12] : memref<1x128xf32, #tpu.memory_space<vmem>>, vector<1x128xf32>
      %14 = vector.broadcast %13 : vector<1x128xf32> to vector<32x128xf32>
      %15 = arith.addf %12, %14 : vector<32x128xf32>
      %c0_13 = arith.constant 0 : index
      %c0_14 = arith.constant 0 : index
      %16 = vector.load %arg6[%c0_13, %c0_14] : memref<32x128xf32, #tpu.memory_space<vmem>>, vector<32x128xf32>
      tpu.vector_store %arg6[%c0_13, %c0_14], %15 {strides = array<i32>} : memref<32x128xf32, #tpu.memory_space<vmem>>, vector<32x128xf32>,
    } else {
    }
    return
  }
  func.func @transform_0(%arg0: i32, %arg1: i32, %arg2: i32) -> (i32, i32) {
    %c0_i32 = arith.constant 0 : i32
    return %arg0, %arg2 : i32, i32
  }
  func.func @transform_1(%arg0: i32, %arg1: i32, %arg2: i32) -> (i32, i32) {
    %c0_i32 = arith.constant 0 : i32
    return %arg2, %arg1 : i32, i32
  }
  func.func @transform_2(%arg0: i32, %arg1: i32, %arg2: i32) -> (i32, i32) {
    %c0_i32 = arith.constant 0 : i32
    %c0_i32_0 = arith.constant 0 : i32
    return %c0_i32, %arg1 : i32, i32
  }
  func.func @transform_3(%arg0: i32, %arg1: i32, %arg2: i32) -> (i32, i32) {
    %c0_i32 = arith.constant 0 : i32
    return %arg0, %arg1 : i32, i32
  }
}

module attributes {stable_mosaic.version = 11 : i64} {
  func.func @_adain_kernel(%arg0: i32, %arg1: memref<1x16x64xf32, #tpu.memory_space<vmem>>, %arg2: memref<1x1x64xf32, #tpu.memory_space<vmem>>, %arg3: memref<1x1x64xf32, #tpu.memory_space<vmem>>, %arg4: memref<1x16x64xf32, #tpu.memory_space<vmem>>) attributes {dimension_semantics = [#tpu.dimension_semantics<parallel>], iteration_bounds = array<i64: 2>, scalar_prefetch = 0 : i64, scratch_operands = 0 : i64, tpu.core_type = #tpu.core_type<tc>, window_params = [{transform_indices = @transform_0, window_bounds = array<i64: 1, 16, 64>}, {transform_indices = @transform_1, window_bounds = array<i64: 1, 1, 64>}, {transform_indices = @transform_2, window_bounds = array<i64: 1, 1, 64>}, {transform_indices = @transform_3, window_bounds = array<i64: 1, 16, 64>}]} {
    %c0 = arith.constant 0 : index
    %c0_0 = arith.constant 0 : index
    %c0_1 = arith.constant 0 : index
    %0 = vector.load %arg1[%c0, %c0_0, %c0_1] : memref<1x16x64xf32, #tpu.memory_space<vmem>>, vector<1x16x64xf32>
    %cst = arith.constant dense<0.000000e+00> : vector<1x64xf32>
    %1 = vector.multi_reduction <add>, %0, %cst [1] : vector<1x16x64xf32> to vector<1x64xf32>
    %2 = vector.shape_cast %1 : vector<1x64xf32> to vector<1x1x64xf32>
    %3 = arith.mulf %0, %0 : vector<1x16x64xf32>
    %cst_2 = arith.constant dense<0.000000e+00> : vector<1x64xf32>
    %4 = vector.multi_reduction <add>, %3, %cst_2 [1] : vector<1x16x64xf32> to vector<1x64xf32>
    %5 = vector.shape_cast %4 : vector<1x64xf32> to vector<1x1x64xf32>
    %cst_3 = arith.constant 6.250000e-02 : f32
    %6 = vector.broadcast %cst_3 : f32 to vector<1x1x64xf32>
    %7 = arith.mulf %2, %6 : vector<1x1x64xf32>
    %8 = arith.mulf %2, %7 : vector<1x1x64xf32>
    %9 = arith.subf %5, %8 : vector<1x1x64xf32>
    %cst_4 = arith.constant 0.0666666701 : f32
    %10 = vector.broadcast %cst_4 : f32 to vector<1x1x64xf32>
    %11 = arith.mulf %9, %10 : vector<1x1x64xf32>
    %12 = vector.broadcast %7 : vector<1x1x64xf32> to vector<1x16x64xf32>
    %13 = arith.subf %0, %12 : vector<1x16x64xf32>
    %cst_5 = arith.constant 9.99999974E-6 : f32
    %14 = vector.broadcast %cst_5 : f32 to vector<1x1x64xf32>
    %15 = arith.addf %11, %14 : vector<1x1x64xf32>
    %16 = math.rsqrt %15 : vector<1x1x64xf32>
    %17 = vector.broadcast %16 : vector<1x1x64xf32> to vector<1x16x64xf32>
    %18 = arith.mulf %13, %17 : vector<1x16x64xf32>
    %c0_6 = arith.constant 0 : index
    %c0_7 = arith.constant 0 : index
    %c0_8 = arith.constant 0 : index
    %19 = vector.load %arg2[%c0_6, %c0_7, %c0_8] : memref<1x1x64xf32, #tpu.memory_space<vmem>>, vector<1x1x64xf32>
    %20 = vector.broadcast %19 : vector<1x1x64xf32> to vector<1x16x64xf32>
    %21 = arith.mulf %18, %20 : vector<1x16x64xf32>
    %c0_9 = arith.constant 0 : index
    %c0_10 = arith.constant 0 : index
    %c0_11 = arith.constant 0 : index
    %22 = vector.load %arg3[%c0_9, %c0_10, %c0_11] : memref<1x1x64xf32, #tpu.memory_space<vmem>>, vector<1x1x64xf32>
    %23 = vector.broadcast %22 : vector<1x1x64xf32> to vector<1x16x64xf32>
    %24 = arith.addf %21, %23 : vector<1x16x64xf32>
    %cst_12 = arith.constant 0.000000e+00 : f32
    %25 = vector.broadcast %cst_12 : f32 to vector<1x16x64xf32>
    %26 = arith.maximumf %24, %25 : vector<1x16x64xf32>
    %c0_13 = arith.constant 0 : index
    %c0_14 = arith.constant 0 : index
    %c0_15 = arith.constant 0 : index
    %27 = vector.load %arg4[%c0_13, %c0_14, %c0_15] : memref<1x16x64xf32, #tpu.memory_space<vmem>>, vector<1x16x64xf32>
    tpu.vector_store %arg4[%c0_13, %c0_14, %c0_15], %26 {strides = array<i32>} : memref<1x16x64xf32, #tpu.memory_space<vmem>>, vector<1x16x64xf32>,
    return
  }
  func.func @transform_0(%arg0: i32) -> (i32, i32, i32) {
    %c0_i32 = arith.constant 0 : i32
    %c0_i32_0 = arith.constant 0 : i32
    %c0_i32_1 = arith.constant 0 : i32
    return %arg0, %c0_i32, %c0_i32_0 : i32, i32, i32
  }
  func.func @transform_1(%arg0: i32) -> (i32, i32, i32) {
    %c0_i32 = arith.constant 0 : i32
    %c0_i32_0 = arith.constant 0 : i32
    %c0_i32_1 = arith.constant 0 : i32
    return %arg0, %c0_i32, %c0_i32_0 : i32, i32, i32
  }
  func.func @transform_2(%arg0: i32) -> (i32, i32, i32) {
    %c0_i32 = arith.constant 0 : i32
    %c0_i32_0 = arith.constant 0 : i32
    %c0_i32_1 = arith.constant 0 : i32
    return %arg0, %c0_i32, %c0_i32_0 : i32, i32, i32
  }
  func.func @transform_3(%arg0: i32) -> (i32, i32, i32) {
    %c0_i32 = arith.constant 0 : i32
    %c0_i32_0 = arith.constant 0 : i32
    %c0_i32_1 = arith.constant 0 : i32
    return %arg0, %c0_i32, %c0_i32_0 : i32, i32, i32
  }
}

module attributes {stable_mosaic.version = 11 : i64} {
  func.func @_matmul_bias_kernel(%arg0: i32, %arg1: i32, %arg2: i32, %arg3: memref<32x128xbf16, #tpu.memory_space<vmem>>, %arg4: memref<128x128xbf16, #tpu.memory_space<vmem>>, %arg5: memref<1x128xf32, #tpu.memory_space<vmem>>, %arg6: memref<32x128xf32, #tpu.memory_space<vmem>>, %arg7: memref<32x128xf32, #tpu.memory_space<vmem>>) attributes {dimension_semantics = [#tpu.dimension_semantics<parallel>, #tpu.dimension_semantics<parallel>, #tpu.dimension_semantics<arbitrary>], iteration_bounds = array<i64: 1, 1, 5>, scalar_prefetch = 0 : i64, scratch_operands = 1 : i64, tpu.core_type = #tpu.core_type<tc>, window_params = [{transform_indices = @transform_0, window_bounds = array<i64: 32, 128>}, {transform_indices = @transform_1, window_bounds = array<i64: 128, 128>}, {transform_indices = @transform_2, window_bounds = array<i64: 1, 128>}, {transform_indices = @transform_3, window_bounds = array<i64: 32, 128>}]} {
    %c0_i32 = arith.constant 0 : i32
    %0 = arith.cmpi eq, %arg2, %c0_i32 : i32
    %1 = arith.extui %0 : i1 to i32
    %c0_i32_0 = arith.constant 0 : i32
    %2 = arith.cmpi ne, %1, %c0_i32_0 : i32
    scf.if %2 {
      %cst_9 = arith.constant 0.000000e+00 : f32
      %12 = vector.broadcast %cst_9 : f32 to vector<32x128xf32>
      %c0_10 = arith.constant 0 : index
      %c0_11 = arith.constant 0 : index
      %13 = vector.load %arg7[%c0_10, %c0_11] : memref<32x128xf32, #tpu.memory_space<vmem>>, vector<32x128xf32>
      tpu.vector_store %arg7[%c0_10, %c0_11], %12 {strides = array<i32>} : memref<32x128xf32, #tpu.memory_space<vmem>>, vector<32x128xf32>,
    } else {
    }
    %c0 = arith.constant 0 : index
    %c0_1 = arith.constant 0 : index
    %3 = vector.load %arg7[%c0, %c0_1] : memref<32x128xf32, #tpu.memory_space<vmem>>, vector<32x128xf32>
    %c0_2 = arith.constant 0 : index
    %c0_3 = arith.constant 0 : index
    %4 = vector.load %arg3[%c0_2, %c0_3] : memref<32x128xbf16, #tpu.memory_space<vmem>>, vector<32x128xbf16>
    %c0_4 = arith.constant 0 : index
    %c0_5 = arith.constant 0 : index
    %5 = vector.load %arg4[%c0_4, %c0_5] : memref<128x128xbf16, #tpu.memory_space<vmem>>, vector<128x128xbf16>
    %cst = arith.constant dense<0.000000e+00> : vector<32x128xf32>
    %6 = tpu.matmul %4, %5, %cst {dimension_numbers = #tpu.dot_dimension_numbers<[1], [0], [0], [1], [0, 0, 1, 1], [], []>} : vector<32x128xbf16>, vector<128x128xbf16>, vector<32x128xf32> -> vector<32x128xf32>
    %7 = arith.addf %3, %6 : vector<32x128xf32>
    %c0_6 = arith.constant 0 : index
    %c0_7 = arith.constant 0 : index
    %8 = vector.load %arg7[%c0_6, %c0_7] : memref<32x128xf32, #tpu.memory_space<vmem>>, vector<32x128xf32>
    tpu.vector_store %arg7[%c0_6, %c0_7], %7 {strides = array<i32>} : memref<32x128xf32, #tpu.memory_space<vmem>>, vector<32x128xf32>,
    %c4_i32 = arith.constant 4 : i32
    %9 = arith.cmpi eq, %arg2, %c4_i32 : i32
    %10 = arith.extui %9 : i1 to i32
    %c0_i32_8 = arith.constant 0 : i32
    %11 = arith.cmpi ne, %10, %c0_i32_8 : i32
    scf.if %11 {
      %c0_9 = arith.constant 0 : index
      %c0_10 = arith.constant 0 : index
      %12 = vector.load %arg7[%c0_9, %c0_10] : memref<32x128xf32, #tpu.memory_space<vmem>>, vector<32x128xf32>
      %c0_11 = arith.constant 0 : index
      %c0_12 = arith.constant 0 : index
      %13 = vector.load %arg5[%c0_11, %c0_12] : memref<1x128xf32, #tpu.memory_space<vmem>>, vector<1x128xf32>
      %14 = vector.broadcast %13 : vector<1x128xf32> to vector<32x128xf32>
      %15 = arith.addf %12, %14 : vector<32x128xf32>
      %c0_13 = arith.constant 0 : index
      %c0_14 = arith.constant 0 : index
      %16 = vector.load %arg6[%c0_13, %c0_14] : memref<32x128xf32, #tpu.memory_space<vmem>>, vector<32x128xf32>
      tpu.vector_store %arg6[%c0_13, %c0_14], %15 {strides = array<i32>} : memref<32x128xf32, #tpu.memory_space<vmem>>, vector<32x128xf32>,
    } else {
    }
    return
  }
  func.func @transform_0(%arg0: i32, %arg1: i32, %arg2: i32) -> (i32, i32) {
    %c0_i32 = arith.constant 0 : i32
    return %arg0, %arg2 : i32, i32
  }
  func.func @transform_1(%arg0: i32, %arg1: i32, %arg2: i32) -> (i32, i32) {
    %c0_i32 = arith.constant 0 : i32
    return %arg2, %arg1 : i32, i32
  }
  func.func @transform_2(%arg0: i32, %arg1: i32, %arg2: i32) -> (i32, i32) {
    %c0_i32 = arith.constant 0 : i32
    %c0_i32_0 = arith.constant 0 : i32
    return %c0_i32, %arg1 : i32, i32
  }
  func.func @transform_3(%arg0: i32, %arg1: i32, %arg2: i32) -> (i32, i32) {
    %c0_i32 = arith.constant 0 : i32
    return %arg0, %arg1 : i32, i32
  }
}

module attributes {stable_mosaic.version = 11 : i64} {
  func.func @_adain_res_kernel(%arg0: i32, %arg1: memref<1x16x64xf32, #tpu.memory_space<vmem>>, %arg2: memref<1x1x64xf32, #tpu.memory_space<vmem>>, %arg3: memref<1x1x64xf32, #tpu.memory_space<vmem>>, %arg4: memref<1x16x64xf32, #tpu.memory_space<vmem>>, %arg5: memref<1x16x64xf32, #tpu.memory_space<vmem>>) attributes {dimension_semantics = [#tpu.dimension_semantics<parallel>], iteration_bounds = array<i64: 2>, scalar_prefetch = 0 : i64, scratch_operands = 0 : i64, tpu.core_type = #tpu.core_type<tc>, window_params = [{transform_indices = @transform_0, window_bounds = array<i64: 1, 16, 64>}, {transform_indices = @transform_1, window_bounds = array<i64: 1, 1, 64>}, {transform_indices = @transform_2, window_bounds = array<i64: 1, 1, 64>}, {transform_indices = @transform_3, window_bounds = array<i64: 1, 16, 64>}, {transform_indices = @transform_4, window_bounds = array<i64: 1, 16, 64>}]} {
    %c0 = arith.constant 0 : index
    %c0_0 = arith.constant 0 : index
    %c0_1 = arith.constant 0 : index
    %0 = vector.load %arg1[%c0, %c0_0, %c0_1] : memref<1x16x64xf32, #tpu.memory_space<vmem>>, vector<1x16x64xf32>
    %cst = arith.constant dense<0.000000e+00> : vector<1x64xf32>
    %1 = vector.multi_reduction <add>, %0, %cst [1] : vector<1x16x64xf32> to vector<1x64xf32>
    %2 = vector.shape_cast %1 : vector<1x64xf32> to vector<1x1x64xf32>
    %3 = arith.mulf %0, %0 : vector<1x16x64xf32>
    %cst_2 = arith.constant dense<0.000000e+00> : vector<1x64xf32>
    %4 = vector.multi_reduction <add>, %3, %cst_2 [1] : vector<1x16x64xf32> to vector<1x64xf32>
    %5 = vector.shape_cast %4 : vector<1x64xf32> to vector<1x1x64xf32>
    %cst_3 = arith.constant 6.250000e-02 : f32
    %6 = vector.broadcast %cst_3 : f32 to vector<1x1x64xf32>
    %7 = arith.mulf %2, %6 : vector<1x1x64xf32>
    %8 = arith.mulf %2, %7 : vector<1x1x64xf32>
    %9 = arith.subf %5, %8 : vector<1x1x64xf32>
    %cst_4 = arith.constant 0.0666666701 : f32
    %10 = vector.broadcast %cst_4 : f32 to vector<1x1x64xf32>
    %11 = arith.mulf %9, %10 : vector<1x1x64xf32>
    %12 = vector.broadcast %7 : vector<1x1x64xf32> to vector<1x16x64xf32>
    %13 = arith.subf %0, %12 : vector<1x16x64xf32>
    %cst_5 = arith.constant 9.99999974E-6 : f32
    %14 = vector.broadcast %cst_5 : f32 to vector<1x1x64xf32>
    %15 = arith.addf %11, %14 : vector<1x1x64xf32>
    %16 = math.rsqrt %15 : vector<1x1x64xf32>
    %17 = vector.broadcast %16 : vector<1x1x64xf32> to vector<1x16x64xf32>
    %18 = arith.mulf %13, %17 : vector<1x16x64xf32>
    %c0_6 = arith.constant 0 : index
    %c0_7 = arith.constant 0 : index
    %c0_8 = arith.constant 0 : index
    %19 = vector.load %arg2[%c0_6, %c0_7, %c0_8] : memref<1x1x64xf32, #tpu.memory_space<vmem>>, vector<1x1x64xf32>
    %20 = vector.broadcast %19 : vector<1x1x64xf32> to vector<1x16x64xf32>
    %21 = arith.mulf %18, %20 : vector<1x16x64xf32>
    %c0_9 = arith.constant 0 : index
    %c0_10 = arith.constant 0 : index
    %c0_11 = arith.constant 0 : index
    %22 = vector.load %arg3[%c0_9, %c0_10, %c0_11] : memref<1x1x64xf32, #tpu.memory_space<vmem>>, vector<1x1x64xf32>
    %23 = vector.broadcast %22 : vector<1x1x64xf32> to vector<1x16x64xf32>
    %24 = arith.addf %21, %23 : vector<1x16x64xf32>
    %c0_12 = arith.constant 0 : index
    %c0_13 = arith.constant 0 : index
    %c0_14 = arith.constant 0 : index
    %25 = vector.load %arg4[%c0_12, %c0_13, %c0_14] : memref<1x16x64xf32, #tpu.memory_space<vmem>>, vector<1x16x64xf32>
    %26 = arith.addf %24, %25 : vector<1x16x64xf32>
    %c0_15 = arith.constant 0 : index
    %c0_16 = arith.constant 0 : index
    %c0_17 = arith.constant 0 : index
    %27 = vector.load %arg5[%c0_15, %c0_16, %c0_17] : memref<1x16x64xf32, #tpu.memory_space<vmem>>, vector<1x16x64xf32>
    tpu.vector_store %arg5[%c0_15, %c0_16, %c0_17], %26 {strides = array<i32>} : memref<1x16x64xf32, #tpu.memory_space<vmem>>, vector<1x16x64xf32>,
    return
  }
  func.func @transform_0(%arg0: i32) -> (i32, i32, i32) {
    %c0_i32 = arith.constant 0 : i32
    %c0_i32_0 = arith.constant 0 : i32
    %c0_i32_1 = arith.constant 0 : i32
    return %arg0, %c0_i32, %c0_i32_0 : i32, i32, i32
  }
  func.func @transform_1(%arg0: i32) -> (i32, i32, i32) {
    %c0_i32 = arith.constant 0 : i32
    %c0_i32_0 = arith.constant 0 : i32
    %c0_i32_1 = arith.constant 0 : i32
    return %arg0, %c0_i32, %c0_i32_0 : i32, i32, i32
  }
  func.func @transform_2(%arg0: i32) -> (i32, i32, i32) {
    %c0_i32 = arith.constant 0 : i32
    %c0_i32_0 = arith.constant 0 : i32
    %c0_i32_1 = arith.constant 0 : i32
    return %arg0, %c0_i32, %c0_i32_0 : i32, i32, i32
  }
  func.func @transform_3(%arg0: i32) -> (i32, i32, i32) {
    %c0_i32 = arith.constant 0 : i32
    %c0_i32_0 = arith.constant 0 : i32
    %c0_i32_1 = arith.constant 0 : i32
    return %arg0, %c0_i32, %c0_i32_0 : i32, i32, i32
  }
  func.func @transform_4(%arg0: i32) -> (i32, i32, i32) {
    %c0_i32 = arith.constant 0 : i32
    %c0_i32_0 = arith.constant 0 : i32
    %c0_i32_1 = arith.constant 0 : i32
    return %arg0, %c0_i32, %c0_i32_0 : i32, i32, i32
  }
}

module attributes {stable_mosaic.version = 11 : i64} {
  func.func @_matmul_bias_kernel(%arg0: i32, %arg1: i32, %arg2: i32, %arg3: memref<32x256xbf16, #tpu.memory_space<vmem>>, %arg4: memref<256x128xbf16, #tpu.memory_space<vmem>>, %arg5: memref<1x128xf32, #tpu.memory_space<vmem>>, %arg6: memref<32x128xf32, #tpu.memory_space<vmem>>, %arg7: memref<32x128xf32, #tpu.memory_space<vmem>>) attributes {dimension_semantics = [#tpu.dimension_semantics<parallel>, #tpu.dimension_semantics<parallel>, #tpu.dimension_semantics<arbitrary>], iteration_bounds = array<i64: 1, 1, 1>, scalar_prefetch = 0 : i64, scratch_operands = 1 : i64, tpu.core_type = #tpu.core_type<tc>, window_params = [{transform_indices = @transform_0, window_bounds = array<i64: 32, 256>}, {transform_indices = @transform_1, window_bounds = array<i64: 256, 128>}, {transform_indices = @transform_2, window_bounds = array<i64: 1, 128>}, {transform_indices = @transform_3, window_bounds = array<i64: 32, 128>}]} {
    %c0_i32 = arith.constant 0 : i32
    %0 = arith.cmpi eq, %arg2, %c0_i32 : i32
    %1 = arith.extui %0 : i1 to i32
    %c0_i32_0 = arith.constant 0 : i32
    %2 = arith.cmpi ne, %1, %c0_i32_0 : i32
    scf.if %2 {
      %cst_10 = arith.constant 0.000000e+00 : f32
      %12 = vector.broadcast %cst_10 : f32 to vector<32x128xf32>
      %c0_11 = arith.constant 0 : index
      %c0_12 = arith.constant 0 : index
      %13 = vector.load %arg7[%c0_11, %c0_12] : memref<32x128xf32, #tpu.memory_space<vmem>>, vector<32x128xf32>
      tpu.vector_store %arg7[%c0_11, %c0_12], %12 {strides = array<i32>} : memref<32x128xf32, #tpu.memory_space<vmem>>, vector<32x128xf32>,
    } else {
    }
    %c0 = arith.constant 0 : index
    %c0_1 = arith.constant 0 : index
    %3 = vector.load %arg7[%c0, %c0_1] : memref<32x128xf32, #tpu.memory_space<vmem>>, vector<32x128xf32>
    %c0_2 = arith.constant 0 : index
    %c0_3 = arith.constant 0 : index
    %4 = vector.load %arg3[%c0_2, %c0_3] : memref<32x256xbf16, #tpu.memory_space<vmem>>, vector<32x256xbf16>
    %c0_4 = arith.constant 0 : index
    %c0_5 = arith.constant 0 : index
    %5 = vector.load %arg4[%c0_4, %c0_5] : memref<256x128xbf16, #tpu.memory_space<vmem>>, vector<256x128xbf16>
    %cst = arith.constant dense<0.000000e+00> : vector<32x128xf32>
    %6 = tpu.matmul %4, %5, %cst {dimension_numbers = #tpu.dot_dimension_numbers<[1], [0], [0], [1], [0, 0, 1, 1], [], []>} : vector<32x256xbf16>, vector<256x128xbf16>, vector<32x128xf32> -> vector<32x128xf32>
    %7 = arith.addf %3, %6 : vector<32x128xf32>
    %c0_6 = arith.constant 0 : index
    %c0_7 = arith.constant 0 : index
    %8 = vector.load %arg7[%c0_6, %c0_7] : memref<32x128xf32, #tpu.memory_space<vmem>>, vector<32x128xf32>
    tpu.vector_store %arg7[%c0_6, %c0_7], %7 {strides = array<i32>} : memref<32x128xf32, #tpu.memory_space<vmem>>, vector<32x128xf32>,
    %c0_i32_8 = arith.constant 0 : i32
    %9 = arith.cmpi eq, %arg2, %c0_i32_8 : i32
    %10 = arith.extui %9 : i1 to i32
    %c0_i32_9 = arith.constant 0 : i32
    %11 = arith.cmpi ne, %10, %c0_i32_9 : i32
    scf.if %11 {
      %c0_10 = arith.constant 0 : index
      %c0_11 = arith.constant 0 : index
      %12 = vector.load %arg7[%c0_10, %c0_11] : memref<32x128xf32, #tpu.memory_space<vmem>>, vector<32x128xf32>
      %c0_12 = arith.constant 0 : index
      %c0_13 = arith.constant 0 : index
      %13 = vector.load %arg5[%c0_12, %c0_13] : memref<1x128xf32, #tpu.memory_space<vmem>>, vector<1x128xf32>
      %14 = vector.broadcast %13 : vector<1x128xf32> to vector<32x128xf32>
      %15 = arith.addf %12, %14 : vector<32x128xf32>
      %c0_14 = arith.constant 0 : index
      %c0_15 = arith.constant 0 : index
      %16 = vector.load %arg6[%c0_14, %c0_15] : memref<32x128xf32, #tpu.memory_space<vmem>>, vector<32x128xf32>
      tpu.vector_store %arg6[%c0_14, %c0_15], %15 {strides = array<i32>} : memref<32x128xf32, #tpu.memory_space<vmem>>, vector<32x128xf32>,
    } else {
    }
    return
  }
  func.func @transform_0(%arg0: i32, %arg1: i32, %arg2: i32) -> (i32, i32) {
    %c0_i32 = arith.constant 0 : i32
    return %arg0, %arg2 : i32, i32
  }
  func.func @transform_1(%arg0: i32, %arg1: i32, %arg2: i32) -> (i32, i32) {
    %c0_i32 = arith.constant 0 : i32
    return %arg2, %arg1 : i32, i32
  }
  func.func @transform_2(%arg0: i32, %arg1: i32, %arg2: i32) -> (i32, i32) {
    %c0_i32 = arith.constant 0 : i32
    %c0_i32_0 = arith.constant 0 : i32
    return %c0_i32, %arg1 : i32, i32
  }
  func.func @transform_3(%arg0: i32, %arg1: i32, %arg2: i32) -> (i32, i32) {
    %c0_i32 = arith.constant 0 : i32
    return %arg0, %arg1 : i32, i32
  }
}

module attributes {stable_mosaic.version = 11 : i64} {
  func.func @_matmul_bias_kernel(%arg0: i32, %arg1: i32, %arg2: i32, %arg3: memref<128x128xbf16, #tpu.memory_space<vmem>>, %arg4: memref<128x128xbf16, #tpu.memory_space<vmem>>, %arg5: memref<1x128xf32, #tpu.memory_space<vmem>>, %arg6: memref<128x128xf32, #tpu.memory_space<vmem>>, %arg7: memref<128x128xf32, #tpu.memory_space<vmem>>) attributes {dimension_semantics = [#tpu.dimension_semantics<parallel>, #tpu.dimension_semantics<parallel>, #tpu.dimension_semantics<arbitrary>], iteration_bounds = array<i64: 1, 1, 1>, scalar_prefetch = 0 : i64, scratch_operands = 1 : i64, tpu.core_type = #tpu.core_type<tc>, window_params = [{transform_indices = @transform_0, window_bounds = array<i64: 128, 128>}, {transform_indices = @transform_1, window_bounds = array<i64: 128, 128>}, {transform_indices = @transform_2, window_bounds = array<i64: 1, 128>}, {transform_indices = @transform_3, window_bounds = array<i64: 128, 128>}]} {
    %c0_i32 = arith.constant 0 : i32
    %0 = arith.cmpi eq, %arg2, %c0_i32 : i32
    %1 = arith.extui %0 : i1 to i32
    %c0_i32_0 = arith.constant 0 : i32
    %2 = arith.cmpi ne, %1, %c0_i32_0 : i32
    scf.if %2 {
      %cst_10 = arith.constant 0.000000e+00 : f32
      %12 = vector.broadcast %cst_10 : f32 to vector<128x128xf32>
      %c0_11 = arith.constant 0 : index
      %c0_12 = arith.constant 0 : index
      %13 = vector.load %arg7[%c0_11, %c0_12] : memref<128x128xf32, #tpu.memory_space<vmem>>, vector<128x128xf32>
      tpu.vector_store %arg7[%c0_11, %c0_12], %12 {strides = array<i32>} : memref<128x128xf32, #tpu.memory_space<vmem>>, vector<128x128xf32>,
    } else {
    }
    %c0 = arith.constant 0 : index
    %c0_1 = arith.constant 0 : index
    %3 = vector.load %arg7[%c0, %c0_1] : memref<128x128xf32, #tpu.memory_space<vmem>>, vector<128x128xf32>
    %c0_2 = arith.constant 0 : index
    %c0_3 = arith.constant 0 : index
    %4 = vector.load %arg3[%c0_2, %c0_3] : memref<128x128xbf16, #tpu.memory_space<vmem>>, vector<128x128xbf16>
    %c0_4 = arith.constant 0 : index
    %c0_5 = arith.constant 0 : index
    %5 = vector.load %arg4[%c0_4, %c0_5] : memref<128x128xbf16, #tpu.memory_space<vmem>>, vector<128x128xbf16>
    %cst = arith.constant dense<0.000000e+00> : vector<128x128xf32>
    %6 = tpu.matmul %4, %5, %cst {dimension_numbers = #tpu.dot_dimension_numbers<[1], [0], [0], [1], [0, 0, 1, 1], [], []>} : vector<128x128xbf16>, vector<128x128xbf16>, vector<128x128xf32> -> vector<128x128xf32>
    %7 = arith.addf %3, %6 : vector<128x128xf32>
    %c0_6 = arith.constant 0 : index
    %c0_7 = arith.constant 0 : index
    %8 = vector.load %arg7[%c0_6, %c0_7] : memref<128x128xf32, #tpu.memory_space<vmem>>, vector<128x128xf32>
    tpu.vector_store %arg7[%c0_6, %c0_7], %7 {strides = array<i32>} : memref<128x128xf32, #tpu.memory_space<vmem>>, vector<128x128xf32>,
    %c0_i32_8 = arith.constant 0 : i32
    %9 = arith.cmpi eq, %arg2, %c0_i32_8 : i32
    %10 = arith.extui %9 : i1 to i32
    %c0_i32_9 = arith.constant 0 : i32
    %11 = arith.cmpi ne, %10, %c0_i32_9 : i32
    scf.if %11 {
      %c0_10 = arith.constant 0 : index
      %c0_11 = arith.constant 0 : index
      %12 = vector.load %arg7[%c0_10, %c0_11] : memref<128x128xf32, #tpu.memory_space<vmem>>, vector<128x128xf32>
      %c0_12 = arith.constant 0 : index
      %c0_13 = arith.constant 0 : index
      %13 = vector.load %arg5[%c0_12, %c0_13] : memref<1x128xf32, #tpu.memory_space<vmem>>, vector<1x128xf32>
      %14 = vector.broadcast %13 : vector<1x128xf32> to vector<128x128xf32>
      %15 = arith.addf %12, %14 : vector<128x128xf32>
      %c0_14 = arith.constant 0 : index
      %c0_15 = arith.constant 0 : index
      %16 = vector.load %arg6[%c0_14, %c0_15] : memref<128x128xf32, #tpu.memory_space<vmem>>, vector<128x128xf32>
      tpu.vector_store %arg6[%c0_14, %c0_15], %15 {strides = array<i32>} : memref<128x128xf32, #tpu.memory_space<vmem>>, vector<128x128xf32>,
    } else {
    }
    return
  }
  func.func @transform_0(%arg0: i32, %arg1: i32, %arg2: i32) -> (i32, i32) {
    %c0_i32 = arith.constant 0 : i32
    return %arg0, %arg2 : i32, i32
  }
  func.func @transform_1(%arg0: i32, %arg1: i32, %arg2: i32) -> (i32, i32) {
    %c0_i32 = arith.constant 0 : i32
    return %arg2, %arg1 : i32, i32
  }
  func.func @transform_2(%arg0: i32, %arg1: i32, %arg2: i32) -> (i32, i32) {
    %c0_i32 = arith.constant 0 : i32
    %c0_i32_0 = arith.constant 0 : i32
    return %c0_i32, %arg1 : i32, i32
  }
  func.func @transform_3(%arg0: i32, %arg1: i32, %arg2: i32) -> (i32, i32) {
    %c0_i32 = arith.constant 0 : i32
    return %arg0, %arg1 : i32, i32
  }
}

module attributes {stable_mosaic.version = 11 : i64} {
  func.func @_matmul_bias_kernel(%arg0: i32, %arg1: i32, %arg2: i32, %arg3: memref<512x256xbf16, #tpu.memory_space<vmem>>, %arg4: memref<256x128xbf16, #tpu.memory_space<vmem>>, %arg5: memref<1x128xf32, #tpu.memory_space<vmem>>, %arg6: memref<512x128xf32, #tpu.memory_space<vmem>>, %arg7: memref<512x128xf32, #tpu.memory_space<vmem>>) attributes {dimension_semantics = [#tpu.dimension_semantics<parallel>, #tpu.dimension_semantics<parallel>, #tpu.dimension_semantics<arbitrary>], iteration_bounds = array<i64: 4, 1, 2>, scalar_prefetch = 0 : i64, scratch_operands = 1 : i64, tpu.core_type = #tpu.core_type<tc>, window_params = [{transform_indices = @transform_0, window_bounds = array<i64: 512, 256>}, {transform_indices = @transform_1, window_bounds = array<i64: 256, 128>}, {transform_indices = @transform_2, window_bounds = array<i64: 1, 128>}, {transform_indices = @transform_3, window_bounds = array<i64: 512, 128>}]} {
    %c0_i32 = arith.constant 0 : i32
    %0 = arith.cmpi eq, %arg2, %c0_i32 : i32
    %1 = arith.extui %0 : i1 to i32
    %c0_i32_0 = arith.constant 0 : i32
    %2 = arith.cmpi ne, %1, %c0_i32_0 : i32
    scf.if %2 {
      %cst_9 = arith.constant 0.000000e+00 : f32
      %12 = vector.broadcast %cst_9 : f32 to vector<512x128xf32>
      %c0_10 = arith.constant 0 : index
      %c0_11 = arith.constant 0 : index
      %13 = vector.load %arg7[%c0_10, %c0_11] : memref<512x128xf32, #tpu.memory_space<vmem>>, vector<512x128xf32>
      tpu.vector_store %arg7[%c0_10, %c0_11], %12 {strides = array<i32>} : memref<512x128xf32, #tpu.memory_space<vmem>>, vector<512x128xf32>,
    } else {
    }
    %c0 = arith.constant 0 : index
    %c0_1 = arith.constant 0 : index
    %3 = vector.load %arg7[%c0, %c0_1] : memref<512x128xf32, #tpu.memory_space<vmem>>, vector<512x128xf32>
    %c0_2 = arith.constant 0 : index
    %c0_3 = arith.constant 0 : index
    %4 = vector.load %arg3[%c0_2, %c0_3] : memref<512x256xbf16, #tpu.memory_space<vmem>>, vector<512x256xbf16>
    %c0_4 = arith.constant 0 : index
    %c0_5 = arith.constant 0 : index
    %5 = vector.load %arg4[%c0_4, %c0_5] : memref<256x128xbf16, #tpu.memory_space<vmem>>, vector<256x128xbf16>
    %cst = arith.constant dense<0.000000e+00> : vector<512x128xf32>
    %6 = tpu.matmul %4, %5, %cst {dimension_numbers = #tpu.dot_dimension_numbers<[1], [0], [0], [1], [0, 0, 1, 1], [], []>} : vector<512x256xbf16>, vector<256x128xbf16>, vector<512x128xf32> -> vector<512x128xf32>
    %7 = arith.addf %3, %6 : vector<512x128xf32>
    %c0_6 = arith.constant 0 : index
    %c0_7 = arith.constant 0 : index
    %8 = vector.load %arg7[%c0_6, %c0_7] : memref<512x128xf32, #tpu.memory_space<vmem>>, vector<512x128xf32>
    tpu.vector_store %arg7[%c0_6, %c0_7], %7 {strides = array<i32>} : memref<512x128xf32, #tpu.memory_space<vmem>>, vector<512x128xf32>,
    %c1_i32 = arith.constant 1 : i32
    %9 = arith.cmpi eq, %arg2, %c1_i32 : i32
    %10 = arith.extui %9 : i1 to i32
    %c0_i32_8 = arith.constant 0 : i32
    %11 = arith.cmpi ne, %10, %c0_i32_8 : i32
    scf.if %11 {
      %c0_9 = arith.constant 0 : index
      %c0_10 = arith.constant 0 : index
      %12 = vector.load %arg7[%c0_9, %c0_10] : memref<512x128xf32, #tpu.memory_space<vmem>>, vector<512x128xf32>
      %c0_11 = arith.constant 0 : index
      %c0_12 = arith.constant 0 : index
      %13 = vector.load %arg5[%c0_11, %c0_12] : memref<1x128xf32, #tpu.memory_space<vmem>>, vector<1x128xf32>
      %14 = vector.broadcast %13 : vector<1x128xf32> to vector<512x128xf32>
      %15 = arith.addf %12, %14 : vector<512x128xf32>
      %16 = math.tanh %15 : vector<512x128xf32>
      %c0_13 = arith.constant 0 : index
      %c0_14 = arith.constant 0 : index
      %17 = vector.load %arg6[%c0_13, %c0_14] : memref<512x128xf32, #tpu.memory_space<vmem>>, vector<512x128xf32>
      tpu.vector_store %arg6[%c0_13, %c0_14], %16 {strides = array<i32>} : memref<512x128xf32, #tpu.memory_space<vmem>>, vector<512x128xf32>,
    } else {
    }
    return
  }
  func.func @transform_0(%arg0: i32, %arg1: i32, %arg2: i32) -> (i32, i32) {
    %c0_i32 = arith.constant 0 : i32
    return %arg0, %arg2 : i32, i32
  }
  func.func @transform_1(%arg0: i32, %arg1: i32, %arg2: i32) -> (i32, i32) {
    %c0_i32 = arith.constant 0 : i32
    return %arg2, %arg1 : i32, i32
  }
  func.func @transform_2(%arg0: i32, %arg1: i32, %arg2: i32) -> (i32, i32) {
    %c0_i32 = arith.constant 0 : i32
    %c0_i32_0 = arith.constant 0 : i32
    return %c0_i32, %arg1 : i32, i32
  }
  func.func @transform_3(%arg0: i32, %arg1: i32, %arg2: i32) -> (i32, i32) {
    %c0_i32 = arith.constant 0 : i32
    return %arg0, %arg1 : i32, i32
  }
}

</mosaic_0001>

<bundles_post_ra>
// kernel: pix2pixhd_forward.39
= control target key start
LH: loop header
LB: loop body
LE: loop exit
PB: predicated region body
PF: predicated region fallthrough
CT: control target
= control target key end

     0   :  { %s1955_s12 = smov 0   ;;  %s1957_s13 = smov 0   ;;  %s2276_s0 = inlined_call_operand.vmem [shape: bf16[2048,256], index: 0, kind: input, shape index: {}]   ;;  %s2277_s1 = inlined_call_operand.vmem [shape: bf16[256,128], index: 1, kind: input, shape index: {}]   ;;  %s2278_s2 = inlined_call_operand.vmem [shape: f32[1,128], index: 2, kind: input, shape index: {}]   ;;  %s2279_s3 = inlined_call_operand.vmem [shape: f32[2048,128], index: 3, kind: output, shape index: {}]  }
   0x1   :  { %s1959_s14 = smov 0  }
   0x2 LB: > { %s32_s15 = sadd.s32 1, %s1928_s13  ;;  %p1651_p0 = scmp.ge.s32.totalorder %s1932_s14, 1  ;;  %s1932_s14 = sphi %s1959_s14, %s13_s14   ;;  %s1928_s13 = sphi %s1957_s13, %s2281_s13   ;;  %s1924_s12 = sphi %s1955_s12, %s2280_s12  }
   0x3   : > { %p34_p1 = scmp.ge.s32.totalorder %s32_s15, 4  ;;  %p191_p2 = scmp.lt.s32.totalorder %s1932_s14, 5 }
   0x5   : > { %s2283_s15 = smov (%p34_p1, %s32_s15), 0  ;;  %p192_p3 = pnand %p1651_p0, %p191_p2 }
   0x6   : > { %v1798_v0 = vld [vmem:[%s2277_s1] sm:$0xff] (!%p192_p3)   ;;  %v1934_v1 = vmov (!%p192_p3), 0   ;;  %s1652_s18 = sshll.u32 (!%p192_p3), %s1924_s12, 6  ;;  %v1799_v2 = vld [vmem:[%s2277_s1 + $0x8] sm:$0xff] (!%p192_p3)   ;;  %v1800_v3 = vld [vmem:[%s2277_s1 + $0x10] sm:$0xff] (!%p192_p3)  }
   0x7   : > { %195 = sbr.rel (%p192_p3) target bundleno = 408 (0x198), region = 32  ;;  %912 = vmatprep.subr.bf16.mxu0 (!%p192_p3), %v1934_v1  ;;  %1741 = vmatprep.subr.bf16.mxu1 (!%p192_p3), %v1934_v1  ;;  %p236_p4 = scmp.lt.s32.totalorder (!%p192_p3), %s1652_s18, 255  ;;  %v1801_v4 = vld [vmem:[%s2277_s1 + $0x18] sm:$0xff] (!%p192_p3)   ;;  %v1802_v5 = vld [vmem:[%s2277_s1 + $0x20] sm:$0xff] (!%p192_p3)   ;;  %v1803_v7 = vld [vmem:[%s2277_s1 + $0x28] sm:$0xff] (!%p192_p3)  }
   0x8   : > { %913 = vmatpush1.bf16.msra.mxu0 (!%p192_p3), %v1798_v0  ;;  %1757 = vmatpush1.bf16.msra.mxu1 (!%p192_p3), %v1798_v0  ;;  %v1804_v9 = vld [vmem:[%s2277_s1 + $0x30] sm:$0xff] (!%p192_p3)   ;;  %v1805_v10 = vld [vmem:[%s2277_s1 + $0x38] sm:$0xff] (!%p192_p3)   ;;  %v1806_v11 = vld [vmem:[%s2277_s1 + $0x40] sm:$0xff] (!%p192_p3)  }
   0x9   : > { %914 = vmatprep.subr.bf16.mxu0 (!%p192_p3), %v1934_v1  ;;  %1742 = vmatprep.subr.bf16.mxu1 (!%p192_p3), %v1934_v1  ;;  %v1807_v12 = vld [vmem:[%s2277_s1 + $0x48] sm:$0xff] (!%p192_p3)   ;;  %v1808_v13 = vld [vmem:[%s2277_s1 + $0x50] sm:$0xff] (!%p192_p3)   ;;  %v1809_v14 = vld [vmem:[%s2277_s1 + $0x58] sm:$0xff] (!%p192_p3)  }
   0xa   : > { %v1810_v15 = vld [vmem:[%s2277_s1 + $0x60] sm:$0xff] (!%p192_p3)   ;;  %v1811_v16 = vld [vmem:[%s2277_s1 + $0x68] sm:$0xff] (!%p192_p3)   ;;  %v1812_v17 = vld [vmem:[%s2277_s1 + $0x70] sm:$0xff] (!%p192_p3)  }
   0xb   : > { %v1813_v18 = vld [vmem:[%s2277_s1 + $0x78] sm:$0xff] (!%p192_p3)  }
   0xc   : > { %915 = vmatpush1.bf16.msra.mxu0 (!%p192_p3), %v1799_v2  ;;  %1758 = vmatpush1.bf16.msra.mxu1 (!%p192_p3), %v1799_v2 }
   0xd   : > { %916 = vmatprep.subr.bf16.mxu0 (!%p192_p3), %v1934_v1  ;;  %1743 = vmatprep.subr.bf16.mxu1 (!%p192_p3), %v1934_v1 }
   0xe   : > { %s2285_s18 = smov (!%p236_p4, %s1652_s18), 255 }
   0xf   : > { %s1740_s25 = sshll.u32 %s2285_s18, 3 }
  0x10   : > { %917 = vmatpush1.bf16.msra.mxu0 %v1800_v3  ;;  %1759 = vmatpush1.bf16.msra.mxu1 %v1800_v3  ;;  %s2004_s30 = scalar_lea.vmem %s2276_s0, %s1740_s25  ;;  %s2137_s9 = scalar_lea.vmem %s2279_s3, %s1740_s25 }
  0x11   : > { %918 = vmatprep.subr.bf16.mxu0 %v1934_v1  ;;  %1744 = vmatprep.subr.bf16.mxu1 %v1934_v1  ;;  %v1816_v6 = vld [vmem:[%s2004_s30 + $0x4] ss:$8 sps:$4 sm:$0xff]   ;;  %v1814_v19 = vld [vmem:[%s2004_s30] ss:$8 sps:$4 sm:$0xff]   ;;  %v1820_v21 = vld [vmem:[%s2004_s30 + $0x14] ss:$8 sps:$4 sm:$0xff]  }
  0x12   : > { %v1819_v8 = vld [vmem:[%s2004_s30 + $0x104] ss:$8 sps:$4 sm:$0xff]   ;;  %944 = vmatprep.mubr.bf16.mxu0 %v1816_v6  ;;  %v1817_v20 = vld [vmem:[%s2004_s30 + $0x100] ss:$8 sps:$4 sm:$0xff]   ;;  %v1822_v22 = vld [vmem:[%s2004_s30 + $0x114] ss:$8 sps:$4 sm:$0xff]  }
  0x13   : > { %1072 = vmatprep.mubr.bf16.mxu1 %v1819_v8  ;;  %v1824_v23 = vld [vmem:[%s2004_s30 + $0x10] ss:$8 sps:$4 sm:$0xff]   ;;  %v1826_v25 = vld [vmem:[%s2004_s30 + $0x24] ss:$8 sps:$4 sm:$0xff]   ;;  %v1830_v27 = vld [vmem:[%s2004_s30 + $0x20] ss:$8 sps:$4 sm:$0xff]  }
  0x14   : > { %919 = vmatpush1.bf16.msra.mxu0 %v1801_v4  ;;  %1760 = vmatpush1.bf16.msra.mxu1 %v1801_v4  ;;  %v1825_v24 = vld [vmem:[%s2004_s30 + $0x110] ss:$8 sps:$4 sm:$0xff]   ;;  %v1828_v26 = vld [vmem:[%s2004_s30 + $0x124] ss:$8 sps:$4 sm:$0xff]   ;;  %v1831_v28 = vld [vmem:[%s2004_s30 + $0x120] ss:$8 sps:$4 sm:$0xff]  }
  0x15   : > { %920 = vmatprep.subr.bf16.mxu0 %v1934_v1  ;;  %1745 = vmatprep.subr.bf16.mxu1 %v1934_v1  ;;  %v1832_v29 = vld [vmem:[%s2004_s30 + $0x34] ss:$8 sps:$4 sm:$0xff]   ;;  %v1836_v31 = vld [vmem:[%s2004_s30 + $0x30] ss:$8 sps:$4 sm:$0xff]   ;;  %v1838_v33 = vld [vmem:[%s2004_s30 + $0x44] ss:$8 sps:$4 sm:$0xff]  }
  0x16   : > { %v1834_v30 = vld [vmem:[%s2004_s30 + $0x134] ss:$8 sps:$4 sm:$0xff]   ;;  %v1837_v32 = vld [vmem:[%s2004_s30 + $0x130] ss:$8 sps:$4 sm:$0xff]   ;;  %v1840_v34 = vld [vmem:[%s2004_s30 + $0x144] ss:$8 sps:$4 sm:$0xff]  }
  0x17   : > { %v1842_v35 = vld [vmem:[%s2004_s30 + $0x40] ss:$8 sps:$4 sm:$0xff]   ;;  %v1844_v37 = vld [vmem:[%s2004_s30 + $0x54] ss:$8 sps:$4 sm:$0xff]   ;;  %v1848_v39 = vld [vmem:[%s2004_s30 + $0x50] ss:$8 sps:$4 sm:$0xff]  }
  0x18   : > { %921 = vmatpush1.bf16.msra.mxu0 %v1802_v5  ;;  %1761 = vmatpush1.bf16.msra.mxu1 %v1802_v5  ;;  %v1843_v36 = vld [vmem:[%s2004_s30 + $0x140] ss:$8 sps:$4 sm:$0xff]   ;;  %v1846_v38 = vld [vmem:[%s2004_s30 + $0x154] ss:$8 sps:$4 sm:$0xff]   ;;  %v1849_v40 = vld [vmem:[%s2004_s30 + $0x150] ss:$8 sps:$4 sm:$0xff]  }
  0x19   : > { %922 = vmatprep.subr.bf16.mxu0 %v1934_v1  ;;  %1746 = vmatprep.subr.bf16.mxu1 %v1934_v1  ;;  %v1850_v41 = vld [vmem:[%s2004_s30 + $0x64] ss:$8 sps:$4 sm:$0xff]   ;;  %v1854_v43 = vld [vmem:[%s2004_s30 + $0x60] ss:$8 sps:$4 sm:$0xff]   ;;  %v1856_v45 = vld [vmem:[%s2004_s30 + $0x74] ss:$8 sps:$4 sm:$0xff]  }
  0x1a   : > { %v1852_v42 = vld [vmem:[%s2004_s30 + $0x164] ss:$8 sps:$4 sm:$0xff]   ;;  %v1855_v44 = vld [vmem:[%s2004_s30 + $0x160] ss:$8 sps:$4 sm:$0xff]   ;;  %v1858_v46 = vld [vmem:[%s2004_s30 + $0x174] ss:$8 sps:$4 sm:$0xff]  }
  0x1b   : > { %v1860_v47 = vld [vmem:[%s2004_s30 + $0x70] ss:$8 sps:$4 sm:$0xff]   ;;  %v1862_v49 = vld [vmem:[%s2004_s30 + $0x84] ss:$8 sps:$4 sm:$0xff]   ;;  %v1866_v51 = vld [vmem:[%s2004_s30 + $0x80] ss:$8 sps:$4 sm:$0xff]  }
  0x1c   : > { %923 = vmatpush1.bf16.msra.mxu0 %v1803_v7  ;;  %1762 = vmatpush1.bf16.msra.mxu1 %v1803_v7  ;;  %v1861_v48 = vld [vmem:[%s2004_s30 + $0x170] ss:$8 sps:$4 sm:$0xff]   ;;  %v1864_v50 = vld [vmem:[%s2004_s30 + $0x184] ss:$8 sps:$4 sm:$0xff]   ;;  %v1867_v52 = vld [vmem:[%s2004_s30 + $0x180] ss:$8 sps:$4 sm:$0xff]  }
  0x1d   : > { %924 = vmatprep.subr.bf16.mxu0 %v1934_v1  ;;  %1747 = vmatprep.subr.bf16.mxu1 %v1934_v1  ;;  %v1868_v53 = vld [vmem:[%s2004_s30 + $0x94] ss:$8 sps:$4 sm:$0xff]   ;;  %v1872_v55 = vld [vmem:[%s2004_s30 + $0x90] ss:$8 sps:$4 sm:$0xff]   ;;  %v1874_v57 = vld [vmem:[%s2004_s30 + $0xa4] ss:$8 sps:$4 sm:$0xff]  }
  0x1e   : > { %v1870_v54 = vld [vmem:[%s2004_s30 + $0x194] ss:$8 sps:$4 sm:$0xff]   ;;  %v1873_v56 = vld [vmem:[%s2004_s30 + $0x190] ss:$8 sps:$4 sm:$0xff]   ;;  %v1876_v58 = vld [vmem:[%s2004_s30 + $0x1a4] ss:$8 sps:$4 sm:$0xff]  }
  0x1f   : > { %v1878_v59 = vld [vmem:[%s2004_s30 + $0xa0] ss:$8 sps:$4 sm:$0xff]   ;;  %v1880_v61 = vld [vmem:[%s2004_s30 + $0xb4] ss:$8 sps:$4 sm:$0xff]   ;;  %v1884_v63 = vld [vmem:[%s2004_s30 + $0xb0] ss:$8 sps:$4 sm:$0xff]  }
  0x20   : > { %925 = vmatpush1.bf16.msra.mxu0 %v1804_v9  ;;  %1763 = vmatpush1.bf16.msra.mxu1 %v1804_v9  ;;  %v1879_v60 = vld [vmem:[%s2004_s30 + $0x1a0] ss:$8 sps:$4 sm:$0xff]   ;;  %v1882_v62 = vld [vmem:[%s2004_s30 + $0x1b4] ss:$8 sps:$4 sm:$0xff]   ;;  %v1885_v0 = vld [vmem:[%s2004_s30 + $0x1b0] ss:$8 sps:$4 sm:$0xff]  }
  0x21   : > { %926 = vmatprep.subr.bf16.mxu0 %v1934_v1  ;;  %1748 = vmatprep.subr.bf16.mxu1 %v1934_v1  ;;  %v1888_v2 = vld [vmem:[%s2004_s30 + $0x1c4] ss:$8 sps:$4 sm:$0xff]   ;;  %v1890_v3 = vld [vmem:[%s2004_s30 + $0xc0] ss:$8 sps:$4 sm:$0xff]   ;;  %v1892_v5 = vld [vmem:[%s2004_s30 + $0xd4] ss:$8 sps:$4 sm:$0xff]  }
  0x22   : > { %v1891_v4 = vld [vmem:[%s2004_s30 + $0x1c0] ss:$8 sps:$4 sm:$0xff]   ;;  %v1894_v6 = vld [vmem:[%s2004_s30 + $0x1d4] ss:$8 sps:$4 sm:$0xff]   ;;  %v1896_v7 = vld [vmem:[%s2004_s30 + $0xd0] ss:$8 sps:$4 sm:$0xff]  }
  0x23   : > { %v1897_v8 = vld [vmem:[%s2004_s30 + $0x1d0] ss:$8 sps:$4 sm:$0xff]   ;;  %v1898_v9 = vld [vmem:[%s2004_s30 + $0xe4] ss:$8 sps:$4 sm:$0xff]  }
  0x24   : > { %927 = vmatpush1.bf16.msra.mxu0 %v1805_v10  ;;  %1764 = vmatpush1.bf16.msra.mxu1 %v1805_v10  ;;  %v1900_v10 = vld [vmem:[%s2004_s30 + $0x1e4] ss:$8 sps:$4 sm:$0xff]  }
  0x25   : > { %928 = vmatprep.subr.bf16.mxu0 %v1934_v1  ;;  %1749 = vmatprep.subr.bf16.mxu1 %v1934_v1 }
  0x28   : > { %929 = vmatpush1.bf16.msra.mxu0 %v1806_v11  ;;  %1765 = vmatpush1.bf16.msra.mxu1 %v1806_v11  ;;  %v1902_v11 = vld [vmem:[%s2004_s30 + $0xe0] ss:$8 sps:$4 sm:$0xff]  }
  0x29   : > { %930 = vmatprep.subr.bf16.mxu0 %v1934_v1  ;;  %1750 = vmatprep.subr.bf16.mxu1 %v1934_v1 }
  0x2c   : > { %931 = vmatpush1.bf16.msra.mxu0 %v1807_v12  ;;  %1766 = vmatpush1.bf16.msra.mxu1 %v1807_v12  ;;  %v1903_v12 = vld [vmem:[%s2004_s30 + $0x1e0] ss:$8 sps:$4 sm:$0xff]  }
  0x2d   : > { %932 = vmatprep.subr.bf16.mxu0 %v1934_v1  ;;  %1751 = vmatprep.subr.bf16.mxu1 %v1934_v1 }
  0x30   : > { %933 = vmatpush1.bf16.msra.mxu0 %v1808_v13  ;;  %1767 = vmatpush1.bf16.msra.mxu1 %v1808_v13  ;;  %v1904_v13 = vld [vmem:[%s2004_s30 + $0xf4] ss:$8 sps:$4 sm:$0xff]  }
  0x31   : > { %934 = vmatprep.subr.bf16.mxu0 %v1934_v1  ;;  %1752 = vmatprep.subr.bf16.mxu1 %v1934_v1 }
  0x34   : > { %935 = vmatpush1.bf16.msra.mxu0 %v1809_v14  ;;  %1768 = vmatpush1.bf16.msra.mxu1 %v1809_v14  ;;  %v1906_v14 = vld [vmem:[%s2004_s30 + $0x1f4] ss:$8 sps:$4 sm:$0xff]  }
  0x35   : > { %936 = vmatprep.subr.bf16.mxu0 %v1934_v1  ;;  %1753 = vmatprep.subr.bf16.mxu1 %v1934_v1 }
  0x38   : > { %937 = vmatpush1.bf16.msra.mxu0 %v1810_v15  ;;  %1769 = vmatpush1.bf16.msra.mxu1 %v1810_v15  ;;  %v1908_v15 = vld [vmem:[%s2004_s30 + $0xf0] ss:$8 sps:$4 sm:$0xff]  }
  0x39   : > { %938 = vmatprep.subr.bf16.mxu0 %v1934_v1  ;;  %1754 = vmatprep.subr.bf16.mxu1 %v1934_v1 }
  0x3c   : > { %939 = vmatpush1.bf16.msra.mxu0 %v1811_v16  ;;  %1770 = vmatpush1.bf16.msra.mxu1 %v1811_v16  ;;  %v1909_v16 = vld [vmem:[%s2004_s30 + $0x1f0] ss:$8 sps:$4 sm:$0xff]  }
  0x3d   : > { %940 = vmatprep.subr.bf16.mxu0 %v1934_v1  ;;  %1755 = vmatprep.subr.bf16.mxu1 %v1934_v1 }
  0x40   : > { %941 = vmatpush1.bf16.msra.mxu0 %v1812_v17  ;;  %1771 = vmatpush1.bf16.msra.mxu1 %v1812_v17  ;;  %v2130_v17 = vld [vmem:[%s2278_s2] ss:$0 sm:$0xff] }
  0x41   : > { %942 = vmatprep.subr.bf16.mxu0 %v1934_v1  ;;  %1756 = vmatprep.subr.bf16.mxu1 %v1934_v1  ;;  %v1886_v1 = vld [vmem:[%s2004_s30 + $0xc4] ss:$8 sps:$4 sm:$0xff]  }
  0x44   : > { %943 = vmatpush1.bf16.msra.mxu0 %v1813_v18  ;;  %1772 = vmatpush1.bf16.msra.mxu1 %v1813_v18 }
  0x47   : > { %945 = vmatmul.mubr.bf16.vlgmr.msra.gmra.mrb[0].mxu0 %v1814_v19  ;;  %1073 = vmatmul.mubr.bf16.vlgmr.msra.gmra.mrb[0].mxu1 %v1817_v20 }
  0x48   : > { %952 = vmatprep.mubr.bf16.mxu0 %v1820_v21  ;;  %1080 = vmatprep.mubr.bf16.mxu1 %v1822_v22 }
  0x4f   : > { %953 = vmatmul.mubr.bf16.gmra.mrb[4].mxu0 %v1824_v23  ;;  %1081 = vmatmul.mubr.bf16.gmra.mrb[4].mxu1 %v1825_v24 }
  0x50   : > { %960 = vmatprep.mubr.bf16.mxu0 %v1826_v25  ;;  %1088 = vmatprep.mubr.bf16.mxu1 %v1828_v26 }
  0x57   : > { %961 = vmatmul.mubr.bf16.gmra.mrb[8].mxu0 %v1830_v27  ;;  %1089 = vmatmul.mubr.bf16.gmra.mrb[8].mxu1 %v1831_v28 }
  0x58   : > { %968 = vmatprep.mubr.bf16.mxu0 %v1832_v29  ;;  %1096 = vmatprep.mubr.bf16.mxu1 %v1834_v30 }
  0x5f   : > { %969 = vmatmul.mubr.bf16.gmra.mrb[12].mxu0 %v1836_v31  ;;  %1097 = vmatmul.mubr.bf16.gmra.mrb[12].mxu1 %v1837_v32 }
  0x60   : > { %976 = vmatprep.mubr.bf16.mxu0 %v1838_v33  ;;  %1104 = vmatprep.mubr.bf16.mxu1 %v1840_v34 }
  0x67   : > { %977 = vmatmul.mubr.bf16.gmra.mrb[16].mxu0 %v1842_v35  ;;  %1105 = vmatmul.mubr.bf16.gmra.mrb[16].mxu1 %v1843_v36 }
  0x68   : > { %984 = vmatprep.mubr.bf16.mxu0 %v1844_v37  ;;  %1112 = vmatprep.mubr.bf16.mxu1 %v1846_v38 }
  0x6f   : > { %985 = vmatmul.mubr.bf16.gmra.mrb[20].mxu0 %v1848_v39  ;;  %1113 = vmatmul.mubr.bf16.gmra.mrb[20].mxu1 %v1849_v40 }
  0x70   : > { %992 = vmatprep.mubr.bf16.mxu0 %v1850_v41  ;;  %1120 = vmatprep.mubr.bf16.mxu1 %v1852_v42 }
  0x77   : > { %993 = vmatmul.mubr.bf16.gmra.mrb[24].mxu0 %v1854_v43  ;;  %1121 = vmatmul.mubr.bf16.gmra.mrb[24].mxu1 %v1855_v44 }
  0x78   : > { %1000 = vmatprep.mubr.bf16.mxu0 %v1856_v45  ;;  %1128 = vmatprep.mubr.bf16.mxu1 %v1858_v46 }
  0x7f   : > { %1001 = vmatmul.mubr.bf16.gmra.mrb[28].mxu0 %v1860_v47  ;;  %1129 = vmatmul.mubr.bf16.gmra.mrb[28].mxu1 %v1861_v48 }
  0x80   : > { %1008 = vmatprep.mubr.bf16.mxu0 %v1862_v49  ;;  %1136 = vmatprep.mubr.bf16.mxu1 %v1864_v50 }
  0x87   : > { %1009 = vmatmul.mubr.bf16.gmra.mrb[32].mxu0 %v1866_v51  ;;  %1137 = vmatmul.mubr.bf16.gmra.mrb[32].mxu1 %v1867_v52 }
  0x88   : > { %1016 = vmatprep.mubr.bf16.mxu0 %v1868_v53  ;;  %1144 = vmatprep.mubr.bf16.mxu1 %v1870_v54 }
  0x8f   : > { %1017 = vmatmul.mubr.bf16.gmra.mrb[36].mxu0 %v1872_v55  ;;  %1145 = vmatmul.mubr.bf16.gmra.mrb[36].mxu1 %v1873_v56 }
  0x90   : > { %1024 = vmatprep.mubr.bf16.mxu0 %v1874_v57  ;;  %1152 = vmatprep.mubr.bf16.mxu1 %v1876_v58 }
  0x97   : > { %1025 = vmatmul.mubr.bf16.gmra.mrb[40].mxu0 %v1878_v59  ;;  %1153 = vmatmul.mubr.bf16.gmra.mrb[40].mxu1 %v1879_v60 }
  0x98   : > { %1032 = vmatprep.mubr.bf16.mxu0 %v1880_v61  ;;  %1160 = vmatprep.mubr.bf16.mxu1 %v1882_v62 }
  0x9f   : > { %1033 = vmatmul.mubr.bf16.gmra.mrb[44].mxu0 %v1884_v63  ;;  %1161 = vmatmul.mubr.bf16.gmra.mrb[44].mxu1 %v1885_v0 }
  0xa0   : > { %1040 = vmatprep.mubr.bf16.mxu0 %v1886_v1  ;;  %1168 = vmatprep.mubr.bf16.mxu1 %v1888_v2 }
  0xa7   : > { %1041 = vmatmul.mubr.bf16.gmra.mrb[48].mxu0 %v1890_v3  ;;  %1169 = vmatmul.mubr.bf16.gmra.mrb[48].mxu1 %v1891_v4 }
  0xa8   : > { %1048 = vmatprep.mubr.bf16.mxu0 %v1892_v5  ;;  %1176 = vmatprep.mubr.bf16.mxu1 %v1894_v6 }
  0xaf   : > { %1049 = vmatmul.mubr.bf16.gmra.mrb[52].mxu0 %v1896_v7  ;;  %1177 = vmatmul.mubr.bf16.gmra.mrb[52].mxu1 %v1897_v8 }
  0xb0   : > { %1056 = vmatprep.mubr.bf16.mxu0 %v1898_v9  ;;  %1184 = vmatprep.mubr.bf16.mxu1 %v1900_v10 }
  0xb7   : > { %1057 = vmatmul.mubr.bf16.gmra.mrb[56].mxu0 %v1902_v11  ;;  %1185 = vmatmul.mubr.bf16.gmra.mrb[56].mxu1 %v1903_v12 }
  0xb8   : > { %1064 = vmatprep.mubr.bf16.mxu0 %v1904_v13  ;;  %1192 = vmatprep.mubr.bf16.mxu1 %v1906_v14 }
  0xbf   : > { %1065 = vmatmul.mubr.bf16.gmra.mrb[60].mxu0 %v1908_v15  ;;  %1193 = vmatmul.mubr.bf16.gmra.mrb[60].mxu1 %v1909_v16 }
 0x11a   : > { %v946_v18 = vpop.f32.mrb[0].mxu0  ;;  %v1074_v19 = vpop.f32.mrb[0].mxu1 }
 0x11b   : > { %v1403_v20 = vadd.f32 %v2130_v17, %v946_v18  ;;  %v1435_v21 = vadd.f32 %v2130_v17, %v1074_v19  ;;  %v948_v22 = vpop.f32.mrb[1].mxu0  ;;  %v1076_v23 = vpop.f32.mrb[1].mxu1 }
 0x11c   : > { %v949_v24 = vpop.f32.mrb[2].mxu0  ;;  %v1077_v25 = vpop.f32.mrb[2].mxu1 }
 0x11d   : > { %1467 = vst [vmem:[%s2137_s9] sm:$0xff] %v1403_v20  ;;  %1499 = vst [vmem:[%s2137_s9 + $0x100] sm:$0xff] %v1435_v21  ;;  %v1404_v26 = vadd.f32 %v2130_v17, %v949_v24  ;;  %v1436_v27 = vadd.f32 %v2130_v17, %v1077_v25  ;;  %v951_v28 = vpop.f32.mrb[3].mxu0  ;;  %v1079_v29 = vpop.f32.mrb[3].mxu1 }
 0x11f   : > { %1468 = vst [vmem:[%s2137_s9 + $0x8] sm:$0xff] %v1404_v26  ;;  %1500 = vst [vmem:[%s2137_s9 + $0x108] sm:$0xff] %v1436_v27 }
 0x122   : > { %v954_v30 = vpop.f32.mrb[4].mxu0  ;;  %v1082_v31 = vpop.f32.mrb[4].mxu1 }
 0x123   : > { %v1405_v32 = vadd.f32 %v2130_v17, %v954_v30  ;;  %v1437_v33 = vadd.f32 %v2130_v17, %v1082_v31  ;;  %v956_v34 = vpop.f32.mrb[5].mxu0  ;;  %v1084_v35 = vpop.f32.mrb[5].mxu1 }
 0x124   : > { %v957_v36 = vpop.f32.mrb[6].mxu0  ;;  %v1085_v37 = vpop.f32.mrb[6].mxu1 }
 0x125   : > { %1469 = vst [vmem:[%s2137_s9 + $0x10] sm:$0xff] %v1405_v32  ;;  %1501 = vst [vmem:[%s2137_s9 + $0x110] sm:$0xff] %v1437_v33  ;;  %v1406_v38 = vadd.f32 %v2130_v17, %v957_v36  ;;  %v1438_v39 = vadd.f32 %v2130_v17, %v1085_v37  ;;  %v959_v40 = vpop.f32.mrb[7].mxu0  ;;  %v1087_v41 = vpop.f32.mrb[7].mxu1 }
 0x127   : > { %1470 = vst [vmem:[%s2137_s9 + $0x18] sm:$0xff] %v1406_v38  ;;  %1502 = vst [vmem:[%s2137_s9 + $0x118] sm:$0xff] %v1438_v39 }
 0x12a   : > { %v962_v42 = vpop.f32.mrb[8].mxu0  ;;  %v1090_v43 = vpop.f32.mrb[8].mxu1 }
 0x12b   : > { %v1407_v44 = vadd.f32 %v2130_v17, %v962_v42  ;;  %v1439_v45 = vadd.f32 %v2130_v17, %v1090_v43  ;;  %v964_v46 = vpop.f32.mrb[9].mxu0  ;;  %v1092_v47 = vpop.f32.mrb[9].mxu1 }
 0x12c   : > { %v965_v48 = vpop.f32.mrb[10].mxu0  ;;  %v1093_v49 = vpop.f32.mrb[10].mxu1 }
 0x12d   : > { %1471 = vst [vmem:[%s2137_s9 + $0x20] sm:$0xff] %v1407_v44  ;;  %1503 = vst [vmem:[%s2137_s9 + $0x120] sm:$0xff] %v1439_v45  ;;  %v1408_v50 = vadd.f32 %v2130_v17, %v965_v48  ;;  %v1440_v51 = vadd.f32 %v2130_v17, %v1093_v49  ;;  %v967_v52 = vpop.f32.mrb[11].mxu0  ;;  %v1095_v53 = vpop.f32.mrb[11].mxu1 }
 0x12f   : > { %1472 = vst [vmem:[%s2137_s9 + $0x28] sm:$0xff] %v1408_v50  ;;  %1504 = vst [vmem:[%s2137_s9 + $0x128] sm:$0xff] %v1440_v51 }
 0x132   : > { %v970_v54 = vpop.f32.mrb[12].mxu0  ;;  %v1098_v55 = vpop.f32.mrb[12].mxu1 }
 0x133   : > { %v1409_v56 = vadd.f32 %v2130_v17, %v970_v54  ;;  %v1441_v57 = vadd.f32 %v2130_v17, %v1098_v55  ;;  %v972_v58 = vpop.f32.mrb[13].mxu0  ;;  %v1100_v59 = vpop.f32.mrb[13].mxu1 }
 0x134   : > { %v973_v60 = vpop.f32.mrb[14].mxu0  ;;  %v1101_v61 = vpop.f32.mrb[14].mxu1 }
 0x135   : > { %1473 = vst [vmem:[%s2137_s9 + $0x30] sm:$0xff] %v1409_v56  ;;  %1505 = vst [vmem:[%s2137_s9 + $0x130] sm:$0xff] %v1441_v57  ;;  %v1410_v62 = vadd.f32 %v2130_v17, %v973_v60  ;;  %v1442_v63 = vadd.f32 %v2130_v17, %v1101_v61  ;;  %v975_v0 = vpop.f32.mrb[15].mxu0  ;;  %v1103_v1 = vpop.f32.mrb[15].mxu1 }
 0x137   : > { %1474 = vst [vmem:[%s2137_s9 + $0x38] sm:$0xff] %v1410_v62  ;;  %1506 = vst [vmem:[%s2137_s9 + $0x138] sm:$0xff] %v1442_v63 }
 0x13a   : > { %v978_v2 = vpop.f32.mrb[16].mxu0  ;;  %v1106_v3 = vpop.f32.mrb[16].mxu1 }
 0x13b   : > { %v1411_v4 = vadd.f32 %v2130_v17, %v978_v2  ;;  %v1443_v5 = vadd.f32 %v2130_v17, %v1106_v3  ;;  %v980_v6 = vpop.f32.mrb[17].mxu0  ;;  %v1108_v7 = vpop.f32.mrb[17].mxu1 }
 0x13c   : > { %v981_v8 = vpop.f32.mrb[18].mxu0  ;;  %v1109_v9 = vpop.f32.mrb[18].mxu1 }
 0x13d   : > { %1475 = vst [vmem:[%s2137_s9 + $0x40] sm:$0xff] %v1411_v4  ;;  %1507 = vst [vmem:[%s2137_s9 + $0x140] sm:$0xff] %v1443_v5  ;;  %v1412_v10 = vadd.f32 %v2130_v17, %v981_v8  ;;  %v1444_v11 = vadd.f32 %v2130_v17, %v1109_v9  ;;  %v983_v12 = vpop.f32.mrb[19].mxu0  ;;  %v1111_v13 = vpop.f32.mrb[19].mxu1 }
 0x13f   : > { %1476 = vst [vmem:[%s2137_s9 + $0x48] sm:$0xff] %v1412_v10  ;;  %1508 = vst [vmem:[%s2137_s9 + $0x148] sm:$0xff] %v1444_v11 }
 0x142   : > { %v986_v14 = vpop.f32.mrb[20].mxu0  ;;  %v1114_v15 = vpop.f32.mrb[20].mxu1 }
 0x143   : > { %v1413_v16 = vadd.f32 %v2130_v17, %v986_v14  ;;  %v1445_v18 = vadd.f32 %v2130_v17, %v1114_v15  ;;  %v988_v19 = vpop.f32.mrb[21].mxu0  ;;  %v1116_v20 = vpop.f32.mrb[21].mxu1 }
 0x144   : > { %v989_v21 = vpop.f32.mrb[22].mxu0  ;;  %v1117_v22 = vpop.f32.mrb[22].mxu1 }
 0x145   : > { %1477 = vst [vmem:[%s2137_s9 + $0x50] sm:$0xff] %v1413_v16  ;;  %1509 = vst [vmem:[%s2137_s9 + $0x150] sm:$0xff] %v1445_v18  ;;  %v1414_v23 = vadd.f32 %v2130_v17, %v989_v21  ;;  %v1446_v24 = vadd.f32 %v2130_v17, %v1117_v22  ;;  %v991_v25 = vpop.f32.mrb[23].mxu0  ;;  %v1119_v26 = vpop.f32.mrb[23].mxu1 }
 0x147   : > { %1478 = vst [vmem:[%s2137_s9 + $0x58] sm:$0xff] %v1414_v23  ;;  %1510 = vst [vmem:[%s2137_s9 + $0x158] sm:$0xff] %v1446_v24 }
 0x14a   : > { %v994_v27 = vpop.f32.mrb[24].mxu0  ;;  %v1122_v28 = vpop.f32.mrb[24].mxu1 }
 0x14b   : > { %v1415_v29 = vadd.f32 %v2130_v17, %v994_v27  ;;  %v1447_v30 = vadd.f32 %v2130_v17, %v1122_v28  ;;  %v996_v31 = vpop.f32.mrb[25].mxu0  ;;  %v1124_v32 = vpop.f32.mrb[25].mxu1 }
 0x14c   : > { %v997_v33 = vpop.f32.mrb[26].mxu0  ;;  %v1125_v34 = vpop.f32.mrb[26].mxu1 }
 0x14d   : > { %1479 = vst [vmem:[%s2137_s9 + $0x60] sm:$0xff] %v1415_v29  ;;  %1511 = vst [vmem:[%s2137_s9 + $0x160] sm:$0xff] %v1447_v30  ;;  %v1416_v35 = vadd.f32 %v2130_v17, %v997_v33  ;;  %v1448_v36 = vadd.f32 %v2130_v17, %v1125_v34  ;;  %v999_v37 = vpop.f32.mrb[27].mxu0  ;;  %v1127_v38 = vpop.f32.mrb[27].mxu1 }
 0x14f   : > { %1480 = vst [vmem:[%s2137_s9 + $0x68] sm:$0xff] %v1416_v35  ;;  %1512 = vst [vmem:[%s2137_s9 + $0x168] sm:$0xff] %v1448_v36 }
 0x152   : > { %v1002_v39 = vpop.f32.mrb[28].mxu0  ;;  %v1130_v40 = vpop.f32.mrb[28].mxu1 }
 0x153   : > { %v1417_v41 = vadd.f32 %v2130_v17, %v1002_v39  ;;  %v1449_v42 = vadd.f32 %v2130_v17, %v1130_v40  ;;  %v1004_v43 = vpop.f32.mrb[29].mxu0  ;;  %v1132_v44 = vpop.f32.mrb[29].mxu1 }
 0x154   : > { %v1005_v45 = vpop.f32.mrb[30].mxu0  ;;  %v1133_v46 = vpop.f32.mrb[30].mxu1 }
 0x155   : > { %1481 = vst [vmem:[%s2137_s9 + $0x70] sm:$0xff] %v1417_v41  ;;  %1513 = vst [vmem:[%s2137_s9 + $0x170] sm:$0xff] %v1449_v42  ;;  %v1418_v47 = vadd.f32 %v2130_v17, %v1005_v45  ;;  %v1450_v48 = vadd.f32 %v2130_v17, %v1133_v46  ;;  %v1007_v49 = vpop.f32.mrb[31].mxu0  ;;  %v1135_v50 = vpop.f32.mrb[31].mxu1 }
 0x157   : > { %1482 = vst [vmem:[%s2137_s9 + $0x78] sm:$0xff] %v1418_v47  ;;  %1514 = vst [vmem:[%s2137_s9 + $0x178] sm:$0xff] %v1450_v48 }
 0x15a   : > { %v1010_v51 = vpop.f32.mrb[32].mxu0  ;;  %v1138_v52 = vpop.f32.mrb[32].mxu1 }
 0x15b   : > { %v1419_v53 = vadd.f32 %v2130_v17, %v1010_v51  ;;  %v1451_v54 = vadd.f32 %v2130_v17, %v1138_v52  ;;  %v1012_v55 = vpop.f32.mrb[33].mxu0  ;;  %v1140_v56 = vpop.f32.mrb[33].mxu1 }
 0x15c   : > { %v1013_v57 = vpop.f32.mrb[34].mxu0  ;;  %v1141_v58 = vpop.f32.mrb[34].mxu1 }
 0x15d   : > { %1483 = vst [vmem:[%s2137_s9 + $0x80] sm:$0xff] %v1419_v53  ;;  %1515 = vst [vmem:[%s2137_s9 + $0x180] sm:$0xff] %v1451_v54  ;;  %v1420_v59 = vadd.f32 %v2130_v17, %v1013_v57  ;;  %v1452_v60 = vadd.f32 %v2130_v17, %v1141_v58  ;;  %v1015_v61 = vpop.f32.mrb[35].mxu0  ;;  %v1143_v62 = vpop.f32.mrb[35].mxu1 }
 0x15f   : > { %1484 = vst [vmem:[%s2137_s9 + $0x88] sm:$0xff] %v1420_v59  ;;  %1516 = vst [vmem:[%s2137_s9 + $0x188] sm:$0xff] %v1452_v60 }
 0x162   : > { %v1018_v63 = vpop.f32.mrb[36].mxu0  ;;  %v1146_v0 = vpop.f32.mrb[36].mxu1 }
 0x163   : > { %v1421_v1 = vadd.f32 %v2130_v17, %v1018_v63  ;;  %v1453_v2 = vadd.f32 %v2130_v17, %v1146_v0  ;;  %v1020_v3 = vpop.f32.mrb[37].mxu0  ;;  %v1148_v4 = vpop.f32.mrb[37].mxu1 }
 0x164   : > { %v1021_v5 = vpop.f32.mrb[38].mxu0  ;;  %v1149_v6 = vpop.f32.mrb[38].mxu1 }
 0x165   : > { %1485 = vst [vmem:[%s2137_s9 + $0x90] sm:$0xff] %v1421_v1  ;;  %1517 = vst [vmem:[%s2137_s9 + $0x190] sm:$0xff] %v1453_v2  ;;  %v1422_v7 = vadd.f32 %v2130_v17, %v1021_v5  ;;  %v1454_v8 = vadd.f32 %v2130_v17, %v1149_v6  ;;  %v1023_v9 = vpop.f32.mrb[39].mxu0  ;;  %v1151_v10 = vpop.f32.mrb[39].mxu1 }
 0x167   : > { %1486 = vst [vmem:[%s2137_s9 + $0x98] sm:$0xff] %v1422_v7  ;;  %1518 = vst [vmem:[%s2137_s9 + $0x198] sm:$0xff] %v1454_v8 }
 0x16a   : > { %v1026_v11 = vpop.f32.mrb[40].mxu0  ;;  %v1154_v12 = vpop.f32.mrb[40].mxu1 }
 0x16b   : > { %v1423_v13 = vadd.f32 %v2130_v17, %v1026_v11  ;;  %v1455_v14 = vadd.f32 %v2130_v17, %v1154_v12  ;;  %v1028_v15 = vpop.f32.mrb[41].mxu0  ;;  %v1156_v16 = vpop.f32.mrb[41].mxu1 }
 0x16c   : > { %v1029_v18 = vpop.f32.mrb[42].mxu0  ;;  %v1157_v19 = vpop.f32.mrb[42].mxu1 }
 0x16d   : > { %1487 = vst [vmem:[%s2137_s9 + $0xa0] sm:$0xff] %v1423_v13  ;;  %1519 = vst [vmem:[%s2137_s9 + $0x1a0] sm:$0xff] %v1455_v14  ;;  %v1424_v20 = vadd.f32 %v2130_v17, %v1029_v18  ;;  %v1456_v21 = vadd.f32 %v2130_v17, %v1157_v19  ;;  %v1031_v22 = vpop.f32.mrb[43].mxu0  ;;  %v1159_v23 = vpop.f32.mrb[43].mxu1 }
 0x16f   : > { %1488 = vst [vmem:[%s2137_s9 + $0xa8] sm:$0xff] %v1424_v20  ;;  %1520 = vst [vmem:[%s2137_s9 + $0x1a8] sm:$0xff] %v1456_v21 }
 0x172   : > { %v1034_v24 = vpop.f32.mrb[44].mxu0  ;;  %v1162_v25 = vpop.f32.mrb[44].mxu1 }
 0x173   : > { %v1425_v26 = vadd.f32 %v2130_v17, %v1034_v24  ;;  %v1457_v27 = vadd.f32 %v2130_v17, %v1162_v25  ;;  %v1036_v28 = vpop.f32.mrb[45].mxu0  ;;  %v1164_v29 = vpop.f32.mrb[45].mxu1 }
 0x174   : > { %v1037_v30 = vpop.f32.mrb[46].mxu0  ;;  %v1165_v31 = vpop.f32.mrb[46].mxu1 }
 0x175   : > { %1489 = vst [vmem:[%s2137_s9 + $0xb0] sm:$0xff] %v1425_v26  ;;  %1521 = vst [vmem:[%s2137_s9 + $0x1b0] sm:$0xff] %v1457_v27  ;;  %v1426_v32 = vadd.f32 %v2130_v17, %v1037_v30  ;;  %v1458_v33 = vadd.f32 %v2130_v17, %v1165_v31  ;;  %v1039_v34 = vpop.f32.mrb[47].mxu0  ;;  %v1167_v35 = vpop.f32.mrb[47].mxu1 }
 0x177   : > { %1490 = vst [vmem:[%s2137_s9 + $0xb8] sm:$0xff] %v1426_v32  ;;  %1522 = vst [vmem:[%s2137_s9 + $0x1b8] sm:$0xff] %v1458_v33 }
 0x17a   : > { %v1042_v36 = vpop.f32.mrb[48].mxu0  ;;  %v1170_v37 = vpop.f32.mrb[48].mxu1 }
 0x17b   : > { %v1427_v38 = vadd.f32 %v2130_v17, %v1042_v36  ;;  %v1459_v39 = vadd.f32 %v2130_v17, %v1170_v37  ;;  %v1044_v40 = vpop.f32.mrb[49].mxu0  ;;  %v1172_v41 = vpop.f32.mrb[49].mxu1 }
 0x17c   : > { %v1045_v42 = vpop.f32.mrb[50].mxu0  ;;  %v1173_v43 = vpop.f32.mrb[50].mxu1 }
 0x17d   : > { %1491 = vst [vmem:[%s2137_s9 + $0xc0] sm:$0xff] %v1427_v38  ;;  %1523 = vst [vmem:[%s2137_s9 + $0x1c0] sm:$0xff] %v1459_v39  ;;  %v1428_v44 = vadd.f32 %v2130_v17, %v1045_v42  ;;  %v1460_v45 = vadd.f32 %v2130_v17, %v1173_v43  ;;  %v1047_v46 = vpop.f32.mrb[51].mxu0  ;;  %v1175_v47 = vpop.f32.mrb[51].mxu1 }
 0x17f   : > { %1492 = vst [vmem:[%s2137_s9 + $0xc8] sm:$0xff] %v1428_v44  ;;  %1524 = vst [vmem:[%s2137_s9 + $0x1c8] sm:$0xff] %v1460_v45 }
 0x182   : > { %v1050_v48 = vpop.f32.mrb[52].mxu0  ;;  %v1178_v49 = vpop.f32.mrb[52].mxu1 }
 0x183   : > { %v1429_v50 = vadd.f32 %v2130_v17, %v1050_v48  ;;  %v1461_v51 = vadd.f32 %v2130_v17, %v1178_v49  ;;  %v1052_v52 = vpop.f32.mrb[53].mxu0  ;;  %v1180_v53 = vpop.f32.mrb[53].mxu1 }
 0x184   : > { %v1053_v54 = vpop.f32.mrb[54].mxu0  ;;  %v1181_v55 = vpop.f32.mrb[54].mxu1 }
 0x185   : > { %1493 = vst [vmem:[%s2137_s9 + $0xd0] sm:$0xff] %v1429_v50  ;;  %1525 = vst [vmem:[%s2137_s9 + $0x1d0] sm:$0xff] %v1461_v51  ;;  %v1430_v56 = vadd.f32 %v2130_v17, %v1053_v54  ;;  %v1462_v57 = vadd.f32 %v2130_v17, %v1181_v55  ;;  %v1055_v58 = vpop.f32.mrb[55].mxu0  ;;  %v1183_v59 = vpop.f32.mrb[55].mxu1 }
 0x187   : > { %1494 = vst [vmem:[%s2137_s9 + $0xd8] sm:$0xff] %v1430_v56  ;;  %1526 = vst [vmem:[%s2137_s9 + $0x1d8] sm:$0xff] %v1462_v57 }
 0x18a   : > { %v1058_v60 = vpop.f32.mrb[56].mxu0  ;;  %v1186_v61 = vpop.f32.mrb[56].mxu1 }
 0x18b   : > { %v1431_v62 = vadd.f32 %v2130_v17, %v1058_v60  ;;  %v1463_v63 = vadd.f32 %v2130_v17, %v1186_v61  ;;  %v1060_v0 = vpop.f32.mrb[57].mxu0  ;;  %v1188_v1 = vpop.f32.mrb[57].mxu1 }
 0x18c   : > { %v1061_v2 = vpop.f32.mrb[58].mxu0  ;;  %v1189_v3 = vpop.f32.mrb[58].mxu1 }
 0x18d   : > { %1495 = vst [vmem:[%s2137_s9 + $0xe0] sm:$0xff] %v1431_v62  ;;  %1527 = vst [vmem:[%s2137_s9 + $0x1e0] sm:$0xff] %v1463_v63  ;;  %v1432_v4 = vadd.f32 %v2130_v17, %v1061_v2  ;;  %v1464_v5 = vadd.f32 %v2130_v17, %v1189_v3  ;;  %v1063_v6 = vpop.f32.mrb[59].mxu0  ;;  %v1191_v7 = vpop.f32.mrb[59].mxu1 }
 0x18f   : > { %1496 = vst [vmem:[%s2137_s9 + $0xe8] sm:$0xff] %v1432_v4  ;;  %1528 = vst [vmem:[%s2137_s9 + $0x1e8] sm:$0xff] %v1464_v5 }
 0x192   : > { %v1066_v8 = vpop.f32.mrb[60].mxu0  ;;  %v1194_v9 = vpop.f32.mrb[60].mxu1 }
 0x193   : > { %v1433_v10 = vadd.f32 %v2130_v17, %v1066_v8  ;;  %v1465_v11 = vadd.f32 %v2130_v17, %v1194_v9  ;;  %v1068_v12 = vpop.f32.mrb[61].mxu0  ;;  %v1196_v13 = vpop.f32.mrb[61].mxu1 }
 0x194   : > { %v1069_v14 = vpop.f32.mrb[62].mxu0  ;;  %v1197_v15 = vpop.f32.mrb[62].mxu1 }
 0x195   : > { %1497 = vst [vmem:[%s2137_s9 + $0xf0] sm:$0xff] %v1433_v10  ;;  %1529 = vst [vmem:[%s2137_s9 + $0x1f0] sm:$0xff] %v1465_v11  ;;  %v1434_v16 = vadd.f32 %v2130_v17, %v1069_v14  ;;  %v1466_v18 = vadd.f32 %v2130_v17, %v1197_v15  ;;  %v1071_v19 = vpop.f32.mrb[63].mxu0  ;;  %v1199_v20 = vpop.f32.mrb[63].mxu1 }
 0x197   : > { %1498 = vst [vmem:[%s2137_s9 + $0xf8] sm:$0xff] %v1434_v16  ;;  %1530 = vst [vmem:[%s2137_s9 + $0x1f8] sm:$0xff] %v1466_v18 }
 0x198 PF: > { %s13_s14 = sadd.s32 1, %s1932_s14   ;;  %s2280_s12 = smov %s1928_s13 }
 0x199   : > { %p10_p5 = scmp.ge.s32.totalorder %s13_s14, 6   ;;  %s2281_s13 = smov %s2283_s15 }
 0x19b   :  { %12 = sbr.rel (!%p10_p5) target bundleno = 2 (0x2), region = 76 }

// kernel: pix2pixhd_forward.40
= control target key start
LH: loop header
LB: loop body
LE: loop exit
PB: predicated region body
PF: predicated region fallthrough
CT: control target
= control target key end

     0   :  { %s1966_s12 = smov 0   ;;  %s4546_s0 = inlined_call_operand.vmem [shape: f32[2,1024,8], index: 0, kind: input, shape index: {}]   ;;  %s4547_s1 = inlined_call_operand.vmem [shape: f32[2,1,8], index: 1, kind: input, shape index: {}]   ;;  %s4548_s2 = inlined_call_operand.vmem [shape: f32[2,1,8], index: 2, kind: input, shape index: {}]   ;;  %s4549_s3 = inlined_call_operand.vmem [shape: f32[2,1024,8], index: 3, kind: output, shape index: {}]  }
   0x1 LB: > { %s1839_s13 = sadd.s32 4294967295, %s1944_s12   ;;  %p1843_p0 = scmp.ge.s32.totalorder %s1944_s12, 1  ;;  %s1944_s12 = sphi %s1966_s12, %s13_s12  }
   0x2   : > { %p153_p1 = scmp.lt.s32.totalorder %s1944_s12, 3 }
   0x4   : > { %p154_p2 = pnand %p1843_p0, %p153_p1 }
   0x6   : > { %157 = sbr.rel (%p154_p2) target bundleno = 522 (0x20a), region = 32 }
   0xd   : > { %p183_p3 = scmp.lt.s32.totalorder %s1839_s13, 1  ;;  %vm327_vm0 = vcmask 64512  }
   0xf   : > { %s4964_s13 = smov (!%p183_p3, %s1839_s13), 1 }
  0x10   : > { %s1852_s14 = sshll.u32 %s4964_s13, 10  ;;  %s3458_s20 = scalar_lea.vmem %s4547_s1, %s4964_s13 }
  0x11   : > { %s1982_s17 = scalar_lea.vmem %s4546_s0, %s1852_s14  ;;  %s3480_s23 = scalar_lea.vmem %s4548_s2, %s4964_s13 }
  0x12   : > { %v1985_v0 = vld [vmem:[%s1982_s17] sm:$0xff]  ;;  %v1988_v1 = vld [vmem:[%s1982_s17 + $0x8] sm:$0xff]  ;;  %v1991_v2 = vld [vmem:[%s1982_s17 + $0x10] sm:$0xff]  ;;  %s3555_s26 = scalar_lea.vmem %s4549_s3, %s1852_s14 }
  0x13   : > { %v1994_v3 = vld [vmem:[%s1982_s17 + $0x18] sm:$0xff]  ;;  %v328_v4 = vsel %vm327_vm0, %v1985_v0, 0.0  ;;  %v329_v5 = vsel %vm327_vm0, %v1988_v1, 0.0  ;;  %v331_v6 = vsel %vm327_vm0, %v1991_v2, 0.0  ;;  %v2003_v7 = vld [vmem:[%s1982_s17 + $0x20] sm:$0xff]  ;;  %v2008_v10 = vld [vmem:[%s1982_s17 + $0x28] sm:$0xff] }
  0x14   : > { %v330_v8 = vadd.f32 %v329_v5, %v328_v4  ;;  %v333_v9 = vsel %vm327_vm0, %v1994_v3, 0.0  ;;  %v335_v12 = vsel %vm327_vm0, %v2003_v7, 0.0  ;;  %v2013_v13 = vld [vmem:[%s1982_s17 + $0x30] sm:$0xff]  ;;  %v337_v15 = vsel %vm327_vm0, %v2008_v10, 0.0  ;;  %v2018_v16 = vld [vmem:[%s1982_s17 + $0x38] sm:$0xff]  ;;  %v2023_v19 = vld [vmem:[%s1982_s17 + $0x40] sm:$0xff] }
  0x15   : > { %v339_v18 = vsel %vm327_vm0, %v2013_v13, 0.0  ;;  %v341_v21 = vsel %vm327_vm0, %v2018_v16, 0.0  ;;  %v2028_v22 = vld [vmem:[%s1982_s17 + $0x48] sm:$0xff]  ;;  %v343_v24 = vsel %vm327_vm0, %v2023_v19, 0.0  ;;  %v2033_v25 = vld [vmem:[%s1982_s17 + $0x50] sm:$0xff]  ;;  %v2038_v28 = vld [vmem:[%s1982_s17 + $0x58] sm:$0xff] }
  0x16   : > { %v332_v11 = vadd.f32 %v331_v6, %v330_v8  ;;  %v345_v27 = vsel %vm327_vm0, %v2028_v22, 0.0  ;;  %v347_v30 = vsel %vm327_vm0, %v2033_v25, 0.0  ;;  %v2043_v31 = vld [vmem:[%s1982_s17 + $0x60] sm:$0xff]  ;;  %v349_v33 = vsel %vm327_vm0, %v2038_v28, 0.0  ;;  %v2048_v34 = vld [vmem:[%s1982_s17 + $0x68] sm:$0xff]  ;;  %v2053_v37 = vld [vmem:[%s1982_s17 + $0x70] sm:$0xff] }
  0x17   : > { %v351_v36 = vsel %vm327_vm0, %v2043_v31, 0.0  ;;  %v353_v39 = vsel %vm327_vm0, %v2048_v34, 0.0  ;;  %v2058_v40 = vld [vmem:[%s1982_s17 + $0x78] sm:$0xff]  ;;  %v355_v42 = vsel %vm327_vm0, %v2053_v37, 0.0  ;;  %v2063_v43 = vld [vmem:[%s1982_s17 + $0x80] sm:$0xff]  ;;  %v2068_v46 = vld [vmem:[%s1982_s17 + $0x88] sm:$0xff] }
  0x18   : > { %v334_v14 = vadd.f32 %v333_v9, %v332_v11  ;;  %v357_v45 = vsel %vm327_vm0, %v2058_v40, 0.0  ;;  %v359_v48 = vsel %vm327_vm0, %v2063_v43, 0.0  ;;  %v2073_v49 = vld [vmem:[%s1982_s17 + $0x90] sm:$0xff]  ;;  %v361_v51 = vsel %vm327_vm0, %v2068_v46, 0.0  ;;  %v2078_v52 = vld [vmem:[%s1982_s17 + $0x98] sm:$0xff]  ;;  %v2083_v55 = vld [vmem:[%s1982_s17 + $0xa0] sm:$0xff] }
  0x19   : > { %v363_v54 = vsel %vm327_vm0, %v2073_v49, 0.0  ;;  %v365_v57 = vsel %vm327_vm0, %v2078_v52, 0.0  ;;  %v2088_v58 = vld [vmem:[%s1982_s17 + $0xa8] sm:$0xff]  ;;  %v367_v60 = vsel %vm327_vm0, %v2083_v55, 0.0  ;;  %v2093_v61 = vld [vmem:[%s1982_s17 + $0xb0] sm:$0xff]  ;;  %v2098_v4 = vld [vmem:[%s1982_s17 + $0xb8] sm:$0xff] }
  0x1a   : > { %v336_v17 = vadd.f32 %v335_v12, %v334_v14  ;;  %v369_v63 = vsel %vm327_vm0, %v2088_v58, 0.0  ;;  %v371_v6 = vsel %vm327_vm0, %v2093_v61, 0.0  ;;  %v2103_v8 = vld [vmem:[%s1982_s17 + $0xc0] sm:$0xff]  ;;  %v373_v11 = vsel %vm327_vm0, %v2098_v4, 0.0  ;;  %v2108_v12 = vld [vmem:[%s1982_s17 + $0xc8] sm:$0xff] }
  0x1c   : > { %v338_v20 = vadd.f32 %v337_v15, %v336_v17  ;;  %v375_v15 = vsel %vm327_vm0, %v2103_v8, 0.0  ;;  %v2113_v17 = vld [vmem:[%s1982_s17 + $0xd0] sm:$0xff] }
  0x1e   : > { %v340_v23 = vadd.f32 %v339_v18, %v338_v20  ;;  %v377_v20 = vsel %vm327_vm0, %v2108_v12, 0.0 }
  0x20   : > { %v342_v26 = vadd.f32 %v341_v21, %v340_v23  ;;  %v2118_v21 = vld [vmem:[%s1982_s17 + $0xd8] sm:$0xff] }
  0x22   : > { %v344_v29 = vadd.f32 %v343_v24, %v342_v26  ;;  %v379_v24 = vsel %vm327_vm0, %v2113_v17, 0.0  ;;  %v589_v26 = vmul.f32 %v1985_v0, %v1985_v0  ;;  %v593_v0 = vmul.f32 %v2003_v7, %v2003_v7 }
  0x23   : > { %v594_v7 = vmul.f32 %v2008_v10, %v2008_v10 }
  0x24   : > { %v346_v32 = vadd.f32 %v345_v27, %v344_v29  ;;  %v590_v27 = vmul.f32 %v1988_v1, %v1988_v1  ;;  %v591_v29 = vmul.f32 %v1991_v2, %v1991_v2  ;;  %v717_v2 = vsel %vm327_vm0, %v589_v26, 0.0  ;;  %v2186_v26 = vld [vmem:[%s1982_s17 + $0x118] sm:$0xff] }
  0x26   : > { %v348_v35 = vadd.f32 %v347_v30, %v346_v32  ;;  %v2129_v30 = vld [vmem:[%s1982_s17 + $0xe0] sm:$0xff] }
  0x27   : > { %v383_v1 = vsel %vm327_vm0, %v2129_v30, 0.0 }
  0x28   : > { %v350_v38 = vadd.f32 %v349_v33, %v348_v35  ;;  %v381_v33 = vsel %vm327_vm0, %v2118_v21, 0.0  ;;  %v592_v35 = vmul.f32 %v1994_v3, %v1994_v3 }
  0x2a   : > { %v352_v41 = vadd.f32 %v351_v36, %v350_v38  ;;  %v2136_v36 = vld [vmem:[%s1982_s17 + $0xe8] sm:$0xff] }
  0x2c   : > { %v354_v44 = vadd.f32 %v353_v39, %v352_v41  ;;  %v718_v39 = vsel %vm327_vm0, %v590_v27, 0.0  ;;  %v720_v41 = vsel %vm327_vm0, %v591_v29, 0.0 }
  0x2d   : > { %v719_v3 = vadd.f32 %v718_v39, %v717_v2  ;;  %v2202_v39 = vld [vmem:[%s1982_s17 + $0x128] sm:$0xff] }
  0x2e   : > { %v356_v47 = vadd.f32 %v355_v42, %v354_v44  ;;  %v2146_v42 = vld [vmem:[%s1982_s17 + $0xf0] sm:$0xff] }
  0x30   : > { %v358_v50 = vadd.f32 %v357_v45, %v356_v47  ;;  %v385_v45 = vsel %vm327_vm0, %v2136_v36, 0.0  ;;  %v722_v47 = vsel %vm327_vm0, %v592_v35, 0.0  ;;  %v2194_v35 = vld [vmem:[%s1982_s17 + $0x120] sm:$0xff] }
  0x32   : > { %v360_v53 = vadd.f32 %v359_v48, %v358_v50  ;;  %v2154_v48 = vld [vmem:[%s1982_s17 + $0xf8] sm:$0xff] }
  0x33   : > { %v389_v10 = vsel %vm327_vm0, %v2154_v48, 0.0 }
  0x34   : > { %v362_v56 = vadd.f32 %v361_v51, %v360_v53  ;;  %v721_v51 = vadd.f32 %v720_v41, %v719_v3  ;;  %v387_v53 = vsel %vm327_vm0, %v2146_v42, 0.0  ;;  %v601_v3 = vmul.f32 %v2043_v31, %v2043_v31 }
  0x36   : > { %v364_v59 = vadd.f32 %v363_v54, %v362_v56  ;;  %v595_v54 = vmul.f32 %v2013_v13, %v2013_v13  ;;  %v724_v56 = vsel %vm327_vm0, %v593_v0, 0.0 }
  0x38   : > { %v366_v62 = vadd.f32 %v365_v57, %v364_v59  ;;  %v2162_v57 = vld [vmem:[%s1982_s17 + $0x100] sm:$0xff] }
  0x39   : > { %v391_v13 = vsel %vm327_vm0, %v2162_v57, 0.0 }
  0x3a   : > { %v368_v5 = vadd.f32 %v367_v60, %v366_v62  ;;  %v723_v60 = vadd.f32 %v722_v47, %v721_v51  ;;  %v596_v62 = vmul.f32 %v2018_v16, %v2018_v16  ;;  %v602_v51 = vmul.f32 %v2048_v34, %v2048_v34 }
  0x3c   : > { %v370_v9 = vadd.f32 %v369_v63, %v368_v5  ;;  %v726_v63 = vsel %vm327_vm0, %v594_v7, 0.0  ;;  %v2170_v5 = vld [vmem:[%s1982_s17 + $0x108] sm:$0xff]  ;;  %v2210_v7 = vld [vmem:[%s1982_s17 + $0x130] sm:$0xff] }
  0x3d   : > { %v393_v16 = vsel %vm327_vm0, %v2170_v5, 0.0  ;;  %v403_v31 = vsel %vm327_vm0, %v2210_v7, 0.0 }
  0x3e   : > { %v372_v14 = vadd.f32 %v371_v6, %v370_v9  ;;  %v725_v9 = vadd.f32 %v724_v56, %v723_v60  ;;  %v603_v60 = vmul.f32 %v2053_v37, %v2053_v37 }
  0x40   : > { %v374_v18 = vadd.f32 %v373_v11, %v372_v14  ;;  %v597_v11 = vmul.f32 %v2023_v19, %v2023_v19  ;;  %v728_v14 = vsel %vm327_vm0, %v595_v54, 0.0  ;;  %v2218_v54 = vld [vmem:[%s1982_s17 + $0x138] sm:$0xff] }
  0x41   : > { %v405_v34 = vsel %vm327_vm0, %v2218_v54, 0.0 }
  0x42   : > { %v376_v23 = vadd.f32 %v375_v15, %v374_v18  ;;  %v2178_v15 = vld [vmem:[%s1982_s17 + $0x110] sm:$0xff] }
  0x43   : > { %v395_v19 = vsel %vm327_vm0, %v2178_v15, 0.0 }
  0x44   : > { %v378_v32 = vadd.f32 %v377_v20, %v376_v23  ;;  %v727_v20 = vadd.f32 %v726_v63, %v725_v9  ;;  %v598_v23 = vmul.f32 %v2028_v22, %v2028_v22  ;;  %v397_v22 = vsel %vm327_vm0, %v2186_v26, 0.0 }
  0x45   : > { %v604_v9 = vmul.f32 %v2058_v40, %v2058_v40 }
  0x46   : > { %v380_v38 = vadd.f32 %v379_v24, %v378_v32  ;;  %v730_v24 = vsel %vm327_vm0, %v596_v62, 0.0  ;;  %v729_v29 = vadd.f32 %v728_v14, %v727_v20  ;;  %v599_v32 = vmul.f32 %v2033_v25, %v2033_v25  ;;  %v2226_v62 = vld [vmem:[%s1982_s17 + $0x140] sm:$0xff] }
  0x47   : > { %v734_v2 = vsel %vm327_vm0, %v598_v23, 0.0  ;;  %v399_v25 = vsel %vm327_vm0, %v2194_v35, 0.0  ;;  %v407_v37 = vsel %vm327_vm0, %v2226_v62, 0.0  ;;  %v605_v20 = vmul.f32 %v2063_v43, %v2063_v43  ;;  %v2242_v23 = vld [vmem:[%s1982_s17 + $0x150] sm:$0xff] }
  0x48   : > { %v382_v44 = vadd.f32 %v381_v33, %v380_v38  ;;  %v732_v33 = vsel %vm327_vm0, %v597_v11, 0.0  ;;  %v731_v0 = vadd.f32 %v730_v24, %v729_v29  ;;  %v2234_v11 = vld [vmem:[%s1982_s17 + $0x148] sm:$0xff]  ;;  %v606_v29 = vmul.f32 %v2068_v46, %v2068_v46 }
  0x49   : > { %v409_v40 = vsel %vm327_vm0, %v2234_v11, 0.0  ;;  %v411_v43 = vsel %vm327_vm0, %v2242_v23, 0.0 }
  0x4a   : > { %v384_v50 = vadd.f32 %v383_v1, %v382_v44  ;;  %v600_v1 = vmul.f32 %v2038_v28, %v2038_v28  ;;  %v733_v44 = vadd.f32 %v732_v33, %v731_v0  ;;  %v401_v28 = vsel %vm327_vm0, %v2202_v39, 0.0 }
  0x4b   : > { %v607_v0 = vmul.f32 %v2073_v49, %v2073_v49 }
  0x4c   : > { %v386_v59 = vadd.f32 %v385_v45, %v384_v50  ;;  %v736_v45 = vsel %vm327_vm0, %v599_v32, 0.0  ;;  %v735_v50 = vadd.f32 %v734_v2, %v733_v44  ;;  %v2250_v32 = vld [vmem:[%s1982_s17 + $0x158] sm:$0xff]  ;;  %v608_v44 = vmul.f32 %v2078_v52, %v2078_v52 }
  0x4d   : > { %v413_v46 = vsel %vm327_vm0, %v2250_v32, 0.0 }
  0x4e   : > { %v388_v6 = vadd.f32 %v387_v53, %v386_v59  ;;  %v738_v53 = vsel %vm327_vm0, %v600_v1, 0.0  ;;  %v737_v59 = vadd.f32 %v736_v45, %v735_v50  ;;  %v2258_v1 = vld [vmem:[%s1982_s17 + $0x160] sm:$0xff]  ;;  %v609_v50 = vmul.f32 %v2083_v55, %v2083_v55 }
  0x4f   : > { %v415_v49 = vsel %vm327_vm0, %v2258_v1, 0.0 }
  0x50   : > { %v390_v18 = vadd.f32 %v389_v10, %v388_v6  ;;  %v740_v10 = vsel %vm327_vm0, %v601_v3, 0.0  ;;  %v739_v6 = vadd.f32 %v738_v53, %v737_v59  ;;  %v2266_v3 = vld [vmem:[%s1982_s17 + $0x168] sm:$0xff]  ;;  %v610_v59 = vmul.f32 %v2088_v58, %v2088_v58 }
  0x51   : > { %v417_v52 = vsel %vm327_vm0, %v2266_v3, 0.0 }
  0x52   : > { %v392_v27 = vadd.f32 %v391_v13, %v390_v18  ;;  %v742_v13 = vsel %vm327_vm0, %v602_v51, 0.0  ;;  %v741_v18 = vadd.f32 %v740_v10, %v739_v6  ;;  %v2274_v51 = vld [vmem:[%s1982_s17 + $0x170] sm:$0xff]  ;;  %v611_v6 = vmul.f32 %v2093_v61, %v2093_v61 }
  0x53   : > { %v419_v55 = vsel %vm327_vm0, %v2274_v51, 0.0 }
  0x54   : > { %v394_v38 = vadd.f32 %v393_v16, %v392_v27  ;;  %v744_v16 = vsel %vm327_vm0, %v603_v60, 0.0  ;;  %v743_v27 = vadd.f32 %v742_v13, %v741_v18  ;;  %v2282_v60 = vld [vmem:[%s1982_s17 + $0x178] sm:$0xff]  ;;  %v612_v18 = vmul.f32 %v2098_v4, %v2098_v4 }
  0x55   : > { %v421_v58 = vsel %vm327_vm0, %v2282_v60, 0.0 }
  0x56   : > { %v396_v41 = vadd.f32 %v395_v19, %v394_v38  ;;  %v746_v19 = vsel %vm327_vm0, %v604_v9, 0.0  ;;  %v745_v38 = vadd.f32 %v744_v16, %v743_v27  ;;  %v2290_v9 = vld [vmem:[%s1982_s17 + $0x180] sm:$0xff]  ;;  %v613_v27 = vmul.f32 %v2103_v8, %v2103_v8 }
  0x57   : > { %v423_v61 = vsel %vm327_vm0, %v2290_v9, 0.0 }
  0x58   : > { %v398_v47 = vadd.f32 %v397_v22, %v396_v41  ;;  %v748_v22 = vsel %vm327_vm0, %v605_v20, 0.0  ;;  %v747_v41 = vadd.f32 %v746_v19, %v745_v38  ;;  %v2298_v20 = vld [vmem:[%s1982_s17 + $0x188] sm:$0xff]  ;;  %v614_v38 = vmul.f32 %v2108_v12, %v2108_v12 }
  0x59   : > { %v425_v4 = vsel %vm327_vm0, %v2298_v20, 0.0 }
  0x5a   : > { %v400_v56 = vadd.f32 %v399_v25, %v398_v47  ;;  %v750_v25 = vsel %vm327_vm0, %v606_v29, 0.0  ;;  %v749_v47 = vadd.f32 %v748_v22, %v747_v41  ;;  %v2306_v29 = vld [vmem:[%s1982_s17 + $0x190] sm:$0xff]  ;;  %v615_v41 = vmul.f32 %v2113_v17, %v2113_v17 }
  0x5b   : > { %v427_v8 = vsel %vm327_vm0, %v2306_v29, 0.0 }
  0x5c   : > { %v402_v63 = vadd.f32 %v401_v28, %v400_v56  ;;  %v752_v28 = vsel %vm327_vm0, %v607_v0, 0.0  ;;  %v751_v56 = vadd.f32 %v750_v25, %v749_v47  ;;  %v2314_v0 = vld [vmem:[%s1982_s17 + $0x198] sm:$0xff]  ;;  %v616_v47 = vmul.f32 %v2118_v21, %v2118_v21 }
  0x5d   : > { %v429_v12 = vsel %vm327_vm0, %v2314_v0, 0.0 }
  0x5e   : > { %v404_v14 = vadd.f32 %v403_v31, %v402_v63  ;;  %v754_v31 = vsel %vm327_vm0, %v608_v44, 0.0  ;;  %v753_v63 = vadd.f32 %v752_v28, %v751_v56  ;;  %v2322_v44 = vld [vmem:[%s1982_s17 + $0x1a0] sm:$0xff]  ;;  %v617_v56 = vmul.f32 %v2129_v30, %v2129_v30 }
  0x5f   : > { %v431_v17 = vsel %vm327_vm0, %v2322_v44, 0.0 }
  0x60   : > { %v406_v24 = vadd.f32 %v405_v34, %v404_v14  ;;  %v756_v34 = vsel %vm327_vm0, %v609_v50, 0.0  ;;  %v755_v14 = vadd.f32 %v754_v31, %v753_v63  ;;  %v2330_v50 = vld [vmem:[%s1982_s17 + $0x1a8] sm:$0xff]  ;;  %v618_v63 = vmul.f32 %v2136_v36, %v2136_v36 }
  0x61   : > { %v433_v21 = vsel %vm327_vm0, %v2330_v50, 0.0 }
  0x62   : > { %v408_v33 = vadd.f32 %v407_v37, %v406_v24  ;;  %v758_v37 = vsel %vm327_vm0, %v610_v59, 0.0  ;;  %v757_v24 = vadd.f32 %v756_v34, %v755_v14  ;;  %v2338_v59 = vld [vmem:[%s1982_s17 + $0x1b0] sm:$0xff]  ;;  %v619_v14 = vmul.f32 %v2146_v42, %v2146_v42 }
  0x63   : > { %v435_v30 = vsel %vm327_vm0, %v2338_v59, 0.0 }
  0x64   : > { %v410_v2 = vadd.f32 %v409_v40, %v408_v33  ;;  %v760_v40 = vsel %vm327_vm0, %v611_v6, 0.0  ;;  %v759_v33 = vadd.f32 %v758_v37, %v757_v24  ;;  %v2346_v6 = vld [vmem:[%s1982_s17 + $0x1b8] sm:$0xff]  ;;  %v620_v24 = vmul.f32 %v2154_v48, %v2154_v48 }
  0x65   : > { %v437_v36 = vsel %vm327_vm0, %v2346_v6, 0.0 }
  0x66   : > { %v412_v45 = vadd.f32 %v411_v43, %v410_v2  ;;  %v762_v43 = vsel %vm327_vm0, %v612_v18, 0.0  ;;  %v761_v2 = vadd.f32 %v760_v40, %v759_v33  ;;  %v2354_v18 = vld [vmem:[%s1982_s17 + $0x1c0] sm:$0xff]  ;;  %v621_v33 = vmul.f32 %v2162_v57, %v2162_v57 }
  0x67   : > { %v439_v42 = vsel %vm327_vm0, %v2354_v18, 0.0 }
  0x68   : > { %v414_v53 = vadd.f32 %v413_v46, %v412_v45  ;;  %v764_v46 = vsel %vm327_vm0, %v613_v27, 0.0  ;;  %v763_v45 = vadd.f32 %v762_v43, %v761_v2  ;;  %v2362_v27 = vld [vmem:[%s1982_s17 + $0x1c8] sm:$0xff]  ;;  %v622_v2 = vmul.f32 %v2170_v5, %v2170_v5 }
  0x69   : > { %v441_v48 = vsel %vm327_vm0, %v2362_v27, 0.0 }
  0x6a   : > { %v416_v10 = vadd.f32 %v415_v49, %v414_v53  ;;  %v766_v49 = vsel %vm327_vm0, %v614_v38, 0.0  ;;  %v765_v53 = vadd.f32 %v764_v46, %v763_v45  ;;  %v2370_v38 = vld [vmem:[%s1982_s17 + $0x1d0] sm:$0xff]  ;;  %v623_v45 = vmul.f32 %v2178_v15, %v2178_v15 }
  0x6b   : > { %v443_v57 = vsel %vm327_vm0, %v2370_v38, 0.0 }
  0x6c   : > { %v418_v13 = vadd.f32 %v417_v52, %v416_v10  ;;  %v768_v52 = vsel %vm327_vm0, %v615_v41, 0.0  ;;  %v767_v10 = vadd.f32 %v766_v49, %v765_v53  ;;  %v2378_v41 = vld [vmem:[%s1982_s17 + $0x1d8] sm:$0xff]  ;;  %v624_v53 = vmul.f32 %v2186_v26, %v2186_v26 }
  0x6d   : > { %v445_v5 = vsel %vm327_vm0, %v2378_v41, 0.0 }
  0x6e   : > { %v420_v16 = vadd.f32 %v419_v55, %v418_v13  ;;  %v770_v55 = vsel %vm327_vm0, %v616_v47, 0.0  ;;  %v769_v13 = vadd.f32 %v768_v52, %v767_v10  ;;  %v2386_v47 = vld [vmem:[%s1982_s17 + $0x1e0] sm:$0xff]  ;;  %v625_v10 = vmul.f32 %v2194_v35, %v2194_v35 }
  0x6f   : > { %v447_v15 = vsel %vm327_vm0, %v2386_v47, 0.0 }
  0x70   : > { %v422_v19 = vadd.f32 %v421_v58, %v420_v16  ;;  %v772_v58 = vsel %vm327_vm0, %v617_v56, 0.0  ;;  %v771_v16 = vadd.f32 %v770_v55, %v769_v13  ;;  %v2394_v56 = vld [vmem:[%s1982_s17 + $0x1e8] sm:$0xff]  ;;  %v626_v13 = vmul.f32 %v2202_v39, %v2202_v39 }
  0x71   : > { %v449_v26 = vsel %vm327_vm0, %v2394_v56, 0.0 }
  0x72   : > { %v424_v22 = vadd.f32 %v423_v61, %v422_v19  ;;  %v774_v61 = vsel %vm327_vm0, %v618_v63, 0.0  ;;  %v773_v19 = vadd.f32 %v772_v58, %v771_v16  ;;  %v2402_v63 = vld [vmem:[%s1982_s17 + $0x1f0] sm:$0xff]  ;;  %v627_v16 = vmul.f32 %v2210_v7, %v2210_v7 }
  0x73   : > { %v451_v35 = vsel %vm327_vm0, %v2402_v63, 0.0 }
  0x74   : > { %v426_v25 = vadd.f32 %v425_v4, %v424_v22  ;;  %v776_v4 = vsel %vm327_vm0, %v619_v14, 0.0  ;;  %v775_v22 = vadd.f32 %v774_v61, %v773_v19  ;;  %v2410_v14 = vld [vmem:[%s1982_s17 + $0x1f8] sm:$0xff]  ;;  %v628_v19 = vmul.f32 %v2218_v54, %v2218_v54 }
  0x75   : > { %v453_v39 = vsel %vm327_vm0, %v2410_v14, 0.0 }
  0x76   : > { %v428_v28 = vadd.f32 %v427_v8, %v426_v25  ;;  %v778_v8 = vsel %vm327_vm0, %v620_v24, 0.0  ;;  %v777_v25 = vadd.f32 %v776_v4, %v775_v22  ;;  %v2418_v24 = vld [vmem:[%s1982_s17 + $0x200] sm:$0xff]  ;;  %v629_v22 = vmul.f32 %v2226_v62, %v2226_v62 }
  0x77   : > { %v455_v7 = vsel %vm327_vm0, %v2418_v24, 0.0 }
  0x78   : > { %v430_v31 = vadd.f32 %v429_v12, %v428_v28  ;;  %v780_v12 = vsel %vm327_vm0, %v621_v33, 0.0  ;;  %v779_v28 = vadd.f32 %v778_v8, %v777_v25  ;;  %v2426_v33 = vld [vmem:[%s1982_s17 + $0x208] sm:$0xff]  ;;  %v630_v25 = vmul.f32 %v2234_v11, %v2234_v11 }
  0x79   : > { %v457_v54 = vsel %vm327_vm0, %v2426_v33, 0.0 }
  0x7a   : > { %v432_v34 = vadd.f32 %v431_v17, %v430_v31  ;;  %v782_v17 = vsel %vm327_vm0, %v622_v2, 0.0  ;;  %v781_v31 = vadd.f32 %v780_v12, %v779_v28  ;;  %v2434_v2 = vld [vmem:[%s1982_s17 + $0x210] sm:$0xff]  ;;  %v631_v28 = vmul.f32 %v2242_v23, %v2242_v23 }
  0x7b   : > { %v459_v62 = vsel %vm327_vm0, %v2434_v2, 0.0 }
  0x7c   : > { %v434_v37 = vadd.f32 %v433_v21, %v432_v34  ;;  %v784_v21 = vsel %vm327_vm0, %v623_v45, 0.0  ;;  %v783_v34 = vadd.f32 %v782_v17, %v781_v31  ;;  %v2442_v45 = vld [vmem:[%s1982_s17 + $0x218] sm:$0xff]  ;;  %v632_v31 = vmul.f32 %v2250_v32, %v2250_v32 }
  0x7d   : > { %v461_v11 = vsel %vm327_vm0, %v2442_v45, 0.0 }
  0x7e   : > { %v436_v40 = vadd.f32 %v435_v30, %v434_v37  ;;  %v786_v30 = vsel %vm327_vm0, %v624_v53, 0.0  ;;  %v785_v37 = vadd.f32 %v784_v21, %v783_v34  ;;  %v2450_v53 = vld [vmem:[%s1982_s17 + $0x220] sm:$0xff]  ;;  %v633_v34 = vmul.f32 %v2258_v1, %v2258_v1 }
  0x7f   : > { %v463_v23 = vsel %vm327_vm0, %v2450_v53, 0.0 }
  0x80   : > { %v438_v43 = vadd.f32 %v437_v36, %v436_v40  ;;  %v788_v36 = vsel %vm327_vm0, %v625_v10, 0.0  ;;  %v787_v40 = vadd.f32 %v786_v30, %v785_v37  ;;  %v2458_v10 = vld [vmem:[%s1982_s17 + $0x228] sm:$0xff]  ;;  %v634_v37 = vmul.f32 %v2266_v3, %v2266_v3 }
  0x81   : > { %v465_v32 = vsel %vm327_vm0, %v2458_v10, 0.0 }
  0x82   : > { %v440_v46 = vadd.f32 %v439_v42, %v438_v43  ;;  %v790_v42 = vsel %vm327_vm0, %v626_v13, 0.0  ;;  %v789_v43 = vadd.f32 %v788_v36, %v787_v40  ;;  %v2466_v13 = vld [vmem:[%s1982_s17 + $0x230] sm:$0xff]  ;;  %v635_v40 = vmul.f32 %v2274_v51, %v2274_v51 }
  0x83   : > { %v467_v1 = vsel %vm327_vm0, %v2466_v13, 0.0 }
  0x84   : > { %v442_v49 = vadd.f32 %v441_v48, %v440_v46  ;;  %v792_v48 = vsel %vm327_vm0, %v627_v16, 0.0  ;;  %v791_v46 = vadd.f32 %v790_v42, %v789_v43  ;;  %v2474_v16 = vld [vmem:[%s1982_s17 + $0x238] sm:$0xff]  ;;  %v636_v43 = vmul.f32 %v2282_v60, %v2282_v60 }
  0x85   : > { %v469_v3 = vsel %vm327_vm0, %v2474_v16, 0.0 }
  0x86   : > { %v444_v52 = vadd.f32 %v443_v57, %v442_v49  ;;  %v794_v57 = vsel %vm327_vm0, %v628_v19, 0.0  ;;  %v793_v49 = vadd.f32 %v792_v48, %v791_v46  ;;  %v2482_v19 = vld [vmem:[%s1982_s17 + $0x240] sm:$0xff]  ;;  %v637_v46 = vmul.f32 %v2290_v9, %v2290_v9 }
  0x87   : > { %v471_v51 = vsel %vm327_vm0, %v2482_v19, 0.0 }
  0x88   : > { %v446_v55 = vadd.f32 %v445_v5, %v444_v52  ;;  %v796_v5 = vsel %vm327_vm0, %v629_v22, 0.0  ;;  %v795_v52 = vadd.f32 %v794_v57, %v793_v49  ;;  %v2490_v22 = vld [vmem:[%s1982_s17 + $0x248] sm:$0xff]  ;;  %v638_v49 = vmul.f32 %v2298_v20, %v2298_v20 }
  0x89   : > { %v473_v60 = vsel %vm327_vm0, %v2490_v22, 0.0 }
  0x8a   : > { %v448_v58 = vadd.f32 %v447_v15, %v446_v55  ;;  %v798_v15 = vsel %vm327_vm0, %v630_v25, 0.0  ;;  %v797_v55 = vadd.f32 %v796_v5, %v795_v52  ;;  %v2498_v25 = vld [vmem:[%s1982_s17 + $0x250] sm:$0xff]  ;;  %v639_v52 = vmul.f32 %v2306_v29, %v2306_v29 }
  0x8b   : > { %v475_v9 = vsel %vm327_vm0, %v2498_v25, 0.0 }
  0x8c   : > { %v450_v61 = vadd.f32 %v449_v26, %v448_v58  ;;  %v800_v26 = vsel %vm327_vm0, %v631_v28, 0.0  ;;  %v799_v58 = vadd.f32 %v798_v15, %v797_v55  ;;  %v2506_v28 = vld [vmem:[%s1982_s17 + $0x258] sm:$0xff]  ;;  %v640_v55 = vmul.f32 %v2314_v0, %v2314_v0 }
  0x8d   : > { %v477_v20 = vsel %vm327_vm0, %v2506_v28, 0.0 }
  0x8e   : > { %v452_v4 = vadd.f32 %v451_v35, %v450_v61  ;;  %v802_v35 = vsel %vm327_vm0, %v632_v31, 0.0  ;;  %v801_v61 = vadd.f32 %v800_v26, %v799_v58  ;;  %v2514_v31 = vld [vmem:[%s1982_s17 + $0x260] sm:$0xff]  ;;  %v641_v58 = vmul.f32 %v2322_v44, %v2322_v44 }
  0x8f   : > { %v479_v29 = vsel %vm327_vm0, %v2514_v31, 0.0 }
  0x90   : > { %v454_v8 = vadd.f32 %v453_v39, %v452_v4  ;;  %v804_v39 = vsel %vm327_vm0, %v633_v34, 0.0  ;;  %v803_v4 = vadd.f32 %v802_v35, %v801_v61  ;;  %v2522_v34 = vld [vmem:[%s1982_s17 + $0x268] sm:$0xff]  ;;  %v642_v61 = vmul.f32 %v2330_v50, %v2330_v50 }
  0x91   : > { %v481_v0 = vsel %vm327_vm0, %v2522_v34, 0.0 }
  0x92   : > { %v456_v12 = vadd.f32 %v455_v7, %v454_v8  ;;  %v806_v7 = vsel %vm327_vm0, %v634_v37, 0.0  ;;  %v805_v8 = vadd.f32 %v804_v39, %v803_v4  ;;  %v2530_v37 = vld [vmem:[%s1982_s17 + $0x270] sm:$0xff]  ;;  %v643_v4 = vmul.f32 %v2338_v59, %v2338_v59 }
  0x93   : > { %v483_v44 = vsel %vm327_vm0, %v2530_v37, 0.0 }
  0x94   : > { %v458_v17 = vadd.f32 %v457_v54, %v456_v12  ;;  %v808_v54 = vsel %vm327_vm0, %v635_v40, 0.0  ;;  %v807_v12 = vadd.f32 %v806_v7, %v805_v8  ;;  %v2538_v40 = vld [vmem:[%s1982_s17 + $0x278] sm:$0xff]  ;;  %v644_v8 = vmul.f32 %v2346_v6, %v2346_v6 }
  0x95   : > { %v485_v50 = vsel %vm327_vm0, %v2538_v40, 0.0 }
  0x96   : > { %v460_v21 = vadd.f32 %v459_v62, %v458_v17  ;;  %v810_v62 = vsel %vm327_vm0, %v636_v43, 0.0  ;;  %v809_v17 = vadd.f32 %v808_v54, %v807_v12  ;;  %v2546_v43 = vld [vmem:[%s1982_s17 + $0x280] sm:$0xff]  ;;  %v645_v12 = vmul.f32 %v2354_v18, %v2354_v18 }
  0x97   : > { %v487_v59 = vsel %vm327_vm0, %v2546_v43, 0.0 }
  0x98   : > { %v462_v30 = vadd.f32 %v461_v11, %v460_v21  ;;  %v812_v11 = vsel %vm327_vm0, %v637_v46, 0.0  ;;  %v811_v21 = vadd.f32 %v810_v62, %v809_v17  ;;  %v2554_v46 = vld [vmem:[%s1982_s17 + $0x288] sm:$0xff]  ;;  %v646_v17 = vmul.f32 %v2362_v27, %v2362_v27 }
  0x99   : > { %v489_v6 = vsel %vm327_vm0, %v2554_v46, 0.0 }
  0x9a   : > { %v464_v36 = vadd.f32 %v463_v23, %v462_v30  ;;  %v814_v23 = vsel %vm327_vm0, %v638_v49, 0.0  ;;  %v813_v30 = vadd.f32 %v812_v11, %v811_v21  ;;  %v2562_v49 = vld [vmem:[%s1982_s17 + $0x290] sm:$0xff]  ;;  %v647_v21 = vmul.f32 %v2370_v38, %v2370_v38 }
  0x9b   : > { %v491_v18 = vsel %vm327_vm0, %v2562_v49, 0.0 }
  0x9c   : > { %v466_v42 = vadd.f32 %v465_v32, %v464_v36  ;;  %v816_v32 = vsel %vm327_vm0, %v639_v52, 0.0  ;;  %v815_v36 = vadd.f32 %v814_v23, %v813_v30  ;;  %v2570_v52 = vld [vmem:[%s1982_s17 + $0x298] sm:$0xff]  ;;  %v648_v30 = vmul.f32 %v2378_v41, %v2378_v41 }
  0x9d   : > { %v493_v27 = vsel %vm327_vm0, %v2570_v52, 0.0 }
  0x9e   : > { %v468_v48 = vadd.f32 %v467_v1, %v466_v42  ;;  %v818_v1 = vsel %vm327_vm0, %v640_v55, 0.0  ;;  %v817_v42 = vadd.f32 %v816_v32, %v815_v36  ;;  %v2578_v55 = vld [vmem:[%s1982_s17 + $0x2a0] sm:$0xff]  ;;  %v649_v36 = vmul.f32 %v2386_v47, %v2386_v47 }
  0x9f   : > { %v495_v38 = vsel %vm327_vm0, %v2578_v55, 0.0 }
  0xa0   : > { %v470_v57 = vadd.f32 %v469_v3, %v468_v48  ;;  %v820_v3 = vsel %vm327_vm0, %v641_v58, 0.0  ;;  %v819_v48 = vadd.f32 %v818_v1, %v817_v42  ;;  %v2586_v58 = vld [vmem:[%s1982_s17 + $0x2a8] sm:$0xff]  ;;  %v650_v42 = vmul.f32 %v2394_v56, %v2394_v56 }
  0xa1   : > { %v497_v41 = vsel %vm327_vm0, %v2586_v58, 0.0 }
  0xa2   : > { %v472_v5 = vadd.f32 %v471_v51, %v470_v57  ;;  %v822_v51 = vsel %vm327_vm0, %v642_v61, 0.0  ;;  %v821_v57 = vadd.f32 %v820_v3, %v819_v48  ;;  %v2594_v61 = vld [vmem:[%s1982_s17 + $0x2b0] sm:$0xff]  ;;  %v651_v48 = vmul.f32 %v2402_v63, %v2402_v63 }
  0xa3   : > { %v499_v47 = vsel %vm327_vm0, %v2594_v61, 0.0 }
  0xa4   : > { %v474_v15 = vadd.f32 %v473_v60, %v472_v5  ;;  %v824_v60 = vsel %vm327_vm0, %v643_v4, 0.0  ;;  %v823_v5 = vadd.f32 %v822_v51, %v821_v57  ;;  %v2602_v4 = vld [vmem:[%s1982_s17 + $0x2b8] sm:$0xff]  ;;  %v652_v57 = vmul.f32 %v2410_v14, %v2410_v14 }
  0xa5   : > { %v501_v56 = vsel %vm327_vm0, %v2602_v4, 0.0 }
  0xa6   : > { %v476_v26 = vadd.f32 %v475_v9, %v474_v15  ;;  %v826_v9 = vsel %vm327_vm0, %v644_v8, 0.0  ;;  %v825_v15 = vadd.f32 %v824_v60, %v823_v5  ;;  %v2610_v8 = vld [vmem:[%s1982_s17 + $0x2c0] sm:$0xff]  ;;  %v653_v5 = vmul.f32 %v2418_v24, %v2418_v24 }
  0xa7   : > { %4651 = vst [vmem:[#allocation2_spill] sm:$0xff] %v2610_v8  ;;  %v503_v63 = vsel %vm327_vm0, %v2610_v8, 0.0 }
  0xa8   : > { %v478_v35 = vadd.f32 %v477_v20, %v476_v26  ;;  %v828_v20 = vsel %vm327_vm0, %v645_v12, 0.0  ;;  %v827_v26 = vadd.f32 %v826_v9, %v825_v15  ;;  %v2618_v12 = vld [vmem:[%s1982_s17 + $0x2c8] sm:$0xff]  ;;  %v654_v15 = vmul.f32 %v2426_v33, %v2426_v33 }
  0xa9   : > { %v505_v14 = vsel %vm327_vm0, %v2618_v12, 0.0 }
  0xaa   : > { %v480_v39 = vadd.f32 %v479_v29, %v478_v35  ;;  %v830_v29 = vsel %vm327_vm0, %v646_v17, 0.0  ;;  %v829_v35 = vadd.f32 %v828_v20, %v827_v26  ;;  %v2626_v17 = vld [vmem:[%s1982_s17 + $0x2d0] sm:$0xff]  ;;  %v655_v26 = vmul.f32 %v2434_v2, %v2434_v2 }
  0xab   : > { %v507_v24 = vsel %vm327_vm0, %v2626_v17, 0.0 }
  0xac   : > { %v482_v7 = vadd.f32 %v481_v0, %v480_v39  ;;  %v832_v0 = vsel %vm327_vm0, %v647_v21, 0.0  ;;  %v831_v39 = vadd.f32 %v830_v29, %v829_v35  ;;  %v2634_v21 = vld [vmem:[%s1982_s17 + $0x2d8] sm:$0xff]  ;;  %v656_v35 = vmul.f32 %v2442_v45, %v2442_v45 }
  0xad   : > { %v509_v33 = vsel %vm327_vm0, %v2634_v21, 0.0 }
  0xae   : > { %v484_v54 = vadd.f32 %v483_v44, %v482_v7  ;;  %v834_v44 = vsel %vm327_vm0, %v648_v30, 0.0  ;;  %v833_v7 = vadd.f32 %v832_v0, %v831_v39  ;;  %v2642_v30 = vld [vmem:[%s1982_s17 + $0x2e0] sm:$0xff]  ;;  %v657_v39 = vmul.f32 %v2450_v53, %v2450_v53 }
  0xaf   : > { %4652 = vst [vmem:[#allocation3_spill] sm:$0xff] %v2642_v30  ;;  %v511_v2 = vsel %vm327_vm0, %v2642_v30, 0.0 }
  0xb0   : > { %v486_v62 = vadd.f32 %v485_v50, %v484_v54  ;;  %v836_v50 = vsel %vm327_vm0, %v649_v36, 0.0  ;;  %v835_v54 = vadd.f32 %v834_v44, %v833_v7  ;;  %v2650_v36 = vld [vmem:[%s1982_s17 + $0x2e8] sm:$0xff]  ;;  %v658_v7 = vmul.f32 %v2458_v10, %v2458_v10 }
  0xb1   : > { %v513_v45 = vsel %vm327_vm0, %v2650_v36, 0.0 }
  0xb2   : > { %v488_v11 = vadd.f32 %v487_v59, %v486_v62  ;;  %v838_v59 = vsel %vm327_vm0, %v650_v42, 0.0  ;;  %v837_v62 = vadd.f32 %v836_v50, %v835_v54  ;;  %v2658_v42 = vld [vmem:[%s1982_s17 + $0x2f0] sm:$0xff]  ;;  %v659_v54 = vmul.f32 %v2466_v13, %v2466_v13 }
  0xb3   : > { %4653 = vst [vmem:[#allocation4_spill] sm:$0xff] %v2658_v42  ;;  %v515_v53 = vsel %vm327_vm0, %v2658_v42, 0.0 }
  0xb4   : > { %v490_v23 = vadd.f32 %v489_v6, %v488_v11  ;;  %v840_v6 = vsel %vm327_vm0, %v651_v48, 0.0  ;;  %v839_v11 = vadd.f32 %v838_v59, %v837_v62  ;;  %v2666_v48 = vld [vmem:[%s1982_s17 + $0x2f8] sm:$0xff]  ;;  %v660_v62 = vmul.f32 %v2474_v16, %v2474_v16 }
  0xb5   : > { %4654 = vst [vmem:[#allocation5_spill] sm:$0xff] %v2666_v48  ;;  %v517_v10 = vsel %vm327_vm0, %v2666_v48, 0.0 }
  0xb6   : > { %v492_v32 = vadd.f32 %v491_v18, %v490_v23  ;;  %v842_v18 = vsel %vm327_vm0, %v652_v57, 0.0  ;;  %v841_v23 = vadd.f32 %v840_v6, %v839_v11  ;;  %v2674_v57 = vld [vmem:[%s1982_s17 + $0x300] sm:$0xff]  ;;  %v661_v11 = vmul.f32 %v2482_v19, %v2482_v19 }
  0xb7   : > { %4655 = vst [vmem:[#allocation6_spill] sm:$0xff] %v2674_v57  ;;  %v519_v13 = vsel %vm327_vm0, %v2674_v57, 0.0 }
  0xb8   : > { %v494_v1 = vadd.f32 %v493_v27, %v492_v32  ;;  %v844_v27 = vsel %vm327_vm0, %v653_v5, 0.0  ;;  %v843_v32 = vadd.f32 %v842_v18, %v841_v23  ;;  %v2682_v5 = vld [vmem:[%s1982_s17 + $0x308] sm:$0xff]  ;;  %v662_v23 = vmul.f32 %v2490_v22, %v2490_v22 }
  0xb9   : > { %4656 = vst [vmem:[#allocation7_spill] sm:$0xff] %v2682_v5  ;;  %v521_v16 = vsel %vm327_vm0, %v2682_v5, 0.0 }
  0xba   : > { %v496_v3 = vadd.f32 %v495_v38, %v494_v1  ;;  %v846_v38 = vsel %vm327_vm0, %v654_v15, 0.0  ;;  %v845_v1 = vadd.f32 %v844_v27, %v843_v32  ;;  %v2690_v15 = vld [vmem:[%s1982_s17 + $0x310] sm:$0xff] }
  0xbb   : > { %4657 = vst [vmem:[#allocation8_spill] sm:$0xff] %v2690_v15  ;;  %v523_v32 = vsel %vm327_vm0, %v2690_v15, 0.0 }
  0xbc   : > { %v498_v51 = vadd.f32 %v497_v41, %v496_v3  ;;  %v848_v41 = vsel %vm327_vm0, %v655_v26, 0.0  ;;  %v847_v3 = vadd.f32 %v846_v38, %v845_v1  ;;  %v2698_v26 = vld [vmem:[%s1982_s17 + $0x318] sm:$0xff]  ;;  %v2706_v38 = vld [vmem:[%s1982_s17 + $0x320] sm:$0xff] }
  0xbd   : > { %4658 = vst [vmem:[#allocation9_spill] sm:$0xff] %v2698_v26  ;;  %4659 = vst [vmem:[#allocation10_spill] sm:$0xff] %v2706_v38 }
  0xbe   : > { %v500_v60 = vadd.f32 %v499_v47, %v498_v51  ;;  %v850_v47 = vsel %vm327_vm0, %v656_v35, 0.0  ;;  %v849_v51 = vadd.f32 %v848_v41, %v847_v3  ;;  %v860_v35 = vsel %vm327_vm0, %v661_v11, 0.0  ;;  %v2738_v11 = vld [vmem:[%s1982_s17 + $0x340] sm:$0xff] }
  0xbf   : > { %v862_v41 = vsel %vm327_vm0, %v662_v23, 0.0  ;;  %4663 = vst [vmem:[#allocation14_spill] sm:$0xff] %v2738_v11 }
  0xc0   : > { %v502_v9 = vadd.f32 %v501_v56, %v500_v60  ;;  %v852_v56 = vsel %vm327_vm0, %v657_v39, 0.0  ;;  %v851_v60 = vadd.f32 %v850_v47, %v849_v51  ;;  %v664_v39 = vmul.f32 %v2506_v28, %v2506_v28  ;;  %v2722_v51 = vld [vmem:[%s1982_s17 + $0x330] sm:$0xff] }
  0xc1   : > { %v665_v47 = vmul.f32 %v2514_v31, %v2514_v31  ;;  %4661 = vst [vmem:[#allocation12_spill] sm:$0xff] %v2722_v51 }
  0xc2   : > { %v504_v20 = vadd.f32 %v503_v63, %v502_v9  ;;  %v854_v63 = vsel %vm327_vm0, %v658_v7, 0.0  ;;  %v853_v9 = vadd.f32 %v852_v56, %v851_v60  ;;  %v527_v7 = vsel %vm327_vm0, %v2706_v38, 0.0 }
  0xc3   : > { %v866_v60 = vsel %vm327_vm0, %v664_v39, 0.0 }
  0xc4   : > { %v506_v29 = vadd.f32 %v505_v14, %v504_v20  ;;  %v856_v14 = vsel %vm327_vm0, %v659_v54, 0.0  ;;  %v855_v20 = vadd.f32 %v854_v63, %v853_v9  ;;  %v667_v9 = vmul.f32 %v2530_v37, %v2530_v37 }
  0xc6   : > { %v508_v0 = vadd.f32 %v507_v24, %v506_v29  ;;  %v858_v24 = vsel %vm327_vm0, %v660_v62, 0.0  ;;  %v857_v29 = vadd.f32 %v856_v14, %v855_v20 }
  0xc8   : > { %v510_v44 = vadd.f32 %v509_v33, %v508_v0  ;;  %v663_v33 = vmul.f32 %v2498_v25, %v2498_v25  ;;  %v859_v1 = vadd.f32 %v858_v24, %v857_v29  ;;  %v2746_v24 = vld [vmem:[%s1982_s17 + $0x348] sm:$0xff] }
  0xc9   : > { %4664 = vst [vmem:[#allocation15_spill] sm:$0xff] %v2746_v24  ;;  %v537_v39 = vsel %vm327_vm0, %v2746_v24, 0.0 }
  0xca   : > { %v512_v50 = vadd.f32 %v511_v2, %v510_v44  ;;  %v525_v2 = vsel %vm327_vm0, %v2698_v26, 0.0  ;;  %v2714_v44 = vld [vmem:[%s1982_s17 + $0x328] sm:$0xff] }
  0xcb   : > { %4660 = vst [vmem:[#allocation11_spill] sm:$0xff] %v2714_v44  ;;  %v529_v56 = vsel %vm327_vm0, %v2714_v44, 0.0 }
  0xcc   : > { %v514_v59 = vadd.f32 %v513_v45, %v512_v50  ;;  %v861_v45 = vadd.f32 %v860_v35, %v859_v1  ;;  %v864_v50 = vsel %vm327_vm0, %v663_v33, 0.0  ;;  %v669_v33 = vmul.f32 %v2546_v43, %v2546_v43 }
  0xcd   : > { %v872_v35 = vsel %vm327_vm0, %v667_v9, 0.0  ;;  %v2778_v9 = vld [vmem:[%s1982_s17 + $0x368] sm:$0xff] }
  0xce   : > { %v516_v6 = vadd.f32 %v515_v53, %v514_v59  ;;  %v863_v54 = vadd.f32 %v862_v41, %v861_v45  ;;  %v666_v59 = vmul.f32 %v2522_v34, %v2522_v34  ;;  %v670_v41 = vmul.f32 %v2554_v46, %v2554_v46  ;;  %v2762_v45 = vld [vmem:[%s1982_s17 + $0x358] sm:$0xff]  ;;  %4666 = vst [vmem:[#allocation17_spill] sm:$0xff] %v2778_v9 }
  0xcf   : > { %4665 = vst [vmem:[#allocation16_spill] sm:$0xff] %v2762_v45 }
  0xd0   : > { %v518_v18 = vadd.f32 %v517_v10, %v516_v6  ;;  %v2730_v10 = vld [vmem:[%s1982_s17 + $0x338] sm:$0xff]  ;;  %v865_v63 = vadd.f32 %v864_v50, %v863_v54  ;;  %v531_v6 = vsel %vm327_vm0, %v2722_v51, 0.0  ;;  %v870_v23 = vsel %vm327_vm0, %v666_v59, 0.0 }
  0xd1   : > { %4662 = vst [vmem:[#allocation13_spill] sm:$0xff] %v2730_v10  ;;  %v533_v20 = vsel %vm327_vm0, %v2730_v10, 0.0  ;;  %v876_v54 = vsel %vm327_vm0, %v669_v33, 0.0  ;;  %v674_v33 = vmul.f32 %v2586_v58, %v2586_v58 }
  0xd2   : > { %v520_v27 = vadd.f32 %v519_v13, %v518_v18  ;;  %v868_v13 = vsel %vm327_vm0, %v665_v47, 0.0  ;;  %v867_v18 = vadd.f32 %v866_v60, %v865_v63  ;;  %v672_v63 = vmul.f32 %v2570_v52, %v2570_v52 }
  0xd4   : > { %v522_v0 = vadd.f32 %v521_v16, %v520_v27  ;;  %v668_v16 = vmul.f32 %v2538_v40, %v2538_v40  ;;  %v869_v29 = vadd.f32 %v868_v13, %v867_v18 }
  0xd6   : > { %v524_v3 = vadd.f32 %v523_v32, %v522_v0  ;;  %v535_v32 = vsel %vm327_vm0, %v2738_v11, 0.0  ;;  %v2754_v0 = vld [vmem:[%s1982_s17 + $0x350] sm:$0xff] }
  0xd7   : > { %v539_v50 = vsel %vm327_vm0, %v2754_v0, 0.0 }
  0xd8   : > { %v526_v53 = vadd.f32 %v525_v2, %v524_v3  ;;  %v871_v2 = vadd.f32 %v870_v23, %v869_v29  ;;  %v874_v3 = vsel %vm327_vm0, %v668_v16, 0.0  ;;  %v2786_v23 = vld [vmem:[%s1982_s17 + $0x370] sm:$0xff] }
  0xda   : > { %v528_v62 = vadd.f32 %v527_v7, %v526_v53  ;;  %v873_v47 = vadd.f32 %v872_v35, %v871_v2  ;;  %v671_v53 = vmul.f32 %v2562_v49, %v2562_v49  ;;  %v882_v35 = vsel %vm327_vm0, %v672_v63, 0.0 }
  0xdc   : > { %v530_v14 = vadd.f32 %v529_v56, %v528_v62  ;;  %v2770_v56 = vld [vmem:[%s1982_s17 + $0x360] sm:$0xff]  ;;  %v875_v60 = vadd.f32 %v874_v3, %v873_v47  ;;  %v541_v62 = vsel %vm327_vm0, %v2762_v45, 0.0  ;;  %v880_v16 = vsel %vm327_vm0, %v671_v53, 0.0 }
  0xdd   : > { %v543_v18 = vsel %vm327_vm0, %v2770_v56, 0.0  ;;  %v675_v3 = vmul.f32 %v2594_v61, %v2594_v61  ;;  %v2802_v47 = vld [vmem:[%s1982_s17 + $0x380] sm:$0xff] }
  0xde   : > { %v532_v27 = vadd.f32 %v531_v6, %v530_v14  ;;  %v878_v6 = vsel %vm327_vm0, %v670_v41, 0.0  ;;  %v877_v14 = vadd.f32 %v876_v54, %v875_v60  ;;  %v547_v41 = vsel %vm327_vm0, %v2786_v23, 0.0 }
  0xdf   : > { %v886_v60 = vsel %vm327_vm0, %v674_v33, 0.0 }
  0xe0   : > { %v534_v1 = vadd.f32 %v533_v20, %v532_v27  ;;  %v673_v20 = vmul.f32 %v2578_v55, %v2578_v55  ;;  %v879_v29 = vadd.f32 %v878_v6, %v877_v14  ;;  %v677_v14 = vmul.f32 %v2610_v8, %v2610_v8  ;;  %v4751_v8 = vld [vmem:[#allocation17_spill] sm:$0xff] }
  0xe2   : > { %v536_v7 = vadd.f32 %v535_v32, %v534_v1  ;;  %v545_v32 = vsel %vm327_vm0, %v2778_v9, 0.0  ;;  %v2794_v1 = vld [vmem:[%s1982_s17 + $0x378] sm:$0xff] }
  0xe3   : > { %v549_v54 = vsel %vm327_vm0, %v2794_v1, 0.0 }
  0xe4   : > { %v538_v59 = vadd.f32 %v537_v39, %v536_v7  ;;  %v881_v39 = vadd.f32 %v880_v16, %v879_v29  ;;  %v884_v7 = vsel %vm327_vm0, %v673_v20, 0.0  ;;  %v2818_v20 = vld [vmem:[%s1982_s17 + $0x390] sm:$0xff] }
  0xe6   : > { %v540_v13 = vadd.f32 %v539_v50, %v538_v59  ;;  %v883_v53 = vadd.f32 %v882_v35, %v881_v39  ;;  %v676_v59 = vmul.f32 %v2602_v4, %v2602_v4  ;;  %v2826_v35 = vld [vmem:[%s1982_s17 + $0x398] sm:$0xff] }
  0xe8   : > { %v542_v27 = vadd.f32 %v541_v62, %v540_v13  ;;  %v2810_v62 = vld [vmem:[%s1982_s17 + $0x388] sm:$0xff]  ;;  %v885_v6 = vadd.f32 %v884_v7, %v883_v53  ;;  %v551_v13 = vsel %vm327_vm0, %v2802_v47, 0.0  ;;  %v890_v33 = vsel %vm327_vm0, %v676_v59, 0.0 }
  0xe9   : > { %v553_v29 = vsel %vm327_vm0, %v2810_v62, 0.0  ;;  %v892_v7 = vsel %vm327_vm0, %v677_v14, 0.0  ;;  %v557_v59 = vsel %vm327_vm0, %v2826_v35, 0.0 }
  0xea   : > { %v544_v2 = vadd.f32 %v543_v18, %v542_v27  ;;  %v888_v18 = vsel %vm327_vm0, %v675_v3, 0.0  ;;  %v887_v27 = vadd.f32 %v886_v60, %v885_v6  ;;  %v679_v3 = vmul.f32 %v2626_v17, %v2626_v17  ;;  %v2842_v6 = vld [vmem:[%s1982_s17 + $0x3a8] sm:$0xff] }
  0xeb   : > { %v680_v60 = vmul.f32 %v2634_v21, %v2634_v21  ;;  %4667 = vst [vmem:[#allocation18_spill] sm:$0xff] %v2842_v6 }
  0xec   : > { %v546_v50 = vadd.f32 %v545_v32, %v544_v2  ;;  %v678_v32 = vmul.f32 %v2618_v12, %v2618_v12  ;;  %v889_v39 = vadd.f32 %v888_v18, %v887_v27  ;;  %v896_v27 = vsel %vm327_vm0, %v679_v3, 0.0 }
  0xed   : > { %v683_v3 = vmul.f32 %v2658_v42, %v2658_v42  ;;  %v685_v42 = vmul.f32 %v2674_v57, %v2674_v57 }
  0xee   : > { %v548_v63 = vadd.f32 %v547_v41, %v546_v50  ;;  %v555_v41 = vsel %vm327_vm0, %v2818_v20, 0.0  ;;  %v2834_v50 = vld [vmem:[%s1982_s17 + $0x3a0] sm:$0xff] }
  0xef   : > { %v559_v14 = vsel %vm327_vm0, %v2834_v50, 0.0 }
  0xf0   : > { %v550_v16 = vadd.f32 %v549_v54, %v548_v63  ;;  %v891_v54 = vadd.f32 %v890_v33, %v889_v39  ;;  %v894_v63 = vsel %vm327_vm0, %v678_v32, 0.0  ;;  %v561_v32 = vsel %vm327_vm0, %v2842_v6, 0.0 }
  0xf1   : > { %v682_v39 = vmul.f32 %v2650_v36, %v2650_v36 }
  0xf2   : > { %v552_v2 = vadd.f32 %v551_v13, %v550_v16  ;;  %v893_v18 = vadd.f32 %v892_v7, %v891_v54  ;;  %v681_v16 = vmul.f32 %v2642_v30, %v2642_v30  ;;  %v2858_v7 = vld [vmem:[%s1982_s17 + $0x3b8] sm:$0xff] }
  0xf3   : > { %4669 = vst [vmem:[#allocation20_spill] sm:$0xff] %v2858_v7 }
  0xf4   : > { %v554_v53 = vadd.f32 %v553_v29, %v552_v2  ;;  %v2850_v29 = vld [vmem:[%s1982_s17 + $0x3b0] sm:$0xff]  ;;  %v895_v2 = vadd.f32 %v894_v63, %v893_v18  ;;  %v2866_v18 = vld [vmem:[%s1982_s17 + $0x3c0] sm:$0xff] }
  0xf5   : > { %4668 = vst [vmem:[#allocation19_spill] sm:$0xff] %v2850_v29  ;;  %v563_v30 = vsel %vm327_vm0, %v2850_v29, 0.0  ;;  %4670 = vst [vmem:[#allocation21_spill] sm:$0xff] %v2866_v18 }
  0xf6   : > { %v556_v13 = vadd.f32 %v555_v41, %v554_v53  ;;  %v898_v41 = vsel %vm327_vm0, %v680_v60, 0.0  ;;  %v897_v54 = vadd.f32 %v896_v27, %v895_v2  ;;  %v565_v60 = vsel %vm327_vm0, %v2858_v7, 0.0 }
  0xf7   : > { %v902_v27 = vsel %vm327_vm0, %v682_v39, 0.0 }
  0xf8   : > { %v558_v33 = vadd.f32 %v557_v59, %v556_v13  ;;  %v900_v59 = vsel %vm327_vm0, %v681_v16, 0.0  ;;  %v899_v13 = vadd.f32 %v898_v41, %v897_v54  ;;  %v904_v16 = vsel %vm327_vm0, %v683_v3, 0.0  ;;  %v2879_v54 = vld [vmem:[%s1982_s17 + $0x3c8] sm:$0xff] }
  0xf9   : > { %v567_v41 = vsel %vm327_vm0, %v2866_v18, 0.0  ;;  %4671 = vst [vmem:[#allocation22_spill] sm:$0xff] %v2879_v54  ;;  %v908_v3 = vsel %vm327_vm0, %v685_v42, 0.0 }
  0xfa   : > { %v560_v53 = vadd.f32 %v559_v14, %v558_v33  ;;  %v684_v14 = vmul.f32 %v2666_v48, %v2666_v48  ;;  %v901_v2 = vadd.f32 %v900_v59, %v899_v13  ;;  %v686_v48 = vmul.f32 %v2682_v5, %v2682_v5 }
  0xfb   : > { %v569_v13 = vsel %vm327_vm0, %v2879_v54, 0.0 }
  0xfc   : > { %v562_v63 = vadd.f32 %v561_v32, %v560_v53  ;;  %v903_v53 = vadd.f32 %v902_v27, %v901_v2  ;;  %v906_v39 = vsel %vm327_vm0, %v684_v14, 0.0  ;;  %v2890_v27 = vld [vmem:[%s1982_s17 + $0x3d0] sm:$0xff]  ;;  %v910_v2 = vsel %vm327_vm0, %v686_v48, 0.0 }
  0xfd   : > { %4672 = vst [vmem:[#allocation23_spill] sm:$0xff] %v2890_v27  ;;  %v571_v42 = vsel %vm327_vm0, %v2890_v27, 0.0 }
  0xfe   : > { %v564_v33 = vadd.f32 %v563_v30, %v562_v63  ;;  %v905_v30 = vadd.f32 %v904_v16, %v903_v53  ;;  %v687_v63 = vmul.f32 %v2690_v15, %v2690_v15 }
 0x100   : > { %v566_v32 = vadd.f32 %v565_v60, %v564_v33  ;;  %v907_v60 = vadd.f32 %v906_v39, %v905_v30  ;;  %v688_v33 = vmul.f32 %v2698_v26, %v2698_v26  ;;  %v2901_v39 = vld [vmem:[%s1982_s17 + $0x3d8] sm:$0xff]  ;;  %v690_v30 = vmul.f32 %v2714_v44, %v2714_v44 }
 0x101   : > { %4673 = vst [vmem:[#allocation24_spill] sm:$0xff] %v2901_v39 }
 0x102   : > { %v568_v59 = vadd.f32 %v567_v41, %v566_v32  ;;  %v909_v14 = vadd.f32 %v908_v3, %v907_v60  ;;  %v689_v32 = vmul.f32 %v2706_v38, %v2706_v38  ;;  %v912_v41 = vsel %vm327_vm0, %v687_v63, 0.0  ;;  %v3493_v38 = vld [vmem:[%s3458_s20] ss:$0 sm:$0xff] }
 0x103   : > { %v914_v26 = vsel %vm327_vm0, %v688_v33, 0.0  ;;  %v573_v63 = vsel %vm327_vm0, %v2901_v39, 0.0  ;;  %v918_v44 = vsel %vm327_vm0, %v690_v30, 0.0 }
 0x104   : > { %v570_v16 = vadd.f32 %v569_v13, %v568_v59  ;;  %v911_v53 = vadd.f32 %v910_v2, %v909_v14  ;;  %v691_v59 = vmul.f32 %v2722_v51, %v2722_v51  ;;  %v916_v13 = vsel %vm327_vm0, %v689_v32, 0.0  ;;  %v2912_v2 = vld [vmem:[%s1982_s17 + $0x3e0] sm:$0xff] }
 0x105   : > { %4674 = vst [vmem:[#allocation25_spill] sm:$0xff] %v2912_v2  ;;  %v692_v14 = vmul.f32 %v2730_v10, %v2730_v10  ;;  %v575_v32 = vsel %vm327_vm0, %v2912_v2, 0.0 }
 0x106   : > { %v913_v48 = vadd.f32 %v912_v41, %v911_v53  ;;  %v572_v3 = vadd.f32 %v571_v42, %v570_v16  ;;  %v693_v16 = vmul.f32 %v2738_v11, %v2738_v11  ;;  %v920_v42 = vsel %vm327_vm0, %v691_v59, 0.0 }
 0x107   : > { %v922_v10 = vsel %vm327_vm0, %v692_v14, 0.0 }
 0x108   : > { %v915_v60 = vadd.f32 %v914_v26, %v913_v48  ;;  %v574_v41 = vadd.f32 %v573_v63, %v572_v3  ;;  %v2923_v26 = vld [vmem:[%s1982_s17 + $0x3e8] sm:$0xff]  ;;  %v694_v48 = vmul.f32 %v2746_v24, %v2746_v24  ;;  %v695_v3 = vmul.f32 %v2754_v0, %v2754_v0 }
 0x109   : > { %4675 = vst [vmem:[#allocation26_spill] sm:$0xff] %v2923_v26  ;;  %v924_v63 = vsel %vm327_vm0, %v693_v16, 0.0  ;;  %v577_v59 = vsel %vm327_vm0, %v2923_v26, 0.0 }
 0x10a   : > { %v917_v33 = vadd.f32 %v916_v13, %v915_v60  ;;  %v576_v13 = vadd.f32 %v575_v32, %v574_v41  ;;  %v926_v24 = vsel %vm327_vm0, %v694_v48, 0.0  ;;  %v697_v41 = vmul.f32 %v2770_v56, %v2770_v56 }
 0x10c   : > { %v919_v53 = vadd.f32 %v918_v44, %v917_v33  ;;  %v2934_v44 = vld [vmem:[%s1982_s17 + $0x3f0] sm:$0xff]  ;;  %v696_v33 = vmul.f32 %v2762_v45, %v2762_v45  ;;  %v578_v11 = vadd.f32 %v577_v59, %v576_v13  ;;  %v699_v13 = vmul.f32 %v2786_v23, %v2786_v23 }
 0x10d   : > { %4676 = vst [vmem:[#allocation27_spill] sm:$0xff] %v2934_v44  ;;  %v579_v16 = vsel %vm327_vm0, %v2934_v44, 0.0 }
 0x10e   : > { %v921_v30 = vadd.f32 %v920_v42, %v919_v53  ;;  %v928_v42 = vsel %vm327_vm0, %v695_v3, 0.0  ;;  %v2945_v53 = vld [vmem:[%s1982_s17 + $0x3f8] sm:$0xff]  ;;  %v580_v48 = vadd.f32 %v579_v16, %v578_v11  ;;  %v936_v11 = vsel %vm327_vm0, %v699_v13, 0.0 }
 0x10f   : > { %4677 = vst [vmem:[#allocation28_spill] sm:$0xff] %v2945_v53  ;;  %v581_v3 = vsel %vm327_vm0, %v2945_v53, 0.0 }
 0x110   : > { %v923_v60 = vadd.f32 %v922_v10, %v921_v30  ;;  %v698_v10 = vmul.f32 %v2778_v9, %v2778_v9  ;;  %v930_v30 = vsel %vm327_vm0, %v696_v33, 0.0  ;;  %v582_v9 = vadd.f32 %v581_v3, %v580_v48 }
 0x111   : > { %v701_v33 = vmul.f32 %v2802_v47, %v2802_v47  ;;  %v704_v48 = vmul.f32 %v2826_v35, %v2826_v35 }
 0x112   : > { %v925_v14 = vadd.f32 %v924_v63, %v923_v60  ;;  %v932_v63 = vsel %vm327_vm0, %v697_v41, 0.0  ;;  %v934_v60 = vsel %vm327_vm0, %v698_v10, 0.0  ;;  %v702_v41 = vmul.f32 %v2810_v62, %v2810_v62 }
 0x113   : > { %v940_v10 = vsel %vm327_vm0, %v701_v33, 0.0 }
 0x114   : > { %v927_v32 = vadd.f32 %v926_v24, %v925_v14  ;;  %v700_v24 = vmul.f32 %v2794_v1, %v2794_v1  ;;  %v942_v3 = vsel %vm327_vm0, %v702_v41, 0.0 }
 0x116   : > { %v929_v45 = vadd.f32 %v928_v42, %v927_v32  ;;  %v938_v16 = vsel %vm327_vm0, %v700_v24, 0.0 }
 0x118   : > { %v931_v59 = vadd.f32 %v930_v30, %v929_v45  ;;  %v583_v45 = vrot.slane %v582_v9, 4  ;;  %v703_v30 = vmul.f32 %v2818_v20, %v2818_v20 }
 0x11a   : > { %v933_v14 = vadd.f32 %v932_v63, %v931_v59  ;;  %v584_v59 = vadd.f32 %v583_v45, %v582_v9  ;;  %v944_v24 = vsel %vm327_vm0, %v703_v30, 0.0  ;;  %v708_v9 = vmul.f32 %v2858_v7, %v2858_v7 }
 0x11c   : > { %v935_v42 = vadd.f32 %v934_v60, %v933_v14  ;;  %v705_v60 = vmul.f32 %v2834_v50, %v2834_v50 }
 0x11e   : > { %v937_v32 = vadd.f32 %v936_v11, %v935_v42  ;;  %v706_v11 = vmul.f32 %v2842_v6, %v2842_v6  ;;  %v946_v42 = vsel %vm327_vm0, %v704_v48, 0.0  ;;  %v948_v41 = vsel %vm327_vm0, %v705_v60, 0.0 }
 0x120   : > { %v939_v63 = vadd.f32 %v938_v16, %v937_v32  ;;  %v585_v16 = vrot.slane %v584_v59, 2  ;;  %v707_v32 = vmul.f32 %v2850_v29, %v2850_v29  ;;  %v950_v45 = vsel %vm327_vm0, %v706_v11, 0.0 }
 0x122   : > { %v941_v13 = vadd.f32 %v940_v10, %v939_v63  ;;  %v586_v63 = vadd.f32 %v585_v16, %v584_v59  ;;  %v952_v48 = vsel %vm327_vm0, %v707_v32, 0.0  ;;  %v712_v59 = vmul.f32 %v2901_v39, %v2901_v39 }
 0x124   : > { %v943_v14 = vadd.f32 %v942_v3, %v941_v13  ;;  %v709_v3 = vmul.f32 %v2866_v18, %v2866_v18 }
 0x126   : > { %v945_v33 = vadd.f32 %v944_v24, %v943_v14  ;;  %v710_v24 = vmul.f32 %v2879_v54, %v2879_v54  ;;  %v954_v14 = vsel %vm327_vm0, %v708_v9, 0.0  ;;  %v956_v11 = vsel %vm327_vm0, %v709_v3, 0.0 }
 0x127   : > { %v962_v3 = vsel %vm327_vm0, %v712_v59, 0.0 }
 0x128   : > { %v947_v10 = vadd.f32 %v946_v42, %v945_v33  ;;  %v587_v42 = vrot.slane %v586_v63, 1  ;;  %v711_v33 = vmul.f32 %v2890_v27, %v2890_v27  ;;  %v958_v16 = vsel %vm327_vm0, %v710_v24, 0.0 }
 0x129   : > { %v715_v24 = vmul.f32 %v2934_v44, %v2934_v44 }
 0x12a   : > { %v949_v30 = vadd.f32 %v948_v41, %v947_v10  ;;  %v588_v10 = vadd.f32 %v587_v42, %v586_v63  ;;  %v960_v9 = vsel %vm327_vm0, %v711_v33, 0.0  ;;  %v716_v63 = vmul.f32 %v2945_v53, %v2945_v53  ;;  %v3520_v53 = vld [vmem:[%s3480_s23] ss:$0 sm:$0xff] }
 0x12c   : > { %v951_v13 = vadd.f32 %v950_v45, %v949_v30  ;;  %v713_v45 = vmul.f32 %v2912_v2, %v2912_v2  ;;  %v970_v59 = vsel %vm327_vm0, %v716_v63, 0.0  ;;  %v3034_v63 = vld [vmem:[%s1982_s17 + $0x20] sm:$0xff] }
 0x12d   : > { %4678 = vst [vmem:[#allocation29_spill] sm:$0xff] %v3034_v63  ;;  %v3074_v63 = vld [vmem:[%s1982_s17 + $0x60] sm:$0xff] }
 0x12e   : > { %v953_v60 = vadd.f32 %v952_v48, %v951_v13  ;;  %v714_v48 = vmul.f32 %v2923_v26, %v2923_v26  ;;  %4685 = vst [vmem:[#allocation36_spill] sm:$0xff] %v3074_v63  ;;  %v3114_v63 = vld [vmem:[%s1982_s17 + $0xa0] sm:$0xff] }
 0x12f   : > { %4693 = vst [vmem:[#allocation44_spill] sm:$0xff] %v3114_v63  ;;  %v3154_v63 = vld [vmem:[%s1982_s17 + $0xe0] sm:$0xff] }
 0x130   : > { %v955_v41 = vadd.f32 %v954_v14, %v953_v60  ;;  %v964_v14 = vsel %vm327_vm0, %v713_v45, 0.0  ;;  %v3005_v60 = vmul.f32 0.0009765625, %v588_v10  ;;  %v966_v33 = vsel %vm327_vm0, %v714_v48, 0.0  ;;  %v3094_v48 = vld [vmem:[%s1982_s17 + $0x80] sm:$0xff]  ;;  %4701 = vst [vmem:[#allocation52_spill] sm:$0xff] %v3154_v63 }
 0x131   : > { %4689 = vst [vmem:[#allocation40_spill] sm:$0xff] %v3094_v48  ;;  %v3134_v48 = vld [vmem:[%s1982_s17 + $0xc0] sm:$0xff] }
 0x132   : > { %v957_v32 = vadd.f32 %v956_v11, %v955_v41  ;;  %v968_v41 = vsel %vm327_vm0, %v715_v24, 0.0  ;;  %v3049_v24 = vld [vmem:[%s1982_s17 + $0x38] sm:$0xff]  ;;  %4697 = vst [vmem:[#allocation48_spill] sm:$0xff] %v3134_v48  ;;  %v3199_v48 = vld [vmem:[%s1982_s17 + $0x128] sm:$0xff] }
 0x133   : > { %4710 = vst [vmem:[#allocation61_spill] sm:$0xff] %v3199_v48  ;;  %v3239_v48 = vld [vmem:[%s1982_s17 + $0x168] sm:$0xff] }
 0x134   : > { %v959_v30 = vadd.f32 %v958_v16, %v957_v32  ;;  %v3011_v16 = vmul.f32 %v3005_v60, %v588_v10  ;;  %v3014_v32 = vld [vmem:[%s1982_s17] sm:$0xff]  ;;  %v3064_v10 = vld [vmem:[%s1982_s17 + $0x50] sm:$0xff]  ;;  %4718 = vst [vmem:[#allocation69_spill] sm:$0xff] %v3239_v48  ;;  %v3279_v48 = vld [vmem:[%s1982_s17 + $0x1a8] sm:$0xff] }
 0x135   : > { %4683 = vst [vmem:[#allocation34_spill] sm:$0xff] %v3064_v10  ;;  %v3129_v10 = vld [vmem:[%s1982_s17 + $0xb8] sm:$0xff]  ;;  %4726 = vst [vmem:[#allocation77_spill] sm:$0xff] %v3279_v48  ;;  %v3319_v48 = vld [vmem:[%s1982_s17 + $0x1e8] sm:$0xff] }
 0x136   : > { %v961_v13 = vadd.f32 %v960_v9, %v959_v30  ;;  %v3019_v30 = vld [vmem:[%s1982_s17 + $0x8] sm:$0xff]  ;;  %4696 = vst [vmem:[#allocation47_spill] sm:$0xff] %v3129_v10  ;;  %v3169_v10 = vld [vmem:[%s1982_s17 + $0xf8] sm:$0xff]  ;;  %4734 = vst [vmem:[#allocation85_spill] sm:$0xff] %v3319_v48 }
 0x137   : > { %4704 = vst [vmem:[#allocation55_spill] sm:$0xff] %v3169_v10  ;;  %v3209_v10 = vld [vmem:[%s1982_s17 + $0x138] sm:$0xff]  ;;  %v3340_v48 = vld [vmem:[%s1982_s17 + $0x208] sm:$0xff]  ;;  %v4753_v39 = vsub.f32 %v3019_v30, %v3005_v60 }
 0x138   : > { %v963_v42 = vadd.f32 %v962_v3, %v961_v13  ;;  %v3024_v3 = vld [vmem:[%s1982_s17 + $0x10] sm:$0xff]  ;;  %v3029_v13 = vld [vmem:[%s1982_s17 + $0x18] sm:$0xff]  ;;  %4712 = vst [vmem:[#allocation63_spill] sm:$0xff] %v3209_v10  ;;  %4737 = vst [vmem:[#allocation88_spill] sm:$0xff] %v3340_v48 }
 0x139   : > { %v3249_v10 = vld [vmem:[%s1982_s17 + $0x178] sm:$0xff]  ;;  %v3365_v48 = vld [vmem:[%s1982_s17 + $0x230] sm:$0xff]  ;;  %v4755_v57 = vsub.f32 %v3029_v13, %v3005_v60 }
 0x13a   : > { %v965_v11 = vadd.f32 %v964_v14, %v963_v42  ;;  %v3039_v42 = vld [vmem:[%s1982_s17 + $0x28] sm:$0xff]  ;;  %v3054_v14 = vld [vmem:[%s1982_s17 + $0x40] sm:$0xff]  ;;  %4720 = vst [vmem:[#allocation71_spill] sm:$0xff] %v3249_v10  ;;  %v3289_v10 = vld [vmem:[%s1982_s17 + $0x1b8] sm:$0xff] }
 0x13b   : > { %4679 = vst [vmem:[#allocation30_spill] sm:$0xff] %v3039_v42  ;;  %4681 = vst [vmem:[#allocation32_spill] sm:$0xff] %v3054_v14  ;;  %v3079_v42 = vld [vmem:[%s1982_s17 + $0x68] sm:$0xff] }
 0x13c   : > { %v967_v9 = vadd.f32 %v966_v33, %v965_v11  ;;  %v3044_v11 = vld [vmem:[%s1982_s17 + $0x30] sm:$0xff]  ;;  %v3059_v33 = vld [vmem:[%s1982_s17 + $0x48] sm:$0xff]  ;;  %4686 = vst [vmem:[#allocation37_spill] sm:$0xff] %v3079_v42  ;;  %4728 = vst [vmem:[#allocation79_spill] sm:$0xff] %v3289_v10 }
 0x13d   : > { %4680 = vst [vmem:[#allocation31_spill] sm:$0xff] %v3044_v11  ;;  %4682 = vst [vmem:[#allocation33_spill] sm:$0xff] %v3059_v33  ;;  %v3084_v11 = vld [vmem:[%s1982_s17 + $0x70] sm:$0xff]  ;;  %v3099_v33 = vld [vmem:[%s1982_s17 + $0x88] sm:$0xff] }
 0x13e   : > { %v969_v45 = vadd.f32 %v968_v41, %v967_v9  ;;  %v3069_v41 = vld [vmem:[%s1982_s17 + $0x58] sm:$0xff]  ;;  %4687 = vst [vmem:[#allocation38_spill] sm:$0xff] %v3084_v11  ;;  %4690 = vst [vmem:[#allocation41_spill] sm:$0xff] %v3099_v33  ;;  %v3119_v42 = vld [vmem:[%s1982_s17 + $0xa8] sm:$0xff] }
 0x13f   : > { %4684 = vst [vmem:[#allocation35_spill] sm:$0xff] %v3069_v41  ;;  %v3089_v9 = vld [vmem:[%s1982_s17 + $0x78] sm:$0xff]  ;;  %4694 = vst [vmem:[#allocation45_spill] sm:$0xff] %v3119_v42  ;;  %v3139_v33 = vld [vmem:[%s1982_s17 + $0xc8] sm:$0xff] }
 0x140   : > { %v971_v14 = vadd.f32 %v970_v59, %v969_v45  ;;  %4688 = vst [vmem:[#allocation39_spill] sm:$0xff] %v3089_v9  ;;  %v3104_v59 = vld [vmem:[%s1982_s17 + $0x90] sm:$0xff]  ;;  %v3109_v41 = vld [vmem:[%s1982_s17 + $0x98] sm:$0xff]  ;;  %4698 = vst [vmem:[#allocation49_spill] sm:$0xff] %v3139_v33 }
 0x141   : > { %4691 = vst [vmem:[#allocation42_spill] sm:$0xff] %v3104_v59  ;;  %4692 = vst [vmem:[#allocation43_spill] sm:$0xff] %v3109_v41  ;;  %v3124_v45 = vld [vmem:[%s1982_s17 + $0xb0] sm:$0xff]  ;;  %v3149_v41 = vld [vmem:[%s1982_s17 + $0xd8] sm:$0xff] }
 0x142   : > { %v972_v9 = vrot.slane %v971_v14, 4  ;;  %4695 = vst [vmem:[#allocation46_spill] sm:$0xff] %v3124_v45  ;;  %v3144_v59 = vld [vmem:[%s1982_s17 + $0xd0] sm:$0xff]  ;;  %4700 = vst [vmem:[#allocation51_spill] sm:$0xff] %v3149_v41  ;;  %v3159_v42 = vld [vmem:[%s1982_s17 + $0xe8] sm:$0xff] }
 0x143   : > { %4699 = vst [vmem:[#allocation50_spill] sm:$0xff] %v3144_v59  ;;  %4702 = vst [vmem:[#allocation53_spill] sm:$0xff] %v3159_v42  ;;  %v3164_v45 = vld [vmem:[%s1982_s17 + $0xf0] sm:$0xff]  ;;  %v3179_v33 = vld [vmem:[%s1982_s17 + $0x108] sm:$0xff] }
 0x144   : > { %v973_v11 = vadd.f32 %v972_v9, %v971_v14  ;;  %4703 = vst [vmem:[#allocation54_spill] sm:$0xff] %v3164_v45  ;;  %v3174_v14 = vld [vmem:[%s1982_s17 + $0x100] sm:$0xff]  ;;  %4706 = vst [vmem:[#allocation57_spill] sm:$0xff] %v3179_v33  ;;  %v3184_v59 = vld [vmem:[%s1982_s17 + $0x110] sm:$0xff] }
 0x145   : > { %4705 = vst [vmem:[#allocation56_spill] sm:$0xff] %v3174_v14  ;;  %4707 = vst [vmem:[#allocation58_spill] sm:$0xff] %v3184_v59  ;;  %v3189_v41 = vld [vmem:[%s1982_s17 + $0x118] sm:$0xff]  ;;  %v3194_v9 = vld [vmem:[%s1982_s17 + $0x120] sm:$0xff] }
 0x146   : > { %4708 = vst [vmem:[#allocation59_spill] sm:$0xff] %v3189_v41  ;;  %v974_v42 = vrot.slane %v973_v11, 2  ;;  %4709 = vst [vmem:[#allocation60_spill] sm:$0xff] %v3194_v9  ;;  %v3204_v45 = vld [vmem:[%s1982_s17 + $0x130] sm:$0xff]  ;;  %v3214_v14 = vld [vmem:[%s1982_s17 + $0x140] sm:$0xff] }
 0x147   : > { %4711 = vst [vmem:[#allocation62_spill] sm:$0xff] %v3204_v45  ;;  %4713 = vst [vmem:[#allocation64_spill] sm:$0xff] %v3214_v14  ;;  %v3219_v33 = vld [vmem:[%s1982_s17 + $0x148] sm:$0xff]  ;;  %v3224_v59 = vld [vmem:[%s1982_s17 + $0x150] sm:$0xff] }
 0x148   : > { %4714 = vst [vmem:[#allocation65_spill] sm:$0xff] %v3219_v33  ;;  %4715 = vst [vmem:[#allocation66_spill] sm:$0xff] %v3224_v59  ;;  %v975_v63 = vadd.f32 %v974_v42, %v973_v11  ;;  %v3229_v41 = vld [vmem:[%s1982_s17 + $0x158] sm:$0xff]  ;;  %v3234_v9 = vld [vmem:[%s1982_s17 + $0x160] sm:$0xff] }
 0x149   : > { %4716 = vst [vmem:[#allocation67_spill] sm:$0xff] %v3229_v41  ;;  %4717 = vst [vmem:[#allocation68_spill] sm:$0xff] %v3234_v9  ;;  %v3244_v42 = vld [vmem:[%s1982_s17 + $0x170] sm:$0xff]  ;;  %v3254_v14 = vld [vmem:[%s1982_s17 + $0x180] sm:$0xff] }
 0x14a   : > { %4719 = vst [vmem:[#allocation70_spill] sm:$0xff] %v3244_v42  ;;  %4721 = vst [vmem:[#allocation72_spill] sm:$0xff] %v3254_v14  ;;  %v3259_v33 = vld [vmem:[%s1982_s17 + $0x188] sm:$0xff]  ;;  %v976_v41 = vrot.slane %v975_v63, 1  ;;  %v3264_v11 = vld [vmem:[%s1982_s17 + $0x190] sm:$0xff] }
 0x14b   : > { %4722 = vst [vmem:[#allocation73_spill] sm:$0xff] %v3259_v33  ;;  %4723 = vst [vmem:[#allocation74_spill] sm:$0xff] %v3264_v11  ;;  %v3269_v45 = vld [vmem:[%s1982_s17 + $0x198] sm:$0xff]  ;;  %v3274_v9 = vld [vmem:[%s1982_s17 + $0x1a0] sm:$0xff] }
 0x14c   : > { %4724 = vst [vmem:[#allocation75_spill] sm:$0xff] %v3269_v45  ;;  %4725 = vst [vmem:[#allocation76_spill] sm:$0xff] %v3274_v9  ;;  %v3284_v42 = vld [vmem:[%s1982_s17 + $0x1b0] sm:$0xff]  ;;  %v3294_v14 = vld [vmem:[%s1982_s17 + $0x1c0] sm:$0xff]  ;;  %v977_v59 = vadd.f32 %v976_v41, %v975_v63  ;;  %v4754_v9 = vsub.f32 %v3024_v3, %v3005_v60 }
 0x14d   : > { %4727 = vst [vmem:[#allocation78_spill] sm:$0xff] %v3284_v42  ;;  %4729 = vst [vmem:[#allocation80_spill] sm:$0xff] %v3294_v14  ;;  %v3299_v33 = vld [vmem:[%s1982_s17 + $0x1c8] sm:$0xff]  ;;  %v3304_v11 = vld [vmem:[%s1982_s17 + $0x1d0] sm:$0xff] }
 0x14e   : > { %4730 = vst [vmem:[#allocation81_spill] sm:$0xff] %v3299_v33  ;;  %4731 = vst [vmem:[#allocation82_spill] sm:$0xff] %v3304_v11  ;;  %v3309_v45 = vld [vmem:[%s1982_s17 + $0x1d8] sm:$0xff]  ;;  %v3314_v63 = vld [vmem:[%s1982_s17 + $0x1e0] sm:$0xff]  ;;  %v980_v41 = vsub.f32 %v977_v59, %v3011_v16  ;;  %v4752_v16 = vsub.f32 %v3014_v32, %v3005_v60 }
 0x14f   : > { %4732 = vst [vmem:[#allocation83_spill] sm:$0xff] %v3309_v45  ;;  %4733 = vst [vmem:[#allocation84_spill] sm:$0xff] %v3314_v63  ;;  %v3324_v42 = vld [vmem:[%s1982_s17 + $0x1f0] sm:$0xff]  ;;  %v3329_v10 = vld [vmem:[%s1982_s17 + $0x1f8] sm:$0xff] }
 0x150   : > { %4735 = vst [vmem:[#allocation86_spill] sm:$0xff] %v3324_v42  ;;  %v3335_v63 = vld [vmem:[%s1982_s17 + $0x200] sm:$0xff]  ;;  %v3345_v11 = vld [vmem:[%s1982_s17 + $0x210] sm:$0xff]  ;;  %v3350_v14 = vld [vmem:[%s1982_s17 + $0x218] sm:$0xff] }
 0x151   : > { %4736 = vst [vmem:[#allocation87_spill] sm:$0xff] %v3335_v63  ;;  %4738 = vst [vmem:[#allocation89_spill] sm:$0xff] %v3345_v11  ;;  %v3355_v59 = vld [vmem:[%s1982_s17 + $0x220] sm:$0xff]  ;;  %v3360_v45 = vld [vmem:[%s1982_s17 + $0x228] sm:$0xff]  ;;  %v981_v11 = vmul.f32 0.0009775171, %v980_v41 }
 0x152   : > { %4739 = vst [vmem:[#allocation90_spill] sm:$0xff] %v3350_v14  ;;  %4740 = vst [vmem:[#allocation91_spill] sm:$0xff] %v3360_v45  ;;  %v3370_v63 = vld [vmem:[%s1982_s17 + $0x238] sm:$0xff]  ;;  %v4746_v42 = vld [vmem:[#allocation11_spill] sm:$0xff] }
 0x153   : > { %4741 = vst [vmem:[#allocation92_spill] sm:$0xff] %v3365_v48  ;;  %v1110_v48 = vadd.f32 1e-05, %v981_v11  ;;  %v4744_v33 = vld [vmem:[#allocation5_spill] sm:$0xff]  ;;  %v4748_v41 = vld [vmem:[#allocation14_spill] sm:$0xff]  ;;  %v4750_v14 = vld [vmem:[#allocation16_spill] sm:$0xff] }
 0x154   : > { %v4745_v11 = vld [vmem:[#allocation9_spill] sm:$0xff]  ;;  %v4758_v30 = vld [vmem:[#allocation30_spill] sm:$0xff]  ;;  %v4760_v26 = vld [vmem:[#allocation31_spill] sm:$0xff] }
 0x155   : > { %1862 = vrsqrt.f32 %v1110_v48  ;;  %v4747_v45 = vld [vmem:[#allocation13_spill] sm:$0xff]  ;;  %v4749_v48 = vld [vmem:[#allocation15_spill] sm:$0xff] }
 0x156   : > { %v4756_v32 = vld [vmem:[#allocation29_spill] sm:$0xff] }
 0x15f   : > { %v3490_v51 = vpop.eup %1862 }
 0x160   : > { %v1112_v15 = vmul.f32 %v3490_v51, %v4752_v16  ;;  %v1113_v27 = vmul.f32 %v3490_v51, %v4753_v39  ;;  %v1114_v7 = vmul.f32 %v3490_v51, %v4754_v9  ;;  %v1115_v5 = vmul.f32 %v3490_v51, %v4755_v57 }
 0x161   : > { %v4757_v16 = vsub.f32 %v4756_v32, %v3005_v60  ;;  %v4759_v39 = vsub.f32 %v4758_v30, %v3005_v60  ;;  %v4761_v9 = vsub.f32 %v4760_v26, %v3005_v60  ;;  %v4762_v57 = vsub.f32 %v3049_v24, %v3005_v60 }
 0x162   : > { %v1247_v32 = vmul.f32 %v3493_v38, %v1112_v15  ;;  %v1249_v54 = vmul.f32 %v3493_v38, %v1114_v7  ;;  %v1250_v30 = vmul.f32 %v3493_v38, %v1115_v5 }
 0x163   : > { %v1116_v44 = vmul.f32 %v3490_v51, %v4757_v16  ;;  %v1117_v3 = vmul.f32 %v3490_v51, %v4759_v39  ;;  %v1118_v13 = vmul.f32 %v3490_v51, %v4761_v9  ;;  %v1119_v2 = vmul.f32 %v3490_v51, %v4762_v57 }
 0x164   : > { %v1248_v16 = vmul.f32 %v3493_v38, %v1113_v27  ;;  %v1382_v24 = vadd.f32 %v3520_v53, %v1247_v32  ;;  %v1384_v15 = vadd.f32 %v3520_v53, %v1249_v54  ;;  %v1385_v27 = vadd.f32 %v3520_v53, %v1250_v30 }
 0x165   : > { %v1251_v39 = vmul.f32 %v3493_v38, %v1116_v44  ;;  %v1252_v18 = vmul.f32 %v3493_v38, %v1117_v3  ;;  %v1253_v26 = vmul.f32 %v3493_v38, %v1118_v13  ;;  %v1254_v9 = vmul.f32 %v3493_v38, %v1119_v2 }
 0x166   : > { %v1383_v57 = vadd.f32 %v3520_v53, %v1248_v16  ;;  %v1510_v44 = vmax.f32 %v1382_v24, 0.0  ;;  %v1512_v13 = vmax.f32 %v1384_v15, 0.0  ;;  %v1513_v32 = vmax.f32 %v1385_v27, 0.0  ;;  %v4767_v15 = vld [vmem:[#allocation34_spill] sm:$0xff] }
 0x167   : > { %v1386_v5 = vadd.f32 %v3520_v53, %v1251_v39  ;;  %v1387_v7 = vadd.f32 %v3520_v53, %v1252_v18  ;;  %v1388_v2 = vadd.f32 %v3520_v53, %v1253_v26  ;;  %v1389_v54 = vadd.f32 %v3520_v53, %v1254_v9  ;;  %v4763_v18 = vld [vmem:[#allocation32_spill] sm:$0xff]  ;;  %v4765_v9 = vld [vmem:[#allocation33_spill] sm:$0xff] }
 0x168   : > { %v1511_v3 = vmax.f32 %v1383_v57, 0.0  ;;  %1638 = vst.msk [vmem:[%s3555_s26] sm:$0xff] %vm327_vm0, %v1510_v44  ;;  %1640 = vst.msk [vmem:[%s3555_s26 + $0x10] sm:$0xff] %vm327_vm0, %v1512_v13  ;;  %v4764_v39 = vsub.f32 %v4763_v18, %v3005_v60  ;;  %v4766_v24 = vsub.f32 %v4765_v9, %v3005_v60  ;;  %v4768_v27 = vsub.f32 %v4767_v15, %v3005_v60  ;;  %v4771_v44 = vld [vmem:[#allocation36_spill] sm:$0xff]  ;;  %v4775_v9 = vld [vmem:[#allocation38_spill] sm:$0xff] }
 0x169   : > { %v1514_v16 = vmax.f32 %v1386_v5, 0.0  ;;  %v1515_v30 = vmax.f32 %v1387_v7, 0.0  ;;  %v1516_v29 = vmax.f32 %v1388_v2, 0.0  ;;  %v1517_v6 = vmax.f32 %v1389_v54, 0.0  ;;  %1641 = vst.msk [vmem:[%s3555_s26 + $0x18] sm:$0xff] %vm327_vm0, %v1513_v32  ;;  %v4769_v7 = vld [vmem:[#allocation35_spill] sm:$0xff] }
 0x16a   : > { %1639 = vst.msk [vmem:[%s3555_s26 + $0x8] sm:$0xff] %vm327_vm0, %v1511_v3  ;;  %v1120_v26 = vmul.f32 %v3490_v51, %v4764_v39  ;;  %v1121_v57 = vmul.f32 %v3490_v51, %v4766_v24  ;;  %v1122_v5 = vmul.f32 %v3490_v51, %v4768_v27  ;;  %v4770_v2 = vsub.f32 %v4769_v7, %v3005_v60  ;;  %v4773_v32 = vld [vmem:[#allocation37_spill] sm:$0xff] }
 0x16b   : > { %1642 = vst.msk [vmem:[%s3555_s26 + $0x20] sm:$0xff] %vm327_vm0, %v1514_v16  ;;  %1643 = vst.msk [vmem:[%s3555_s26 + $0x28] sm:$0xff] %vm327_vm0, %v1515_v30  ;;  %v4772_v3 = vsub.f32 %v4771_v44, %v3005_v60  ;;  %v4774_v18 = vsub.f32 %v4773_v32, %v3005_v60  ;;  %v4776_v24 = vsub.f32 %v4775_v9, %v3005_v60  ;;  %v4777_v30 = vld [vmem:[#allocation39_spill] sm:$0xff] }
 0x16c   : > { %v1123_v54 = vmul.f32 %v3490_v51, %v4770_v2  ;;  %1644 = vst.msk [vmem:[%s3555_s26 + $0x30] sm:$0xff] %vm327_vm0, %v1516_v29  ;;  %1645 = vst.msk [vmem:[%s3555_s26 + $0x38] sm:$0xff] %vm327_vm0, %v1517_v6  ;;  %v4778_v29 = vsub.f32 %v4777_v30, %v3005_v60  ;;  %v1255_v15 = vmul.f32 %v3493_v38, %v1120_v26 }
 0x16d   : > { %v1124_v13 = vmul.f32 %v3490_v51, %v4772_v3  ;;  %v1125_v39 = vmul.f32 %v3490_v51, %v4774_v18  ;;  %v1126_v16 = vmul.f32 %v3490_v51, %v4776_v24  ;;  %v1256_v27 = vmul.f32 %v3493_v38, %v1121_v57 }
 0x16e   : > { %v1127_v6 = vmul.f32 %v3490_v51, %v4778_v29  ;;  %v1257_v7 = vmul.f32 %v3493_v38, %v1122_v5  ;;  %v1258_v2 = vmul.f32 %v3493_v38, %v1123_v54  ;;  %v1390_v9 = vadd.f32 %v3520_v53, %v1255_v15 }
 0x16f   : > { %v1259_v44 = vmul.f32 %v3493_v38, %v1124_v13  ;;  %v1260_v3 = vmul.f32 %v3493_v38, %v1125_v39  ;;  %v1261_v32 = vmul.f32 %v3493_v38, %v1126_v16  ;;  %v1391_v24 = vadd.f32 %v3520_v53, %v1256_v27 }
 0x170   : > { %v1262_v18 = vmul.f32 %v3493_v38, %v1127_v6  ;;  %v1392_v26 = vadd.f32 %v3520_v53, %v1257_v7  ;;  %v1393_v57 = vadd.f32 %v3520_v53, %v1258_v2  ;;  %v1518_v16 = vmax.f32 %v1390_v9, 0.0 }
 0x171   : > { %v1394_v5 = vadd.f32 %v3520_v53, %v1259_v44  ;;  %v1395_v54 = vadd.f32 %v3520_v53, %v1260_v3  ;;  %v1396_v13 = vadd.f32 %v3520_v53, %v1261_v32  ;;  %v1519_v30 = vmax.f32 %v1391_v24, 0.0  ;;  %v4779_v44 = vld [vmem:[#allocation40_spill] sm:$0xff] }
 0x172   : > { %v1397_v39 = vadd.f32 %v3520_v53, %v1262_v18  ;;  %v1520_v29 = vmax.f32 %v1392_v26, 0.0  ;;  %v1521_v6 = vmax.f32 %v1393_v57, 0.0  ;;  %1646 = vst.msk [vmem:[%s3555_s26 + $0x40] sm:$0xff] %vm327_vm0, %v1518_v16  ;;  %v4780_v3 = vsub.f32 %v4779_v44, %v3005_v60  ;;  %v4781_v18 = vld [vmem:[#allocation41_spill] sm:$0xff]  ;;  %v4783_v26 = vld [vmem:[#allocation42_spill] sm:$0xff]  ;;  %v4787_v16 = vld [vmem:[#allocation44_spill] sm:$0xff] }
 0x173   : > { %v1522_v15 = vmax.f32 %v1394_v5, 0.0  ;;  %v1523_v27 = vmax.f32 %v1395_v54, 0.0  ;;  %v1524_v7 = vmax.f32 %v1396_v13, 0.0  ;;  %1647 = vst.msk [vmem:[%s3555_s26 + $0x48] sm:$0xff] %vm327_vm0, %v1519_v30  ;;  %v4782_v9 = vsub.f32 %v4781_v18, %v3005_v60  ;;  %v4785_v54 = vld [vmem:[#allocation43_spill] sm:$0xff]  ;;  %v4791_v18 = vld [vmem:[#allocation46_spill] sm:$0xff] }
 0x174   : > { %v1525_v2 = vmax.f32 %v1397_v39, 0.0  ;;  %1648 = vst.msk [vmem:[%s3555_s26 + $0x50] sm:$0xff] %vm327_vm0, %v1520_v29  ;;  %1649 = vst.msk [vmem:[%s3555_s26 + $0x58] sm:$0xff] %vm327_vm0, %v1521_v6  ;;  %v1128_v32 = vmul.f32 %v3490_v51, %v4780_v3  ;;  %v4784_v57 = vsub.f32 %v4783_v26, %v3005_v60  ;;  %v4786_v13 = vsub.f32 %v4785_v54, %v3005_v60  ;;  %v4789_v6 = vld [vmem:[#allocation45_spill] sm:$0xff] }
 0x175   : > { %v1129_v24 = vmul.f32 %v3490_v51, %v4782_v9  ;;  %1650 = vst.msk [vmem:[%s3555_s26 + $0x60] sm:$0xff] %vm327_vm0, %v1522_v15  ;;  %1651 = vst.msk [vmem:[%s3555_s26 + $0x68] sm:$0xff] %vm327_vm0, %v1523_v27  ;;  %v4788_v30 = vsub.f32 %v4787_v16, %v3005_v60  ;;  %v4790_v44 = vsub.f32 %v4789_v6, %v3005_v60  ;;  %v4793_v27 = vld [vmem:[#allocation47_spill] sm:$0xff] }
 0x176   : > { %v1130_v5 = vmul.f32 %v3490_v51, %v4784_v57  ;;  %v1131_v39 = vmul.f32 %v3490_v51, %v4786_v13  ;;  %1652 = vst.msk [vmem:[%s3555_s26 + $0x70] sm:$0xff] %vm327_vm0, %v1524_v7  ;;  %1653 = vst.msk [vmem:[%s3555_s26 + $0x78] sm:$0xff] %vm327_vm0, %v1525_v2  ;;  %v4792_v9 = vsub.f32 %v4791_v18, %v3005_v60 }
 0x177   : > { %v1132_v29 = vmul.f32 %v3490_v51, %v4788_v30  ;;  %v1133_v3 = vmul.f32 %v3490_v51, %v4790_v44  ;;  %v4794_v7 = vsub.f32 %v4793_v27, %v3005_v60  ;;  %v1263_v26 = vmul.f32 %v3493_v38, %v1128_v32 }
 0x178   : > { %v1134_v15 = vmul.f32 %v3490_v51, %v4792_v9  ;;  %v1264_v57 = vmul.f32 %v3493_v38, %v1129_v24  ;;  %v1265_v54 = vmul.f32 %v3493_v38, %v1130_v5  ;;  %v1266_v13 = vmul.f32 %v3493_v38, %v1131_v39 }
 0x179   : > { %v1135_v2 = vmul.f32 %v3490_v51, %v4794_v7  ;;  %v1267_v16 = vmul.f32 %v3493_v38, %v1132_v29  ;;  %v1268_v30 = vmul.f32 %v3493_v38, %v1133_v3  ;;  %v1398_v18 = vadd.f32 %v3520_v53, %v1263_v26 }
 0x17a   : > { %v1269_v6 = vmul.f32 %v3493_v38, %v1134_v15  ;;  %v1399_v9 = vadd.f32 %v3520_v53, %v1264_v57  ;;  %v1400_v32 = vadd.f32 %v3520_v53, %v1265_v54  ;;  %v1401_v24 = vadd.f32 %v3520_v53, %v1266_v13 }
 0x17b   : > { %v1270_v44 = vmul.f32 %v3493_v38, %v1135_v2  ;;  %v1402_v5 = vadd.f32 %v3520_v53, %v1267_v16  ;;  %v1403_v39 = vadd.f32 %v3520_v53, %v1268_v30  ;;  %v1526_v15 = vmax.f32 %v1398_v18, 0.0  ;;  %v4795_v16 = vld [vmem:[#allocation48_spill] sm:$0xff] }
 0x17c   : > { %v1404_v29 = vadd.f32 %v3520_v53, %v1269_v6  ;;  %v1527_v27 = vmax.f32 %v1399_v9, 0.0  ;;  %v1528_v7 = vmax.f32 %v1400_v32, 0.0  ;;  %v1529_v2 = vmax.f32 %v1401_v24, 0.0  ;;  %v4799_v32 = vld [vmem:[#allocation50_spill] sm:$0xff] }
 0x17d   : > { %v1405_v3 = vadd.f32 %v3520_v53, %v1270_v44  ;;  %v1530_v26 = vmax.f32 %v1402_v5, 0.0  ;;  %v1531_v57 = vmax.f32 %v1403_v39, 0.0  ;;  %1654 = vst.msk [vmem:[%s3555_s26 + $0x80] sm:$0xff] %vm327_vm0, %v1526_v15  ;;  %v4796_v30 = vsub.f32 %v4795_v16, %v3005_v60  ;;  %v4797_v44 = vld [vmem:[#allocation49_spill] sm:$0xff]  ;;  %v4801_v39 = vld [vmem:[#allocation51_spill] sm:$0xff]  ;;  %v4803_v15 = vld [vmem:[#allocation52_spill] sm:$0xff] }
 0x17e   : > { %v1532_v54 = vmax.f32 %v1404_v29, 0.0  ;;  %1655 = vst.msk [vmem:[%s3555_s26 + $0x88] sm:$0xff] %vm327_vm0, %v1527_v27  ;;  %1656 = vst.msk [vmem:[%s3555_s26 + $0x90] sm:$0xff] %vm327_vm0, %v1528_v7  ;;  %v4798_v18 = vsub.f32 %v4797_v44, %v3005_v60  ;;  %v4800_v24 = vsub.f32 %v4799_v32, %v3005_v60  ;;  %v4802_v29 = vsub.f32 %v4801_v39, %v3005_v60  ;;  %v4807_v44 = vld [vmem:[#allocation54_spill] sm:$0xff] }
 0x17f   : > { %v1533_v13 = vmax.f32 %v1405_v3, 0.0  ;;  %1657 = vst.msk [vmem:[%s3555_s26 + $0x98] sm:$0xff] %vm327_vm0, %v1529_v2  ;;  %v1136_v6 = vmul.f32 %v3490_v51, %v4796_v30  ;;  %1658 = vst.msk [vmem:[%s3555_s26 + $0xa0] sm:$0xff] %vm327_vm0, %v1530_v26  ;;  %v4804_v27 = vsub.f32 %v4803_v15, %v3005_v60  ;;  %v4805_v2 = vld [vmem:[#allocation53_spill] sm:$0xff] }
 0x180   : > { %v1137_v9 = vmul.f32 %v3490_v51, %v4798_v18  ;;  %v1138_v5 = vmul.f32 %v3490_v51, %v4800_v24  ;;  %v1139_v3 = vmul.f32 %v3490_v51, %v4802_v29  ;;  %1659 = vst.msk [vmem:[%s3555_s26 + $0xa8] sm:$0xff] %vm327_vm0, %v1531_v57  ;;  %1660 = vst.msk [vmem:[%s3555_s26 + $0xb0] sm:$0xff] %vm327_vm0, %v1532_v54  ;;  %v4809_v57 = vld [vmem:[#allocation55_spill] sm:$0xff] }
 0x181   : > { %1661 = vst.msk [vmem:[%s3555_s26 + $0xb8] sm:$0xff] %vm327_vm0, %v1533_v13  ;;  %v1140_v7 = vmul.f32 %v3490_v51, %v4804_v27  ;;  %v4806_v16 = vsub.f32 %v4805_v2, %v3005_v60  ;;  %v4808_v18 = vsub.f32 %v4807_v44, %v3005_v60  ;;  %v4810_v54 = vsub.f32 %v4809_v57, %v3005_v60 }
 0x182   : > { %v1271_v32 = vmul.f32 %v3493_v38, %v1136_v6  ;;  %v1272_v24 = vmul.f32 %v3493_v38, %v1137_v9  ;;  %v1273_v39 = vmul.f32 %v3493_v38, %v1138_v5  ;;  %v1274_v29 = vmul.f32 %v3493_v38, %v1139_v3 }
 0x183   : > { %v1141_v30 = vmul.f32 %v3490_v51, %v4806_v16  ;;  %v1142_v26 = vmul.f32 %v3490_v51, %v4808_v18  ;;  %v1143_v13 = vmul.f32 %v3490_v51, %v4810_v54  ;;  %v1275_v15 = vmul.f32 %v3493_v38, %v1140_v7 }
 0x184   : > { %v1406_v44 = vadd.f32 %v3520_v53, %v1271_v32  ;;  %v1407_v18 = vadd.f32 %v3520_v53, %v1272_v24  ;;  %v1408_v6 = vadd.f32 %v3520_v53, %v1273_v39  ;;  %v1409_v9 = vadd.f32 %v3520_v53, %v1274_v29 }
 0x185   : > { %v1276_v27 = vmul.f32 %v3493_v38, %v1141_v30  ;;  %v1277_v2 = vmul.f32 %v3493_v38, %v1142_v26  ;;  %v1278_v16 = vmul.f32 %v3493_v38, %v1143_v13  ;;  %v1410_v5 = vadd.f32 %v3520_v53, %v1275_v15  ;;  %v4811_v15 = vld [vmem:[#allocation56_spill] sm:$0xff] }
 0x186   : > { %v1534_v26 = vmax.f32 %v1406_v44, 0.0  ;;  %v1535_v57 = vmax.f32 %v1407_v18, 0.0  ;;  %v1536_v54 = vmax.f32 %v1408_v6, 0.0  ;;  %v1537_v13 = vmax.f32 %v1409_v9, 0.0  ;;  %v4815_v6 = vld [vmem:[#allocation58_spill] sm:$0xff] }
 0x187   : > { %v1411_v3 = vadd.f32 %v3520_v53, %v1276_v27  ;;  %v1412_v7 = vadd.f32 %v3520_v53, %v1277_v2  ;;  %v1413_v30 = vadd.f32 %v3520_v53, %v1278_v16  ;;  %v1538_v32 = vmax.f32 %v1410_v5, 0.0  ;;  %v4813_v16 = vld [vmem:[#allocation57_spill] sm:$0xff] }
 0x188   : > { %1662 = vst.msk [vmem:[%s3555_s26 + $0xc0] sm:$0xff] %vm327_vm0, %v1534_v26  ;;  %1663 = vst.msk [vmem:[%s3555_s26 + $0xc8] sm:$0xff] %vm327_vm0, %v1535_v57  ;;  %v4812_v27 = vsub.f32 %v4811_v15, %v3005_v60  ;;  %v4814_v44 = vsub.f32 %v4813_v16, %v3005_v60  ;;  %v4816_v9 = vsub.f32 %v4815_v6, %v3005_v60  ;;  %v4819_v26 = vld [vmem:[#allocation60_spill] sm:$0xff]  ;;  %v4823_v16 = vld [vmem:[#allocation62_spill] sm:$0xff] }
 0x189   : > { %v1539_v24 = vmax.f32 %v1411_v3, 0.0  ;;  %v1540_v39 = vmax.f32 %v1412_v7, 0.0  ;;  %v1541_v29 = vmax.f32 %v1413_v30, 0.0  ;;  %1664 = vst.msk [vmem:[%s3555_s26 + $0xd0] sm:$0xff] %vm327_vm0, %v1536_v54  ;;  %1665 = vst.msk [vmem:[%s3555_s26 + $0xd8] sm:$0xff] %vm327_vm0, %v1537_v13  ;;  %v4817_v3 = vld [vmem:[#allocation59_spill] sm:$0xff]  ;;  %v4820_v57 = vsub.f32 %v4819_v26, %v3005_v60 }
 0x18a   : > { %v1144_v2 = vmul.f32 %v3490_v51, %v4812_v27  ;;  %v1145_v18 = vmul.f32 %v3490_v51, %v4814_v44  ;;  %v1146_v5 = vmul.f32 %v3490_v51, %v4816_v9  ;;  %v4818_v7 = vsub.f32 %v4817_v3, %v3005_v60  ;;  %1666 = vst.msk [vmem:[%s3555_s26 + $0xe0] sm:$0xff] %vm327_vm0, %v1538_v32  ;;  %v4821_v13 = vld [vmem:[#allocation61_spill] sm:$0xff] }
 0x18b   : > { %1667 = vst.msk [vmem:[%s3555_s26 + $0xe8] sm:$0xff] %vm327_vm0, %v1539_v24  ;;  %1668 = vst.msk [vmem:[%s3555_s26 + $0xf0] sm:$0xff] %vm327_vm0, %v1540_v39  ;;  %v1148_v54 = vmul.f32 %v3490_v51, %v4820_v57  ;;  %v4822_v15 = vsub.f32 %v4821_v13, %v3005_v60  ;;  %v4824_v44 = vsub.f32 %v4823_v16, %v3005_v60  ;;  %v4825_v24 = vld [vmem:[#allocation63_spill] sm:$0xff] }
 0x18c   : > { %v1147_v30 = vmul.f32 %v3490_v51, %v4818_v7  ;;  %1669 = vst.msk [vmem:[%s3555_s26 + $0xf8] sm:$0xff] %vm327_vm0, %v1541_v29  ;;  %v4826_v39 = vsub.f32 %v4825_v24, %v3005_v60  ;;  %v1279_v6 = vmul.f32 %v3493_v38, %v1144_v2  ;;  %v1280_v9 = vmul.f32 %v3493_v38, %v1145_v18 }
 0x18d   : > { %v1149_v27 = vmul.f32 %v3490_v51, %v4822_v15  ;;  %v1150_v32 = vmul.f32 %v3490_v51, %v4824_v44  ;;  %v1281_v3 = vmul.f32 %v3493_v38, %v1146_v5  ;;  %v1283_v26 = vmul.f32 %v3493_v38, %v1148_v54 }
 0x18e   : > { %v1151_v29 = vmul.f32 %v3490_v51, %v4826_v39  ;;  %v1282_v7 = vmul.f32 %v3493_v38, %v1147_v30  ;;  %v1414_v16 = vadd.f32 %v3520_v53, %v1279_v6  ;;  %v1415_v44 = vadd.f32 %v3520_v53, %v1280_v9 }
 0x18f   : > { %v1284_v57 = vmul.f32 %v3493_v38, %v1149_v27  ;;  %v1285_v13 = vmul.f32 %v3493_v38, %v1150_v32  ;;  %v1416_v2 = vadd.f32 %v3520_v53, %v1281_v3  ;;  %v1418_v5 = vadd.f32 %v3520_v53, %v1283_v26  ;;  %v4827_v26 = vld [vmem:[#allocation64_spill] sm:$0xff] }
 0x190   : > { %v1286_v15 = vmul.f32 %v3493_v38, %v1151_v29  ;;  %v1417_v18 = vadd.f32 %v3520_v53, %v1282_v7  ;;  %v1542_v32 = vmax.f32 %v1414_v16, 0.0  ;;  %v1543_v24 = vmax.f32 %v1415_v44, 0.0 }
 0x191   : > { %v1419_v30 = vadd.f32 %v3520_v53, %v1284_v57  ;;  %v1420_v54 = vadd.f32 %v3520_v53, %v1285_v13  ;;  %v1544_v39 = vmax.f32 %v1416_v2, 0.0  ;;  %v1546_v6 = vmax.f32 %v1418_v5, 0.0  ;;  %v4831_v2 = vld [vmem:[#allocation66_spill] sm:$0xff] }
 0x192   : > { %v1421_v27 = vadd.f32 %v3520_v53, %v1286_v15  ;;  %v1545_v29 = vmax.f32 %v1417_v18, 0.0  ;;  %1670 = vst.msk [vmem:[%s3555_s26 + $0x100] sm:$0xff] %vm327_vm0, %v1542_v32  ;;  %1671 = vst.msk [vmem:[%s3555_s26 + $0x108] sm:$0xff] %vm327_vm0, %v1543_v24  ;;  %v4828_v57 = vsub.f32 %v4827_v26, %v3005_v60  ;;  %v4829_v15 = vld [vmem:[#allocation65_spill] sm:$0xff]  ;;  %v4832_v18 = vsub.f32 %v4831_v2, %v3005_v60  ;;  %v4835_v32 = vld [vmem:[#allocation68_spill] sm:$0xff] }
 0x193   : > { %v1547_v9 = vmax.f32 %v1419_v30, 0.0  ;;  %v1548_v3 = vmax.f32 %v1420_v54, 0.0  ;;  %1672 = vst.msk [vmem:[%s3555_s26 + $0x110] sm:$0xff] %vm327_vm0, %v1544_v39  ;;  %v4830_v16 = vsub.f32 %v4829_v15, %v3005_v60  ;;  %v4833_v30 = vld [vmem:[#allocation67_spill] sm:$0xff]  ;;  %1674 = vst.msk [vmem:[%s3555_s26 + $0x120] sm:$0xff] %vm327_vm0, %v1546_v6  ;;  %v4836_v24 = vsub.f32 %v4835_v32, %v3005_v60  ;;  %v4839_v15 = vld [vmem:[#allocation70_spill] sm:$0xff] }
 0x194   : > { %v1549_v7 = vmax.f32 %v1421_v27, 0.0  ;;  %1673 = vst.msk [vmem:[%s3555_s26 + $0x118] sm:$0xff] %vm327_vm0, %v1545_v29  ;;  %v1152_v13 = vmul.f32 %v3490_v51, %v4828_v57  ;;  %v1154_v5 = vmul.f32 %v3490_v51, %v4832_v18  ;;  %v4834_v54 = vsub.f32 %v4833_v30, %v3005_v60  ;;  %v4837_v29 = vld [vmem:[#allocation69_spill] sm:$0xff] }
 0x195   : > { %v1153_v44 = vmul.f32 %v3490_v51, %v4830_v16  ;;  %1675 = vst.msk [vmem:[%s3555_s26 + $0x128] sm:$0xff] %vm327_vm0, %v1547_v9  ;;  %1676 = vst.msk [vmem:[%s3555_s26 + $0x130] sm:$0xff] %vm327_vm0, %v1548_v3  ;;  %v1156_v39 = vmul.f32 %v3490_v51, %v4836_v24  ;;  %v4838_v26 = vsub.f32 %v4837_v29, %v3005_v60  ;;  %v4841_v9 = vld [vmem:[#allocation71_spill] sm:$0xff] }
 0x196   : > { %v1155_v27 = vmul.f32 %v3490_v51, %v4834_v54  ;;  %1677 = vst.msk [vmem:[%s3555_s26 + $0x138] sm:$0xff] %vm327_vm0, %v1549_v7  ;;  %v4840_v16 = vsub.f32 %v4839_v15, %v3005_v60  ;;  %v4842_v3 = vsub.f32 %v4841_v9, %v3005_v60  ;;  %v1287_v2 = vmul.f32 %v3493_v38, %v1152_v13 }
 0x197   : > { %v1157_v57 = vmul.f32 %v3490_v51, %v4838_v26  ;;  %v1288_v18 = vmul.f32 %v3493_v38, %v1153_v44  ;;  %v1289_v30 = vmul.f32 %v3493_v38, %v1154_v5  ;;  %v1291_v32 = vmul.f32 %v3493_v38, %v1156_v39 }
 0x198   : > { %v1158_v6 = vmul.f32 %v3490_v51, %v4840_v16  ;;  %v1159_v7 = vmul.f32 %v3490_v51, %v4842_v3  ;;  %v1290_v54 = vmul.f32 %v3493_v38, %v1155_v27  ;;  %v1422_v15 = vadd.f32 %v3520_v53, %v1287_v2 }
 0x199   : > { %v1292_v24 = vmul.f32 %v3493_v38, %v1157_v57  ;;  %v1423_v16 = vadd.f32 %v3520_v53, %v1288_v18  ;;  %v1424_v13 = vadd.f32 %v3520_v53, %v1289_v30  ;;  %v1426_v5 = vadd.f32 %v3520_v53, %v1291_v32  ;;  %v4843_v32 = vld [vmem:[#allocation72_spill] sm:$0xff] }
 0x19a   : > { %v1293_v29 = vmul.f32 %v3493_v38, %v1158_v6  ;;  %v1294_v26 = vmul.f32 %v3493_v38, %v1159_v7  ;;  %v1425_v44 = vadd.f32 %v3520_v53, %v1290_v54  ;;  %v1550_v6 = vmax.f32 %v1422_v15, 0.0 }
 0x19b   : > { %v1427_v27 = vadd.f32 %v3520_v53, %v1292_v24  ;;  %v1551_v9 = vmax.f32 %v1423_v16, 0.0  ;;  %v1552_v3 = vmax.f32 %v1424_v13, 0.0  ;;  %v1554_v2 = vmax.f32 %v1426_v5, 0.0  ;;  %v4847_v13 = vld [vmem:[#allocation74_spill] sm:$0xff] }
 0x19c   : > { %v1428_v39 = vadd.f32 %v3520_v53, %v1293_v29  ;;  %v1429_v57 = vadd.f32 %v3520_v53, %v1294_v26  ;;  %v1553_v7 = vmax.f32 %v1425_v44, 0.0  ;;  %1678 = vst.msk [vmem:[%s3555_s26 + $0x140] sm:$0xff] %vm327_vm0, %v1550_v6  ;;  %v4844_v24 = vsub.f32 %v4843_v32, %v3005_v60  ;;  %v4845_v26 = vld [vmem:[#allocation73_spill] sm:$0xff]  ;;  %v4851_v6 = vld [vmem:[#allocation76_spill] sm:$0xff] }
 0x19d   : > { %v1555_v18 = vmax.f32 %v1427_v27, 0.0  ;;  %1679 = vst.msk [vmem:[%s3555_s26 + $0x148] sm:$0xff] %vm327_vm0, %v1551_v9  ;;  %1680 = vst.msk [vmem:[%s3555_s26 + $0x150] sm:$0xff] %vm327_vm0, %v1552_v3  ;;  %v4846_v15 = vsub.f32 %v4845_v26, %v3005_v60  ;;  %v4848_v44 = vsub.f32 %v4847_v13, %v3005_v60  ;;  %v4849_v27 = vld [vmem:[#allocation75_spill] sm:$0xff]  ;;  %v4852_v9 = vsub.f32 %v4851_v6, %v3005_v60  ;;  %v4855_v26 = vld [vmem:[#allocation78_spill] sm:$0xff] }
 0x19e   : > { %v1556_v30 = vmax.f32 %v1428_v39, 0.0  ;;  %v1557_v54 = vmax.f32 %v1429_v57, 0.0  ;;  %1681 = vst.msk [vmem:[%s3555_s26 + $0x158] sm:$0xff] %vm327_vm0, %v1553_v7  ;;  %v1160_v29 = vmul.f32 %v3490_v51, %v4844_v24  ;;  %v4850_v39 = vsub.f32 %v4849_v27, %v3005_v60  ;;  %1682 = vst.msk [vmem:[%s3555_s26 + $0x160] sm:$0xff] %vm327_vm0, %v1554_v2  ;;  %v4853_v7 = vld [vmem:[#allocation77_spill] sm:$0xff] }
 0x19f   : > { %v1161_v16 = vmul.f32 %v3490_v51, %v4846_v15  ;;  %v1162_v5 = vmul.f32 %v3490_v51, %v4848_v44  ;;  %1683 = vst.msk [vmem:[%s3555_s26 + $0x168] sm:$0xff] %vm327_vm0, %v1555_v18  ;;  %v1164_v3 = vmul.f32 %v3490_v51, %v4852_v9  ;;  %v4854_v32 = vsub.f32 %v4853_v7, %v3005_v60  ;;  %v4857_v18 = vld [vmem:[#allocation79_spill] sm:$0xff] }
 0x1a0   : > { %v1163_v57 = vmul.f32 %v3490_v51, %v4850_v39  ;;  %1684 = vst.msk [vmem:[%s3555_s26 + $0x170] sm:$0xff] %vm327_vm0, %v1556_v30  ;;  %1685 = vst.msk [vmem:[%s3555_s26 + $0x178] sm:$0xff] %vm327_vm0, %v1557_v54  ;;  %v4856_v15 = vsub.f32 %v4855_v26, %v3005_v60  ;;  %v4858_v30 = vsub.f32 %v4857_v18, %v3005_v60 }
 0x1a1   : > { %v1165_v24 = vmul.f32 %v3490_v51, %v4854_v32  ;;  %v1295_v13 = vmul.f32 %v3493_v38, %v1160_v29  ;;  %v1296_v44 = vmul.f32 %v3493_v38, %v1161_v16  ;;  %v1297_v27 = vmul.f32 %v3493_v38, %v1162_v5 }
 0x1a2   : > { %v1166_v2 = vmul.f32 %v3490_v51, %v4856_v15  ;;  %v1167_v54 = vmul.f32 %v3490_v51, %v4858_v30  ;;  %v1298_v39 = vmul.f32 %v3493_v38, %v1163_v57  ;;  %v1299_v6 = vmul.f32 %v3493_v38, %v1164_v3 }
 0x1a3   : > { %v1300_v9 = vmul.f32 %v3493_v38, %v1165_v24  ;;  %v1430_v26 = vadd.f32 %v3520_v53, %v1295_v13  ;;  %v1431_v15 = vadd.f32 %v3520_v53, %v1296_v44  ;;  %v1432_v29 = vadd.f32 %v3520_v53, %v1297_v27 }
 0x1a4   : > { %v1301_v7 = vmul.f32 %v3493_v38, %v1166_v2  ;;  %v1302_v32 = vmul.f32 %v3493_v38, %v1167_v54  ;;  %v1433_v16 = vadd.f32 %v3520_v53, %v1298_v39  ;;  %v1434_v5 = vadd.f32 %v3520_v53, %v1299_v6  ;;  %v4859_v6 = vld [vmem:[#allocation80_spill] sm:$0xff] }
 0x1a5   : > { %v1435_v57 = vadd.f32 %v3520_v53, %v1300_v9  ;;  %v1558_v2 = vmax.f32 %v1430_v26, 0.0  ;;  %v1559_v18 = vmax.f32 %v1431_v15, 0.0  ;;  %v1560_v30 = vmax.f32 %v1432_v29, 0.0  ;;  %v4863_v29 = vld [vmem:[#allocation82_spill] sm:$0xff] }
 0x1a6   : > { %v1436_v3 = vadd.f32 %v3520_v53, %v1301_v7  ;;  %v1437_v24 = vadd.f32 %v3520_v53, %v1302_v32  ;;  %v1561_v54 = vmax.f32 %v1433_v16, 0.0  ;;  %v1562_v13 = vmax.f32 %v1434_v5, 0.0  ;;  %v4861_v32 = vld [vmem:[#allocation81_spill] sm:$0xff] }
 0x1a7   : > { %v1563_v44 = vmax.f32 %v1435_v57, 0.0  ;;  %1686 = vst.msk [vmem:[%s3555_s26 + $0x180] sm:$0xff] %vm327_vm0, %v1558_v2  ;;  %1687 = vst.msk [vmem:[%s3555_s26 + $0x188] sm:$0xff] %vm327_vm0, %v1559_v18  ;;  %v4860_v9 = vsub.f32 %v4859_v6, %v3005_v60  ;;  %v4862_v26 = vsub.f32 %v4861_v32, %v3005_v60  ;;  %v4864_v16 = vsub.f32 %v4863_v29, %v3005_v60  ;;  %v4865_v57 = vld [vmem:[#allocation83_spill] sm:$0xff]  ;;  %v4867_v2 = vld [vmem:[#allocation84_spill] sm:$0xff] }
 0x1a8   : > { %v1564_v27 = vmax.f32 %v1436_v3, 0.0  ;;  %v1565_v39 = vmax.f32 %v1437_v24, 0.0  ;;  %1688 = vst.msk [vmem:[%s3555_s26 + $0x190] sm:$0xff] %vm327_vm0, %v1560_v30  ;;  %1689 = vst.msk [vmem:[%s3555_s26 + $0x198] sm:$0xff] %vm327_vm0, %v1561_v54  ;;  %v4866_v3 = vsub.f32 %v4865_v57, %v3005_v60  ;;  %v4868_v18 = vsub.f32 %v4867_v2, %v3005_v60  ;;  %v4869_v54 = vld [vmem:[#allocation85_spill] sm:$0xff]  ;;  %v4871_v32 = vld [vmem:[#allocation86_spill] sm:$0xff] }
 0x1a9   : > { %v1168_v7 = vmul.f32 %v3490_v51, %v4860_v9  ;;  %v1169_v15 = vmul.f32 %v3490_v51, %v4862_v26  ;;  %v1170_v5 = vmul.f32 %v3490_v51, %v4864_v16  ;;  %1690 = vst.msk [vmem:[%s3555_s26 + $0x1a0] sm:$0xff] %vm327_vm0, %v1562_v13  ;;  %1691 = vst.msk [vmem:[%s3555_s26 + $0x1a8] sm:$0xff] %vm327_vm0, %v1563_v44 }
 0x1aa   : > { %v1171_v24 = vmul.f32 %v3490_v51, %v4866_v3  ;;  %1692 = vst.msk [vmem:[%s3555_s26 + $0x1b0] sm:$0xff] %vm327_vm0, %v1564_v27  ;;  %1693 = vst.msk [vmem:[%s3555_s26 + $0x1b8] sm:$0xff] %vm327_vm0, %v1565_v39  ;;  %v1172_v30 = vmul.f32 %v3490_v51, %v4868_v18  ;;  %v4870_v6 = vsub.f32 %v4869_v54, %v3005_v60 }
 0x1ab   : > { %v4872_v26 = vsub.f32 %v4871_v32, %v3005_v60  ;;  %v4873_v44 = vsub.f32 %v3329_v10, %v3005_v60  ;;  %v1303_v39 = vmul.f32 %v3493_v38, %v1168_v7  ;;  %v1304_v29 = vmul.f32 %v3493_v38, %v1169_v15 }
 0x1ac   : > { %v1173_v9 = vmul.f32 %v3490_v51, %v4870_v6  ;;  %v1305_v16 = vmul.f32 %v3493_v38, %v1170_v5  ;;  %v1306_v57 = vmul.f32 %v3493_v38, %v1171_v24  ;;  %v1307_v3 = vmul.f32 %v3493_v38, %v1172_v30 }
 0x1ad   : > { %v1174_v13 = vmul.f32 %v3490_v51, %v4872_v26  ;;  %v1175_v27 = vmul.f32 %v3490_v51, %v4873_v44  ;;  %v1438_v10 = vadd.f32 %v3520_v53, %v1303_v39  ;;  %v1439_v6 = vadd.f32 %v3520_v53, %v1304_v29 }
 0x1ae   : > { %v1308_v2 = vmul.f32 %v3493_v38, %v1173_v9  ;;  %v1440_v7 = vadd.f32 %v3520_v53, %v1305_v16  ;;  %v1441_v15 = vadd.f32 %v3520_v53, %v1306_v57  ;;  %v1442_v5 = vadd.f32 %v3520_v53, %v1307_v3  ;;  %v4874_v57 = vld [vmem:[#allocation87_spill] sm:$0xff] }
 0x1af   : > { %v1309_v18 = vmul.f32 %v3493_v38, %v1174_v13  ;;  %v1310_v54 = vmul.f32 %v3493_v38, %v1175_v27  ;;  %v1566_v32 = vmax.f32 %v1438_v10, 0.0  ;;  %v1567_v26 = vmax.f32 %v1439_v6, 0.0  ;;  %v4878_v6 = vld [vmem:[#allocation89_spill] sm:$0xff] }
 0x1b0   : > { %v1443_v24 = vadd.f32 %v3520_v53, %v1308_v2  ;;  %v1568_v13 = vmax.f32 %v1440_v7, 0.0  ;;  %v1569_v44 = vmax.f32 %v1441_v15, 0.0  ;;  %v1570_v27 = vmax.f32 %v1442_v5, 0.0  ;;  %v4880_v5 = vld [vmem:[#allocation90_spill] sm:$0xff] }
 0x1b1   : > { %v1444_v30 = vadd.f32 %v3520_v53, %v1309_v18  ;;  %v1445_v9 = vadd.f32 %v3520_v53, %v1310_v54  ;;  %1694 = vst.msk [vmem:[%s3555_s26 + $0x1c0] sm:$0xff] %vm327_vm0, %v1566_v32  ;;  %1695 = vst.msk [vmem:[%s3555_s26 + $0x1c8] sm:$0xff] %vm327_vm0, %v1567_v26  ;;  %v4875_v3 = vsub.f32 %v4874_v57, %v3005_v60  ;;  %v4876_v18 = vld [vmem:[#allocation88_spill] sm:$0xff]  ;;  %v4883_v26 = vld [vmem:[#allocation91_spill] sm:$0xff] }
 0x1b2   : > { %v1571_v39 = vmax.f32 %v1443_v24, 0.0  ;;  %1696 = vst.msk [vmem:[%s3555_s26 + $0x1d0] sm:$0xff] %vm327_vm0, %v1568_v13  ;;  %1697 = vst.msk [vmem:[%s3555_s26 + $0x1d8] sm:$0xff] %vm327_vm0, %v1569_v44  ;;  %v4877_v54 = vsub.f32 %v4876_v18, %v3005_v60  ;;  %v4879_v7 = vsub.f32 %v4878_v6, %v3005_v60  ;;  %v4881_v24 = vsub.f32 %v4880_v5, %v3005_v60  ;;  %v4885_v57 = vld [vmem:[#allocation92_spill] sm:$0xff] }
 0x1b3   : > { %v1572_v29 = vmax.f32 %v1444_v30, 0.0  ;;  %v1573_v16 = vmax.f32 %v1445_v9, 0.0  ;;  %v1176_v2 = vmul.f32 %v3490_v51, %v4875_v3  ;;  %1698 = vst.msk [vmem:[%s3555_s26 + $0x1e0] sm:$0xff] %vm327_vm0, %v1570_v27  ;;  %v4882_v9 = vsub.f32 %v3355_v59, %v3005_v60 }
 0x1b4   : > { %v1177_v10 = vmul.f32 %v3490_v51, %v4877_v54  ;;  %v1178_v15 = vmul.f32 %v3490_v51, %v4879_v7  ;;  %v1179_v30 = vmul.f32 %v3490_v51, %v4881_v24  ;;  %1699 = vst.msk [vmem:[%s3555_s26 + $0x1e8] sm:$0xff] %vm327_vm0, %v1571_v39  ;;  %v4884_v13 = vsub.f32 %v4883_v26, %v3005_v60 }
 0x1b5   : > { %1700 = vst.msk [vmem:[%s3555_s26 + $0x1f0] sm:$0xff] %vm327_vm0, %v1572_v29  ;;  %1701 = vst.msk [vmem:[%s3555_s26 + $0x1f8] sm:$0xff] %vm327_vm0, %v1573_v16  ;;  %v1180_v32 = vmul.f32 %v3490_v51, %v4882_v9  ;;  %v4886_v3 = vsub.f32 %v4885_v57, %v3005_v60  ;;  %v4887_v39 = vsub.f32 %v3370_v63, %v3005_v60 }
 0x1b6   : > { %v1181_v44 = vmul.f32 %v3490_v51, %v4884_v13  ;;  %v1311_v16 = vmul.f32 %v3493_v38, %v1176_v2  ;;  %v1312_v59 = vmul.f32 %v3493_v38, %v1177_v10  ;;  %v1313_v18 = vmul.f32 %v3493_v38, %v1178_v15 }
 0x1b7   : > { %v1182_v27 = vmul.f32 %v3490_v51, %v4886_v3  ;;  %v1183_v29 = vmul.f32 %v3490_v51, %v4887_v39  ;;  %v1314_v54 = vmul.f32 %v3493_v38, %v1179_v30  ;;  %v1315_v6 = vmul.f32 %v3493_v38, %v1180_v32 }
 0x1b8   : > { %v1316_v7 = vmul.f32 %v3493_v38, %v1181_v44  ;;  %v1446_v63 = vadd.f32 %v3520_v53, %v1311_v16  ;;  %v1447_v9 = vadd.f32 %v3520_v53, %v1312_v59  ;;  %v1448_v2 = vadd.f32 %v3520_v53, %v1313_v18 }
 0x1b9   : > { %v1317_v5 = vmul.f32 %v3493_v38, %v1182_v27  ;;  %v1318_v24 = vmul.f32 %v3493_v38, %v1183_v29  ;;  %v1449_v10 = vadd.f32 %v3520_v53, %v1314_v54  ;;  %v1450_v15 = vadd.f32 %v3520_v53, %v1315_v6 }
 0x1ba   : > { %v1451_v30 = vadd.f32 %v3520_v53, %v1316_v7  ;;  %v1574_v13 = vmax.f32 %v1446_v63, 0.0  ;;  %v1575_v44 = vmax.f32 %v1447_v9, 0.0  ;;  %v1576_v57 = vmax.f32 %v1448_v2, 0.0 }
 0x1bb   : > { %v1452_v32 = vadd.f32 %v3520_v53, %v1317_v5  ;;  %v1453_v26 = vadd.f32 %v3520_v53, %v1318_v24  ;;  %v1577_v3 = vmax.f32 %v1449_v10, 0.0  ;;  %v1578_v27 = vmax.f32 %v1450_v15, 0.0 }
 0x1bc   : > { %v1579_v39 = vmax.f32 %v1451_v30, 0.0  ;;  %1702 = vst.msk [vmem:[%s3555_s26 + $0x200] sm:$0xff] %vm327_vm0, %v1574_v13  ;;  %1703 = vst.msk [vmem:[%s3555_s26 + $0x208] sm:$0xff] %vm327_vm0, %v1575_v44  ;;  %v4888_v59 = vsub.f32 %v2482_v19, %v3005_v60  ;;  %v4889_v54 = vsub.f32 %v2490_v22, %v3005_v60  ;;  %v4890_v7 = vsub.f32 %v2498_v25, %v3005_v60 }
 0x1bd   : > { %v1580_v29 = vmax.f32 %v1452_v32, 0.0  ;;  %v1581_v16 = vmax.f32 %v1453_v26, 0.0  ;;  %1704 = vst.msk [vmem:[%s3555_s26 + $0x210] sm:$0xff] %vm327_vm0, %v1576_v57  ;;  %1705 = vst.msk [vmem:[%s3555_s26 + $0x218] sm:$0xff] %vm327_vm0, %v1577_v3  ;;  %v4891_v24 = vsub.f32 %v2506_v28, %v3005_v60  ;;  %v4892_v19 = vsub.f32 %v2514_v31, %v3005_v60 }
 0x1be   : > { %v1184_v18 = vmul.f32 %v3490_v51, %v4888_v59  ;;  %v1185_v6 = vmul.f32 %v3490_v51, %v4889_v54  ;;  %v1186_v5 = vmul.f32 %v3490_v51, %v4890_v7  ;;  %1706 = vst.msk [vmem:[%s3555_s26 + $0x220] sm:$0xff] %vm327_vm0, %v1578_v27  ;;  %1707 = vst.msk [vmem:[%s3555_s26 + $0x228] sm:$0xff] %vm327_vm0, %v1579_v39 }
 0x1bf   : > { %v1187_v63 = vmul.f32 %v3490_v51, %v4891_v24  ;;  %1708 = vst.msk [vmem:[%s3555_s26 + $0x230] sm:$0xff] %vm327_vm0, %v1580_v29  ;;  %1709 = vst.msk [vmem:[%s3555_s26 + $0x238] sm:$0xff] %vm327_vm0, %v1581_v16  ;;  %v1188_v22 = vmul.f32 %v3490_v51, %v4892_v19  ;;  %v4893_v25 = vsub.f32 %v2522_v34, %v3005_v60 }
 0x1c0   : > { %v4894_v9 = vsub.f32 %v2530_v37, %v3005_v60  ;;  %v4895_v10 = vsub.f32 %v2538_v40, %v3005_v60  ;;  %v1319_v30 = vmul.f32 %v3493_v38, %v1184_v18  ;;  %v1320_v31 = vmul.f32 %v3493_v38, %v1185_v6 }
 0x1c1   : > { %v1189_v28 = vmul.f32 %v3490_v51, %v4893_v25  ;;  %v1321_v32 = vmul.f32 %v3493_v38, %v1186_v5  ;;  %v1322_v34 = vmul.f32 %v3493_v38, %v1187_v63  ;;  %v1323_v26 = vmul.f32 %v3493_v38, %v1188_v22 }
 0x1c2   : > { %v1190_v2 = vmul.f32 %v3490_v51, %v4894_v9  ;;  %v1191_v15 = vmul.f32 %v3490_v51, %v4895_v10  ;;  %v1454_v40 = vadd.f32 %v3520_v53, %v1319_v30  ;;  %v1455_v57 = vadd.f32 %v3520_v53, %v1320_v31 }
 0x1c3   : > { %v1324_v13 = vmul.f32 %v3493_v38, %v1189_v28  ;;  %v1456_v3 = vadd.f32 %v3520_v53, %v1321_v32  ;;  %v1457_v27 = vadd.f32 %v3520_v53, %v1322_v34  ;;  %v1458_v39 = vadd.f32 %v3520_v53, %v1323_v26 }
 0x1c4   : > { %v1325_v37 = vmul.f32 %v3493_v38, %v1190_v2  ;;  %v1326_v44 = vmul.f32 %v3493_v38, %v1191_v15  ;;  %v1582_v18 = vmax.f32 %v1454_v40, 0.0  ;;  %v1583_v54 = vmax.f32 %v1455_v57, 0.0 }
 0x1c5   : > { %v1459_v29 = vadd.f32 %v3520_v53, %v1324_v13  ;;  %v1584_v6 = vmax.f32 %v1456_v3, 0.0  ;;  %v1585_v7 = vmax.f32 %v1457_v27, 0.0  ;;  %v1586_v5 = vmax.f32 %v1458_v39, 0.0 }
 0x1c6   : > { %v1460_v16 = vadd.f32 %v3520_v53, %v1325_v37  ;;  %v1461_v59 = vadd.f32 %v3520_v53, %v1326_v44  ;;  %1710 = vst.msk [vmem:[%s3555_s26 + $0x240] sm:$0xff] %vm327_vm0, %v1582_v18  ;;  %1711 = vst.msk [vmem:[%s3555_s26 + $0x248] sm:$0xff] %vm327_vm0, %v1583_v54  ;;  %v4896_v22 = vsub.f32 %v2546_v43, %v3005_v60 }
 0x1c7   : > { %v1587_v24 = vmax.f32 %v1459_v29, 0.0  ;;  %1712 = vst.msk [vmem:[%s3555_s26 + $0x250] sm:$0xff] %vm327_vm0, %v1584_v6  ;;  %1713 = vst.msk [vmem:[%s3555_s26 + $0x258] sm:$0xff] %vm327_vm0, %v1585_v7  ;;  %v4897_v28 = vsub.f32 %v2554_v46, %v3005_v60  ;;  %v4898_v2 = vsub.f32 %v2562_v49, %v3005_v60  ;;  %v4899_v15 = vsub.f32 %v2570_v52, %v3005_v60 }
 0x1c8   : > { %v1588_v63 = vmax.f32 %v1460_v16, 0.0  ;;  %v1589_v19 = vmax.f32 %v1461_v59, 0.0  ;;  %v1192_v25 = vmul.f32 %v3490_v51, %v4896_v22  ;;  %1714 = vst.msk [vmem:[%s3555_s26 + $0x260] sm:$0xff] %vm327_vm0, %v1586_v5  ;;  %v4900_v43 = vsub.f32 %v2578_v55, %v3005_v60 }
 0x1c9   : > { %v1193_v9 = vmul.f32 %v3490_v51, %v4897_v28  ;;  %v1194_v10 = vmul.f32 %v3490_v51, %v4898_v2  ;;  %v1195_v30 = vmul.f32 %v3490_v51, %v4899_v15  ;;  %1715 = vst.msk [vmem:[%s3555_s26 + $0x268] sm:$0xff] %vm327_vm0, %v1587_v24  ;;  %v4901_v49 = vsub.f32 %v2586_v58, %v3005_v60 }
 0x1ca   : > { %1716 = vst.msk [vmem:[%s3555_s26 + $0x270] sm:$0xff] %vm327_vm0, %v1588_v63  ;;  %1717 = vst.msk [vmem:[%s3555_s26 + $0x278] sm:$0xff] %vm327_vm0, %v1589_v19  ;;  %v1196_v46 = vmul.f32 %v3490_v51, %v4900_v43  ;;  %v4902_v31 = vsub.f32 %v2594_v61, %v3005_v60  ;;  %v4903_v34 = vsub.f32 %v2602_v4, %v3005_v60 }
 0x1cb   : > { %v1197_v52 = vmul.f32 %v3490_v51, %v4901_v49  ;;  %v1327_v13 = vmul.f32 %v3493_v38, %v1192_v25  ;;  %v1328_v55 = vmul.f32 %v3493_v38, %v1193_v9  ;;  %v1329_v37 = vmul.f32 %v3493_v38, %v1194_v10  ;;  %v4904_v25 = vld [vmem:[#allocation2_spill] sm:$0xff] }
 0x1cc   : > { %v1198_v32 = vmul.f32 %v3490_v51, %v4902_v31  ;;  %v1199_v26 = vmul.f32 %v3490_v51, %v4903_v34  ;;  %v1330_v58 = vmul.f32 %v3493_v38, %v1195_v30  ;;  %v1331_v44 = vmul.f32 %v3493_v38, %v1196_v46  ;;  %v4912_v31 = vld [vmem:[#allocation4_spill] sm:$0xff] }
 0x1cd   : > { %v1332_v40 = vmul.f32 %v3493_v38, %v1197_v52  ;;  %v1462_v4 = vadd.f32 %v3520_v53, %v1327_v13  ;;  %v1463_v3 = vadd.f32 %v3520_v53, %v1328_v55  ;;  %v1464_v27 = vadd.f32 %v3520_v53, %v1329_v37 }
 0x1ce   : > { %v1333_v61 = vmul.f32 %v3493_v38, %v1198_v32  ;;  %v1334_v57 = vmul.f32 %v3493_v38, %v1199_v26  ;;  %v1465_v39 = vadd.f32 %v3520_v53, %v1330_v58  ;;  %v1466_v29 = vadd.f32 %v3520_v53, %v1331_v44 }
 0x1cf   : > { %v1467_v16 = vadd.f32 %v3520_v53, %v1332_v40  ;;  %v1590_v54 = vmax.f32 %v1462_v4, 0.0  ;;  %v1591_v6 = vmax.f32 %v1463_v3, 0.0  ;;  %v1592_v7 = vmax.f32 %v1464_v27, 0.0 }
 0x1d0   : > { %v1468_v59 = vadd.f32 %v3520_v53, %v1333_v61  ;;  %v1469_v18 = vadd.f32 %v3520_v53, %v1334_v57  ;;  %v1593_v5 = vmax.f32 %v1465_v39, 0.0  ;;  %v1594_v24 = vmax.f32 %v1466_v29, 0.0 }
 0x1d1   : > { %v1595_v63 = vmax.f32 %v1467_v16, 0.0  ;;  %1718 = vst.msk [vmem:[%s3555_s26 + $0x280] sm:$0xff] %vm327_vm0, %v1590_v54  ;;  %1719 = vst.msk [vmem:[%s3555_s26 + $0x288] sm:$0xff] %vm327_vm0, %v1591_v6  ;;  %v4905_v28 = vsub.f32 %v4904_v25, %v3005_v60  ;;  %v4906_v2 = vsub.f32 %v2618_v12, %v3005_v60  ;;  %v4907_v15 = vsub.f32 %v2626_v17, %v3005_v60  ;;  %v4909_v12 = vld [vmem:[#allocation3_spill] sm:$0xff] }
 0x1d2   : > { %v1596_v19 = vmax.f32 %v1468_v59, 0.0  ;;  %v1597_v22 = vmax.f32 %v1469_v18, 0.0  ;;  %1720 = vst.msk [vmem:[%s3555_s26 + $0x290] sm:$0xff] %vm327_vm0, %v1592_v7  ;;  %1721 = vst.msk [vmem:[%s3555_s26 + $0x298] sm:$0xff] %vm327_vm0, %v1593_v5  ;;  %v4908_v43 = vsub.f32 %v2634_v21, %v3005_v60  ;;  %v4910_v49 = vsub.f32 %v4909_v12, %v3005_v60 }
 0x1d3   : > { %v1200_v9 = vmul.f32 %v3490_v51, %v4905_v28  ;;  %v1201_v10 = vmul.f32 %v3490_v51, %v4906_v2  ;;  %v1202_v30 = vmul.f32 %v3490_v51, %v4907_v15  ;;  %1722 = vst.msk [vmem:[%s3555_s26 + $0x2a0] sm:$0xff] %vm327_vm0, %v1594_v24  ;;  %1723 = vst.msk [vmem:[%s3555_s26 + $0x2a8] sm:$0xff] %vm327_vm0, %v1595_v63  ;;  %v4919_v15 = vld [vmem:[#allocation8_spill] sm:$0xff] }
 0x1d4   : > { %v1203_v46 = vmul.f32 %v3490_v51, %v4908_v43  ;;  %1724 = vst.msk [vmem:[%s3555_s26 + $0x2b0] sm:$0xff] %vm327_vm0, %v1596_v19  ;;  %1725 = vst.msk [vmem:[%s3555_s26 + $0x2b8] sm:$0xff] %vm327_vm0, %v1597_v22  ;;  %v1204_v17 = vmul.f32 %v3490_v51, %v4910_v49  ;;  %v4911_v52 = vsub.f32 %v2650_v36, %v3005_v60  ;;  %v4915_v22 = vld [vmem:[#allocation6_spill] sm:$0xff] }
 0x1d5   : > { %v4913_v32 = vsub.f32 %v4912_v31, %v3005_v60  ;;  %v4914_v26 = vsub.f32 %v4744_v33, %v3005_v60  ;;  %v1335_v55 = vmul.f32 %v3493_v38, %v1200_v9  ;;  %v1336_v37 = vmul.f32 %v3493_v38, %v1201_v10  ;;  %v4917_v9 = vld [vmem:[#allocation7_spill] sm:$0xff]  ;;  %v4922_v49 = vld [vmem:[#allocation10_spill] sm:$0xff]  ;;  %v4925_v31 = vld [vmem:[#allocation12_spill] sm:$0xff] }
 0x1d6   : > { %v1205_v21 = vmul.f32 %v3490_v51, %v4911_v52  ;;  %v1337_v58 = vmul.f32 %v3493_v38, %v1202_v30  ;;  %v1338_v36 = vmul.f32 %v3493_v38, %v1203_v46  ;;  %v1339_v44 = vmul.f32 %v3493_v38, %v1204_v17 }
 0x1d7   : > { %v1206_v34 = vmul.f32 %v3490_v51, %v4913_v32  ;;  %v1207_v13 = vmul.f32 %v3490_v51, %v4914_v26  ;;  %v1470_v33 = vadd.f32 %v3520_v53, %v1335_v55  ;;  %v1471_v4 = vadd.f32 %v3520_v53, %v1336_v37 }
 0x1d8   : > { %v1340_v40 = vmul.f32 %v3493_v38, %v1205_v21  ;;  %v1472_v3 = vadd.f32 %v3520_v53, %v1337_v58  ;;  %v1473_v27 = vadd.f32 %v3520_v53, %v1338_v36  ;;  %v1474_v39 = vadd.f32 %v3520_v53, %v1339_v44 }
 0x1d9   : > { %v1341_v61 = vmul.f32 %v3493_v38, %v1206_v34  ;;  %v1342_v57 = vmul.f32 %v3493_v38, %v1207_v13  ;;  %v1598_v18 = vmax.f32 %v1470_v33, 0.0  ;;  %v1599_v54 = vmax.f32 %v1471_v4, 0.0 }
 0x1da   : > { %v1475_v29 = vadd.f32 %v3520_v53, %v1340_v40  ;;  %v1600_v6 = vmax.f32 %v1472_v3, 0.0  ;;  %v1601_v7 = vmax.f32 %v1473_v27, 0.0  ;;  %v1602_v5 = vmax.f32 %v1474_v39, 0.0 }
 0x1db   : > { %v1476_v16 = vadd.f32 %v3520_v53, %v1341_v61  ;;  %v1477_v59 = vadd.f32 %v3520_v53, %v1342_v57  ;;  %1726 = vst.msk [vmem:[%s3555_s26 + $0x2c0] sm:$0xff] %vm327_vm0, %v1598_v18  ;;  %1727 = vst.msk [vmem:[%s3555_s26 + $0x2c8] sm:$0xff] %vm327_vm0, %v1599_v54  ;;  %v4916_v25 = vsub.f32 %v4915_v22, %v3005_v60 }
 0x1dc   : > { %v1603_v24 = vmax.f32 %v1475_v29, 0.0  ;;  %1728 = vst.msk [vmem:[%s3555_s26 + $0x2d0] sm:$0xff] %vm327_vm0, %v1600_v6  ;;  %1729 = vst.msk [vmem:[%s3555_s26 + $0x2d8] sm:$0xff] %vm327_vm0, %v1601_v7  ;;  %v4918_v2 = vsub.f32 %v4917_v9, %v3005_v60  ;;  %v4920_v30 = vsub.f32 %v4919_v15, %v3005_v60  ;;  %v4921_v46 = vsub.f32 %v4745_v11, %v3005_v60 }
 0x1dd   : > { %v1604_v63 = vmax.f32 %v1476_v16, 0.0  ;;  %v1605_v19 = vmax.f32 %v1477_v59, 0.0  ;;  %v1208_v28 = vmul.f32 %v3490_v51, %v4916_v25  ;;  %1730 = vst.msk [vmem:[%s3555_s26 + $0x2e0] sm:$0xff] %vm327_vm0, %v1602_v5  ;;  %v4923_v17 = vsub.f32 %v4922_v49, %v3005_v60 }
 0x1de   : > { %v1209_v10 = vmul.f32 %v3490_v51, %v4918_v2  ;;  %v1210_v43 = vmul.f32 %v3490_v51, %v4920_v30  ;;  %v1211_v12 = vmul.f32 %v3490_v51, %v4921_v46  ;;  %1731 = vst.msk [vmem:[%s3555_s26 + $0x2e8] sm:$0xff] %vm327_vm0, %v1603_v24  ;;  %v4924_v21 = vsub.f32 %v4746_v42, %v3005_v60 }
 0x1df   : > { %1732 = vst.msk [vmem:[%s3555_s26 + $0x2f0] sm:$0xff] %vm327_vm0, %v1604_v63  ;;  %1733 = vst.msk [vmem:[%s3555_s26 + $0x2f8] sm:$0xff] %vm327_vm0, %v1605_v19  ;;  %v1212_v52 = vmul.f32 %v3490_v51, %v4923_v17  ;;  %v4926_v32 = vsub.f32 %v4925_v31, %v3005_v60  ;;  %v4927_v26 = vsub.f32 %v4747_v45, %v3005_v60 }
 0x1e0   : > { %v1213_v11 = vmul.f32 %v3490_v51, %v4924_v21  ;;  %v1343_v55 = vmul.f32 %v3493_v38, %v1208_v28  ;;  %v1344_v37 = vmul.f32 %v3493_v38, %v1209_v10  ;;  %v1345_v58 = vmul.f32 %v3493_v38, %v1210_v43  ;;  %v4378_v43 = vld [vmem:[%s3458_s20] ss:$0 sm:$0xff] }
 0x1e1   : > { %v1214_v34 = vmul.f32 %v3490_v51, %v4926_v32  ;;  %v1215_v13 = vmul.f32 %v3490_v51, %v4927_v26  ;;  %v1346_v42 = vmul.f32 %v3493_v38, %v1211_v12  ;;  %v1347_v36 = vmul.f32 %v3493_v38, %v1212_v52  ;;  %v4389_v52 = vld [vmem:[%s3480_s23] ss:$0 sm:$0xff] }
 0x1e2   : > { %v1348_v44 = vmul.f32 %v3493_v38, %v1213_v11  ;;  %v1478_v45 = vadd.f32 %v3520_v53, %v1343_v55  ;;  %v1479_v57 = vadd.f32 %v3520_v53, %v1344_v37  ;;  %v1480_v33 = vadd.f32 %v3520_v53, %v1345_v58 }
 0x1e3   : > { %v1349_v40 = vmul.f32 %v3493_v38, %v1214_v34  ;;  %v1350_v61 = vmul.f32 %v3493_v38, %v1215_v13  ;;  %v1481_v4 = vadd.f32 %v3520_v53, %v1346_v42  ;;  %v1482_v3 = vadd.f32 %v3520_v53, %v1347_v36 }
 0x1e4   : > { %v1483_v27 = vadd.f32 %v3520_v53, %v1348_v44  ;;  %v1606_v29 = vmax.f32 %v1478_v45, 0.0  ;;  %v1607_v16 = vmax.f32 %v1479_v57, 0.0  ;;  %v1608_v59 = vmax.f32 %v1480_v33, 0.0 }
 0x1e5   : > { %v1484_v39 = vadd.f32 %v3520_v53, %v1349_v40  ;;  %v1485_v38 = vadd.f32 %v3520_v53, %v1350_v61  ;;  %v1609_v18 = vmax.f32 %v1481_v4, 0.0  ;;  %v1610_v54 = vmax.f32 %v1482_v3, 0.0 }
 0x1e6   : > { %v1611_v6 = vmax.f32 %v1483_v27, 0.0  ;;  %1734 = vst.msk [vmem:[%s3555_s26 + $0x300] sm:$0xff] %vm327_vm0, %v1606_v29  ;;  %1735 = vst.msk [vmem:[%s3555_s26 + $0x308] sm:$0xff] %vm327_vm0, %v1607_v16  ;;  %v4928_v53 = vsub.f32 %v4748_v41, %v3005_v60  ;;  %v4929_v63 = vsub.f32 %v4749_v48, %v3005_v60  ;;  %v4930_v22 = vsub.f32 %v2754_v0, %v3005_v60 }
 0x1e7   : > { %v1612_v7 = vmax.f32 %v1484_v39, 0.0  ;;  %v1613_v5 = vmax.f32 %v1485_v38, 0.0  ;;  %1736 = vst.msk [vmem:[%s3555_s26 + $0x310] sm:$0xff] %vm327_vm0, %v1608_v59  ;;  %1737 = vst.msk [vmem:[%s3555_s26 + $0x318] sm:$0xff] %vm327_vm0, %v1609_v18  ;;  %v4931_v28 = vsub.f32 %v4750_v14, %v3005_v60  ;;  %v4932_v41 = vsub.f32 %v2770_v56, %v3005_v60  ;;  %v4943_v59 = vld [vmem:[#allocation19_spill] sm:$0xff] }
 0x1e8   : > { %v1216_v24 = vmul.f32 %v3490_v51, %v4928_v53  ;;  %v1217_v19 = vmul.f32 %v3490_v51, %v4929_v63  ;;  %v1218_v25 = vmul.f32 %v3490_v51, %v4930_v22  ;;  %1738 = vst.msk [vmem:[%s3555_s26 + $0x320] sm:$0xff] %vm327_vm0, %v1610_v54  ;;  %1739 = vst.msk [vmem:[%s3555_s26 + $0x328] sm:$0xff] %vm327_vm0, %v1611_v6  ;;  %v4945_v6 = vld [vmem:[#allocation20_spill] sm:$0xff] }
 0x1e9   : > { %v1219_v9 = vmul.f32 %v3490_v51, %v4931_v28  ;;  %1740 = vst.msk [vmem:[%s3555_s26 + $0x330] sm:$0xff] %vm327_vm0, %v1612_v7  ;;  %1741 = vst.msk [vmem:[%s3555_s26 + $0x338] sm:$0xff] %vm327_vm0, %v1613_v5  ;;  %v1220_v0 = vmul.f32 %v3490_v51, %v4932_v41  ;;  %v4933_v48 = vsub.f32 %v4751_v8, %v3005_v60 }
 0x1ea   : > { %v4934_v2 = vsub.f32 %v2786_v23, %v3005_v60  ;;  %v4935_v15 = vsub.f32 %v2794_v1, %v3005_v60  ;;  %v1351_v56 = vmul.f32 %v4378_v43, %v1216_v24  ;;  %v1352_v46 = vmul.f32 %v4378_v43, %v1217_v19 }
 0x1eb   : > { %v1221_v14 = vmul.f32 %v3490_v51, %v4933_v48  ;;  %v1353_v8 = vmul.f32 %v4378_v43, %v1218_v25  ;;  %v1354_v12 = vmul.f32 %v4378_v43, %v1219_v9  ;;  %v1355_v49 = vmul.f32 %v4378_v43, %v1220_v0 }
 0x1ec   : > { %v1222_v10 = vmul.f32 %v3490_v51, %v4934_v2  ;;  %v1223_v30 = vmul.f32 %v3490_v51, %v4935_v15  ;;  %v1486_v21 = vadd.f32 %v4389_v52, %v1351_v56  ;;  %v1487_v11 = vadd.f32 %v4389_v52, %v1352_v46 }
 0x1ed   : > { %v1356_v23 = vmul.f32 %v4378_v43, %v1221_v14  ;;  %v1488_v31 = vadd.f32 %v4389_v52, %v1353_v8  ;;  %v1489_v32 = vadd.f32 %v4389_v52, %v1354_v12  ;;  %v1490_v34 = vadd.f32 %v4389_v52, %v1355_v49 }
 0x1ee   : > { %v1357_v17 = vmul.f32 %v4378_v43, %v1222_v10  ;;  %v1358_v1 = vmul.f32 %v4378_v43, %v1223_v30  ;;  %v1614_v37 = vmax.f32 %v1486_v21, 0.0  ;;  %v1615_v58 = vmax.f32 %v1487_v11, 0.0 }
 0x1ef   : > { %v1491_v26 = vadd.f32 %v4389_v52, %v1356_v23  ;;  %v1616_v42 = vmax.f32 %v1488_v31, 0.0  ;;  %v1617_v36 = vmax.f32 %v1489_v32, 0.0  ;;  %v1618_v44 = vmax.f32 %v1490_v34, 0.0  ;;  %v4949_v31 = vld [vmem:[#allocation22_spill] sm:$0xff] }
 0x1f0   : > { %v1492_v13 = vadd.f32 %v4389_v52, %v1357_v17  ;;  %v1493_v55 = vadd.f32 %v4389_v52, %v1358_v1  ;;  %1742 = vst.msk [vmem:[%s3555_s26 + $0x340] sm:$0xff] %vm327_vm0, %v1614_v37  ;;  %1743 = vst.msk [vmem:[%s3555_s26 + $0x348] sm:$0xff] %vm327_vm0, %v1615_v58  ;;  %v4936_v57 = vsub.f32 %v2802_v47, %v3005_v60  ;;  %v4947_v1 = vld [vmem:[#allocation21_spill] sm:$0xff]  ;;  %v4953_v37 = vld [vmem:[#allocation24_spill] sm:$0xff] }
 0x1f1   : > { %v1619_v40 = vmax.f32 %v1491_v26, 0.0  ;;  %1744 = vst.msk [vmem:[%s3555_s26 + $0x350] sm:$0xff] %vm327_vm0, %v1616_v42  ;;  %1745 = vst.msk [vmem:[%s3555_s26 + $0x358] sm:$0xff] %vm327_vm0, %v1617_v36  ;;  %v4937_v4 = vsub.f32 %v2810_v62, %v3005_v60  ;;  %v4938_v27 = vsub.f32 %v2818_v20, %v3005_v60  ;;  %v4939_v38 = vsub.f32 %v2826_v35, %v3005_v60  ;;  %v4941_v20 = vld [vmem:[#allocation18_spill] sm:$0xff]  ;;  %v4951_v26 = vld [vmem:[#allocation23_spill] sm:$0xff] }
 0x1f2   : > { %v1620_v61 = vmax.f32 %v1492_v13, 0.0  ;;  %v1621_v45 = vmax.f32 %v1493_v55, 0.0  ;;  %v1224_v33 = vmul.f32 %v3490_v51, %v4936_v57  ;;  %1746 = vst.msk [vmem:[%s3555_s26 + $0x360] sm:$0xff] %vm327_vm0, %v1618_v44  ;;  %v4940_v47 = vsub.f32 %v2834_v50, %v3005_v60  ;;  %v4955_v36 = vld [vmem:[#allocation25_spill] sm:$0xff] }
 0x1f3   : > { %v1225_v3 = vmul.f32 %v3490_v51, %v4937_v4  ;;  %v1226_v39 = vmul.f32 %v3490_v51, %v4938_v27  ;;  %v1227_v29 = vmul.f32 %v3490_v51, %v4939_v38  ;;  %1747 = vst.msk [vmem:[%s3555_s26 + $0x368] sm:$0xff] %vm327_vm0, %v1619_v40  ;;  %v4942_v16 = vsub.f32 %v4941_v20, %v3005_v60  ;;  %v4961_v27 = vld [vmem:[#allocation28_spill] sm:$0xff] }
 0x1f4   : > { %1748 = vst.msk [vmem:[%s3555_s26 + $0x370] sm:$0xff] %vm327_vm0, %v1620_v61  ;;  %1749 = vst.msk [vmem:[%s3555_s26 + $0x378] sm:$0xff] %vm327_vm0, %v1621_v45  ;;  %v1228_v62 = vmul.f32 %v3490_v51, %v4940_v47  ;;  %v4944_v18 = vsub.f32 %v4943_v59, %v3005_v60  ;;  %v4946_v7 = vsub.f32 %v4945_v6, %v3005_v60  ;;  %v4957_v61 = vld [vmem:[#allocation26_spill] sm:$0xff] }
 0x1f5   : > { %v1229_v35 = vmul.f32 %v3490_v51, %v4942_v16  ;;  %v1359_v53 = vmul.f32 %v4378_v43, %v1224_v33  ;;  %v1360_v50 = vmul.f32 %v4378_v43, %v1225_v3  ;;  %v1361_v24 = vmul.f32 %v4378_v43, %v1226_v39  ;;  %v4959_v33 = vld [vmem:[#allocation27_spill] sm:$0xff] }
 0x1f6   : > { %v1230_v54 = vmul.f32 %v3490_v51, %v4944_v18  ;;  %v1231_v5 = vmul.f32 %v3490_v51, %v4946_v7  ;;  %v1362_v63 = vmul.f32 %v4378_v43, %v1227_v29  ;;  %v1363_v19 = vmul.f32 %v4378_v43, %v1228_v62 }
 0x1f7   : > { %v1364_v22 = vmul.f32 %v4378_v43, %v1229_v35  ;;  %v1494_v9 = vadd.f32 %v4389_v52, %v1359_v53  ;;  %v1495_v41 = vadd.f32 %v4389_v52, %v1360_v50  ;;  %v1496_v0 = vadd.f32 %v4389_v52, %v1361_v24 }
 0x1f8   : > { %v1365_v25 = vmul.f32 %v4378_v43, %v1230_v54  ;;  %v1366_v28 = vmul.f32 %v4378_v43, %v1231_v5  ;;  %v1497_v48 = vadd.f32 %v4389_v52, %v1362_v63  ;;  %v1498_v14 = vadd.f32 %v4389_v52, %v1363_v19 }
 0x1f9   : > { %v1499_v2 = vadd.f32 %v4389_v52, %v1364_v22  ;;  %v1622_v30 = vmax.f32 %v1494_v9, 0.0  ;;  %v1623_v56 = vmax.f32 %v1495_v41, 0.0  ;;  %v1624_v46 = vmax.f32 %v1496_v0, 0.0 }
 0x1fa   : > { %v1500_v10 = vadd.f32 %v4389_v52, %v1365_v25  ;;  %v1501_v15 = vadd.f32 %v4389_v52, %v1366_v28  ;;  %v1625_v8 = vmax.f32 %v1497_v48, 0.0  ;;  %v1626_v12 = vmax.f32 %v1498_v14, 0.0 }
 0x1fb   : > { %v1627_v49 = vmax.f32 %v1499_v2, 0.0  ;;  %1750 = vst.msk [vmem:[%s3555_s26 + $0x380] sm:$0xff] %vm327_vm0, %v1622_v30  ;;  %1751 = vst.msk [vmem:[%s3555_s26 + $0x388] sm:$0xff] %vm327_vm0, %v1623_v56  ;;  %v4948_v21 = vsub.f32 %v4947_v1, %v3005_v60  ;;  %v4950_v32 = vsub.f32 %v4949_v31, %v3005_v60  ;;  %v4952_v13 = vsub.f32 %v4951_v26, %v3005_v60 }
 0x1fc   : > { %v1628_v23 = vmax.f32 %v1500_v10, 0.0  ;;  %v1629_v17 = vmax.f32 %v1501_v15, 0.0  ;;  %1752 = vst.msk [vmem:[%s3555_s26 + $0x390] sm:$0xff] %vm327_vm0, %v1624_v46  ;;  %1753 = vst.msk [vmem:[%s3555_s26 + $0x398] sm:$0xff] %vm327_vm0, %v1625_v8  ;;  %v4954_v58 = vsub.f32 %v4953_v37, %v3005_v60  ;;  %v4956_v44 = vsub.f32 %v4955_v36, %v3005_v60 }
 0x1fd   : > { %v1232_v11 = vmul.f32 %v3490_v51, %v4948_v21  ;;  %v1233_v34 = vmul.f32 %v3490_v51, %v4950_v32  ;;  %v1234_v55 = vmul.f32 %v3490_v51, %v4952_v13  ;;  %1754 = vst.msk [vmem:[%s3555_s26 + $0x3a0] sm:$0xff] %vm327_vm0, %v1626_v12  ;;  %1755 = vst.msk [vmem:[%s3555_s26 + $0x3a8] sm:$0xff] %vm327_vm0, %v1627_v49 }
 0x1fe   : > { %v1235_v42 = vmul.f32 %v3490_v51, %v4954_v58  ;;  %1756 = vst.msk [vmem:[%s3555_s26 + $0x3b0] sm:$0xff] %vm327_vm0, %v1628_v23  ;;  %1757 = vst.msk [vmem:[%s3555_s26 + $0x3b8] sm:$0xff] %vm327_vm0, %v1629_v17  ;;  %v1236_v40 = vmul.f32 %v3490_v51, %v4956_v44  ;;  %v4958_v45 = vsub.f32 %v4957_v61, %v3005_v60 }
 0x1ff   : > { %v4960_v4 = vsub.f32 %v4959_v33, %v3005_v60  ;;  %v4962_v39 = vsub.f32 %v4961_v27, %v3005_v60  ;;  %v1367_v29 = vmul.f32 %v4378_v43, %v1232_v11  ;;  %v1368_v47 = vmul.f32 %v4378_v43, %v1233_v34 }
 0x200   : > { %v1237_v57 = vmul.f32 %v3490_v51, %v4958_v45  ;;  %v1369_v62 = vmul.f32 %v4378_v43, %v1234_v55  ;;  %v1370_v20 = vmul.f32 %v4378_v43, %v1235_v42  ;;  %v1371_v16 = vmul.f32 %v4378_v43, %v1236_v40 }
 0x201   : > { %v1238_v3 = vmul.f32 %v3490_v51, %v4960_v4  ;;  %v1239_v38 = vmul.f32 %v3490_v51, %v4962_v39  ;;  %v1502_v60 = vadd.f32 %v4389_v52, %v1367_v29  ;;  %v1503_v51 = vadd.f32 %v4389_v52, %v1368_v47 }
 0x202   : > { %v1372_v35 = vmul.f32 %v4378_v43, %v1237_v57  ;;  %v1504_v54 = vadd.f32 %v4389_v52, %v1369_v62  ;;  %v1505_v6 = vadd.f32 %v4389_v52, %v1370_v20  ;;  %v1506_v7 = vadd.f32 %v4389_v52, %v1371_v16 }
 0x203   : > { %v1373_v59 = vmul.f32 %v4378_v43, %v1238_v3  ;;  %v1374_v18 = vmul.f32 %v4378_v43, %v1239_v38  ;;  %v1630_v50 = vmax.f32 %v1502_v60, 0.0  ;;  %v1631_v24 = vmax.f32 %v1503_v51, 0.0 }
 0x204   : > { %v1507_v5 = vadd.f32 %v4389_v52, %v1372_v35  ;;  %v1632_v63 = vmax.f32 %v1504_v54, 0.0  ;;  %v1633_v19 = vmax.f32 %v1505_v6, 0.0  ;;  %v1634_v22 = vmax.f32 %v1506_v7, 0.0 }
 0x205   : > { %v1508_v43 = vadd.f32 %v4389_v52, %v1373_v59  ;;  %v1509_v53 = vadd.f32 %v4389_v52, %v1374_v18  ;;  %1758 = vst.msk [vmem:[%s3555_s26 + $0x3c0] sm:$0xff] %vm327_vm0, %v1630_v50  ;;  %1759 = vst.msk [vmem:[%s3555_s26 + $0x3c8] sm:$0xff] %vm327_vm0, %v1631_v24 }
 0x206   : > { %v1635_v25 = vmax.f32 %v1507_v5, 0.0  ;;  %1760 = vst.msk [vmem:[%s3555_s26 + $0x3d0] sm:$0xff] %vm327_vm0, %v1632_v63  ;;  %1761 = vst.msk [vmem:[%s3555_s26 + $0x3d8] sm:$0xff] %vm327_vm0, %v1633_v19 }
 0x207   : > { %v1636_v28 = vmax.f32 %v1508_v43, 0.0  ;;  %v1637_v9 = vmax.f32 %v1509_v53, 0.0  ;;  %1762 = vst.msk [vmem:[%s3555_s26 + $0x3e0] sm:$0xff] %vm327_vm0, %v1634_v22 }
 0x208   : > { %1763 = vst.msk [vmem:[%s3555_s26 + $0x3e8] sm:$0xff] %vm327_vm0, %v1635_v25 }
 0x209   : > { %1764 = vst.msk [vmem:[%s3555_s26 + $0x3f0] sm:$0xff] %vm327_vm0, %v1636_v28  ;;  %1765 = vst.msk [vmem:[%s3555_s26 + $0x3f8] sm:$0xff] %vm327_vm0, %v1637_v9 }
 0x20a PF: > { %s13_s12 = sadd.s32 1, %s1944_s12  }
 0x20b   : > { %p10_p4 = scmp.ge.s32.totalorder %s13_s12, 4  }
 0x20d   :  { %12 = sbr.rel (!%p10_p4) target bundleno = 1 (0x1), region = 68 }

// kernel: pix2pixhd_forward.42
= control target key start
LH: loop header
LB: loop body
LE: loop exit
PB: predicated region body
PF: predicated region fallthrough
CT: control target
= control target key end

     0   :  { %s740_s12 = smov 0   ;;  %s1337_s0 = inlined_call_operand.vmem [shape: f32[2,256,16], index: 0, kind: input, shape index: {}]   ;;  %s1338_s1 = inlined_call_operand.vmem [shape: f32[2,1,16], index: 1, kind: input, shape index: {}]   ;;  %s1339_s2 = inlined_call_operand.vmem [shape: f32[2,1,16], index: 2, kind: input, shape index: {}]   ;;  %s1340_s3 = inlined_call_operand.vmem [shape: f32[2,256,16], index: 3, kind: output, shape index: {}]  }
   0x1 LB: > { %s687_s13 = sadd.s32 4294967295, %s718_s12   ;;  %p691_p0 = scmp.ge.s32.totalorder %s718_s12, 1  ;;  %s718_s12 = sphi %s740_s12, %s13_s12  }
   0x2   : > { %p153_p1 = scmp.lt.s32.totalorder %s718_s12, 3 }
   0x4   : > { %p154_p2 = pnand %p691_p0, %p153_p1 }
   0x5   : > { %p183_p3 = scmp.lt.s32.totalorder (!%p154_p2), %s687_s13, 1  ;;  %vm231_vm0 = vcmask (!%p154_p2), 130048  }
   0x6   : > { %157 = sbr.rel (%p154_p2) target bundleno = 158 (0x9e), region = 32 }
   0xd   : > { %s1350_s13 = smov (!%p183_p3, %s687_s13), 1 }
   0xe   : > { %s700_s14 = sshll.u32 %s1350_s13, 8  ;;  %s190_s20 = scalar_lea.vmem %s1338_s1, %s1350_s13 }
   0xf   : > { %s756_s17 = scalar_lea.vmem %s1337_s0, %s700_s14  ;;  %s193_s23 = scalar_lea.vmem %s1339_s2, %s1350_s13 }
  0x10   : > { %v759_v0 = vld [vmem:[%s756_s17] sm:$0xff]  ;;  %v762_v1 = vld [vmem:[%s756_s17 + $0x8] sm:$0xff]  ;;  %v765_v2 = vld [vmem:[%s756_s17 + $0x10] sm:$0xff]  ;;  %s1120_s26 = scalar_lea.vmem %s1340_s3, %s700_s14 }
  0x11   : > { %v768_v3 = vld [vmem:[%s756_s17 + $0x18] sm:$0xff]  ;;  %v232_v4 = vsel %vm231_vm0, %v759_v0, 0.0  ;;  %v233_v5 = vsel %vm231_vm0, %v762_v1, 0.0  ;;  %v235_v6 = vsel %vm231_vm0, %v765_v2, 0.0  ;;  %v777_v7 = vld [vmem:[%s756_s17 + $0x20] sm:$0xff]  ;;  %v782_v10 = vld [vmem:[%s756_s17 + $0x28] sm:$0xff]  ;;  %v301_v29 = vmul.f32 %v759_v0, %v759_v0 }
  0x12   : > { %v234_v8 = vadd.f32 %v233_v5, %v232_v4  ;;  %v237_v9 = vsel %vm231_vm0, %v768_v3, 0.0  ;;  %v239_v12 = vsel %vm231_vm0, %v777_v7, 0.0  ;;  %v787_v13 = vld [vmem:[%s756_s17 + $0x30] sm:$0xff]  ;;  %v241_v15 = vsel %vm231_vm0, %v782_v10, 0.0  ;;  %v792_v16 = vld [vmem:[%s756_s17 + $0x38] sm:$0xff]  ;;  %v797_v19 = vld [vmem:[%s756_s17 + $0x40] sm:$0xff] }
  0x13   : > { %v243_v18 = vsel %vm231_vm0, %v787_v13, 0.0  ;;  %v245_v21 = vsel %vm231_vm0, %v792_v16, 0.0  ;;  %v802_v22 = vld [vmem:[%s756_s17 + $0x48] sm:$0xff]  ;;  %v247_v24 = vsel %vm231_vm0, %v797_v19, 0.0  ;;  %v807_v25 = vld [vmem:[%s756_s17 + $0x50] sm:$0xff]  ;;  %v810_v27 = vld [vmem:[%s756_s17 + $0x58] sm:$0xff]  ;;  %v302_v30 = vmul.f32 %v762_v1, %v762_v1 }
  0x14   : > { %v236_v11 = vadd.f32 %v235_v6, %v234_v8  ;;  %v249_v28 = vsel %vm231_vm0, %v802_v22, 0.0  ;;  %v303_v31 = vmul.f32 %v765_v2, %v765_v2  ;;  %v251_v33 = vsel %vm231_vm0, %v807_v25, 0.0  ;;  %v825_v35 = vld [vmem:[%s756_s17 + $0x60] sm:$0xff]  ;;  %v835_v42 = vld [vmem:[%s756_s17 + $0x68] sm:$0xff]  ;;  %v843_v48 = vld [vmem:[%s756_s17 + $0x70] sm:$0xff] }
  0x15   : > { %v304_v34 = vmul.f32 %v768_v3, %v768_v3  ;;  %v253_v37 = vsel %vm231_vm0, %v810_v27, 0.0  ;;  %v305_v38 = vmul.f32 %v777_v7, %v777_v7  ;;  %v333_v39 = vsel %vm231_vm0, %v301_v29, 0.0  ;;  %v851_v54 = vld [vmem:[%s756_s17 + $0x78] sm:$0xff]  ;;  %v859_v60 = vld [vmem:[%s756_s17 + $0x80] sm:$0xff]  ;;  %v867_v6 = vld [vmem:[%s756_s17 + $0x88] sm:$0xff] }
  0x16   : > { %v238_v14 = vadd.f32 %v237_v9, %v236_v11  ;;  %v334_v40 = vsel %vm231_vm0, %v302_v30, 0.0  ;;  %v336_v41 = vsel %vm231_vm0, %v303_v31, 0.0  ;;  %v255_v45 = vsel %vm231_vm0, %v825_v35, 0.0 }
  0x17   : > { %v335_v44 = vadd.f32 %v334_v40, %v333_v39  ;;  %v306_v46 = vmul.f32 %v782_v10, %v782_v10  ;;  %v338_v47 = vsel %vm231_vm0, %v304_v34, 0.0  ;;  %v257_v51 = vsel %vm231_vm0, %v835_v42, 0.0  ;;  %v899_v39 = vld [vmem:[%s756_s17 + $0xa8] sm:$0xff] }
  0x18   : > { %v240_v17 = vadd.f32 %v239_v12, %v238_v14  ;;  %v307_v52 = vmul.f32 %v787_v13, %v787_v13  ;;  %v340_v53 = vsel %vm231_vm0, %v305_v38, 0.0  ;;  %v259_v57 = vsel %vm231_vm0, %v843_v48, 0.0 }
  0x19   : > { %v337_v50 = vadd.f32 %v336_v41, %v335_v44  ;;  %v308_v58 = vmul.f32 %v792_v16, %v792_v16  ;;  %v342_v59 = vsel %vm231_vm0, %v306_v46, 0.0  ;;  %v261_v63 = vsel %vm231_vm0, %v851_v54, 0.0  ;;  %v907_v46 = vld [vmem:[%s756_s17 + $0xb0] sm:$0xff] }
  0x1a   : > { %v242_v20 = vadd.f32 %v241_v15, %v240_v17  ;;  %v309_v4 = vmul.f32 %v797_v19, %v797_v19  ;;  %v344_v5 = vsel %vm231_vm0, %v307_v52, 0.0  ;;  %v263_v11 = vsel %vm231_vm0, %v859_v60, 0.0  ;;  %v875_v15 = vld [vmem:[%s756_s17 + $0x90] sm:$0xff] }
  0x1b   : > { %v339_v56 = vadd.f32 %v338_v47, %v337_v50  ;;  %v310_v12 = vmul.f32 %v802_v22, %v802_v22  ;;  %v346_v14 = vsel %vm231_vm0, %v308_v58, 0.0  ;;  %v267_v29 = vsel %vm231_vm0, %v875_v15, 0.0 }
  0x1c   : > { %v244_v23 = vadd.f32 %v243_v18, %v242_v20  ;;  %v265_v20 = vsel %vm231_vm0, %v867_v6, 0.0  ;;  %v312_v30 = vmul.f32 %v810_v27, %v810_v27  ;;  %v314_v44 = vmul.f32 %v835_v42, %v835_v42 }
  0x1d   : > { %v341_v62 = vadd.f32 %v340_v53, %v339_v56  ;;  %v350_v31 = vsel %vm231_vm0, %v310_v12, 0.0  ;;  %v273_v50 = vsel %vm231_vm0, %v899_v39, 0.0  ;;  %v915_v53 = vld [vmem:[%s756_s17 + $0xb8] sm:$0xff]  ;;  %v316_v58 = vmul.f32 %v851_v54, %v851_v54 }
  0x1e   : > { %v246_v26 = vadd.f32 %v245_v21, %v244_v23  ;;  %v311_v21 = vmul.f32 %v807_v25, %v807_v25  ;;  %v348_v23 = vsel %vm231_vm0, %v309_v4, 0.0  ;;  %v277_v4 = vsel %vm231_vm0, %v915_v53, 0.0 }
  0x1f   : > { %v343_v9 = vadd.f32 %v342_v59, %v341_v62  ;;  %v358_v59 = vsel %vm231_vm0, %v314_v44, 0.0 }
  0x20   : > { %v248_v32 = vadd.f32 %v247_v24, %v246_v26  ;;  %v883_v24 = vld [vmem:[%s756_s17 + $0x98] sm:$0xff]  ;;  %v352_v38 = vsel %vm231_vm0, %v311_v21, 0.0 }
  0x21   : > { %v345_v18 = vadd.f32 %v344_v5, %v343_v9  ;;  %v317_v5 = vmul.f32 %v859_v60, %v859_v60  ;;  %v931_v9 = vld [vmem:[%s756_s17 + $0xc8] sm:$0xff] }
  0x22   : > { %v250_v36 = vadd.f32 %v249_v28, %v248_v32  ;;  %v891_v32 = vld [vmem:[%s756_s17 + $0xa0] sm:$0xff] }
  0x23   : > { %v347_v28 = vadd.f32 %v346_v14, %v345_v18  ;;  %v362_v18 = vsel %vm231_vm0, %v316_v58, 0.0  ;;  %v321_v44 = vmul.f32 %v891_v32, %v891_v32 }
  0x24   : > { %v252_v43 = vadd.f32 %v251_v33, %v250_v36  ;;  %v269_v36 = vsel %vm231_vm0, %v883_v24, 0.0 }
  0x25   : > { %v349_v34 = vadd.f32 %v348_v23, %v347_v28  ;;  %v319_v28 = vmul.f32 %v875_v15, %v875_v15 }
  0x26   : > { %v254_v49 = vadd.f32 %v253_v37, %v252_v43  ;;  %v313_v37 = vmul.f32 %v825_v35, %v825_v35  ;;  %v271_v43 = vsel %vm231_vm0, %v891_v32, 0.0 }
  0x27   : > { %v351_v41 = vadd.f32 %v350_v31, %v349_v34 }
  0x28   : > { %v256_v55 = vadd.f32 %v255_v45, %v254_v49  ;;  %v354_v45 = vsel %vm231_vm0, %v312_v30, 0.0  ;;  %v356_v52 = vsel %vm231_vm0, %v313_v37, 0.0  ;;  %v947_v30 = vld [vmem:[%s756_s17 + $0xd8] sm:$0xff] }
  0x29   : > { %v353_v49 = vadd.f32 %v352_v38, %v351_v41  ;;  %v955_v38 = vld [vmem:[%s756_s17 + $0xe0] sm:$0xff] }
  0x2a   : > { %v258_v61 = vadd.f32 %v257_v51, %v256_v55  ;;  %v315_v51 = vmul.f32 %v843_v48, %v843_v48 }
  0x2b   : > { %v355_v56 = vadd.f32 %v354_v45, %v353_v49  ;;  %v368_v45 = vsel %vm231_vm0, %v319_v28, 0.0 }
  0x2c   : > { %v260_v8 = vadd.f32 %v259_v57, %v258_v61  ;;  %v275_v57 = vsel %vm231_vm0, %v907_v46, 0.0  ;;  %v923_v61 = vld [vmem:[%s756_s17 + $0xc0] sm:$0xff] }
  0x2d   : > { %v279_v14 = vsel %vm231_vm0, %v923_v61, 0.0 }
  0x2e   : > { %v262_v17 = vadd.f32 %v261_v63, %v260_v8  ;;  %v357_v63 = vadd.f32 %v356_v52, %v355_v56  ;;  %v360_v8 = vsel %vm231_vm0, %v315_v51, 0.0  ;;  %v287_v51 = vsel %vm231_vm0, %v955_v38, 0.0  ;;  %v971_v56 = vld [vmem:[%s756_s17 + $0xf0] sm:$0xff] }
  0x2f   : > { %v322_v52 = vmul.f32 %v899_v39, %v899_v39 }
  0x30   : > { %v264_v26 = vadd.f32 %v263_v11, %v262_v17  ;;  %v359_v12 = vadd.f32 %v358_v59, %v357_v63  ;;  %v318_v17 = vmul.f32 %v867_v6, %v867_v6  ;;  %v372_v63 = vsel %vm231_vm0, %v321_v44, 0.0 }
  0x31   : > { %v328_v44 = vmul.f32 %v947_v30, %v947_v30 }
  0x32   : > { %v266_v33 = vadd.f32 %v265_v20, %v264_v26  ;;  %v939_v20 = vld [vmem:[%s756_s17 + $0xd0] sm:$0xff]  ;;  %v361_v23 = vadd.f32 %v360_v8, %v359_v12  ;;  %v281_v26 = vsel %vm231_vm0, %v931_v9, 0.0  ;;  %v366_v37 = vsel %vm231_vm0, %v318_v17, 0.0 }
  0x33   : > { %v283_v34 = vsel %vm231_vm0, %v939_v20, 0.0  ;;  %v324_v12 = vmul.f32 %v915_v53, %v915_v53 }
  0x34   : > { %v268_v40 = vadd.f32 %v267_v29, %v266_v33  ;;  %v364_v29 = vsel %vm231_vm0, %v317_v5, 0.0  ;;  %v363_v33 = vadd.f32 %v362_v18, %v361_v23  ;;  %v325_v23 = vmul.f32 %v923_v61, %v923_v61 }
  0x36   : > { %v270_v47 = vadd.f32 %v269_v36, %v268_v40  ;;  %v320_v36 = vmul.f32 %v883_v24, %v883_v24  ;;  %v365_v41 = vadd.f32 %v364_v29, %v363_v33  ;;  %v378_v33 = vsel %vm231_vm0, %v324_v12, 0.0 }
  0x38   : > { %v272_v55 = vadd.f32 %v271_v43, %v270_v47  ;;  %v285_v43 = vsel %vm231_vm0, %v947_v30, 0.0  ;;  %v963_v47 = vld [vmem:[%s756_s17 + $0xe8] sm:$0xff] }
  0x39   : > { %v289_v59 = vsel %vm231_vm0, %v963_v47, 0.0 }
  0x3a   : > { %v274_v62 = vadd.f32 %v273_v50, %v272_v55  ;;  %v367_v50 = vadd.f32 %v366_v37, %v365_v41  ;;  %v370_v55 = vsel %vm231_vm0, %v320_v36, 0.0  ;;  %v327_v37 = vmul.f32 %v939_v20, %v939_v20 }
  0x3c   : > { %v276_v11 = vadd.f32 %v275_v57, %v274_v62  ;;  %v369_v58 = vadd.f32 %v368_v45, %v367_v50  ;;  %v323_v62 = vmul.f32 %v907_v46, %v907_v46 }
  0x3e   : > { %v278_v21 = vadd.f32 %v277_v4, %v276_v11  ;;  %v979_v4 = vld [vmem:[%s756_s17 + $0xf8] sm:$0xff]  ;;  %v371_v8 = vadd.f32 %v370_v55, %v369_v58  ;;  %v291_v11 = vsel %vm231_vm0, %v971_v56, 0.0  ;;  %v386_v58 = vsel %vm231_vm0, %v328_v44, 0.0 }
  0x40   : > { %v280_v31 = vadd.f32 %v279_v14, %v278_v21  ;;  %v374_v14 = vsel %vm231_vm0, %v322_v52, 0.0  ;;  %v373_v18 = vadd.f32 %v372_v63, %v371_v8  ;;  %v293_v21 = vsel %vm231_vm0, %v979_v4, 0.0 }
  0x41   : > { %v384_v52 = vsel %vm231_vm0, %v327_v37, 0.0  ;;  %v331_v63 = vmul.f32 %v971_v56, %v971_v56 }
  0x42   : > { %v282_v40 = vadd.f32 %v281_v26, %v280_v31  ;;  %v376_v26 = vsel %vm231_vm0, %v323_v62, 0.0  ;;  %v375_v29 = vadd.f32 %v374_v14, %v373_v18  ;;  %v326_v31 = vmul.f32 %v931_v9, %v931_v9 }
  0x43   : > { %v392_v18 = vsel %vm231_vm0, %v331_v63, 0.0 }
  0x44   : > { %v284_v49 = vadd.f32 %v283_v34, %v282_v40  ;;  %v377_v36 = vadd.f32 %v376_v26, %v375_v29  ;;  %v380_v40 = vsel %vm231_vm0, %v325_v23, 0.0  ;;  %v382_v45 = vsel %vm231_vm0, %v326_v31, 0.0 }
  0x46   : > { %v286_v57 = vadd.f32 %v285_v43, %v284_v49  ;;  %v379_v43 = vadd.f32 %v378_v33, %v377_v36 }
  0x48   : > { %v288_v5 = vadd.f32 %v287_v51, %v286_v57  ;;  %v381_v50 = vadd.f32 %v380_v40, %v379_v43  ;;  %v329_v51 = vmul.f32 %v955_v38, %v955_v38  ;;  %v330_v57 = vmul.f32 %v963_v47, %v963_v47 }
  0x4a   : > { %v290_v17 = vadd.f32 %v289_v59, %v288_v5  ;;  %v383_v55 = vadd.f32 %v382_v45, %v381_v50  ;;  %v388_v5 = vsel %vm231_vm0, %v329_v51, 0.0  ;;  %v390_v12 = vsel %vm231_vm0, %v330_v57, 0.0 }
  0x4c   : > { %v292_v28 = vadd.f32 %v291_v11, %v290_v17  ;;  %v385_v62 = vadd.f32 %v384_v52, %v383_v55  ;;  %v332_v11 = vmul.f32 %v979_v4, %v979_v4 }
  0x4e   : > { %v294_v34 = vadd.f32 %v293_v21, %v292_v28  ;;  %v387_v8 = vadd.f32 %v386_v58, %v385_v62  ;;  %v394_v23 = vsel %vm231_vm0, %v332_v11, 0.0 }
  0x50   : > { %v295_v41 = vrot.slane %v294_v34, 4  ;;  %v389_v17 = vadd.f32 %v388_v5, %v387_v8 }
  0x52   : > { %v296_v49 = vadd.f32 %v295_v41, %v294_v34  ;;  %v391_v21 = vadd.f32 %v390_v12, %v389_v17 }
  0x54   : > { %v297_v59 = vrot.slane %v296_v49, 2  ;;  %v393_v28 = vadd.f32 %v392_v18, %v391_v21 }
  0x56   : > { %v298_v14 = vadd.f32 %v297_v59, %v296_v49  ;;  %v395_v29 = vadd.f32 %v394_v23, %v393_v28 }
  0x58   : > { %v299_v26 = vrot.slane %v298_v14, 1  ;;  %v396_v33 = vrot.slane %v395_v29, 4 }
  0x5a   : > { %v300_v31 = vadd.f32 %v299_v26, %v298_v14  ;;  %v397_v34 = vadd.f32 %v396_v33, %v395_v29  ;;  %v1083_v33 = vld [vmem:[%s190_s20] ss:$0 sm:$0xff] }
  0x5c   : > { %v398_v36 = vrot.slane %v397_v34, 2  ;;  %v1014_v37 = vmul.f32 0.00390625, %v300_v31 }
  0x5e   : > { %v399_v40 = vadd.f32 %v398_v36, %v397_v34  ;;  %v403_v43 = vmul.f32 %v1014_v37, %v300_v31  ;;  %v406_v51 = vsub.f32 %v759_v0, %v1014_v37  ;;  %v407_v52 = vsub.f32 %v762_v1, %v1014_v37 }
  0x5f   : > { %v408_v55 = vsub.f32 %v765_v2, %v1014_v37  ;;  %v409_v57 = vsub.f32 %v768_v3, %v1014_v37  ;;  %v410_v58 = vsub.f32 %v777_v7, %v1014_v37  ;;  %v411_v59 = vsub.f32 %v782_v10, %v1014_v37 }
  0x60   : > { %v400_v41 = vrot.slane %v399_v40, 1  ;;  %v412_v62 = vsub.f32 %v787_v13, %v1014_v37  ;;  %v413_v0 = vsub.f32 %v792_v16, %v1014_v37  ;;  %v414_v1 = vsub.f32 %v797_v19, %v1014_v37 }
  0x61   : > { %v415_v2 = vsub.f32 %v802_v22, %v1014_v37  ;;  %v416_v3 = vsub.f32 %v807_v25, %v1014_v37  ;;  %v417_v7 = vsub.f32 %v810_v27, %v1014_v37  ;;  %v418_v10 = vsub.f32 %v825_v35, %v1014_v37 }
  0x62   : > { %v401_v44 = vadd.f32 %v400_v41, %v399_v40  ;;  %v419_v13 = vsub.f32 %v835_v42, %v1014_v37  ;;  %v420_v16 = vsub.f32 %v843_v48, %v1014_v37  ;;  %v421_v63 = vsub.f32 %v851_v54, %v1014_v37 }
  0x63   : > { %v422_v5 = vsub.f32 %v859_v60, %v1014_v37  ;;  %v423_v8 = vsub.f32 %v867_v6, %v1014_v37  ;;  %v424_v11 = vsub.f32 %v875_v15, %v1014_v37  ;;  %v425_v12 = vsub.f32 %v883_v24, %v1014_v37 }
  0x64   : > { %v404_v45 = vsub.f32 %v401_v44, %v403_v43  ;;  %v426_v14 = vsub.f32 %v891_v32, %v1014_v37  ;;  %v427_v17 = vsub.f32 %v899_v39, %v1014_v37  ;;  %v428_v18 = vsub.f32 %v907_v46, %v1014_v37 }
  0x65   : > { %v429_v21 = vsub.f32 %v915_v53, %v1014_v37 }
  0x66   : > { %v405_v49 = vmul.f32 0.003921569, %v404_v45 }
  0x68   : > { %v438_v50 = vadd.f32 1e-05, %v405_v49 }
  0x6a   : > { %710 = vrsqrt.f32 %v438_v50  ;;  %v1097_v50 = vld [vmem:[%s193_s23] ss:$0 sm:$0xff] }
  0x74   : > { %v1081_v31 = vpop.eup %710 }
  0x75   : > { %v440_v43 = vmul.f32 %v1081_v31, %v406_v51  ;;  %v441_v44 = vmul.f32 %v1081_v31, %v407_v52  ;;  %v442_v45 = vmul.f32 %v1081_v31, %v408_v55  ;;  %v443_v49 = vmul.f32 %v1081_v31, %v409_v57 }
  0x76   : > { %v444_v34 = vmul.f32 %v1081_v31, %v410_v58  ;;  %v445_v36 = vmul.f32 %v1081_v31, %v411_v59  ;;  %v446_v40 = vmul.f32 %v1081_v31, %v412_v62  ;;  %v447_v29 = vmul.f32 %v1081_v31, %v413_v0 }
  0x77   : > { %v479_v41 = vmul.f32 %v1083_v33, %v440_v43  ;;  %v480_v51 = vmul.f32 %v1083_v33, %v441_v44  ;;  %v481_v52 = vmul.f32 %v1083_v33, %v442_v45  ;;  %v482_v55 = vmul.f32 %v1083_v33, %v443_v49 }
  0x78   : > { %v483_v57 = vmul.f32 %v1083_v33, %v444_v34  ;;  %v484_v28 = vmul.f32 %v1083_v33, %v445_v36  ;;  %v485_v58 = vmul.f32 %v1083_v33, %v446_v40  ;;  %v486_v59 = vmul.f32 %v1083_v33, %v447_v29 }
  0x79   : > { %v518_v62 = vadd.f32 %v1097_v50, %v479_v41  ;;  %v519_v0 = vadd.f32 %v1097_v50, %v480_v51  ;;  %v520_v43 = vadd.f32 %v1097_v50, %v481_v52  ;;  %v521_v44 = vadd.f32 %v1097_v50, %v482_v55 }
  0x7a   : > { %v522_v29 = vadd.f32 %v1097_v50, %v483_v57  ;;  %v523_v34 = vadd.f32 %v1097_v50, %v484_v28  ;;  %v524_v36 = vadd.f32 %v1097_v50, %v485_v58  ;;  %v525_v40 = vadd.f32 %v1097_v50, %v486_v59 }
  0x7b   : > { %v550_v41 = vmax.f32 %v518_v62, 0.0  ;;  %v551_v45 = vmax.f32 %v519_v0, 0.0  ;;  %v552_v49 = vmax.f32 %v520_v43, 0.0  ;;  %v553_v51 = vmax.f32 %v521_v44, 0.0 }
  0x7c   : > { %v554_v52 = vmax.f32 %v522_v29, 0.0  ;;  %v555_v55 = vmax.f32 %v523_v34, 0.0  ;;  %v556_v26 = vmax.f32 %v524_v36, 0.0  ;;  %v557_v23 = vmax.f32 %v525_v40, 0.0 }
  0x7d   : > { %582 = vst.msk [vmem:[%s1120_s26] sm:$0xff] %vm231_vm0, %v550_v41  ;;  %583 = vst.msk [vmem:[%s1120_s26 + $0x8] sm:$0xff] %vm231_vm0, %v551_v45  ;;  %v448_v28 = vmul.f32 %v1081_v31, %v414_v1  ;;  %v449_v57 = vmul.f32 %v1081_v31, %v415_v2  ;;  %v450_v58 = vmul.f32 %v1081_v31, %v416_v3 }
  0x7e   : > { %584 = vst.msk [vmem:[%s1120_s26 + $0x10] sm:$0xff] %vm231_vm0, %v552_v49  ;;  %585 = vst.msk [vmem:[%s1120_s26 + $0x18] sm:$0xff] %vm231_vm0, %v553_v51  ;;  %v451_v59 = vmul.f32 %v1081_v31, %v417_v7  ;;  %v452_v19 = vmul.f32 %v1081_v31, %v418_v10  ;;  %v453_v22 = vmul.f32 %v1081_v31, %v419_v13 }
  0x7f   : > { %586 = vst.msk [vmem:[%s1120_s26 + $0x20] sm:$0xff] %vm231_vm0, %v554_v52  ;;  %587 = vst.msk [vmem:[%s1120_s26 + $0x28] sm:$0xff] %vm231_vm0, %v555_v55  ;;  %v454_v25 = vmul.f32 %v1081_v31, %v420_v16  ;;  %v455_v27 = vmul.f32 %v1081_v31, %v421_v63  ;;  %v487_v1 = vmul.f32 %v1083_v33, %v448_v28 }
  0x80   : > { %588 = vst.msk [vmem:[%s1120_s26 + $0x30] sm:$0xff] %vm231_vm0, %v556_v26  ;;  %589 = vst.msk [vmem:[%s1120_s26 + $0x38] sm:$0xff] %vm231_vm0, %v557_v23  ;;  %v488_v35 = vmul.f32 %v1083_v33, %v449_v57  ;;  %v489_v2 = vmul.f32 %v1083_v33, %v450_v58  ;;  %v490_v42 = vmul.f32 %v1083_v33, %v451_v59 }
  0x81   : > { %v491_v3 = vmul.f32 %v1083_v33, %v452_v19  ;;  %v492_v7 = vmul.f32 %v1083_v33, %v453_v22  ;;  %v493_v48 = vmul.f32 %v1083_v33, %v454_v25  ;;  %v494_v10 = vmul.f32 %v1083_v33, %v455_v27 }
  0x82   : > { %v526_v54 = vadd.f32 %v1097_v50, %v487_v1  ;;  %v527_v13 = vadd.f32 %v1097_v50, %v488_v35  ;;  %v528_v16 = vadd.f32 %v1097_v50, %v489_v2  ;;  %v529_v63 = vadd.f32 %v1097_v50, %v490_v42 }
  0x83   : > { %v530_v23 = vadd.f32 %v1097_v50, %v491_v3  ;;  %v531_v26 = vadd.f32 %v1097_v50, %v492_v7  ;;  %v532_v62 = vadd.f32 %v1097_v50, %v493_v48  ;;  %v533_v0 = vadd.f32 %v1097_v50, %v494_v10 }
  0x84   : > { %v558_v43 = vmax.f32 %v526_v54, 0.0  ;;  %v559_v44 = vmax.f32 %v527_v13, 0.0  ;;  %v560_v29 = vmax.f32 %v528_v16, 0.0  ;;  %v561_v34 = vmax.f32 %v529_v63, 0.0 }
  0x85   : > { %v562_v36 = vmax.f32 %v530_v23, 0.0  ;;  %v563_v40 = vmax.f32 %v531_v26, 0.0  ;;  %v564_v41 = vmax.f32 %v532_v62, 0.0  ;;  %v565_v45 = vmax.f32 %v533_v0, 0.0 }
  0x86   : > { %590 = vst.msk [vmem:[%s1120_s26 + $0x40] sm:$0xff] %vm231_vm0, %v558_v43  ;;  %591 = vst.msk [vmem:[%s1120_s26 + $0x48] sm:$0xff] %vm231_vm0, %v559_v44  ;;  %v456_v49 = vmul.f32 %v1081_v31, %v422_v5  ;;  %v457_v51 = vmul.f32 %v1081_v31, %v423_v8  ;;  %v458_v52 = vmul.f32 %v1081_v31, %v424_v11 }
  0x87   : > { %592 = vst.msk [vmem:[%s1120_s26 + $0x50] sm:$0xff] %vm231_vm0, %v560_v29  ;;  %593 = vst.msk [vmem:[%s1120_s26 + $0x58] sm:$0xff] %vm231_vm0, %v561_v34  ;;  %v459_v55 = vmul.f32 %v1081_v31, %v425_v12  ;;  %v460_v60 = vmul.f32 %v1081_v31, %v426_v14  ;;  %v461_v6 = vmul.f32 %v1081_v31, %v427_v17 }
  0x88   : > { %594 = vst.msk [vmem:[%s1120_s26 + $0x60] sm:$0xff] %vm231_vm0, %v562_v36  ;;  %595 = vst.msk [vmem:[%s1120_s26 + $0x68] sm:$0xff] %vm231_vm0, %v563_v40  ;;  %v462_v15 = vmul.f32 %v1081_v31, %v428_v18  ;;  %v463_v24 = vmul.f32 %v1081_v31, %v429_v21  ;;  %v495_v5 = vmul.f32 %v1083_v33, %v456_v49 }
  0x89   : > { %596 = vst.msk [vmem:[%s1120_s26 + $0x70] sm:$0xff] %vm231_vm0, %v564_v41  ;;  %597 = vst.msk [vmem:[%s1120_s26 + $0x78] sm:$0xff] %vm231_vm0, %v565_v45  ;;  %v496_v32 = vmul.f32 %v1083_v33, %v457_v51  ;;  %v497_v8 = vmul.f32 %v1083_v33, %v458_v52  ;;  %v498_v39 = vmul.f32 %v1083_v33, %v459_v55 }
  0x8a   : > { %v499_v11 = vmul.f32 %v1083_v33, %v460_v60  ;;  %v500_v12 = vmul.f32 %v1083_v33, %v461_v6  ;;  %v501_v46 = vmul.f32 %v1083_v33, %v462_v15  ;;  %v502_v14 = vmul.f32 %v1083_v33, %v463_v24 }
  0x8b   : > { %v534_v53 = vadd.f32 %v1097_v50, %v495_v5  ;;  %v535_v17 = vadd.f32 %v1097_v50, %v496_v32  ;;  %v536_v18 = vadd.f32 %v1097_v50, %v497_v8  ;;  %v537_v21 = vadd.f32 %v1097_v50, %v498_v39 }
  0x8c   : > { %v538_v28 = vadd.f32 %v1097_v50, %v499_v11  ;;  %v539_v57 = vadd.f32 %v1097_v50, %v500_v12  ;;  %v540_v58 = vadd.f32 %v1097_v50, %v501_v46  ;;  %v541_v59 = vadd.f32 %v1097_v50, %v502_v14 }
  0x8d   : > { %v566_v19 = vmax.f32 %v534_v53, 0.0  ;;  %v567_v22 = vmax.f32 %v535_v17, 0.0  ;;  %v568_v25 = vmax.f32 %v536_v18, 0.0  ;;  %v569_v27 = vmax.f32 %v537_v21, 0.0 }
  0x8e   : > { %v570_v1 = vmax.f32 %v538_v28, 0.0  ;;  %v571_v35 = vmax.f32 %v539_v57, 0.0  ;;  %v572_v2 = vmax.f32 %v540_v58, 0.0  ;;  %v573_v42 = vmax.f32 %v541_v59, 0.0 }
  0x8f   : > { %598 = vst.msk [vmem:[%s1120_s26 + $0x80] sm:$0xff] %vm231_vm0, %v566_v19  ;;  %599 = vst.msk [vmem:[%s1120_s26 + $0x88] sm:$0xff] %vm231_vm0, %v567_v22  ;;  %v1341_v3 = vsub.f32 %v923_v61, %v1014_v37  ;;  %v1342_v48 = vsub.f32 %v931_v9, %v1014_v37  ;;  %v1343_v54 = vsub.f32 %v939_v20, %v1014_v37 }
  0x90   : > { %600 = vst.msk [vmem:[%s1120_s26 + $0x90] sm:$0xff] %vm231_vm0, %v568_v25  ;;  %601 = vst.msk [vmem:[%s1120_s26 + $0x98] sm:$0xff] %vm231_vm0, %v569_v27  ;;  %v1344_v16 = vsub.f32 %v947_v30, %v1014_v37  ;;  %v1345_v61 = vsub.f32 %v955_v38, %v1014_v37  ;;  %v1346_v20 = vsub.f32 %v963_v47, %v1014_v37 }
  0x91   : > { %v464_v7 = vmul.f32 %v1081_v31, %v1341_v3  ;;  %v465_v10 = vmul.f32 %v1081_v31, %v1342_v48  ;;  %v466_v13 = vmul.f32 %v1081_v31, %v1343_v54  ;;  %602 = vst.msk [vmem:[%s1120_s26 + $0xa0] sm:$0xff] %vm231_vm0, %v570_v1  ;;  %603 = vst.msk [vmem:[%s1120_s26 + $0xa8] sm:$0xff] %vm231_vm0, %v571_v35 }
  0x92   : > { %v467_v63 = vmul.f32 %v1081_v31, %v1344_v16  ;;  %604 = vst.msk [vmem:[%s1120_s26 + $0xb0] sm:$0xff] %vm231_vm0, %v572_v2  ;;  %605 = vst.msk [vmem:[%s1120_s26 + $0xb8] sm:$0xff] %vm231_vm0, %v573_v42  ;;  %v468_v9 = vmul.f32 %v1081_v31, %v1345_v61  ;;  %v469_v30 = vmul.f32 %v1081_v31, %v1346_v20 }
  0x93   : > { %v1347_v23 = vsub.f32 %v971_v56, %v1014_v37  ;;  %v1348_v62 = vsub.f32 %v979_v4, %v1014_v37  ;;  %v503_v43 = vmul.f32 %v1083_v33, %v464_v7  ;;  %v504_v38 = vmul.f32 %v1083_v33, %v465_v10 }
  0x94   : > { %v505_v44 = vmul.f32 %v1083_v33, %v466_v13  ;;  %v506_v47 = vmul.f32 %v1083_v33, %v467_v63  ;;  %v507_v29 = vmul.f32 %v1083_v33, %v468_v9  ;;  %v508_v34 = vmul.f32 %v1083_v33, %v469_v30 }
  0x95   : > { %v470_v26 = vmul.f32 %v1081_v31, %v1347_v23  ;;  %v471_v0 = vmul.f32 %v1081_v31, %v1348_v62  ;;  %v542_v4 = vadd.f32 %v1097_v50, %v503_v43  ;;  %v543_v37 = vadd.f32 %v1097_v50, %v504_v38 }
  0x96   : > { %v544_v31 = vadd.f32 %v1097_v50, %v505_v44  ;;  %v545_v40 = vadd.f32 %v1097_v50, %v506_v47  ;;  %v546_v41 = vadd.f32 %v1097_v50, %v507_v29  ;;  %v547_v45 = vadd.f32 %v1097_v50, %v508_v34 }
  0x97   : > { %v509_v56 = vmul.f32 %v1083_v33, %v470_v26  ;;  %v510_v36 = vmul.f32 %v1083_v33, %v471_v0  ;;  %v574_v51 = vmax.f32 %v542_v4, 0.0  ;;  %v575_v52 = vmax.f32 %v543_v37, 0.0 }
  0x98   : > { %v576_v55 = vmax.f32 %v544_v31, 0.0  ;;  %v577_v60 = vmax.f32 %v545_v40, 0.0  ;;  %v578_v6 = vmax.f32 %v546_v41, 0.0  ;;  %v579_v15 = vmax.f32 %v547_v45, 0.0 }
  0x99   : > { %v548_v33 = vadd.f32 %v1097_v50, %v509_v56  ;;  %v549_v49 = vadd.f32 %v1097_v50, %v510_v36  ;;  %606 = vst.msk [vmem:[%s1120_s26 + $0xc0] sm:$0xff] %vm231_vm0, %v574_v51  ;;  %607 = vst.msk [vmem:[%s1120_s26 + $0xc8] sm:$0xff] %vm231_vm0, %v575_v52 }
  0x9a   : > { %608 = vst.msk [vmem:[%s1120_s26 + $0xd0] sm:$0xff] %vm231_vm0, %v576_v55  ;;  %609 = vst.msk [vmem:[%s1120_s26 + $0xd8] sm:$0xff] %vm231_vm0, %v577_v60 }
  0x9b   : > { %v580_v24 = vmax.f32 %v548_v33, 0.0  ;;  %v581_v5 = vmax.f32 %v549_v49, 0.0  ;;  %610 = vst.msk [vmem:[%s1120_s26 + $0xe0] sm:$0xff] %vm231_vm0, %v578_v6  ;;  %611 = vst.msk [vmem:[%s1120_s26 + $0xe8] sm:$0xff] %vm231_vm0, %v579_v15 }
  0x9d   : > { %612 = vst.msk [vmem:[%s1120_s26 + $0xf0] sm:$0xff] %vm231_vm0, %v580_v24  ;;  %613 = vst.msk [vmem:[%s1120_s26 + $0xf8] sm:$0xff] %vm231_vm0, %v581_v5 }
  0x9e PF: > { %s13_s12 = sadd.s32 1, %s718_s12  }
  0x9f   : > { %p10_p4 = scmp.ge.s32.totalorder %s13_s12, 4  }
  0xa1   :  { %12 = sbr.rel (!%p10_p4) target bundleno = 1 (0x1), region = 68 }

// kernel: pix2pixhd_forward.41
= control target key start
LH: loop header
LB: loop body
LE: loop exit
PB: predicated region body
PF: predicated region fallthrough
CT: control target
= control target key end

     0   :  { %s1708_s1 = inlined_call_operand.vmem [shape: bf16[128,128], index: 1, kind: input, shape index: {}]   ;;  %s1709_s0 = inlined_call_operand.vmem [shape: bf16[512,128], index: 0, kind: input, shape index: {}]   ;;  %s1710_s2 = inlined_call_operand.vmem [shape: f32[1,128], index: 2, kind: input, shape index: {}]   ;;  %s1711_s3 = inlined_call_operand.vmem [shape: f32[512,128], index: 3, kind: output, shape index: {}]  }
   0x1   :  { %v1267_v0 = vld [vmem:[%s1708_s1] sm:$0xff]   ;;  %v1268_v1 = vld [vmem:[%s1708_s1 + $0x8] sm:$0xff]   ;;  %v1269_v2 = vld [vmem:[%s1708_s1 + $0x10] sm:$0xff]  }
   0x2   :  { %1171 = vmatprep.subr.bf16.mxu0 %v1267_v0  ;;  %1251 = vmatprep.subr.bf16.mxu1 %v1267_v0  ;;  %v1270_v3 = vld [vmem:[%s1708_s1 + $0x18] sm:$0xff]   ;;  %v1275_v4 = vld [vmem:[%s1709_s0] sm:$0xff]   ;;  %v1272_v7 = vld [vmem:[%s1708_s1 + $0x28] sm:$0xff]  }
   0x3   :  { %1172 = vmatpush3.bf16.msra.mxu0 %v1267_v0  ;;  %1259 = vmatpush3.bf16.msra.mxu1 %v1267_v0  ;;  %v1276_v5 = vld [vmem:[%s1709_s0 + $0x80] sm:$0xff]   ;;  %v1273_v8 = vld [vmem:[%s1708_s1 + $0x30] sm:$0xff]   ;;  %v1274_v9 = vld [vmem:[%s1708_s1 + $0x38] sm:$0xff]  }
   0x4   :  { %1173 = vmatprep.subr.bf16.mxu0 %v1268_v1  ;;  %1252 = vmatprep.subr.bf16.mxu1 %v1268_v1  ;;  %v1271_v6 = vld [vmem:[%s1708_s1 + $0x20] sm:$0xff]   ;;  %v1277_v10 = vld [vmem:[%s1709_s0 + $0x8] sm:$0xff]   ;;  %v1279_v12 = vld [vmem:[%s1709_s0 + $0x10] sm:$0xff]  }
   0x5   :  { %1187 = vmatprep.mubr.bf16.mxu0 %v1275_v4  ;;  %1219 = vmatprep.mubr.bf16.mxu1 %v1276_v5  ;;  %v1278_v11 = vld [vmem:[%s1709_s0 + $0x88] sm:$0xff]   ;;  %v1280_v13 = vld [vmem:[%s1709_s0 + $0x90] sm:$0xff]   ;;  %v1281_v14 = vld [vmem:[%s1709_s0 + $0x18] sm:$0xff]  }
   0x6   :  { %v1282_v15 = vld [vmem:[%s1709_s0 + $0x98] sm:$0xff]   ;;  %v1283_v16 = vld [vmem:[%s1709_s0 + $0x20] sm:$0xff]   ;;  %v1285_v18 = vld [vmem:[%s1709_s0 + $0x28] sm:$0xff]  }
   0x7   :  { %1174 = vmatpush3.bf16.msra.mxu0 %v1268_v1  ;;  %1260 = vmatpush3.bf16.msra.mxu1 %v1268_v1  ;;  %v1284_v17 = vld [vmem:[%s1709_s0 + $0xa0] sm:$0xff]   ;;  %v1286_v19 = vld [vmem:[%s1709_s0 + $0xa8] sm:$0xff]   ;;  %v1287_v20 = vld [vmem:[%s1709_s0 + $0x30] sm:$0xff]  }
   0x8   :  { %1175 = vmatprep.subr.bf16.mxu0 %v1269_v2  ;;  %1253 = vmatprep.subr.bf16.mxu1 %v1269_v2  ;;  %v1288_v21 = vld [vmem:[%s1709_s0 + $0xb0] sm:$0xff]   ;;  %v1289_v22 = vld [vmem:[%s1709_s0 + $0x38] sm:$0xff]   ;;  %v1291_v24 = vld [vmem:[%s1709_s0 + $0x40] sm:$0xff]  }
   0x9   :  { %v1290_v23 = vld [vmem:[%s1709_s0 + $0xb8] sm:$0xff]   ;;  %v1292_v25 = vld [vmem:[%s1709_s0 + $0xc0] sm:$0xff]   ;;  %v1293_v26 = vld [vmem:[%s1709_s0 + $0x48] sm:$0xff]  }
   0xa   :  { %v1294_v27 = vld [vmem:[%s1709_s0 + $0xc8] sm:$0xff]   ;;  %v1295_v28 = vld [vmem:[%s1709_s0 + $0x50] sm:$0xff]   ;;  %v1297_v30 = vld [vmem:[%s1709_s0 + $0x58] sm:$0xff]  }
   0xb   :  { %1176 = vmatpush3.bf16.msra.mxu0 %v1269_v2  ;;  %1261 = vmatpush3.bf16.msra.mxu1 %v1269_v2  ;;  %v1296_v29 = vld [vmem:[%s1709_s0 + $0xd0] sm:$0xff]   ;;  %v1298_v31 = vld [vmem:[%s1709_s0 + $0xd8] sm:$0xff]   ;;  %v1299_v32 = vld [vmem:[%s1709_s0 + $0x60] sm:$0xff]  }
   0xc   :  { %1177 = vmatprep.subr.bf16.mxu0 %v1270_v3  ;;  %1254 = vmatprep.subr.bf16.mxu1 %v1270_v3  ;;  %v1300_v33 = vld [vmem:[%s1709_s0 + $0xe0] sm:$0xff]   ;;  %v1301_v34 = vld [vmem:[%s1709_s0 + $0x68] sm:$0xff]   ;;  %v1303_v36 = vld [vmem:[%s1709_s0 + $0x70] sm:$0xff]  }
   0xd   :  { %v1302_v35 = vld [vmem:[%s1709_s0 + $0xe8] sm:$0xff]   ;;  %v1304_v37 = vld [vmem:[%s1709_s0 + $0xf0] sm:$0xff]   ;;  %v1305_v38 = vld [vmem:[%s1709_s0 + $0x78] sm:$0xff]  }
   0xe   :  { %v1306_v39 = vld [vmem:[%s1709_s0 + $0xf8] sm:$0xff]   ;;  %v1450_v40 = vld [vmem:[%s1710_s2] ss:$0 sm:$0xff] }
   0xf   :  { %1178 = vmatpush3.bf16.msra.mxu0 %v1270_v3  ;;  %1262 = vmatpush3.bf16.msra.mxu1 %v1270_v3 }
  0x10   :  { %1179 = vmatprep.subr.bf16.mxu0 %v1271_v6  ;;  %1255 = vmatprep.subr.bf16.mxu1 %v1271_v6 }
  0x13   :  { %1180 = vmatpush3.bf16.msra.mxu0 %v1271_v6  ;;  %1263 = vmatpush3.bf16.msra.mxu1 %v1271_v6 }
  0x14   :  { %1181 = vmatprep.subr.bf16.mxu0 %v1272_v7  ;;  %1256 = vmatprep.subr.bf16.mxu1 %v1272_v7 }
  0x17   :  { %1182 = vmatpush3.bf16.msra.mxu0 %v1272_v7  ;;  %1264 = vmatpush3.bf16.msra.mxu1 %v1272_v7 }
  0x18   :  { %1183 = vmatprep.subr.bf16.mxu0 %v1273_v8  ;;  %1257 = vmatprep.subr.bf16.mxu1 %v1273_v8 }
  0x1b   :  { %1184 = vmatpush3.bf16.msra.mxu0 %v1273_v8  ;;  %1265 = vmatpush3.bf16.msra.mxu1 %v1273_v8 }
  0x1c   :  { %1185 = vmatprep.subr.bf16.mxu0 %v1274_v9  ;;  %1258 = vmatprep.subr.bf16.mxu1 %v1274_v9 }
  0x1f   :  { %1186 = vmatpush3.bf16.msra.mxu0 %v1274_v9  ;;  %1266 = vmatpush3.bf16.msra.mxu1 %v1274_v9 }
  0x22   :  { %1188 = vmatmul.mubr.bf16.vlgmr.msra.gmra.mrb[0].mxu0 %v1277_v10  ;;  %1220 = vmatmul.mubr.bf16.vlgmr.msra.gmra.mrb[0].mxu1 %v1278_v11 }
  0x23   :  { %1191 = vmatprep.mubr.bf16.mxu0 %v1279_v12  ;;  %1223 = vmatprep.mubr.bf16.mxu1 %v1280_v13 }
  0x2a   :  { %1192 = vmatmul.mubr.bf16.gmra.mrb[4].mxu0 %v1281_v14  ;;  %1224 = vmatmul.mubr.bf16.gmra.mrb[4].mxu1 %v1282_v15 }
  0x2b   :  { %1195 = vmatprep.mubr.bf16.mxu0 %v1283_v16  ;;  %1227 = vmatprep.mubr.bf16.mxu1 %v1284_v17 }
  0x32   :  { %1196 = vmatmul.mubr.bf16.gmra.mrb[8].mxu0 %v1285_v18  ;;  %1228 = vmatmul.mubr.bf16.gmra.mrb[8].mxu1 %v1286_v19 }
  0x33   :  { %1199 = vmatprep.mubr.bf16.mxu0 %v1287_v20  ;;  %1231 = vmatprep.mubr.bf16.mxu1 %v1288_v21 }
  0x3a   :  { %1200 = vmatmul.mubr.bf16.gmra.mrb[12].mxu0 %v1289_v22  ;;  %1232 = vmatmul.mubr.bf16.gmra.mrb[12].mxu1 %v1290_v23 }
  0x3b   :  { %1203 = vmatprep.mubr.bf16.mxu0 %v1291_v24  ;;  %1235 = vmatprep.mubr.bf16.mxu1 %v1292_v25 }
  0x42   :  { %1204 = vmatmul.mubr.bf16.gmra.mrb[16].mxu0 %v1293_v26  ;;  %1236 = vmatmul.mubr.bf16.gmra.mrb[16].mxu1 %v1294_v27 }
  0x43   :  { %1207 = vmatprep.mubr.bf16.mxu0 %v1295_v28  ;;  %1239 = vmatprep.mubr.bf16.mxu1 %v1296_v29 }
  0x4a   :  { %1208 = vmatmul.mubr.bf16.gmra.mrb[20].mxu0 %v1297_v30  ;;  %1240 = vmatmul.mubr.bf16.gmra.mrb[20].mxu1 %v1298_v31 }
  0x4b   :  { %1211 = vmatprep.mubr.bf16.mxu0 %v1299_v32  ;;  %1243 = vmatprep.mubr.bf16.mxu1 %v1300_v33 }
  0x52   :  { %1212 = vmatmul.mubr.bf16.gmra.mrb[24].mxu0 %v1301_v34  ;;  %1244 = vmatmul.mubr.bf16.gmra.mrb[24].mxu1 %v1302_v35 }
  0x53   :  { %1215 = vmatprep.mubr.bf16.mxu0 %v1303_v36  ;;  %1247 = vmatprep.mubr.bf16.mxu1 %v1304_v37 }
  0x5a   :  { %1216 = vmatmul.mubr.bf16.gmra.mrb[28].mxu0 %v1305_v38  ;;  %1248 = vmatmul.mubr.bf16.gmra.mrb[28].mxu1 %v1306_v39 }
  0xf5   :  { %v1189_v41 = vpop.f32.mrb[0].mxu0  ;;  %v1221_v42 = vpop.f32.mrb[0].mxu1 }
  0xf6   :  { %v960_v43 = vadd.f32 %v1189_v41, %v1450_v40  ;;  %v992_v44 = vadd.f32 %v1221_v42, %v1450_v40  ;;  %v501_v45 = vpop.f32.mrb[1].mxu0  ;;  %v629_v46 = vpop.f32.mrb[1].mxu1 }
  0xf7   :  { %v958_v47 = vadd.f32 %v1450_v40, %v501_v45  ;;  %v990_v48 = vadd.f32 %v1450_v40, %v629_v46  ;;  %v1190_v49 = vpop.f32.mrb[2].mxu0  ;;  %v1222_v50 = vpop.f32.mrb[2].mxu1 }
  0xf8   :  { %1024 = vst [vmem:[%s1711_s3 + $0x10] sm:$0xff] %v960_v43  ;;  %1056 = vst [vmem:[%s1711_s3 + $0x110] sm:$0xff] %v992_v44  ;;  %v961_v51 = vadd.f32 %v1190_v49, %v1450_v40  ;;  %v993_v52 = vadd.f32 %v1222_v50, %v1450_v40  ;;  %v504_v53 = vpop.f32.mrb[3].mxu0  ;;  %v632_v54 = vpop.f32.mrb[3].mxu1 }
  0xf9   :  { %1022 = vst [vmem:[%s1711_s3] sm:$0xff] %v958_v47  ;;  %1054 = vst [vmem:[%s1711_s3 + $0x100] sm:$0xff] %v990_v48  ;;  %v959_v55 = vadd.f32 %v1450_v40, %v504_v53  ;;  %v991_v56 = vadd.f32 %v1450_v40, %v632_v54 }
  0xfa   :  { %1025 = vst [vmem:[%s1711_s3 + $0x18] sm:$0xff] %v961_v51  ;;  %1057 = vst [vmem:[%s1711_s3 + $0x118] sm:$0xff] %v993_v52 }
  0xfb   :  { %1023 = vst [vmem:[%s1711_s3 + $0x8] sm:$0xff] %v959_v55  ;;  %1055 = vst [vmem:[%s1711_s3 + $0x108] sm:$0xff] %v991_v56 }
  0xfd   :  { %v1193_v57 = vpop.f32.mrb[4].mxu0  ;;  %v1225_v58 = vpop.f32.mrb[4].mxu1 }
  0xfe   :  { %v964_v59 = vadd.f32 %v1193_v57, %v1450_v40  ;;  %v996_v60 = vadd.f32 %v1225_v58, %v1450_v40  ;;  %v517_v61 = vpop.f32.mrb[5].mxu0  ;;  %v645_v62 = vpop.f32.mrb[5].mxu1 }
  0xff   :  { %v962_v63 = vadd.f32 %v1450_v40, %v517_v61  ;;  %v994_v0 = vadd.f32 %v1450_v40, %v645_v62  ;;  %v1194_v1 = vpop.f32.mrb[6].mxu0  ;;  %v1226_v2 = vpop.f32.mrb[6].mxu1 }
 0x100   :  { %1028 = vst [vmem:[%s1711_s3 + $0x30] sm:$0xff] %v964_v59  ;;  %1060 = vst [vmem:[%s1711_s3 + $0x130] sm:$0xff] %v996_v60  ;;  %v965_v3 = vadd.f32 %v1194_v1, %v1450_v40  ;;  %v997_v4 = vadd.f32 %v1226_v2, %v1450_v40  ;;  %v520_v5 = vpop.f32.mrb[7].mxu0  ;;  %v648_v6 = vpop.f32.mrb[7].mxu1 }
 0x101   :  { %1026 = vst [vmem:[%s1711_s3 + $0x20] sm:$0xff] %v962_v63  ;;  %1058 = vst [vmem:[%s1711_s3 + $0x120] sm:$0xff] %v994_v0  ;;  %v963_v7 = vadd.f32 %v1450_v40, %v520_v5  ;;  %v995_v8 = vadd.f32 %v1450_v40, %v648_v6 }
 0x102   :  { %1029 = vst [vmem:[%s1711_s3 + $0x38] sm:$0xff] %v965_v3  ;;  %1061 = vst [vmem:[%s1711_s3 + $0x138] sm:$0xff] %v997_v4 }
 0x103   :  { %1027 = vst [vmem:[%s1711_s3 + $0x28] sm:$0xff] %v963_v7  ;;  %1059 = vst [vmem:[%s1711_s3 + $0x128] sm:$0xff] %v995_v8 }
 0x105   :  { %v1197_v9 = vpop.f32.mrb[8].mxu0  ;;  %v1229_v10 = vpop.f32.mrb[8].mxu1 }
 0x106   :  { %v968_v11 = vadd.f32 %v1197_v9, %v1450_v40  ;;  %v1000_v12 = vadd.f32 %v1229_v10, %v1450_v40  ;;  %v533_v13 = vpop.f32.mrb[9].mxu0  ;;  %v661_v14 = vpop.f32.mrb[9].mxu1 }
 0x107   :  { %v966_v15 = vadd.f32 %v1450_v40, %v533_v13  ;;  %v998_v16 = vadd.f32 %v1450_v40, %v661_v14  ;;  %v1198_v17 = vpop.f32.mrb[10].mxu0  ;;  %v1230_v18 = vpop.f32.mrb[10].mxu1 }
 0x108   :  { %1032 = vst [vmem:[%s1711_s3 + $0x50] sm:$0xff] %v968_v11  ;;  %1064 = vst [vmem:[%s1711_s3 + $0x150] sm:$0xff] %v1000_v12  ;;  %v969_v19 = vadd.f32 %v1198_v17, %v1450_v40  ;;  %v1001_v20 = vadd.f32 %v1230_v18, %v1450_v40  ;;  %v536_v21 = vpop.f32.mrb[11].mxu0  ;;  %v664_v22 = vpop.f32.mrb[11].mxu1 }
 0x109   :  { %1030 = vst [vmem:[%s1711_s3 + $0x40] sm:$0xff] %v966_v15  ;;  %1062 = vst [vmem:[%s1711_s3 + $0x140] sm:$0xff] %v998_v16  ;;  %v967_v23 = vadd.f32 %v1450_v40, %v536_v21  ;;  %v999_v24 = vadd.f32 %v1450_v40, %v664_v22 }
 0x10a   :  { %1033 = vst [vmem:[%s1711_s3 + $0x58] sm:$0xff] %v969_v19  ;;  %1065 = vst [vmem:[%s1711_s3 + $0x158] sm:$0xff] %v1001_v20 }
 0x10b   :  { %1031 = vst [vmem:[%s1711_s3 + $0x48] sm:$0xff] %v967_v23  ;;  %1063 = vst [vmem:[%s1711_s3 + $0x148] sm:$0xff] %v999_v24 }
 0x10d   :  { %v1201_v25 = vpop.f32.mrb[12].mxu0  ;;  %v1233_v26 = vpop.f32.mrb[12].mxu1 }
 0x10e   :  { %v972_v27 = vadd.f32 %v1201_v25, %v1450_v40  ;;  %v1004_v28 = vadd.f32 %v1233_v26, %v1450_v40  ;;  %v549_v29 = vpop.f32.mrb[13].mxu0  ;;  %v677_v30 = vpop.f32.mrb[13].mxu1 }
 0x10f   :  { %v970_v31 = vadd.f32 %v1450_v40, %v549_v29  ;;  %v1002_v32 = vadd.f32 %v1450_v40, %v677_v30  ;;  %v1202_v33 = vpop.f32.mrb[14].mxu0  ;;  %v1234_v34 = vpop.f32.mrb[14].mxu1 }
 0x110   :  { %1036 = vst [vmem:[%s1711_s3 + $0x70] sm:$0xff] %v972_v27  ;;  %1068 = vst [vmem:[%s1711_s3 + $0x170] sm:$0xff] %v1004_v28  ;;  %v973_v35 = vadd.f32 %v1202_v33, %v1450_v40  ;;  %v1005_v36 = vadd.f32 %v1234_v34, %v1450_v40  ;;  %v552_v37 = vpop.f32.mrb[15].mxu0  ;;  %v680_v38 = vpop.f32.mrb[15].mxu1 }
 0x111   :  { %1034 = vst [vmem:[%s1711_s3 + $0x60] sm:$0xff] %v970_v31  ;;  %1066 = vst [vmem:[%s1711_s3 + $0x160] sm:$0xff] %v1002_v32  ;;  %v971_v39 = vadd.f32 %v1450_v40, %v552_v37  ;;  %v1003_v41 = vadd.f32 %v1450_v40, %v680_v38 }
 0x112   :  { %1037 = vst [vmem:[%s1711_s3 + $0x78] sm:$0xff] %v973_v35  ;;  %1069 = vst [vmem:[%s1711_s3 + $0x178] sm:$0xff] %v1005_v36 }
 0x113   :  { %1035 = vst [vmem:[%s1711_s3 + $0x68] sm:$0xff] %v971_v39  ;;  %1067 = vst [vmem:[%s1711_s3 + $0x168] sm:$0xff] %v1003_v41 }
 0x115   :  { %v1205_v42 = vpop.f32.mrb[16].mxu0  ;;  %v1237_v43 = vpop.f32.mrb[16].mxu1 }
 0x116   :  { %v976_v44 = vadd.f32 %v1205_v42, %v1450_v40  ;;  %v1008_v45 = vadd.f32 %v1237_v43, %v1450_v40  ;;  %v565_v46 = vpop.f32.mrb[17].mxu0  ;;  %v693_v47 = vpop.f32.mrb[17].mxu1 }
 0x117   :  { %v974_v48 = vadd.f32 %v1450_v40, %v565_v46  ;;  %v1006_v49 = vadd.f32 %v1450_v40, %v693_v47  ;;  %v1206_v50 = vpop.f32.mrb[18].mxu0  ;;  %v1238_v51 = vpop.f32.mrb[18].mxu1 }
 0x118   :  { %1040 = vst [vmem:[%s1711_s3 + $0x90] sm:$0xff] %v976_v44  ;;  %1072 = vst [vmem:[%s1711_s3 + $0x190] sm:$0xff] %v1008_v45  ;;  %v977_v52 = vadd.f32 %v1206_v50, %v1450_v40  ;;  %v1009_v53 = vadd.f32 %v1238_v51, %v1450_v40  ;;  %v568_v54 = vpop.f32.mrb[19].mxu0  ;;  %v696_v55 = vpop.f32.mrb[19].mxu1 }
 0x119   :  { %1038 = vst [vmem:[%s1711_s3 + $0x80] sm:$0xff] %v974_v48  ;;  %1070 = vst [vmem:[%s1711_s3 + $0x180] sm:$0xff] %v1006_v49  ;;  %v975_v56 = vadd.f32 %v1450_v40, %v568_v54  ;;  %v1007_v57 = vadd.f32 %v1450_v40, %v696_v55 }
 0x11a   :  { %1041 = vst [vmem:[%s1711_s3 + $0x98] sm:$0xff] %v977_v52  ;;  %1073 = vst [vmem:[%s1711_s3 + $0x198] sm:$0xff] %v1009_v53 }
 0x11b   :  { %1039 = vst [vmem:[%s1711_s3 + $0x88] sm:$0xff] %v975_v56  ;;  %1071 = vst [vmem:[%s1711_s3 + $0x188] sm:$0xff] %v1007_v57 }
 0x11d   :  { %v1209_v58 = vpop.f32.mrb[20].mxu0  ;;  %v1241_v59 = vpop.f32.mrb[20].mxu1 }
 0x11e   :  { %v980_v60 = vadd.f32 %v1209_v58, %v1450_v40  ;;  %v1012_v61 = vadd.f32 %v1241_v59, %v1450_v40  ;;  %v581_v62 = vpop.f32.mrb[21].mxu0  ;;  %v709_v63 = vpop.f32.mrb[21].mxu1 }
 0x11f   :  { %v978_v0 = vadd.f32 %v1450_v40, %v581_v62  ;;  %v1010_v1 = vadd.f32 %v1450_v40, %v709_v63  ;;  %v1210_v2 = vpop.f32.mrb[22].mxu0  ;;  %v1242_v3 = vpop.f32.mrb[22].mxu1 }
 0x120   :  { %1044 = vst [vmem:[%s1711_s3 + $0xb0] sm:$0xff] %v980_v60  ;;  %1076 = vst [vmem:[%s1711_s3 + $0x1b0] sm:$0xff] %v1012_v61  ;;  %v981_v4 = vadd.f32 %v1210_v2, %v1450_v40  ;;  %v1013_v5 = vadd.f32 %v1242_v3, %v1450_v40  ;;  %v584_v6 = vpop.f32.mrb[23].mxu0  ;;  %v712_v7 = vpop.f32.mrb[23].mxu1 }
 0x121   :  { %1042 = vst [vmem:[%s1711_s3 + $0xa0] sm:$0xff] %v978_v0  ;;  %1074 = vst [vmem:[%s1711_s3 + $0x1a0] sm:$0xff] %v1010_v1  ;;  %v979_v8 = vadd.f32 %v1450_v40, %v584_v6  ;;  %v1011_v9 = vadd.f32 %v1450_v40, %v712_v7 }
 0x122   :  { %1045 = vst [vmem:[%s1711_s3 + $0xb8] sm:$0xff] %v981_v4  ;;  %1077 = vst [vmem:[%s1711_s3 + $0x1b8] sm:$0xff] %v1013_v5 }
 0x123   :  { %1043 = vst [vmem:[%s1711_s3 + $0xa8] sm:$0xff] %v979_v8  ;;  %1075 = vst [vmem:[%s1711_s3 + $0x1a8] sm:$0xff] %v1011_v9 }
 0x125   :  { %v1213_v10 = vpop.f32.mrb[24].mxu0  ;;  %v1245_v11 = vpop.f32.mrb[24].mxu1 }
 0x126   :  { %v984_v12 = vadd.f32 %v1213_v10, %v1450_v40  ;;  %v1016_v13 = vadd.f32 %v1245_v11, %v1450_v40  ;;  %v597_v14 = vpop.f32.mrb[25].mxu0  ;;  %v725_v15 = vpop.f32.mrb[25].mxu1 }
 0x127   :  { %v982_v16 = vadd.f32 %v1450_v40, %v597_v14  ;;  %v1014_v17 = vadd.f32 %v1450_v40, %v725_v15  ;;  %v1214_v18 = vpop.f32.mrb[26].mxu0  ;;  %v1246_v19 = vpop.f32.mrb[26].mxu1 }
 0x128   :  { %1048 = vst [vmem:[%s1711_s3 + $0xd0] sm:$0xff] %v984_v12  ;;  %1080 = vst [vmem:[%s1711_s3 + $0x1d0] sm:$0xff] %v1016_v13  ;;  %v985_v20 = vadd.f32 %v1214_v18, %v1450_v40  ;;  %v1017_v21 = vadd.f32 %v1246_v19, %v1450_v40  ;;  %v600_v22 = vpop.f32.mrb[27].mxu0  ;;  %v728_v23 = vpop.f32.mrb[27].mxu1 }
 0x129   :  { %1046 = vst [vmem:[%s1711_s3 + $0xc0] sm:$0xff] %v982_v16  ;;  %1078 = vst [vmem:[%s1711_s3 + $0x1c0] sm:$0xff] %v1014_v17  ;;  %v983_v24 = vadd.f32 %v1450_v40, %v600_v22  ;;  %v1015_v25 = vadd.f32 %v1450_v40, %v728_v23 }
 0x12a   :  { %1049 = vst [vmem:[%s1711_s3 + $0xd8] sm:$0xff] %v985_v20  ;;  %1081 = vst [vmem:[%s1711_s3 + $0x1d8] sm:$0xff] %v1017_v21 }
 0x12b   :  { %1047 = vst [vmem:[%s1711_s3 + $0xc8] sm:$0xff] %v983_v24  ;;  %1079 = vst [vmem:[%s1711_s3 + $0x1c8] sm:$0xff] %v1015_v25 }
 0x12d   :  { %v1217_v26 = vpop.f32.mrb[28].mxu0  ;;  %v1249_v27 = vpop.f32.mrb[28].mxu1 }
 0x12e   :  { %v988_v28 = vadd.f32 %v1217_v26, %v1450_v40  ;;  %v1020_v29 = vadd.f32 %v1249_v27, %v1450_v40  ;;  %v613_v30 = vpop.f32.mrb[29].mxu0  ;;  %v741_v31 = vpop.f32.mrb[29].mxu1 }
 0x12f   :  { %v986_v32 = vadd.f32 %v1450_v40, %v613_v30  ;;  %v1018_v33 = vadd.f32 %v1450_v40, %v741_v31  ;;  %v1218_v34 = vpop.f32.mrb[30].mxu0  ;;  %v1250_v35 = vpop.f32.mrb[30].mxu1 }
 0x130   :  { %1052 = vst [vmem:[%s1711_s3 + $0xf0] sm:$0xff] %v988_v28  ;;  %1084 = vst [vmem:[%s1711_s3 + $0x1f0] sm:$0xff] %v1020_v29  ;;  %v989_v36 = vadd.f32 %v1218_v34, %v1450_v40  ;;  %v1021_v37 = vadd.f32 %v1250_v35, %v1450_v40  ;;  %v616_v38 = vpop.f32.mrb[31].mxu0  ;;  %v744_v39 = vpop.f32.mrb[31].mxu1 }
 0x131   :  { %1050 = vst [vmem:[%s1711_s3 + $0xe0] sm:$0xff] %v986_v32  ;;  %1082 = vst [vmem:[%s1711_s3 + $0x1e0] sm:$0xff] %v1018_v33  ;;  %v987_v41 = vadd.f32 %v1450_v40, %v616_v38  ;;  %v1019_v42 = vadd.f32 %v1450_v40, %v744_v39 }
 0x132   :  { %1053 = vst [vmem:[%s1711_s3 + $0xf8] sm:$0xff] %v989_v36  ;;  %1085 = vst [vmem:[%s1711_s3 + $0x1f8] sm:$0xff] %v1021_v37 }
 0x133   :  { %1051 = vst [vmem:[%s1711_s3 + $0xe8] sm:$0xff] %v987_v41  ;;  %1083 = vst [vmem:[%s1711_s3 + $0x1e8] sm:$0xff] %v1019_v42 }

// kernel: pix2pixhd_forward.43
= control target key start
LH: loop header
LB: loop body
LE: loop exit
PB: predicated region body
PF: predicated region fallthrough
CT: control target
= control target key end

     0   :  { %s804_s1 = inlined_call_operand.vmem [shape: bf16[256,128], index: 1, kind: input, shape index: {}]   ;;  %s805_s0 = inlined_call_operand.vmem [shape: bf16[128,256], index: 0, kind: input, shape index: {}]   ;;  %s806_s2 = inlined_call_operand.vmem [shape: f32[1,128], index: 2, kind: input, shape index: {}]   ;;  %s807_s3 = inlined_call_operand.vmem [shape: f32[128,128], index: 3, kind: output, shape index: {}]  }
   0x1   :  { %v579_v0 = vld [vmem:[%s804_s1 + $0x40] sm:$0xff]   ;;  %v581_v2 = vld [vmem:[%s804_s1 + $0x48] sm:$0xff]   ;;  %v583_v4 = vld [vmem:[%s804_s1 + $0x50] sm:$0xff]  }
   0x2   :  { %v580_v1 = vld [vmem:[%s804_s1] sm:$0xff]   ;;  %499 = vmatprep.subr.bf16.mxu0 %v579_v0  ;;  %563 = vmatprep.subr.bf16.mxu1 %v579_v0  ;;  %v582_v3 = vld [vmem:[%s804_s1 + $0x8] sm:$0xff]   ;;  %v584_v5 = vld [vmem:[%s804_s1 + $0x10] sm:$0xff]  }
   0x3   :  { %500 = vmatpush3.bf16.msra.mxu0 %v580_v1  ;;  %571 = vmatpush3.bf16.msra.mxu1 %v580_v1  ;;  %v585_v6 = vld [vmem:[%s804_s1 + $0x58] sm:$0xff]   ;;  %v587_v8 = vld [vmem:[%s804_s1 + $0x60] sm:$0xff]   ;;  %v589_v10 = vld [vmem:[%s804_s1 + $0x68] sm:$0xff]  }
   0x4   :  { %501 = vmatprep.subr.bf16.mxu0 %v581_v2  ;;  %564 = vmatprep.subr.bf16.mxu1 %v581_v2  ;;  %v586_v7 = vld [vmem:[%s804_s1 + $0x18] sm:$0xff]   ;;  %v588_v9 = vld [vmem:[%s804_s1 + $0x20] sm:$0xff]   ;;  %v590_v13 = vld [vmem:[%s804_s1 + $0x28] sm:$0xff]  }
   0x5   :  { %v597_v11 = vld [vmem:[%s805_s0 + $0x4] ss:$8 sps:$4 sm:$0xff]   ;;  %v591_v14 = vld [vmem:[%s804_s1 + $0x70] sm:$0xff]   ;;  %v593_v16 = vld [vmem:[%s804_s1 + $0x78] sm:$0xff]  }
   0x6   :  { %v600_v12 = vld [vmem:[%s805_s0 + $0x44] ss:$8 sps:$4 sm:$0xff]   ;;  %307 = vmatprep.mubr.bf16.mxu0 %v597_v11  ;;  %v592_v15 = vld [vmem:[%s804_s1 + $0x30] sm:$0xff]   ;;  %v594_v17 = vld [vmem:[%s804_s1 + $0x38] sm:$0xff]  }
   0x7   :  { %502 = vmatpush3.bf16.msra.mxu0 %v582_v3  ;;  %572 = vmatpush3.bf16.msra.mxu1 %v582_v3  ;;  %v595_v18 = vld [vmem:[%s805_s0] ss:$8 sps:$4 sm:$0xff]   ;;  %v601_v20 = vld [vmem:[%s805_s0 + $0x14] ss:$8 sps:$4 sm:$0xff]   ;;  %v605_v22 = vld [vmem:[%s805_s0 + $0x10] ss:$8 sps:$4 sm:$0xff]  }
   0x8   :  { %503 = vmatprep.subr.bf16.mxu0 %v583_v4  ;;  %565 = vmatprep.subr.bf16.mxu1 %v583_v4  ;;  %v598_v19 = vld [vmem:[%s805_s0 + $0x40] ss:$8 sps:$4 sm:$0xff]   ;;  %v603_v21 = vld [vmem:[%s805_s0 + $0x54] ss:$8 sps:$4 sm:$0xff]   ;;  %v606_v23 = vld [vmem:[%s805_s0 + $0x50] ss:$8 sps:$4 sm:$0xff]  }
   0x9   :  { %339 = vmatprep.mubr.bf16.mxu1 %v600_v12  ;;  %v607_v24 = vld [vmem:[%s805_s0 + $0x24] ss:$8 sps:$4 sm:$0xff]   ;;  %v611_v26 = vld [vmem:[%s805_s0 + $0x20] ss:$8 sps:$4 sm:$0xff]   ;;  %v613_v28 = vld [vmem:[%s805_s0 + $0x34] ss:$8 sps:$4 sm:$0xff]  }
   0xa   :  { %v609_v25 = vld [vmem:[%s805_s0 + $0x64] ss:$8 sps:$4 sm:$0xff]   ;;  %v612_v27 = vld [vmem:[%s805_s0 + $0x60] ss:$8 sps:$4 sm:$0xff]   ;;  %v615_v29 = vld [vmem:[%s805_s0 + $0x74] ss:$8 sps:$4 sm:$0xff]  }
   0xb   :  { %504 = vmatpush3.bf16.msra.mxu0 %v584_v5  ;;  %573 = vmatpush3.bf16.msra.mxu1 %v584_v5  ;;  %v617_v30 = vld [vmem:[%s805_s0 + $0x30] ss:$8 sps:$4 sm:$0xff]   ;;  %v738_v35 = vld [vmem:[%s806_s2] ss:$0 sm:$0xff] }
   0xc   :  { %505 = vmatprep.subr.bf16.mxu0 %v585_v6  ;;  %566 = vmatprep.subr.bf16.mxu1 %v585_v6  ;;  %v618_v31 = vld [vmem:[%s805_s0 + $0x70] ss:$8 sps:$4 sm:$0xff]  }
   0xf   :  { %506 = vmatpush3.bf16.msra.mxu0 %v586_v7  ;;  %574 = vmatpush3.bf16.msra.mxu1 %v586_v7 }
  0x10   :  { %507 = vmatprep.subr.bf16.mxu0 %v587_v8  ;;  %567 = vmatprep.subr.bf16.mxu1 %v587_v8 }
  0x13   :  { %508 = vmatpush3.bf16.msra.mxu0 %v588_v9  ;;  %575 = vmatpush3.bf16.msra.mxu1 %v588_v9 }
  0x14   :  { %509 = vmatprep.subr.bf16.mxu0 %v589_v10  ;;  %568 = vmatprep.subr.bf16.mxu1 %v589_v10 }
  0x17   :  { %510 = vmatpush3.bf16.msra.mxu0 %v590_v13  ;;  %576 = vmatpush3.bf16.msra.mxu1 %v590_v13 }
  0x18   :  { %511 = vmatprep.subr.bf16.mxu0 %v591_v14  ;;  %569 = vmatprep.subr.bf16.mxu1 %v591_v14 }
  0x1b   :  { %512 = vmatpush3.bf16.msra.mxu0 %v592_v15  ;;  %577 = vmatpush3.bf16.msra.mxu1 %v592_v15 }
  0x1c   :  { %513 = vmatprep.subr.bf16.mxu0 %v593_v16  ;;  %570 = vmatprep.subr.bf16.mxu1 %v593_v16 }
  0x1f   :  { %514 = vmatpush3.bf16.msra.mxu0 %v594_v17  ;;  %578 = vmatpush3.bf16.msra.mxu1 %v594_v17 }
  0x22   :  { %308 = vmatmul.mubr.bf16.vlgmr.msra.gmra.mrb[0].mxu0 %v595_v18  ;;  %340 = vmatmul.mubr.bf16.vlgmr.msra.gmra.mrb[0].mxu1 %v598_v19 }
  0x23   :  { %315 = vmatprep.mubr.bf16.mxu0 %v601_v20  ;;  %347 = vmatprep.mubr.bf16.mxu1 %v603_v21 }
  0x2a   :  { %316 = vmatmul.mubr.bf16.gmra.mrb[4].mxu0 %v605_v22  ;;  %348 = vmatmul.mubr.bf16.gmra.mrb[4].mxu1 %v606_v23 }
  0x2b   :  { %323 = vmatprep.mubr.bf16.mxu0 %v607_v24  ;;  %355 = vmatprep.mubr.bf16.mxu1 %v609_v25 }
  0x32   :  { %324 = vmatmul.mubr.bf16.gmra.mrb[8].mxu0 %v611_v26  ;;  %356 = vmatmul.mubr.bf16.gmra.mrb[8].mxu1 %v612_v27 }
  0x33   :  { %331 = vmatprep.mubr.bf16.mxu0 %v613_v28  ;;  %363 = vmatprep.mubr.bf16.mxu1 %v615_v29 }
  0x3a   :  { %332 = vmatmul.mubr.bf16.gmra.mrb[12].mxu0 %v617_v30  ;;  %364 = vmatmul.mubr.bf16.gmra.mrb[12].mxu1 %v618_v31 }
  0xf5   :  { %v515_v32 = vpop.f32.mrb[0].mxu0  ;;  %v539_v33 = vpop.f32.mrb[0].mxu1 }
  0xf6   :  { %v516_v34 = vpop.f32.mrb[1].mxu0  ;;  %v540_v36 = vpop.f32.mrb[1].mxu1 }
  0xf7   :  { %v517_v37 = vadd.f32 %v516_v34, %v515_v32  ;;  %v541_v38 = vadd.f32 %v540_v36, %v539_v33  ;;  %v518_v39 = vpop.f32.mrb[2].mxu0  ;;  %v542_v40 = vpop.f32.mrb[2].mxu1 }
  0xf8   :  { %v519_v41 = vpop.f32.mrb[3].mxu0  ;;  %v543_v42 = vpop.f32.mrb[3].mxu1 }
  0xf9   :  { %v430_v43 = vadd.f32 %v517_v37, %v738_v35  ;;  %v438_v44 = vadd.f32 %v541_v38, %v738_v35  ;;  %v520_v45 = vadd.f32 %v519_v41, %v518_v39  ;;  %v544_v46 = vadd.f32 %v543_v42, %v542_v40 }
  0xfb   :  { %446 = vst [vmem:[%s807_s3] sm:$0xff] %v430_v43  ;;  %454 = vst [vmem:[%s807_s3 + $0x40] sm:$0xff] %v438_v44  ;;  %v431_v47 = vadd.f32 %v520_v45, %v738_v35  ;;  %v439_v48 = vadd.f32 %v544_v46, %v738_v35 }
  0xfd   :  { %447 = vst [vmem:[%s807_s3 + $0x8] sm:$0xff] %v431_v47  ;;  %455 = vst [vmem:[%s807_s3 + $0x48] sm:$0xff] %v439_v48  ;;  %v521_v49 = vpop.f32.mrb[4].mxu0  ;;  %v545_v50 = vpop.f32.mrb[4].mxu1 }
  0xfe   :  { %v522_v51 = vpop.f32.mrb[5].mxu0  ;;  %v546_v52 = vpop.f32.mrb[5].mxu1 }
  0xff   :  { %v523_v53 = vadd.f32 %v522_v51, %v521_v49  ;;  %v547_v54 = vadd.f32 %v546_v52, %v545_v50  ;;  %v524_v55 = vpop.f32.mrb[6].mxu0  ;;  %v548_v56 = vpop.f32.mrb[6].mxu1 }
 0x100   :  { %v525_v57 = vpop.f32.mrb[7].mxu0  ;;  %v549_v58 = vpop.f32.mrb[7].mxu1 }
 0x101   :  { %v432_v59 = vadd.f32 %v523_v53, %v738_v35  ;;  %v440_v60 = vadd.f32 %v547_v54, %v738_v35  ;;  %v526_v61 = vadd.f32 %v525_v57, %v524_v55  ;;  %v550_v62 = vadd.f32 %v549_v58, %v548_v56 }
 0x103   :  { %448 = vst [vmem:[%s807_s3 + $0x10] sm:$0xff] %v432_v59  ;;  %456 = vst [vmem:[%s807_s3 + $0x50] sm:$0xff] %v440_v60  ;;  %v433_v63 = vadd.f32 %v526_v61, %v738_v35  ;;  %v441_v0 = vadd.f32 %v550_v62, %v738_v35 }
 0x105   :  { %449 = vst [vmem:[%s807_s3 + $0x18] sm:$0xff] %v433_v63  ;;  %457 = vst [vmem:[%s807_s3 + $0x58] sm:$0xff] %v441_v0  ;;  %v527_v1 = vpop.f32.mrb[8].mxu0  ;;  %v551_v2 = vpop.f32.mrb[8].mxu1 }
 0x106   :  { %v528_v3 = vpop.f32.mrb[9].mxu0  ;;  %v552_v4 = vpop.f32.mrb[9].mxu1 }
 0x107   :  { %v529_v5 = vadd.f32 %v528_v3, %v527_v1  ;;  %v553_v6 = vadd.f32 %v552_v4, %v551_v2  ;;  %v530_v7 = vpop.f32.mrb[10].mxu0  ;;  %v554_v8 = vpop.f32.mrb[10].mxu1 }
 0x108   :  { %v531_v9 = vpop.f32.mrb[11].mxu0  ;;  %v555_v10 = vpop.f32.mrb[11].mxu1 }
 0x109   :  { %v434_v11 = vadd.f32 %v529_v5, %v738_v35  ;;  %v442_v12 = vadd.f32 %v553_v6, %v738_v35  ;;  %v532_v13 = vadd.f32 %v531_v9, %v530_v7  ;;  %v556_v14 = vadd.f32 %v555_v10, %v554_v8 }
 0x10b   :  { %450 = vst [vmem:[%s807_s3 + $0x20] sm:$0xff] %v434_v11  ;;  %458 = vst [vmem:[%s807_s3 + $0x60] sm:$0xff] %v442_v12  ;;  %v435_v15 = vadd.f32 %v532_v13, %v738_v35  ;;  %v443_v16 = vadd.f32 %v556_v14, %v738_v35 }
 0x10d   :  { %451 = vst [vmem:[%s807_s3 + $0x28] sm:$0xff] %v435_v15  ;;  %459 = vst [vmem:[%s807_s3 + $0x68] sm:$0xff] %v443_v16  ;;  %v533_v17 = vpop.f32.mrb[12].mxu0  ;;  %v557_v18 = vpop.f32.mrb[12].mxu1 }
 0x10e   :  { %v534_v19 = vpop.f32.mrb[13].mxu0  ;;  %v558_v20 = vpop.f32.mrb[13].mxu1 }
 0x10f   :  { %v535_v21 = vadd.f32 %v534_v19, %v533_v17  ;;  %v559_v22 = vadd.f32 %v558_v20, %v557_v18  ;;  %v536_v23 = vpop.f32.mrb[14].mxu0  ;;  %v560_v24 = vpop.f32.mrb[14].mxu1 }
 0x110   :  { %v537_v25 = vpop.f32.mrb[15].mxu0  ;;  %v561_v26 = vpop.f32.mrb[15].mxu1 }
 0x111   :  { %v436_v27 = vadd.f32 %v535_v21, %v738_v35  ;;  %v444_v28 = vadd.f32 %v559_v22, %v738_v35  ;;  %v538_v29 = vadd.f32 %v537_v25, %v536_v23  ;;  %v562_v30 = vadd.f32 %v561_v26, %v560_v24 }
 0x113   :  { %452 = vst [vmem:[%s807_s3 + $0x30] sm:$0xff] %v436_v27  ;;  %460 = vst [vmem:[%s807_s3 + $0x70] sm:$0xff] %v444_v28  ;;  %v437_v31 = vadd.f32 %v538_v29, %v738_v35  ;;  %v445_v32 = vadd.f32 %v562_v30, %v738_v35 }
 0x115   :  { %453 = vst [vmem:[%s807_s3 + $0x38] sm:$0xff] %v437_v31  ;;  %461 = vst [vmem:[%s807_s3 + $0x78] sm:$0xff] %v445_v32 }

// kernel: pix2pixhd_forward.44
= control target key start
LH: loop header
LB: loop body
LE: loop exit
PB: predicated region body
PF: predicated region fallthrough
CT: control target
= control target key end

     0   :  { %s452_s12 = smov 0   ;;  %s550_s0 = inlined_call_operand.vmem [shape: f32[2,64,32], index: 0, kind: input, shape index: {}]   ;;  %s551_s1 = inlined_call_operand.vmem [shape: f32[2,1,32], index: 1, kind: input, shape index: {}]   ;;  %s552_s2 = inlined_call_operand.vmem [shape: f32[2,1,32], index: 2, kind: input, shape index: {}]   ;;  %s553_s3 = inlined_call_operand.vmem [shape: f32[2,64,32], index: 3, kind: output, shape index: {}]  }
   0x1 LB: > { %s399_s13 = sadd.s32 4294967295, %s430_s12   ;;  %p403_p0 = scmp.ge.s32.totalorder %s430_s12, 1  ;;  %s430_s12 = sphi %s452_s12, %s13_s12  }
   0x2   : > { %p153_p1 = scmp.lt.s32.totalorder %s430_s12, 3 }
   0x4   : > { %p154_p2 = pnand %p403_p0, %p153_p1 }
   0x5   : > { %p183_p3 = scmp.lt.s32.totalorder (!%p154_p2), %s399_s13, 1  ;;  %vm207_vm0 = vcmask (!%p154_p2), 261120  }
   0x6   : > { %157 = sbr.rel (%p154_p2) target bundleno = 77 (0x4d), region = 32 }
   0xd   : > { %s555_s13 = smov (!%p183_p3, %s399_s13), 1 }
   0xe   : > { %s412_s14 = sshll.u32 %s555_s13, 6  ;;  %s190_s20 = scalar_lea.vmem %s551_s1, %s555_s13 }
   0xf   : > { %s187_s17 = scalar_lea.vmem %s550_s0, %s412_s14  ;;  %s193_s23 = scalar_lea.vmem %s552_s2, %s555_s13 }
  0x10   : > { %v468_v0 = vld [vmem:[%s187_s17] sm:$0xff]  ;;  %v470_v1 = vld [vmem:[%s187_s17 + $0x8] sm:$0xff]  ;;  %v472_v2 = vld [vmem:[%s187_s17 + $0x10] sm:$0xff]  ;;  %s198_s26 = scalar_lea.vmem %s553_s3, %s412_s14 }
  0x11   : > { %v474_v3 = vld [vmem:[%s187_s17 + $0x18] sm:$0xff]  ;;  %v208_v4 = vsel %vm207_vm0, %v468_v0, 0.0  ;;  %v209_v5 = vsel %vm207_vm0, %v470_v1, 0.0  ;;  %v211_v6 = vsel %vm207_vm0, %v472_v2, 0.0  ;;  %v229_v7 = vmul.f32 %v468_v0, %v468_v0  ;;  %v484_v8 = vld [vmem:[%s187_s17 + $0x20] sm:$0xff]  ;;  %v492_v13 = vld [vmem:[%s187_s17 + $0x28] sm:$0xff] }
  0x12   : > { %v210_v9 = vadd.f32 %v209_v5, %v208_v4  ;;  %v213_v10 = vsel %vm207_vm0, %v474_v3, 0.0  ;;  %v230_v11 = vmul.f32 %v470_v1, %v470_v1  ;;  %v231_v12 = vmul.f32 %v472_v2, %v472_v2  ;;  %v502_v20 = vld [vmem:[%s187_s17 + $0x30] sm:$0xff]  ;;  %v206_v27 = vld [vmem:[%s187_s17 + $0x38] sm:$0xff] }
  0x13   : > { %v232_v15 = vmul.f32 %v474_v3, %v474_v3  ;;  %v215_v16 = vsel %vm207_vm0, %v484_v8, 0.0  ;;  %v233_v17 = vmul.f32 %v484_v8, %v484_v8  ;;  %v237_v18 = vsel %vm207_vm0, %v229_v7, 0.0 }
  0x14   : > { %v212_v14 = vadd.f32 %v211_v6, %v210_v9  ;;  %v238_v19 = vsel %vm207_vm0, %v230_v11, 0.0  ;;  %v240_v23 = vsel %vm207_vm0, %v231_v12, 0.0  ;;  %v217_v24 = vsel %vm207_vm0, %v492_v13, 0.0 }
  0x15   : > { %v239_v22 = vadd.f32 %v238_v19, %v237_v18  ;;  %v234_v25 = vmul.f32 %v492_v13, %v492_v13  ;;  %v242_v26 = vsel %vm207_vm0, %v232_v15, 0.0  ;;  %v219_v30 = vsel %vm207_vm0, %v502_v20, 0.0 }
  0x16   : > { %v214_v21 = vadd.f32 %v213_v10, %v212_v14  ;;  %v235_v31 = vmul.f32 %v502_v20, %v502_v20  ;;  %v244_v32 = vsel %vm207_vm0, %v233_v17, 0.0  ;;  %v221_v35 = vsel %vm207_vm0, %v206_v27, 0.0  ;;  %v408_v14 = vld [vmem:[%s190_s20] ss:$0 sm:$0xff] }
  0x17   : > { %v241_v29 = vadd.f32 %v240_v23, %v239_v22  ;;  %v236_v36 = vmul.f32 %v206_v27, %v206_v27  ;;  %v246_v37 = vsel %vm207_vm0, %v234_v25, 0.0 }
  0x18   : > { %v216_v28 = vadd.f32 %v215_v16, %v214_v21  ;;  %v248_v40 = vsel %vm207_vm0, %v235_v31, 0.0 }
  0x19   : > { %v243_v34 = vadd.f32 %v242_v26, %v241_v29  ;;  %v250_v43 = vsel %vm207_vm0, %v236_v36, 0.0 }
  0x1a   : > { %v218_v33 = vadd.f32 %v217_v24, %v216_v28 }
  0x1b   : > { %v245_v39 = vadd.f32 %v244_v32, %v243_v34 }
  0x1c   : > { %v220_v38 = vadd.f32 %v219_v30, %v218_v33 }
  0x1d   : > { %v247_v42 = vadd.f32 %v246_v37, %v245_v39 }
  0x1e   : > { %v222_v41 = vadd.f32 %v221_v35, %v220_v38 }
  0x1f   : > { %v249_v45 = vadd.f32 %v248_v40, %v247_v42 }
  0x20   : > { %v223_v44 = vrot.slane %v222_v41, 4 }
  0x21   : > { %v251_v47 = vadd.f32 %v250_v43, %v249_v45 }
  0x22   : > { %v224_v46 = vadd.f32 %v223_v44, %v222_v41 }
  0x23   : > { %v252_v49 = vrot.slane %v251_v47, 4 }
  0x24   : > { %v225_v48 = vrot.slane %v224_v46, 2 }
  0x25   : > { %v253_v51 = vadd.f32 %v252_v49, %v251_v47 }
  0x26   : > { %v226_v50 = vadd.f32 %v225_v48, %v224_v46 }
  0x27   : > { %v254_v53 = vrot.slane %v253_v51, 2 }
  0x28   : > { %v227_v52 = vrot.slane %v226_v50, 1 }
  0x29   : > { %v255_v55 = vadd.f32 %v254_v53, %v253_v51 }
  0x2a   : > { %v228_v54 = vadd.f32 %v227_v52, %v226_v50 }
  0x2b   : > { %v256_v56 = vrot.slane %v255_v55, 1 }
  0x2c   : > { %v258_v57 = vmul.f32 0.015625, %v228_v54 }
  0x2d   : > { %v257_v58 = vadd.f32 %v256_v56, %v255_v55 }
  0x2e   : > { %v259_v59 = vmul.f32 %v258_v57, %v228_v54  ;;  %v262_v63 = vsub.f32 %v468_v0, %v258_v57  ;;  %v263_v4 = vsub.f32 %v470_v1, %v258_v57  ;;  %v264_v5 = vsub.f32 %v472_v2, %v258_v57  ;;  %v409_v2 = vld [vmem:[%s193_s23] ss:$0 sm:$0xff] }
  0x2f   : > { %v265_v6 = vsub.f32 %v474_v3, %v258_v57  ;;  %v266_v7 = vsub.f32 %v484_v8, %v258_v57  ;;  %v267_v9 = vsub.f32 %v492_v13, %v258_v57  ;;  %v268_v10 = vsub.f32 %v502_v20, %v258_v57 }
  0x30   : > { %v260_v60 = vsub.f32 %v257_v58, %v259_v59  ;;  %v269_v11 = vsub.f32 %v206_v27, %v258_v57 }
  0x32   : > { %v261_v61 = vmul.f32 0.015873017, %v260_v60 }
  0x34   : > { %v270_v62 = vadd.f32 1e-05, %v261_v61 }
  0x36   : > { %422 = vrsqrt.f32 %v270_v62 }
  0x40   : > { %v423_v12 = vpop.eup %422 }
  0x41   : > { %v272_v0 = vmul.f32 %v423_v12, %v262_v63  ;;  %v273_v15 = vmul.f32 %v423_v12, %v263_v4  ;;  %v274_v1 = vmul.f32 %v423_v12, %v264_v5  ;;  %v275_v16 = vmul.f32 %v423_v12, %v265_v6 }
  0x42   : > { %v276_v17 = vmul.f32 %v423_v12, %v266_v7  ;;  %v277_v3 = vmul.f32 %v423_v12, %v267_v9  ;;  %v278_v8 = vmul.f32 %v423_v12, %v268_v10  ;;  %v279_v18 = vmul.f32 %v423_v12, %v269_v11 }
  0x43   : > { %v287_v13 = vmul.f32 %v408_v14, %v272_v0  ;;  %v288_v19 = vmul.f32 %v408_v14, %v273_v15  ;;  %v289_v20 = vmul.f32 %v408_v14, %v274_v1  ;;  %v290_v21 = vmul.f32 %v408_v14, %v275_v16 }
  0x44   : > { %v291_v22 = vmul.f32 %v408_v14, %v276_v17  ;;  %v292_v23 = vmul.f32 %v408_v14, %v277_v3  ;;  %v293_v24 = vmul.f32 %v408_v14, %v278_v8  ;;  %v294_v25 = vmul.f32 %v408_v14, %v279_v18 }
  0x45   : > { %v302_v26 = vadd.f32 %v409_v2, %v287_v13  ;;  %v303_v27 = vadd.f32 %v409_v2, %v288_v19  ;;  %v304_v28 = vadd.f32 %v409_v2, %v289_v20  ;;  %v305_v29 = vadd.f32 %v409_v2, %v290_v21 }
  0x46   : > { %v306_v30 = vadd.f32 %v409_v2, %v291_v22  ;;  %v307_v31 = vadd.f32 %v409_v2, %v292_v23  ;;  %v308_v32 = vadd.f32 %v409_v2, %v293_v24  ;;  %v309_v33 = vadd.f32 %v409_v2, %v294_v25 }
  0x47   : > { %v310_v34 = vmax.f32 %v302_v26, 0.0  ;;  %v311_v35 = vmax.f32 %v303_v27, 0.0  ;;  %v312_v36 = vmax.f32 %v304_v28, 0.0  ;;  %v313_v37 = vmax.f32 %v305_v29, 0.0 }
  0x48   : > { %v314_v38 = vmax.f32 %v306_v30, 0.0  ;;  %v315_v39 = vmax.f32 %v307_v31, 0.0  ;;  %v316_v40 = vmax.f32 %v308_v32, 0.0  ;;  %v317_v41 = vmax.f32 %v309_v33, 0.0 }
  0x49   : > { %318 = vst.msk [vmem:[%s198_s26] sm:$0xff] %vm207_vm0, %v310_v34  ;;  %319 = vst.msk [vmem:[%s198_s26 + $0x8] sm:$0xff] %vm207_vm0, %v311_v35 }
  0x4a   : > { %320 = vst.msk [vmem:[%s198_s26 + $0x10] sm:$0xff] %vm207_vm0, %v312_v36  ;;  %321 = vst.msk [vmem:[%s198_s26 + $0x18] sm:$0xff] %vm207_vm0, %v313_v37 }
  0x4b   : > { %322 = vst.msk [vmem:[%s198_s26 + $0x20] sm:$0xff] %vm207_vm0, %v314_v38  ;;  %323 = vst.msk [vmem:[%s198_s26 + $0x28] sm:$0xff] %vm207_vm0, %v315_v39 }
  0x4c   : > { %324 = vst.msk [vmem:[%s198_s26 + $0x30] sm:$0xff] %vm207_vm0, %v316_v40  ;;  %325 = vst.msk [vmem:[%s198_s26 + $0x38] sm:$0xff] %vm207_vm0, %v317_v41 }
  0x4d PF: > { %s13_s12 = sadd.s32 1, %s430_s12  }
  0x4e   : > { %p10_p4 = scmp.ge.s32.totalorder %s13_s12, 4  }
  0x50   :  { %12 = sbr.rel (!%p10_p4) target bundleno = 1 (0x1), region = 68 }

// kernel: pix2pixhd_forward.45
= control target key start
LH: loop header
LB: loop body
LE: loop exit
PB: predicated region body
PF: predicated region fallthrough
CT: control target
= control target key end

     0   :  { %s757_s12 = smov 0   ;;  %s759_s13 = smov 0   ;;  %s856_s0 = inlined_call_operand.vmem [shape: bf16[32,384], index: 0, kind: input, shape index: {}]   ;;  %s857_s1 = inlined_call_operand.vmem [shape: bf16[384,128], index: 1, kind: input, shape index: {}]   ;;  %s858_s2 = inlined_call_operand.vmem [shape: f32[1,128], index: 2, kind: input, shape index: {}]   ;;  %s859_s3 = inlined_call_operand.vmem [shape: f32[32,128], index: 3, kind: output, shape index: {}]  }
   0x1   :  { %s761_s14 = smov 0   ;;  %s763_s15 = smov 0  }
   0x2   :  { %s765_s16 = smov 0  }
   0x3 LB: > { %s25_s17 = sadd.s32 1, %s730_s15  ;;  %p48_p1 = scmp.ne.s32.totalorder %s722_s13, %s718_s12  ;;  %s734_s16 = sphi %s765_s16, %s13_s16   ;;  %s730_s15 = sphi %s763_s15, %s863_s15   ;;  %s726_s14 = sphi %s761_s14, %s862_s14   ;;  %s722_s13 = sphi %s759_s13, %s861_s13   ;;  %s718_s12 = sphi %s757_s12, %s860_s12  }
   0x4   : > { %p26_p0 = scmp.ge.s32.totalorder %s25_s17, 3  ;;  %p49_p2 = scmp.eq.s32.totalorder %s734_s16, 0 }
   0x5   : > { %s41_s19 = sadd.s32 1, %s722_s13  ;;  %p591_p5 = scmp.ge.s32.totalorder %s734_s16, 3 }
   0x6   : > { %s865_s17 = smov (%p26_p0, %s25_s17), 0  ;;  %p50_p3 = por %p49_p2, %p48_p1 }
   0x7   : > { %s37_s18 = ssub.s32 %s730_s15, %s865_s17  ;;  %162 = sbr.rel (%p591_p5) target bundleno = 21 (0x15), region = 20 }
   0x8   : > { %p39_p4 = scmp.eq.s32.totalorder %s37_s18, 0 }
   0xa   : > { %s792_s20 = scalar_select %p39_p4, %s722_s13, %s41_s19  }
   0xe   : > { %165 = sbr.rel (!%p50_p3) target bundleno = 21 (0x15), region = 24  ;;  %s167_s21 = sand.u32 (%p50_p3), 1, %s722_s13  }
   0xf   : > { %s593_s22 = sshll.u32 (%p50_p3), %s730_s15, 2  ;;  %s592_s23 = sshll.u32 (%p50_p3), %s167_s21, 4 }
  0x10   : > { %s174_s26 = scalar_lea.vmem (%p50_p3), %s856_s0, %s593_s22  ;;  %s169_s27 = scalar_lea.vmem (%p50_p3), [#allocation3], %s592_s23 }
  0x11   : > { %v190_v0 = vld [vmem:[%s174_s26] sm:$0xf] (%p50_p3)  ;;  %v192_v1 = vld [vmem:[%s174_s26 + $0xc] sm:$0xf] (%p50_p3)  ;;  %v194_v2 = vld [vmem:[%s174_s26 + $0x18] sm:$0xf] (%p50_p3) }
  0x12   : > { %191 = vst [vmem:[%s169_s27] sm:$0xf] (%p50_p3), %v190_v0  ;;  %193 = vst [vmem:[%s169_s27 + $0x4] sm:$0xf] (%p50_p3), %v192_v1  ;;  %v196_v3 = vld [vmem:[%s174_s26 + $0x24] sm:$0xf] (%p50_p3) }
  0x13   : > { %195 = vst [vmem:[%s169_s27 + $0x8] sm:$0xf] (%p50_p3), %v194_v2  ;;  %197 = vst [vmem:[%s169_s27 + $0xc] sm:$0xf] (%p50_p3), %v196_v3 }
  0x15 PF: > { %p594_p6 = scmp.ge.s32.totalorder %s734_s16, 1  ;;  %p239_p7 = scmp.lt.s32.totalorder %s734_s16, 4 }
  0x17   : > { %p240_p8 = pnand %p594_p6, %p239_p7 }
  0x18   : > { %s246_s28 = sand.u32 (!%p240_p8), 1, %s718_s12   ;;  %s596_s29 = sshll.u32 (!%p240_p8), %s726_s14, 4 }
  0x19   : > { %243 = sbr.rel (%p240_p8) target bundleno = 300 (0x12c), region = 69  ;;  %s804_s30 = sshll.u32 (!%p240_p8), %s246_s28, 4 }
  0x1a   : > { %p285_p9 = scmp.lt.s32.totalorder (!%p240_p8), %s596_s29, 47  ;;  %s248_s8 = scalar_lea.vmem (!%p240_p8), [#allocation3], %s804_s30 }
  0x1b   : > { %p598_p10 = scmp.ne.s32.totalorder (!%p240_p8), %s726_s14, 0 }
  0x20   : > { %s867_s29 = smov (!%p285_p9, %s596_s29), 47  ;;  %309 = sbr.rel (%p598_p10) target bundleno = 39 (0x27), region = 77 }
  0x21   : > { %s597_s4 = sshll.u32 %s867_s29, 2  ;;  %v736_v4 = vmov (!%p598_p10), 0.0  }
  0x22   : > { %s809_s7 = scalar_lea.vmem %s857_s1, %s597_s4  ;;  %310 = vst [vmem:[#allocation2] sm:$0xff] (!%p598_p10), %v736_v4  ;;  %311 = vst [vmem:[#allocation2 + $0x8] sm:$0xff] (!%p598_p10), %v736_v4 }
  0x23   : > { %312 = vst [vmem:[#allocation2 + $0x10] sm:$0xff] (!%p598_p10), %v736_v4  ;;  %313 = vst [vmem:[#allocation2 + $0x18] sm:$0xff] (!%p598_p10), %v736_v4 }
  0x27 PF: > { %v686_v5 = vld [vmem:[%s809_s7] sm:$0xff]   ;;  %v687_v6 = vld [vmem:[%s809_s7 + $0x8] sm:$0xff]   ;;  %v688_v7 = vld [vmem:[%s809_s7 + $0x10] sm:$0xff]   ;;  %p609_p11 = scmp.ne.s32.totalorder %s726_s14, 2 }
  0x28   : > { %625 = vmatprep.subr.bf16.mxu0 %v686_v5  ;;  %v689_v8 = vld [vmem:[%s809_s7 + $0x18] sm:$0xff]   ;;  %v694_v9 = vld [vmem:[%s248_s8] sm:$0xff]   ;;  %v691_v11 = vld [vmem:[%s809_s7 + $0x28] sm:$0xff]  }
  0x29   : > { %626 = vmatpush3.bf16.msra.mxu0 %v686_v5  ;;  %641 = vmatprep.mubr.bf16.mxu0 %v694_v9  ;;  %v690_v10 = vld [vmem:[%s809_s7 + $0x20] sm:$0xff]   ;;  %v692_v12 = vld [vmem:[%s809_s7 + $0x30] sm:$0xff]   ;;  %v693_v13 = vld [vmem:[%s809_s7 + $0x38] sm:$0xff]  }
  0x2a   : > { %627 = vmatprep.subr.bf16.mxu0 %v687_v6  ;;  %v695_v14 = vld [vmem:[%s248_s8 + $0x8] sm:$0xff]   ;;  %v316_v15 = vld [vmem:[#allocation2 + $0x10] sm:$0xff]  ;;  %v314_v16 = vld [vmem:[#allocation2] sm:$0xff] }
  0x2b   : > { %v317_v18 = vld [vmem:[#allocation2 + $0x18] sm:$0xff]  ;;  %v315_v21 = vld [vmem:[#allocation2 + $0x8] sm:$0xff]  ;;  %v610_v28 = vld [vmem:[%s858_s2] ss:$0 sm:$0xff] (!%p609_p11) }
  0x2d   : > { %628 = vmatpush3.bf16.msra.mxu0 %v687_v6 }
  0x2e   : > { %629 = vmatprep.subr.bf16.mxu0 %v688_v7 }
  0x31   : > { %630 = vmatpush3.bf16.msra.mxu0 %v688_v7 }
  0x32   : > { %631 = vmatprep.subr.bf16.mxu0 %v689_v8 }
  0x35   : > { %632 = vmatpush3.bf16.msra.mxu0 %v689_v8 }
  0x36   : > { %633 = vmatprep.subr.bf16.mxu0 %v690_v10 }
  0x39   : > { %634 = vmatpush3.bf16.msra.mxu0 %v690_v10 }
  0x3a   : > { %635 = vmatprep.subr.bf16.mxu0 %v691_v11 }
  0x3d   : > { %636 = vmatpush3.bf16.msra.mxu0 %v691_v11 }
  0x3e   : > { %637 = vmatprep.subr.bf16.mxu0 %v692_v12 }
  0x41   : > { %638 = vmatpush3.bf16.msra.mxu0 %v692_v12 }
  0x42   : > { %639 = vmatprep.subr.bf16.mxu0 %v693_v13 }
  0x45   : > { %640 = vmatpush3.bf16.msra.mxu0 %v693_v13 }
  0x48   : > { %642 = vmatmul.mubr.bf16.vlgmr.msra.gmra.mrb[0].mxu0 %v695_v14 }
 0x11b   : > { %v643_v17 = vpop.f32.mrb[0].mxu0  ;;  %458 = sbr.rel (%p609_p11) target bundleno = 300 (0x12c), region = 81 }
 0x11c   : > { %v449_v19 = vadd.f32 %v643_v17, %v316_v15  ;;  %v432_v20 = vpop.f32.mrb[1].mxu0 }
 0x11d   : > { %v447_v22 = vadd.f32 %v432_v20, %v314_v16  ;;  %v644_v23 = vpop.f32.mrb[2].mxu0 }
 0x11e   : > { %453 = vst [vmem:[#allocation2 + $0x10] sm:$0xff] %v449_v19  ;;  %v450_v24 = vadd.f32 %v644_v23, %v317_v18  ;;  %v435_v25 = vpop.f32.mrb[3].mxu0 }
 0x11f   : > { %451 = vst [vmem:[#allocation2] sm:$0xff] %v447_v22  ;;  %v448_v26 = vadd.f32 %v435_v25, %v315_v21 }
 0x120   : > { %454 = vst [vmem:[#allocation2 + $0x18] sm:$0xff] %v450_v24 }
 0x121   : > { %452 = vst [vmem:[#allocation2 + $0x8] sm:$0xff] %v448_v26 }
 0x125   : > { %v461_v32 = vld [vmem:[#allocation2 + $0x10] sm:$0xff] }
 0x126   : > { %v459_v27 = vld [vmem:[#allocation2] sm:$0xff]  ;;  %v472_v34 = vadd.f32 %v610_v28, %v461_v32 }
 0x127   : > { %v470_v30 = vadd.f32 %v610_v28, %v459_v27  ;;  %v462_v33 = vld [vmem:[#allocation2 + $0x18] sm:$0xff] }
 0x128   : > { %v460_v29 = vld [vmem:[#allocation2 + $0x8] sm:$0xff]  ;;  %v473_v35 = vadd.f32 %v610_v28, %v462_v33  ;;  %476 = vst [vmem:[%s859_s3 + $0x10] sm:$0xff] %v472_v34 }
 0x129   : > { %v471_v31 = vadd.f32 %v610_v28, %v460_v29  ;;  %474 = vst [vmem:[%s859_s3] sm:$0xff] %v470_v30 }
 0x12a   : > { %477 = vst [vmem:[%s859_s3 + $0x18] sm:$0xff] %v473_v35 }
 0x12b   : > { %475 = vst [vmem:[%s859_s3 + $0x8] sm:$0xff] %v471_v31 }
 0x12c PF: > { %s13_s16 = sadd.s32 1, %s734_s16   ;;  %s860_s12 = smov %s722_s13 }
 0x12d   : > { %p10_p12 = scmp.ge.s32.totalorder %s13_s16, 5   ;;  %s861_s13 = smov %s792_s20 }
 0x12e   : > { %s862_s14 = smov %s730_s15  ;;  %s863_s15 = smov %s865_s17 }
 0x12f   :  { %12 = sbr.rel (!%p10_p12) target bundleno = 3 (0x3), region = 122 }

// kernel: pix2pixhd_forward.46
= control target key start
LH: loop header
LB: loop body
LE: loop exit
PB: predicated region body
PF: predicated region fallthrough
CT: control target
= control target key end

     0   :  { %s380_s12 = smov 0   ;;  %s418_s0 = inlined_call_operand.vmem [shape: f32[2,16,64], index: 0, kind: input, shape index: {}]   ;;  %s419_s1 = inlined_call_operand.vmem [shape: f32[2,1,64], index: 1, kind: input, shape index: {}]   ;;  %s420_s2 = inlined_call_operand.vmem [shape: f32[2,1,64], index: 2, kind: input, shape index: {}]   ;;  %s421_s3 = inlined_call_operand.vmem [shape: f32[2,16,64], index: 3, kind: output, shape index: {}]  }
   0x1 LB: > { %s327_s13 = sadd.s32 4294967295, %s358_s12   ;;  %p331_p0 = scmp.ge.s32.totalorder %s358_s12, 1  ;;  %s358_s12 = sphi %s380_s12, %s13_s12  }
   0x2   : > { %p153_p1 = scmp.lt.s32.totalorder %s358_s12, 3 }
   0x4   : > { %p154_p2 = pnand %p331_p0, %p153_p1 }
   0x5   : > { %p183_p3 = scmp.lt.s32.totalorder (!%p154_p2), %s327_s13, 1  ;;  %vm201_vm0 = vcmask (!%p154_p2), 523264  }
   0x6   : > { %157 = sbr.rel (%p154_p2) target bundleno = 62 (0x3e), region = 32 }
   0xd   : > { %s423_s13 = smov (!%p183_p3, %s327_s13), 1 }
   0xe   : > { %s340_s14 = sshll.u32 %s423_s13, 4  ;;  %s190_s20 = scalar_lea.vmem %s419_s1, %s423_s13 }
   0xf   : > { %s187_s17 = scalar_lea.vmem %s418_s0, %s340_s14  ;;  %s193_s23 = scalar_lea.vmem %s420_s2, %s423_s13  ;;  %v336_v30 = vld [vmem:[%s190_s20] ss:$0 sm:$0xff] }
  0x10   : > { %v199_v0 = vld [vmem:[%s187_s17] sm:$0xff]  ;;  %v200_v1 = vld [vmem:[%s187_s17 + $0x8] sm:$0xff]  ;;  %s198_s26 = scalar_lea.vmem %s421_s3, %s340_s14 }
  0x11   : > { %v202_v2 = vsel %vm201_vm0, %v199_v0, 0.0  ;;  %v203_v3 = vsel %vm201_vm0, %v200_v1, 0.0  ;;  %v211_v4 = vmul.f32 %v199_v0, %v199_v0  ;;  %v212_v5 = vmul.f32 %v200_v1, %v200_v1  ;;  %v337_v33 = vld [vmem:[%s193_s23] ss:$0 sm:$0xff] }
  0x12   : > { %v204_v6 = vadd.f32 %v203_v3, %v202_v2 }
  0x13   : > { %v213_v7 = vsel %vm201_vm0, %v211_v4, 0.0  ;;  %v214_v8 = vsel %vm201_vm0, %v212_v5, 0.0 }
  0x14   : > { %v205_v9 = vrot.slane %v204_v6, 4  ;;  %v215_v10 = vadd.f32 %v214_v8, %v213_v7 }
  0x16   : > { %v206_v11 = vadd.f32 %v205_v9, %v204_v6  ;;  %v216_v12 = vrot.slane %v215_v10, 4 }
  0x18   : > { %v207_v13 = vrot.slane %v206_v11, 2  ;;  %v217_v14 = vadd.f32 %v216_v12, %v215_v10 }
  0x1a   : > { %v208_v15 = vadd.f32 %v207_v13, %v206_v11  ;;  %v218_v16 = vrot.slane %v217_v14, 2 }
  0x1c   : > { %v209_v17 = vrot.slane %v208_v15, 1  ;;  %v219_v18 = vadd.f32 %v218_v16, %v217_v14 }
  0x1e   : > { %v210_v19 = vadd.f32 %v209_v17, %v208_v15  ;;  %v220_v20 = vrot.slane %v219_v18, 1 }
  0x20   : > { %v221_v21 = vadd.f32 %v220_v20, %v219_v18  ;;  %v222_v22 = vmul.f32 0.0625, %v210_v19 }
  0x22   : > { %v223_v23 = vmul.f32 %v222_v22, %v210_v19  ;;  %v226_v27 = vsub.f32 %v199_v0, %v222_v22  ;;  %v227_v28 = vsub.f32 %v200_v1, %v222_v22 }
  0x24   : > { %v224_v24 = vsub.f32 %v221_v21, %v223_v23 }
  0x26   : > { %v225_v25 = vmul.f32 0.06666667, %v224_v24 }
  0x28   : > { %v228_v26 = vadd.f32 1e-05, %v225_v25 }
  0x2a   : > { %350 = vrsqrt.f32 %v228_v26 }
  0x34   : > { %v351_v29 = vpop.eup %350 }
  0x35   : > { %v230_v31 = vmul.f32 %v351_v29, %v226_v27  ;;  %v231_v32 = vmul.f32 %v351_v29, %v227_v28 }
  0x37   : > { %v239_v34 = vmul.f32 %v336_v30, %v230_v31  ;;  %v240_v35 = vmul.f32 %v336_v30, %v231_v32 }
  0x39   : > { %v248_v36 = vadd.f32 %v337_v33, %v239_v34  ;;  %v249_v37 = vadd.f32 %v337_v33, %v240_v35 }
  0x3b   : > { %v250_v38 = vmax.f32 %v248_v36, 0.0  ;;  %v251_v39 = vmax.f32 %v249_v37, 0.0 }
  0x3d   : > { %252 = vst.msk [vmem:[%s198_s26] sm:$0xff] %vm201_vm0, %v250_v38  ;;  %253 = vst.msk [vmem:[%s198_s26 + $0x8] sm:$0xff] %vm201_vm0, %v251_v39 }
  0x3e PF: > { %s13_s12 = sadd.s32 1, %s358_s12  }
  0x3f   : > { %p10_p4 = scmp.ge.s32.totalorder %s13_s12, 4  }
  0x41   :  { %12 = sbr.rel (!%p10_p4) target bundleno = 1 (0x1), region = 68 }

// kernel: pix2pixhd_forward.47
= control target key start
LH: loop header
LB: loop body
LE: loop exit
PB: predicated region body
PF: predicated region fallthrough
CT: control target
= control target key end

     0   :  { %s757_s12 = smov 0   ;;  %s759_s13 = smov 0   ;;  %s856_s0 = inlined_call_operand.vmem [shape: bf16[32,640], index: 0, kind: input, shape index: {}]   ;;  %s857_s1 = inlined_call_operand.vmem [shape: bf16[640,128], index: 1, kind: input, shape index: {}]   ;;  %s858_s2 = inlined_call_operand.vmem [shape: f32[1,128], index: 2, kind: input, shape index: {}]   ;;  %s859_s3 = inlined_call_operand.vmem [shape: f32[32,128], index: 3, kind: output, shape index: {}]  }
   0x1   :  { %s761_s14 = smov 0   ;;  %s763_s15 = smov 0  }
   0x2   :  { %s765_s16 = smov 0  }
   0x3 LB: > { %s25_s17 = sadd.s32 1, %s730_s15  ;;  %p48_p1 = scmp.ne.s32.totalorder %s722_s13, %s718_s12  ;;  %s734_s16 = sphi %s765_s16, %s13_s16   ;;  %s730_s15 = sphi %s763_s15, %s863_s15   ;;  %s726_s14 = sphi %s761_s14, %s862_s14   ;;  %s722_s13 = sphi %s759_s13, %s861_s13   ;;  %s718_s12 = sphi %s757_s12, %s860_s12  }
   0x4   : > { %p26_p0 = scmp.ge.s32.totalorder %s25_s17, 5  ;;  %p49_p2 = scmp.eq.s32.totalorder %s734_s16, 0 }
   0x5   : > { %s41_s19 = sadd.s32 1, %s722_s13  ;;  %p591_p5 = scmp.ge.s32.totalorder %s734_s16, 5 }
   0x6   : > { %s865_s17 = smov (%p26_p0, %s25_s17), 0  ;;  %p50_p3 = por %p49_p2, %p48_p1 }
   0x7   : > { %s37_s18 = ssub.s32 %s730_s15, %s865_s17  ;;  %162 = sbr.rel (%p591_p5) target bundleno = 21 (0x15), region = 20 }
   0x8   : > { %p39_p4 = scmp.eq.s32.totalorder %s37_s18, 0 }
   0xa   : > { %s792_s20 = scalar_select %p39_p4, %s722_s13, %s41_s19  }
   0xe   : > { %165 = sbr.rel (!%p50_p3) target bundleno = 21 (0x15), region = 24  ;;  %s167_s21 = sand.u32 (%p50_p3), 1, %s722_s13  }
   0xf   : > { %s593_s22 = sshll.u32 (%p50_p3), %s730_s15, 2  ;;  %s592_s23 = sshll.u32 (%p50_p3), %s167_s21, 4 }
  0x10   : > { %s174_s26 = scalar_lea.vmem (%p50_p3), %s856_s0, %s593_s22  ;;  %s169_s27 = scalar_lea.vmem (%p50_p3), [#allocation3], %s592_s23 }
  0x11   : > { %v190_v0 = vld [vmem:[%s174_s26] sm:$0xf] (%p50_p3)  ;;  %v192_v1 = vld [vmem:[%s174_s26 + $0x14] sm:$0xf] (%p50_p3)  ;;  %v194_v2 = vld [vmem:[%s174_s26 + $0x28] sm:$0xf] (%p50_p3) }
  0x12   : > { %191 = vst [vmem:[%s169_s27] sm:$0xf] (%p50_p3), %v190_v0  ;;  %193 = vst [vmem:[%s169_s27 + $0x4] sm:$0xf] (%p50_p3), %v192_v1  ;;  %v196_v3 = vld [vmem:[%s174_s26 + $0x3c] sm:$0xf] (%p50_p3) }
  0x13   : > { %195 = vst [vmem:[%s169_s27 + $0x8] sm:$0xf] (%p50_p3), %v194_v2  ;;  %197 = vst [vmem:[%s169_s27 + $0xc] sm:$0xf] (%p50_p3), %v196_v3 }
  0x15 PF: > { %p594_p6 = scmp.ge.s32.totalorder %s734_s16, 1  ;;  %p239_p7 = scmp.lt.s32.totalorder %s734_s16, 6 }
  0x17   : > { %p240_p8 = pnand %p594_p6, %p239_p7 }
  0x18   : > { %s246_s28 = sand.u32 (!%p240_p8), 1, %s718_s12   ;;  %s596_s29 = sshll.u32 (!%p240_p8), %s726_s14, 4 }
  0x19   : > { %243 = sbr.rel (%p240_p8) target bundleno = 300 (0x12c), region = 69  ;;  %s804_s30 = sshll.u32 (!%p240_p8), %s246_s28, 4 }
  0x1a   : > { %p285_p9 = scmp.lt.s32.totalorder (!%p240_p8), %s596_s29, 79  ;;  %s248_s8 = scalar_lea.vmem (!%p240_p8), [#allocation3], %s804_s30 }
  0x1b   : > { %p598_p10 = scmp.ne.s32.totalorder (!%p240_p8), %s726_s14, 0 }
  0x20   : > { %s867_s29 = smov (!%p285_p9, %s596_s29), 79  ;;  %309 = sbr.rel (%p598_p10) target bundleno = 39 (0x27), region = 77 }
  0x21   : > { %s597_s4 = sshll.u32 %s867_s29, 2  ;;  %v736_v4 = vmov (!%p598_p10), 0.0  }
  0x22   : > { %s809_s7 = scalar_lea.vmem %s857_s1, %s597_s4  ;;  %310 = vst [vmem:[#allocation2] sm:$0xff] (!%p598_p10), %v736_v4  ;;  %311 = vst [vmem:[#allocation2 + $0x8] sm:$0xff] (!%p598_p10), %v736_v4 }
  0x23   : > { %312 = vst [vmem:[#allocation2 + $0x10] sm:$0xff] (!%p598_p10), %v736_v4  ;;  %313 = vst [vmem:[#allocation2 + $0x18] sm:$0xff] (!%p598_p10), %v736_v4 }
  0x27 PF: > { %v686_v5 = vld [vmem:[%s809_s7] sm:$0xff]   ;;  %v687_v6 = vld [vmem:[%s809_s7 + $0x8] sm:$0xff]   ;;  %v688_v7 = vld [vmem:[%s809_s7 + $0x10] sm:$0xff]   ;;  %p609_p11 = scmp.ne.s32.totalorder %s726_s14, 4 }
  0x28   : > { %625 = vmatprep.subr.bf16.mxu0 %v686_v5  ;;  %v689_v8 = vld [vmem:[%s809_s7 + $0x18] sm:$0xff]   ;;  %v694_v9 = vld [vmem:[%s248_s8] sm:$0xff]   ;;  %v691_v11 = vld [vmem:[%s809_s7 + $0x28] sm:$0xff]  }
  0x29   : > { %626 = vmatpush3.bf16.msra.mxu0 %v686_v5  ;;  %641 = vmatprep.mubr.bf16.mxu0 %v694_v9  ;;  %v690_v10 = vld [vmem:[%s809_s7 + $0x20] sm:$0xff]   ;;  %v692_v12 = vld [vmem:[%s809_s7 + $0x30] sm:$0xff]   ;;  %v693_v13 = vld [vmem:[%s809_s7 + $0x38] sm:$0xff]  }
  0x2a   : > { %627 = vmatprep.subr.bf16.mxu0 %v687_v6  ;;  %v695_v14 = vld [vmem:[%s248_s8 + $0x8] sm:$0xff]   ;;  %v316_v15 = vld [vmem:[#allocation2 + $0x10] sm:$0xff]  ;;  %v314_v16 = vld [vmem:[#allocation2] sm:$0xff] }
  0x2b   : > { %v317_v18 = vld [vmem:[#allocation2 + $0x18] sm:$0xff]  ;;  %v315_v21 = vld [vmem:[#allocation2 + $0x8] sm:$0xff]  ;;  %v610_v28 = vld [vmem:[%s858_s2] ss:$0 sm:$0xff] (!%p609_p11) }
  0x2d   : > { %628 = vmatpush3.bf16.msra.mxu0 %v687_v6 }
  0x2e   : > { %629 = vmatprep.subr.bf16.mxu0 %v688_v7 }
  0x31   : > { %630 = vmatpush3.bf16.msra.mxu0 %v688_v7 }
  0x32   : > { %631 = vmatprep.subr.bf16.mxu0 %v689_v8 }
  0x35   : > { %632 = vmatpush3.bf16.msra.mxu0 %v689_v8 }
  0x36   : > { %633 = vmatprep.subr.bf16.mxu0 %v690_v10 }
  0x39   : > { %634 = vmatpush3.bf16.msra.mxu0 %v690_v10 }
  0x3a   : > { %635 = vmatprep.subr.bf16.mxu0 %v691_v11 }
  0x3d   : > { %636 = vmatpush3.bf16.msra.mxu0 %v691_v11 }
  0x3e   : > { %637 = vmatprep.subr.bf16.mxu0 %v692_v12 }
  0x41   : > { %638 = vmatpush3.bf16.msra.mxu0 %v692_v12 }
  0x42   : > { %639 = vmatprep.subr.bf16.mxu0 %v693_v13 }
  0x45   : > { %640 = vmatpush3.bf16.msra.mxu0 %v693_v13 }
  0x48   : > { %642 = vmatmul.mubr.bf16.vlgmr.msra.gmra.mrb[0].mxu0 %v695_v14 }
 0x11b   : > { %v643_v17 = vpop.f32.mrb[0].mxu0  ;;  %458 = sbr.rel (%p609_p11) target bundleno = 300 (0x12c), region = 81 }
 0x11c   : > { %v449_v19 = vadd.f32 %v643_v17, %v316_v15  ;;  %v432_v20 = vpop.f32.mrb[1].mxu0 }
 0x11d   : > { %v447_v22 = vadd.f32 %v432_v20, %v314_v16  ;;  %v644_v23 = vpop.f32.mrb[2].mxu0 }
 0x11e   : > { %453 = vst [vmem:[#allocation2 + $0x10] sm:$0xff] %v449_v19  ;;  %v450_v24 = vadd.f32 %v644_v23, %v317_v18  ;;  %v435_v25 = vpop.f32.mrb[3].mxu0 }
 0x11f   : > { %451 = vst [vmem:[#allocation2] sm:$0xff] %v447_v22  ;;  %v448_v26 = vadd.f32 %v435_v25, %v315_v21 }
 0x120   : > { %454 = vst [vmem:[#allocation2 + $0x18] sm:$0xff] %v450_v24 }
 0x121   : > { %452 = vst [vmem:[#allocation2 + $0x8] sm:$0xff] %v448_v26 }
 0x125   : > { %v461_v32 = vld [vmem:[#allocation2 + $0x10] sm:$0xff] }
 0x126   : > { %v459_v27 = vld [vmem:[#allocation2] sm:$0xff]  ;;  %v472_v34 = vadd.f32 %v610_v28, %v461_v32 }
 0x127   : > { %v470_v30 = vadd.f32 %v610_v28, %v459_v27  ;;  %v462_v33 = vld [vmem:[#allocation2 + $0x18] sm:$0xff] }
 0x128   : > { %v460_v29 = vld [vmem:[#allocation2 + $0x8] sm:$0xff]  ;;  %v473_v35 = vadd.f32 %v610_v28, %v462_v33  ;;  %476 = vst [vmem:[%s859_s3 + $0x10] sm:$0xff] %v472_v34 }
 0x129   : > { %v471_v31 = vadd.f32 %v610_v28, %v460_v29  ;;  %474 = vst [vmem:[%s859_s3] sm:$0xff] %v470_v30 }
 0x12a   : > { %477 = vst [vmem:[%s859_s3 + $0x18] sm:$0xff] %v473_v35 }
 0x12b   : > { %475 = vst [vmem:[%s859_s3 + $0x8] sm:$0xff] %v471_v31 }
 0x12c PF: > { %s13_s16 = sadd.s32 1, %s734_s16   ;;  %s860_s12 = smov %s722_s13 }
 0x12d   : > { %p10_p12 = scmp.ge.s32.totalorder %s13_s16, 7   ;;  %s861_s13 = smov %s792_s20 }
 0x12e   : > { %s862_s14 = smov %s730_s15  ;;  %s863_s15 = smov %s865_s17 }
 0x12f   :  { %12 = sbr.rel (!%p10_p12) target bundleno = 3 (0x3), region = 122 }

// kernel: pix2pixhd_forward.50
= control target key start
LH: loop header
LB: loop body
LE: loop exit
PB: predicated region body
PF: predicated region fallthrough
CT: control target
= control target key end

     0   :  { %s449_s15 = smov 0   ;;  %s491_s0 = inlined_call_operand.vmem [shape: f32[2,16,64], index: 0, kind: input, shape index: {}]   ;;  %s492_s1 = inlined_call_operand.vmem [shape: f32[2,1,64], index: 1, kind: input, shape index: {}]   ;;  %s493_s2 = inlined_call_operand.vmem [shape: f32[2,1,64], index: 2, kind: input, shape index: {}]   ;;  %s494_s3 = inlined_call_operand.vmem [shape: f32[2,16,64], index: 3, kind: input, shape index: {}]   ;;  %s495_s4 = inlined_call_operand.vmem [shape: f32[2,16,64], index: 4, kind: output, shape index: {}]  }
   0x1 LB: > { %s388_s16 = sadd.s32 4294967295, %s422_s15   ;;  %p392_p0 = scmp.ge.s32.totalorder %s422_s15, 1  ;;  %s422_s15 = sphi %s449_s15, %s14_s15  }
   0x2   : > { %p188_p1 = scmp.lt.s32.totalorder %s422_s15, 3 }
   0x4   : > { %p189_p2 = pnand %p392_p0, %p188_p1 }
   0x5   : > { %p225_p3 = scmp.lt.s32.totalorder (!%p189_p2), %s388_s16, 1  ;;  %vm248_vm0 = vcmask (!%p189_p2), 523264  }
   0x6   : > { %192 = sbr.rel (%p189_p2) target bundleno = 62 (0x3e), region = 36 }
   0xd   : > { %s497_s16 = smov (!%p225_p3, %s388_s16), 1 }
   0xe   : > { %s460_s17 = sshll.u32 %s497_s16, 4  ;;  %s232_s23 = scalar_lea.vmem %s492_s1, %s497_s16 }
   0xf   : > { %s229_s20 = scalar_lea.vmem %s491_s0, %s460_s17  ;;  %s235_s26 = scalar_lea.vmem %s493_s2, %s497_s16  ;;  %v399_v30 = vld [vmem:[%s232_s23] ss:$0 sm:$0xff] }
  0x10   : > { %v246_v0 = vld [vmem:[%s229_s20] sm:$0xff]  ;;  %v247_v1 = vld [vmem:[%s229_s20 + $0x8] sm:$0xff]  ;;  %s240_s29 = scalar_lea.vmem %s494_s3, %s460_s17  ;;  %s245_s6 = scalar_lea.vmem %s495_s4, %s460_s17 }
  0x11   : > { %v249_v2 = vsel %vm248_vm0, %v246_v0, 0.0  ;;  %v250_v3 = vsel %vm248_vm0, %v247_v1, 0.0  ;;  %v258_v4 = vmul.f32 %v246_v0, %v246_v0  ;;  %v259_v5 = vmul.f32 %v247_v1, %v247_v1  ;;  %v400_v33 = vld [vmem:[%s235_s26] ss:$0 sm:$0xff]  ;;  %v298_v37 = vld [vmem:[%s240_s29 + $0x8] sm:$0xff] }
  0x12   : > { %v251_v6 = vadd.f32 %v250_v3, %v249_v2  ;;  %v297_v36 = vld [vmem:[%s240_s29] sm:$0xff] }
  0x13   : > { %v260_v7 = vsel %vm248_vm0, %v258_v4, 0.0  ;;  %v261_v8 = vsel %vm248_vm0, %v259_v5, 0.0 }
  0x14   : > { %v252_v9 = vrot.slane %v251_v6, 4  ;;  %v262_v10 = vadd.f32 %v261_v8, %v260_v7 }
  0x16   : > { %v253_v11 = vadd.f32 %v252_v9, %v251_v6  ;;  %v263_v12 = vrot.slane %v262_v10, 4 }
  0x18   : > { %v254_v13 = vrot.slane %v253_v11, 2  ;;  %v264_v14 = vadd.f32 %v263_v12, %v262_v10 }
  0x1a   : > { %v255_v15 = vadd.f32 %v254_v13, %v253_v11  ;;  %v265_v16 = vrot.slane %v264_v14, 2 }
  0x1c   : > { %v256_v17 = vrot.slane %v255_v15, 1  ;;  %v266_v18 = vadd.f32 %v265_v16, %v264_v14 }
  0x1e   : > { %v257_v19 = vadd.f32 %v256_v17, %v255_v15  ;;  %v267_v20 = vrot.slane %v266_v18, 1 }
  0x20   : > { %v268_v21 = vadd.f32 %v267_v20, %v266_v18  ;;  %v269_v22 = vmul.f32 0.0625, %v257_v19 }
  0x22   : > { %v270_v23 = vmul.f32 %v269_v22, %v257_v19  ;;  %v273_v27 = vsub.f32 %v246_v0, %v269_v22  ;;  %v274_v28 = vsub.f32 %v247_v1, %v269_v22 }
  0x24   : > { %v271_v24 = vsub.f32 %v268_v21, %v270_v23 }
  0x26   : > { %v272_v25 = vmul.f32 0.06666667, %v271_v24 }
  0x28   : > { %v275_v26 = vadd.f32 1e-05, %v272_v25 }
  0x2a   : > { %414 = vrsqrt.f32 %v275_v26 }
  0x34   : > { %v415_v29 = vpop.eup %414 }
  0x35   : > { %v277_v31 = vmul.f32 %v415_v29, %v273_v27  ;;  %v278_v32 = vmul.f32 %v415_v29, %v274_v28 }
  0x37   : > { %v286_v34 = vmul.f32 %v399_v30, %v277_v31  ;;  %v287_v35 = vmul.f32 %v399_v30, %v278_v32 }
  0x39   : > { %v295_v38 = vadd.f32 %v400_v33, %v286_v34  ;;  %v296_v39 = vadd.f32 %v400_v33, %v287_v35 }
  0x3b   : > { %v299_v40 = vadd.f32 %v297_v36, %v295_v38  ;;  %v300_v41 = vadd.f32 %v298_v37, %v296_v39 }
  0x3d   : > { %301 = vst.msk [vmem:[%s245_s6] sm:$0xff] %vm248_vm0, %v299_v40  ;;  %302 = vst.msk [vmem:[%s245_s6 + $0x8] sm:$0xff] %vm248_vm0, %v300_v41 }
  0x3e PF: > { %s14_s15 = sadd.s32 1, %s422_s15  }
  0x3f   : > { %p11_p4 = scmp.ge.s32.totalorder %s14_s15, 4  }
  0x41   :  { %13 = sbr.rel (!%p11_p4) target bundleno = 1 (0x1), region = 75 }

// kernel: pix2pixhd_forward.71
= control target key start
LH: loop header
LB: loop body
LE: loop exit
PB: predicated region body
PF: predicated region fallthrough
CT: control target
= control target key end

     0   :  { %s444_s1 = inlined_call_operand.vmem [shape: bf16[256,128], index: 1, kind: input, shape index: {}]   ;;  %s445_s0 = inlined_call_operand.vmem [shape: bf16[32,256], index: 0, kind: input, shape index: {}]   ;;  %s446_s2 = inlined_call_operand.vmem [shape: f32[1,128], index: 2, kind: input, shape index: {}]   ;;  %s447_s3 = inlined_call_operand.vmem [shape: f32[32,128], index: 3, kind: output, shape index: {}]  }
   0x1   :  { %v327_v0 = vld [vmem:[%s444_s1 + $0x40] sm:$0xff]   ;;  %v329_v2 = vld [vmem:[%s444_s1 + $0x48] sm:$0xff]   ;;  %v331_v4 = vld [vmem:[%s444_s1 + $0x50] sm:$0xff]  }
   0x2   :  { %v328_v1 = vld [vmem:[%s444_s1] sm:$0xff]   ;;  %283 = vmatprep.subr.bf16.mxu0 %v327_v0  ;;  %311 = vmatprep.subr.bf16.mxu1 %v327_v0  ;;  %v330_v3 = vld [vmem:[%s444_s1 + $0x8] sm:$0xff]   ;;  %v332_v5 = vld [vmem:[%s444_s1 + $0x10] sm:$0xff]  }
   0x3   :  { %284 = vmatpush3.bf16.msra.mxu0 %v328_v1  ;;  %319 = vmatpush3.bf16.msra.mxu1 %v328_v1  ;;  %v333_v6 = vld [vmem:[%s444_s1 + $0x58] sm:$0xff]   ;;  %v335_v8 = vld [vmem:[%s444_s1 + $0x60] sm:$0xff]   ;;  %v337_v10 = vld [vmem:[%s444_s1 + $0x68] sm:$0xff]  }
   0x4   :  { %285 = vmatprep.subr.bf16.mxu0 %v329_v2  ;;  %312 = vmatprep.subr.bf16.mxu1 %v329_v2  ;;  %v334_v7 = vld [vmem:[%s444_s1 + $0x18] sm:$0xff]   ;;  %v336_v9 = vld [vmem:[%s444_s1 + $0x20] sm:$0xff]   ;;  %v338_v13 = vld [vmem:[%s444_s1 + $0x28] sm:$0xff]  }
   0x5   :  { %v345_v11 = vld [vmem:[%s445_s0 + $0x4] ss:$8 sps:$4 sm:$0xff]   ;;  %v348_v12 = vld [vmem:[%s445_s0 + $0x14] ss:$8 sps:$4 sm:$0xff]   ;;  %v343_v18 = vld [vmem:[%s445_s0] ss:$8 sps:$4 sm:$0xff]  }
   0x6   :  { %v339_v14 = vld [vmem:[%s444_s1 + $0x70] sm:$0xff]   ;;  %211 = vmatprep.mubr.bf16.mxu0 %v345_v11  ;;  %219 = vmatprep.mubr.bf16.mxu1 %v348_v12  ;;  %v341_v16 = vld [vmem:[%s444_s1 + $0x78] sm:$0xff]   ;;  %v282_v23 = vld [vmem:[%s446_s2] ss:$0 sm:$0xff] }
   0x7   :  { %286 = vmatpush3.bf16.msra.mxu0 %v330_v3  ;;  %320 = vmatpush3.bf16.msra.mxu1 %v330_v3  ;;  %v340_v15 = vld [vmem:[%s444_s1 + $0x30] sm:$0xff]   ;;  %v342_v17 = vld [vmem:[%s444_s1 + $0x38] sm:$0xff]  }
   0x8   :  { %287 = vmatprep.subr.bf16.mxu0 %v331_v4  ;;  %313 = vmatprep.subr.bf16.mxu1 %v331_v4  ;;  %v346_v19 = vld [vmem:[%s445_s0 + $0x10] ss:$8 sps:$4 sm:$0xff]  }
   0xb   :  { %288 = vmatpush3.bf16.msra.mxu0 %v332_v5  ;;  %321 = vmatpush3.bf16.msra.mxu1 %v332_v5 }
   0xc   :  { %289 = vmatprep.subr.bf16.mxu0 %v333_v6  ;;  %314 = vmatprep.subr.bf16.mxu1 %v333_v6 }
   0xf   :  { %290 = vmatpush3.bf16.msra.mxu0 %v334_v7  ;;  %322 = vmatpush3.bf16.msra.mxu1 %v334_v7 }
  0x10   :  { %291 = vmatprep.subr.bf16.mxu0 %v335_v8  ;;  %315 = vmatprep.subr.bf16.mxu1 %v335_v8 }
  0x13   :  { %292 = vmatpush3.bf16.msra.mxu0 %v336_v9  ;;  %323 = vmatpush3.bf16.msra.mxu1 %v336_v9 }
  0x14   :  { %293 = vmatprep.subr.bf16.mxu0 %v337_v10  ;;  %316 = vmatprep.subr.bf16.mxu1 %v337_v10 }
  0x17   :  { %294 = vmatpush3.bf16.msra.mxu0 %v338_v13  ;;  %324 = vmatpush3.bf16.msra.mxu1 %v338_v13 }
  0x18   :  { %295 = vmatprep.subr.bf16.mxu0 %v339_v14  ;;  %317 = vmatprep.subr.bf16.mxu1 %v339_v14 }
  0x1b   :  { %296 = vmatpush3.bf16.msra.mxu0 %v340_v15  ;;  %325 = vmatpush3.bf16.msra.mxu1 %v340_v15 }
  0x1c   :  { %297 = vmatprep.subr.bf16.mxu0 %v341_v16  ;;  %318 = vmatprep.subr.bf16.mxu1 %v341_v16 }
  0x1f   :  { %298 = vmatpush3.bf16.msra.mxu0 %v342_v17  ;;  %326 = vmatpush3.bf16.msra.mxu1 %v342_v17 }
  0x22   :  { %212 = vmatmul.mubr.bf16.vlgmr.msra.gmra.mrb[0].mxu0 %v343_v18  ;;  %220 = vmatmul.mubr.bf16.vlgmr.msra.gmra.mrb[0].mxu1 %v346_v19 }
  0xf5   :  { %v299_v20 = vpop.f32.mrb[0].mxu0  ;;  %v305_v21 = vpop.f32.mrb[0].mxu1 }
  0xf6   :  { %v300_v22 = vpop.f32.mrb[1].mxu0  ;;  %v306_v24 = vpop.f32.mrb[1].mxu1 }
  0xf7   :  { %v301_v25 = vadd.f32 %v300_v22, %v299_v20  ;;  %v307_v26 = vadd.f32 %v306_v24, %v305_v21  ;;  %v302_v27 = vpop.f32.mrb[2].mxu0  ;;  %v308_v28 = vpop.f32.mrb[2].mxu1 }
  0xf8   :  { %v303_v29 = vpop.f32.mrb[3].mxu0  ;;  %v309_v30 = vpop.f32.mrb[3].mxu1 }
  0xf9   :  { %v250_v31 = vadd.f32 %v301_v25, %v282_v23  ;;  %v252_v32 = vadd.f32 %v307_v26, %v282_v23  ;;  %v304_v33 = vadd.f32 %v303_v29, %v302_v27  ;;  %v310_v34 = vadd.f32 %v309_v30, %v308_v28 }
  0xfb   :  { %254 = vst [vmem:[%s447_s3] sm:$0xff] %v250_v31  ;;  %256 = vst [vmem:[%s447_s3 + $0x10] sm:$0xff] %v252_v32  ;;  %v251_v35 = vadd.f32 %v304_v33, %v282_v23  ;;  %v253_v36 = vadd.f32 %v310_v34, %v282_v23 }
  0xfd   :  { %255 = vst [vmem:[%s447_s3 + $0x8] sm:$0xff] %v251_v35  ;;  %257 = vst [vmem:[%s447_s3 + $0x18] sm:$0xff] %v253_v36 }

// kernel: pix2pixhd_forward.73
= control target key start
LH: loop header
LB: loop body
LE: loop exit
PB: predicated region body
PF: predicated region fallthrough
CT: control target
= control target key end

     0   :  { %s586_s1 = inlined_call_operand.vmem [shape: bf16[128,128], index: 1, kind: input, shape index: {}]   ;;  %s587_s0 = inlined_call_operand.vmem [shape: bf16[128,128], index: 0, kind: input, shape index: {}]   ;;  %s588_s2 = inlined_call_operand.vmem [shape: f32[1,128], index: 2, kind: input, shape index: {}]   ;;  %s589_s3 = inlined_call_operand.vmem [shape: f32[128,128], index: 3, kind: output, shape index: {}]  }
   0x1   :  { %v451_v0 = vld [vmem:[%s586_s1] sm:$0xff]   ;;  %v452_v1 = vld [vmem:[%s586_s1 + $0x8] sm:$0xff]   ;;  %v453_v2 = vld [vmem:[%s586_s1 + $0x10] sm:$0xff]  }
   0x2   :  { %403 = vmatprep.subr.bf16.mxu0 %v451_v0  ;;  %435 = vmatprep.subr.bf16.mxu1 %v451_v0  ;;  %v454_v3 = vld [vmem:[%s586_s1 + $0x18] sm:$0xff]   ;;  %v459_v4 = vld [vmem:[%s587_s0] sm:$0xff]   ;;  %v456_v7 = vld [vmem:[%s586_s1 + $0x28] sm:$0xff]  }
   0x3   :  { %404 = vmatpush3.bf16.msra.mxu0 %v451_v0  ;;  %443 = vmatpush3.bf16.msra.mxu1 %v451_v0  ;;  %v460_v5 = vld [vmem:[%s587_s0 + $0x20] sm:$0xff]   ;;  %v457_v8 = vld [vmem:[%s586_s1 + $0x30] sm:$0xff]   ;;  %v458_v9 = vld [vmem:[%s586_s1 + $0x38] sm:$0xff]  }
   0x4   :  { %405 = vmatprep.subr.bf16.mxu0 %v452_v1  ;;  %436 = vmatprep.subr.bf16.mxu1 %v452_v1  ;;  %v455_v6 = vld [vmem:[%s586_s1 + $0x20] sm:$0xff]   ;;  %v461_v10 = vld [vmem:[%s587_s0 + $0x8] sm:$0xff]   ;;  %v463_v12 = vld [vmem:[%s587_s0 + $0x10] sm:$0xff]  }
   0x5   :  { %419 = vmatprep.mubr.bf16.mxu0 %v459_v4  ;;  %427 = vmatprep.mubr.bf16.mxu1 %v460_v5  ;;  %v462_v11 = vld [vmem:[%s587_s0 + $0x28] sm:$0xff]   ;;  %v464_v13 = vld [vmem:[%s587_s0 + $0x30] sm:$0xff]   ;;  %v465_v14 = vld [vmem:[%s587_s0 + $0x18] sm:$0xff]  }
   0x6   :  { %v466_v15 = vld [vmem:[%s587_s0 + $0x38] sm:$0xff]   ;;  %v386_v16 = vld [vmem:[%s588_s2] ss:$0 sm:$0xff] }
   0x7   :  { %406 = vmatpush3.bf16.msra.mxu0 %v452_v1  ;;  %444 = vmatpush3.bf16.msra.mxu1 %v452_v1 }
   0x8   :  { %407 = vmatprep.subr.bf16.mxu0 %v453_v2  ;;  %437 = vmatprep.subr.bf16.mxu1 %v453_v2 }
   0xb   :  { %408 = vmatpush3.bf16.msra.mxu0 %v453_v2  ;;  %445 = vmatpush3.bf16.msra.mxu1 %v453_v2 }
   0xc   :  { %409 = vmatprep.subr.bf16.mxu0 %v454_v3  ;;  %438 = vmatprep.subr.bf16.mxu1 %v454_v3 }
   0xf   :  { %410 = vmatpush3.bf16.msra.mxu0 %v454_v3  ;;  %446 = vmatpush3.bf16.msra.mxu1 %v454_v3 }
  0x10   :  { %411 = vmatprep.subr.bf16.mxu0 %v455_v6  ;;  %439 = vmatprep.subr.bf16.mxu1 %v455_v6 }
  0x13   :  { %412 = vmatpush3.bf16.msra.mxu0 %v455_v6  ;;  %447 = vmatpush3.bf16.msra.mxu1 %v455_v6 }
  0x14   :  { %413 = vmatprep.subr.bf16.mxu0 %v456_v7  ;;  %440 = vmatprep.subr.bf16.mxu1 %v456_v7 }
  0x17   :  { %414 = vmatpush3.bf16.msra.mxu0 %v456_v7  ;;  %448 = vmatpush3.bf16.msra.mxu1 %v456_v7 }
  0x18   :  { %415 = vmatprep.subr.bf16.mxu0 %v457_v8  ;;  %441 = vmatprep.subr.bf16.mxu1 %v457_v8 }
  0x1b   :  { %416 = vmatpush3.bf16.msra.mxu0 %v457_v8  ;;  %449 = vmatpush3.bf16.msra.mxu1 %v457_v8 }
  0x1c   :  { %417 = vmatprep.subr.bf16.mxu0 %v458_v9  ;;  %442 = vmatprep.subr.bf16.mxu1 %v458_v9 }
  0x1f   :  { %418 = vmatpush3.bf16.msra.mxu0 %v458_v9  ;;  %450 = vmatpush3.bf16.msra.mxu1 %v458_v9 }
  0x22   :  { %420 = vmatmul.mubr.bf16.vlgmr.msra.gmra.mrb[0].mxu0 %v461_v10  ;;  %428 = vmatmul.mubr.bf16.vlgmr.msra.gmra.mrb[0].mxu1 %v462_v11 }
  0x23   :  { %423 = vmatprep.mubr.bf16.mxu0 %v463_v12  ;;  %431 = vmatprep.mubr.bf16.mxu1 %v464_v13 }
  0x2a   :  { %424 = vmatmul.mubr.bf16.gmra.mrb[4].mxu0 %v465_v14  ;;  %432 = vmatmul.mubr.bf16.gmra.mrb[4].mxu1 %v466_v15 }
  0xf5   :  { %v421_v17 = vpop.f32.mrb[0].mxu0  ;;  %v429_v18 = vpop.f32.mrb[0].mxu1 }
  0xf6   :  { %v336_v19 = vadd.f32 %v421_v17, %v386_v16  ;;  %v344_v20 = vadd.f32 %v429_v18, %v386_v16  ;;  %v213_v21 = vpop.f32.mrb[1].mxu0  ;;  %v245_v22 = vpop.f32.mrb[1].mxu1 }
  0xf7   :  { %v334_v23 = vadd.f32 %v386_v16, %v213_v21  ;;  %v342_v24 = vadd.f32 %v386_v16, %v245_v22  ;;  %v422_v25 = vpop.f32.mrb[2].mxu0  ;;  %v430_v26 = vpop.f32.mrb[2].mxu1 }
  0xf8   :  { %352 = vst [vmem:[%s589_s3 + $0x10] sm:$0xff] %v336_v19  ;;  %360 = vst [vmem:[%s589_s3 + $0x50] sm:$0xff] %v344_v20  ;;  %v337_v27 = vadd.f32 %v422_v25, %v386_v16  ;;  %v345_v28 = vadd.f32 %v430_v26, %v386_v16  ;;  %v216_v29 = vpop.f32.mrb[3].mxu0  ;;  %v248_v30 = vpop.f32.mrb[3].mxu1 }
  0xf9   :  { %350 = vst [vmem:[%s589_s3] sm:$0xff] %v334_v23  ;;  %358 = vst [vmem:[%s589_s3 + $0x40] sm:$0xff] %v342_v24  ;;  %v335_v31 = vadd.f32 %v386_v16, %v216_v29  ;;  %v343_v32 = vadd.f32 %v386_v16, %v248_v30 }
  0xfa   :  { %353 = vst [vmem:[%s589_s3 + $0x18] sm:$0xff] %v337_v27  ;;  %361 = vst [vmem:[%s589_s3 + $0x58] sm:$0xff] %v345_v28 }
  0xfb   :  { %351 = vst [vmem:[%s589_s3 + $0x8] sm:$0xff] %v335_v31  ;;  %359 = vst [vmem:[%s589_s3 + $0x48] sm:$0xff] %v343_v32 }
  0xfd   :  { %v425_v33 = vpop.f32.mrb[4].mxu0  ;;  %v433_v34 = vpop.f32.mrb[4].mxu1 }
  0xfe   :  { %v340_v35 = vadd.f32 %v425_v33, %v386_v16  ;;  %v348_v36 = vadd.f32 %v433_v34, %v386_v16  ;;  %v229_v37 = vpop.f32.mrb[5].mxu0  ;;  %v261_v38 = vpop.f32.mrb[5].mxu1 }
  0xff   :  { %v338_v39 = vadd.f32 %v386_v16, %v229_v37  ;;  %v346_v40 = vadd.f32 %v386_v16, %v261_v38  ;;  %v426_v41 = vpop.f32.mrb[6].mxu0  ;;  %v434_v42 = vpop.f32.mrb[6].mxu1 }
 0x100   :  { %356 = vst [vmem:[%s589_s3 + $0x30] sm:$0xff] %v340_v35  ;;  %364 = vst [vmem:[%s589_s3 + $0x70] sm:$0xff] %v348_v36  ;;  %v341_v43 = vadd.f32 %v426_v41, %v386_v16  ;;  %v349_v44 = vadd.f32 %v434_v42, %v386_v16  ;;  %v232_v45 = vpop.f32.mrb[7].mxu0  ;;  %v264_v46 = vpop.f32.mrb[7].mxu1 }
 0x101   :  { %354 = vst [vmem:[%s589_s3 + $0x20] sm:$0xff] %v338_v39  ;;  %362 = vst [vmem:[%s589_s3 + $0x60] sm:$0xff] %v346_v40  ;;  %v339_v47 = vadd.f32 %v386_v16, %v232_v45  ;;  %v347_v48 = vadd.f32 %v386_v16, %v264_v46 }
 0x102   :  { %357 = vst [vmem:[%s589_s3 + $0x38] sm:$0xff] %v341_v43  ;;  %365 = vst [vmem:[%s589_s3 + $0x78] sm:$0xff] %v349_v44 }
 0x103   :  { %355 = vst [vmem:[%s589_s3 + $0x28] sm:$0xff] %v339_v47  ;;  %363 = vst [vmem:[%s589_s3 + $0x68] sm:$0xff] %v347_v48 }

// kernel: pix2pixhd_forward.77
= control target key start
LH: loop header
LB: loop body
LE: loop exit
PB: predicated region body
PF: predicated region fallthrough
CT: control target
= control target key end

     0   :  { %s2496_s12 = smov 0   ;;  %s2498_s13 = smov 0   ;;  %s3037_s0 = inlined_call_operand.vmem [shape: bf16[2048,512], index: 0, kind: input, shape index: {}]   ;;  %s3038_s1 = inlined_call_operand.vmem [shape: bf16[512,128], index: 1, kind: input, shape index: {}]   ;;  %s3039_s2 = inlined_call_operand.vmem [shape: f32[1,128], index: 2, kind: input, shape index: {}]   ;;  %s3040_s3 = inlined_call_operand.vmem [shape: f32[2048,128], index: 3, kind: output, shape index: {}]  }
   0x1   :  { %s2500_s14 = smov 0   ;;  %s2502_s15 = smov 0  }
   0x2   :  { %s2504_s16 = smov 0   ;;  %s2506_s17 = smov 0  }
   0x3   :  { %s2508_s18 = smov 0  }
   0x4 LB: > { %s25_s19 = sadd.s32 1, %s2464_s16  ;;  %s32_s20 = sadd.s32 1, %s2468_s17  ;;  %s2472_s18 = sphi %s2508_s18, %s13_s18   ;;  %s2468_s17 = sphi %s2506_s17, %s3046_s17   ;;  %s2464_s16 = sphi %s2504_s16, %s3045_s16   ;;  %s2460_s15 = sphi %s2502_s15, %s3044_s15   ;;  %s2456_s14 = sphi %s2500_s14, %s3043_s14   ;;  %s2452_s13 = sphi %s2498_s13, %s3042_s13   ;;  %s2448_s12 = sphi %s2496_s12, %s3041_s12  }
   0x5   : > { %p26_p0 = scmp.ge.s32.totalorder %s25_s19, 2  ;;  %p48_p1 = scmp.ne.s32.totalorder %s2452_s13, %s2448_s12 }
   0x6   : > { %p49_p2 = scmp.eq.s32.totalorder %s2472_s18, 0  ;;  %s41_s24 = sadd.s32 1, %s2452_s13 }
   0x7   : > { %s3048_s19 = smov (%p26_p0, %s25_s19), 0  ;;  %s3050_s20 = smov (!%p26_p0, %s32_s20), %s2468_s17 }
   0x8   : > { %p50_p3 = por %p49_p2, %p48_p1  ;;  %p34_p4 = scmp.ge.s32.totalorder %s3050_s20, 4 }
   0x9   : > { %s37_s21 = ssub.s32 %s2464_s16, %s3048_s19  ;;  %p1990_p6 = scmp.ge.s32.totalorder %s2472_s18, 8 }
   0xa   : > { %s3052_s20 = smov (%p34_p4, %s3050_s20), 0 }
   0xb   : > { %s36_s22 = ssub.s32 %s2468_s17, %s3052_s20  ;;  %162 = sbr.rel (%p1990_p6) target bundleno = 57 (0x39), region = 20 }
   0xc   : > { %s38_s23 = sor.u32 %s37_s21, %s36_s22 }
   0xd   : > { %p39_p5 = scmp.eq.s32.totalorder %s38_s23, 0 }
   0xf   : > { %s2547_s25 = scalar_select %p39_p5, %s2452_s13, %s41_s24  }
  0x12   : > { %165 = sbr.rel (!%p50_p3) target bundleno = 57 (0x39), region = 24  ;;  %s167_s26 = sand.u32 (%p50_p3), 1, %s2452_s13  }
  0x13   : > { %s1993_s27 = sshll.u32 (%p50_p3), %s2464_s16, 1  ;;  %s1991_s28 = sshll.u32 (%p50_p3), %s167_s26, 9 }
  0x14   : > { %s2087_s29 = sshll.u32 (%p50_p3), %s2468_s17, 8  ;;  %s2561_s8 = scalar_lea.vmem (%p50_p3), [#allocation3], %s1991_s28 }
  0x15   : > { %s173_s30 = sadd.s32 (%p50_p3), %s2087_s29, %s1993_s27 }
  0x16   : > { %s1995_s4 = sshll.u32 (%p50_p3), %s173_s30, 2 }
  0x17   : > { %s2556_s7 = scalar_lea.vmem (%p50_p3), %s3037_s0, %s1995_s4 }
  0x18   : > { %v329_v0 = vld [vmem:[%s2556_s7] sm:$0xff] (%p50_p3)  ;;  %v331_v1 = vld [vmem:[%s2556_s7 + $0x10] sm:$0xff] (%p50_p3) }
  0x19   : > { %v333_v2 = vld [vmem:[%s2556_s7 + $0x20] sm:$0xff]  ;;  %330 = vst [vmem:[%s2561_s8] sm:$0xff] %v329_v0  ;;  %332 = vst [vmem:[%s2561_s8 + $0x8] sm:$0xff] %v331_v1  ;;  %v335_v3 = vld [vmem:[%s2556_s7 + $0x30] sm:$0xff] }
  0x1a   : > { %334 = vst [vmem:[%s2561_s8 + $0x10] sm:$0xff] %v333_v2  ;;  %v337_v4 = vld [vmem:[%s2556_s7 + $0x40] sm:$0xff]  ;;  %v339_v5 = vld [vmem:[%s2556_s7 + $0x50] sm:$0xff]  ;;  %336 = vst [vmem:[%s2561_s8 + $0x18] sm:$0xff] %v335_v3 }
  0x1b   : > { %338 = vst [vmem:[%s2561_s8 + $0x20] sm:$0xff] %v337_v4  ;;  %340 = vst [vmem:[%s2561_s8 + $0x28] sm:$0xff] %v339_v5  ;;  %v341_v6 = vld [vmem:[%s2556_s7 + $0x60] sm:$0xff]  ;;  %v343_v7 = vld [vmem:[%s2556_s7 + $0x70] sm:$0xff] }
  0x1c   : > { %v345_v8 = vld [vmem:[%s2556_s7 + $0x80] sm:$0xff]  ;;  %342 = vst [vmem:[%s2561_s8 + $0x30] sm:$0xff] %v341_v6  ;;  %344 = vst [vmem:[%s2561_s8 + $0x38] sm:$0xff] %v343_v7  ;;  %v347_v9 = vld [vmem:[%s2556_s7 + $0x90] sm:$0xff] }
  0x1d   : > { %346 = vst [vmem:[%s2561_s8 + $0x40] sm:$0xff] %v345_v8  ;;  %v349_v10 = vld [vmem:[%s2556_s7 + $0xa0] sm:$0xff]  ;;  %v351_v11 = vld [vmem:[%s2556_s7 + $0xb0] sm:$0xff]  ;;  %348 = vst [vmem:[%s2561_s8 + $0x48] sm:$0xff] %v347_v9 }
  0x1e   : > { %350 = vst [vmem:[%s2561_s8 + $0x50] sm:$0xff] %v349_v10  ;;  %352 = vst [vmem:[%s2561_s8 + $0x58] sm:$0xff] %v351_v11  ;;  %v353_v12 = vld [vmem:[%s2556_s7 + $0xc0] sm:$0xff]  ;;  %v355_v13 = vld [vmem:[%s2556_s7 + $0xd0] sm:$0xff] }
  0x1f   : > { %v357_v14 = vld [vmem:[%s2556_s7 + $0xe0] sm:$0xff]  ;;  %354 = vst [vmem:[%s2561_s8 + $0x60] sm:$0xff] %v353_v12  ;;  %356 = vst [vmem:[%s2561_s8 + $0x68] sm:$0xff] %v355_v13  ;;  %v359_v15 = vld [vmem:[%s2556_s7 + $0xf0] sm:$0xff] }
  0x20   : > { %358 = vst [vmem:[%s2561_s8 + $0x70] sm:$0xff] %v357_v14  ;;  %v361_v16 = vld [vmem:[%s2556_s7 + $0x100] sm:$0xff]  ;;  %v363_v17 = vld [vmem:[%s2556_s7 + $0x110] sm:$0xff]  ;;  %360 = vst [vmem:[%s2561_s8 + $0x78] sm:$0xff] %v359_v15 }
  0x21   : > { %362 = vst [vmem:[%s2561_s8 + $0x80] sm:$0xff] %v361_v16  ;;  %364 = vst [vmem:[%s2561_s8 + $0x88] sm:$0xff] %v363_v17  ;;  %v365_v18 = vld [vmem:[%s2556_s7 + $0x120] sm:$0xff]  ;;  %v367_v19 = vld [vmem:[%s2556_s7 + $0x130] sm:$0xff] }
  0x22   : > { %v369_v20 = vld [vmem:[%s2556_s7 + $0x140] sm:$0xff]  ;;  %366 = vst [vmem:[%s2561_s8 + $0x90] sm:$0xff] %v365_v18  ;;  %368 = vst [vmem:[%s2561_s8 + $0x98] sm:$0xff] %v367_v19  ;;  %v371_v21 = vld [vmem:[%s2556_s7 + $0x150] sm:$0xff] }
  0x23   : > { %370 = vst [vmem:[%s2561_s8 + $0xa0] sm:$0xff] %v369_v20  ;;  %v373_v22 = vld [vmem:[%s2556_s7 + $0x160] sm:$0xff]  ;;  %v375_v23 = vld [vmem:[%s2556_s7 + $0x170] sm:$0xff]  ;;  %372 = vst [vmem:[%s2561_s8 + $0xa8] sm:$0xff] %v371_v21 }
  0x24   : > { %374 = vst [vmem:[%s2561_s8 + $0xb0] sm:$0xff] %v373_v22  ;;  %376 = vst [vmem:[%s2561_s8 + $0xb8] sm:$0xff] %v375_v23  ;;  %v377_v24 = vld [vmem:[%s2556_s7 + $0x180] sm:$0xff]  ;;  %v379_v25 = vld [vmem:[%s2556_s7 + $0x190] sm:$0xff] }
  0x25   : > { %v381_v26 = vld [vmem:[%s2556_s7 + $0x1a0] sm:$0xff]  ;;  %378 = vst [vmem:[%s2561_s8 + $0xc0] sm:$0xff] %v377_v24  ;;  %380 = vst [vmem:[%s2561_s8 + $0xc8] sm:$0xff] %v379_v25  ;;  %v383_v27 = vld [vmem:[%s2556_s7 + $0x1b0] sm:$0xff] }
  0x26   : > { %382 = vst [vmem:[%s2561_s8 + $0xd0] sm:$0xff] %v381_v26  ;;  %v385_v28 = vld [vmem:[%s2556_s7 + $0x1c0] sm:$0xff]  ;;  %v387_v29 = vld [vmem:[%s2556_s7 + $0x1d0] sm:$0xff]  ;;  %384 = vst [vmem:[%s2561_s8 + $0xd8] sm:$0xff] %v383_v27 }
  0x27   : > { %386 = vst [vmem:[%s2561_s8 + $0xe0] sm:$0xff] %v385_v28  ;;  %388 = vst [vmem:[%s2561_s8 + $0xe8] sm:$0xff] %v387_v29  ;;  %v389_v30 = vld [vmem:[%s2556_s7 + $0x1e0] sm:$0xff]  ;;  %v391_v31 = vld [vmem:[%s2556_s7 + $0x1f0] sm:$0xff] }
  0x28   : > { %v393_v32 = vld [vmem:[%s2556_s7 + $0x200] sm:$0xff]  ;;  %390 = vst [vmem:[%s2561_s8 + $0xf0] sm:$0xff] %v389_v30  ;;  %392 = vst [vmem:[%s2561_s8 + $0xf8] sm:$0xff] %v391_v31  ;;  %v395_v33 = vld [vmem:[%s2556_s7 + $0x210] sm:$0xff] }
  0x29   : > { %394 = vst [vmem:[%s2561_s8 + $0x100] sm:$0xff] %v393_v32  ;;  %v397_v34 = vld [vmem:[%s2556_s7 + $0x220] sm:$0xff]  ;;  %v399_v35 = vld [vmem:[%s2556_s7 + $0x230] sm:$0xff]  ;;  %396 = vst [vmem:[%s2561_s8 + $0x108] sm:$0xff] %v395_v33 }
  0x2a   : > { %398 = vst [vmem:[%s2561_s8 + $0x110] sm:$0xff] %v397_v34  ;;  %400 = vst [vmem:[%s2561_s8 + $0x118] sm:$0xff] %v399_v35  ;;  %v401_v36 = vld [vmem:[%s2556_s7 + $0x240] sm:$0xff]  ;;  %v403_v37 = vld [vmem:[%s2556_s7 + $0x250] sm:$0xff] }
  0x2b   : > { %v405_v38 = vld [vmem:[%s2556_s7 + $0x260] sm:$0xff]  ;;  %402 = vst [vmem:[%s2561_s8 + $0x120] sm:$0xff] %v401_v36  ;;  %404 = vst [vmem:[%s2561_s8 + $0x128] sm:$0xff] %v403_v37  ;;  %v407_v39 = vld [vmem:[%s2556_s7 + $0x270] sm:$0xff] }
  0x2c   : > { %406 = vst [vmem:[%s2561_s8 + $0x130] sm:$0xff] %v405_v38  ;;  %v409_v40 = vld [vmem:[%s2556_s7 + $0x280] sm:$0xff]  ;;  %v411_v41 = vld [vmem:[%s2556_s7 + $0x290] sm:$0xff]  ;;  %408 = vst [vmem:[%s2561_s8 + $0x138] sm:$0xff] %v407_v39 }
  0x2d   : > { %410 = vst [vmem:[%s2561_s8 + $0x140] sm:$0xff] %v409_v40  ;;  %412 = vst [vmem:[%s2561_s8 + $0x148] sm:$0xff] %v411_v41  ;;  %v413_v42 = vld [vmem:[%s2556_s7 + $0x2a0] sm:$0xff]  ;;  %v415_v43 = vld [vmem:[%s2556_s7 + $0x2b0] sm:$0xff] }
  0x2e   : > { %v417_v44 = vld [vmem:[%s2556_s7 + $0x2c0] sm:$0xff]  ;;  %414 = vst [vmem:[%s2561_s8 + $0x150] sm:$0xff] %v413_v42  ;;  %416 = vst [vmem:[%s2561_s8 + $0x158] sm:$0xff] %v415_v43  ;;  %v419_v45 = vld [vmem:[%s2556_s7 + $0x2d0] sm:$0xff] }
  0x2f   : > { %418 = vst [vmem:[%s2561_s8 + $0x160] sm:$0xff] %v417_v44  ;;  %v421_v46 = vld [vmem:[%s2556_s7 + $0x2e0] sm:$0xff]  ;;  %v423_v47 = vld [vmem:[%s2556_s7 + $0x2f0] sm:$0xff]  ;;  %420 = vst [vmem:[%s2561_s8 + $0x168] sm:$0xff] %v419_v45 }
  0x30   : > { %422 = vst [vmem:[%s2561_s8 + $0x170] sm:$0xff] %v421_v46  ;;  %424 = vst [vmem:[%s2561_s8 + $0x178] sm:$0xff] %v423_v47  ;;  %v425_v48 = vld [vmem:[%s2556_s7 + $0x300] sm:$0xff]  ;;  %v427_v49 = vld [vmem:[%s2556_s7 + $0x310] sm:$0xff] }
  0x31   : > { %v429_v50 = vld [vmem:[%s2556_s7 + $0x320] sm:$0xff]  ;;  %426 = vst [vmem:[%s2561_s8 + $0x180] sm:$0xff] %v425_v48  ;;  %428 = vst [vmem:[%s2561_s8 + $0x188] sm:$0xff] %v427_v49  ;;  %v431_v51 = vld [vmem:[%s2556_s7 + $0x330] sm:$0xff] }
  0x32   : > { %430 = vst [vmem:[%s2561_s8 + $0x190] sm:$0xff] %v429_v50  ;;  %v433_v52 = vld [vmem:[%s2556_s7 + $0x340] sm:$0xff]  ;;  %v435_v53 = vld [vmem:[%s2556_s7 + $0x350] sm:$0xff]  ;;  %432 = vst [vmem:[%s2561_s8 + $0x198] sm:$0xff] %v431_v51 }
  0x33   : > { %434 = vst [vmem:[%s2561_s8 + $0x1a0] sm:$0xff] %v433_v52  ;;  %436 = vst [vmem:[%s2561_s8 + $0x1a8] sm:$0xff] %v435_v53  ;;  %v437_v54 = vld [vmem:[%s2556_s7 + $0x360] sm:$0xff]  ;;  %v439_v55 = vld [vmem:[%s2556_s7 + $0x370] sm:$0xff] }
  0x34   : > { %v441_v56 = vld [vmem:[%s2556_s7 + $0x380] sm:$0xff]  ;;  %438 = vst [vmem:[%s2561_s8 + $0x1b0] sm:$0xff] %v437_v54  ;;  %440 = vst [vmem:[%s2561_s8 + $0x1b8] sm:$0xff] %v439_v55  ;;  %v443_v57 = vld [vmem:[%s2556_s7 + $0x390] sm:$0xff] }
  0x35   : > { %442 = vst [vmem:[%s2561_s8 + $0x1c0] sm:$0xff] %v441_v56  ;;  %v445_v58 = vld [vmem:[%s2556_s7 + $0x3a0] sm:$0xff]  ;;  %v447_v59 = vld [vmem:[%s2556_s7 + $0x3b0] sm:$0xff]  ;;  %444 = vst [vmem:[%s2561_s8 + $0x1c8] sm:$0xff] %v443_v57 }
  0x36   : > { %446 = vst [vmem:[%s2561_s8 + $0x1d0] sm:$0xff] %v445_v58  ;;  %448 = vst [vmem:[%s2561_s8 + $0x1d8] sm:$0xff] %v447_v59  ;;  %v449_v60 = vld [vmem:[%s2556_s7 + $0x3c0] sm:$0xff]  ;;  %v451_v61 = vld [vmem:[%s2556_s7 + $0x3d0] sm:$0xff] }
  0x37   : > { %v453_v62 = vld [vmem:[%s2556_s7 + $0x3e0] sm:$0xff]  ;;  %450 = vst [vmem:[%s2561_s8 + $0x1e0] sm:$0xff] %v449_v60  ;;  %452 = vst [vmem:[%s2561_s8 + $0x1e8] sm:$0xff] %v451_v61  ;;  %v455_v63 = vld [vmem:[%s2556_s7 + $0x3f0] sm:$0xff] }
  0x38   : > { %454 = vst [vmem:[%s2561_s8 + $0x1f0] sm:$0xff] %v453_v62  ;;  %456 = vst [vmem:[%s2561_s8 + $0x1f8] sm:$0xff] %v455_v63 }
  0x39 PF: > { %p1996_p7 = scmp.ge.s32.totalorder %s2472_s18, 1  ;;  %p473_p8 = scmp.lt.s32.totalorder %s2472_s18, 9 }
  0x3b   : > { %p474_p9 = pnand %p1996_p7, %p473_p8 }
  0x3c   : > { %s480_s9 = sand.u32 (!%p474_p9), 1, %s2448_s12   ;;  %s1998_s10 = sshll.u32 (!%p474_p9), %s2456_s14, 5 }
  0x3d   : > { %477 = sbr.rel (%p474_p9) target bundleno = 563 (0x233), region = 66  ;;  %s1997_s11 = sshll.u32 (!%p474_p9), %s480_s9, 9 }
  0x3e   : > { %p520_p10 = scmp.lt.s32.totalorder (!%p474_p9), %s1998_s10, 63  ;;  %s2000_s21 = sshll.u32 (!%p474_p9), %s2460_s15, 6 }
  0x3f   : > { %p532_p11 = scmp.lt.s32.totalorder (!%p474_p9), %s2000_s21, 255  ;;  %s2703_s12 = scalar_lea.vmem (!%p474_p9), [#allocation3], %s1997_s11 }
  0x40   : > { %p2002_p12 = scmp.ne.s32.totalorder (!%p474_p9), %s2456_s14, 0 }
  0x44   : > { %s3054_s10 = smov (!%p520_p10, %s1998_s10), 63  ;;  %s3056_s21 = smov (!%p532_p11, %s2000_s21), 255 }
  0x45   : > { %s1999_s22 = sshll.u32 %s3054_s10, 2  ;;  %s2001_s27 = sshll.u32 %s3056_s21, 3  ;;  %v2474_v0 = vmov (!%p2002_p12), 0.0  }
  0x46   : > { %s2696_s26 = scalar_lea.vmem %s3038_s1, %s1999_s22  ;;  %s2701_s30 = scalar_lea.vmem %s3040_s3, %s2001_s27  ;;  %545 = vst [vmem:[#allocation2] sm:$0xff] (!%p2002_p12), %v2474_v0  ;;  %546 = vst [vmem:[#allocation2 + $0x8] sm:$0xff] (!%p2002_p12), %v2474_v0 }
  0x47   : > { %544 = sbr.rel (%p2002_p12) target bundleno = 102 (0x66), region = 74  ;;  %547 = vst [vmem:[#allocation2 + $0x10] sm:$0xff] (!%p2002_p12), %v2474_v0  ;;  %548 = vst [vmem:[#allocation2 + $0x18] sm:$0xff] (!%p2002_p12), %v2474_v0 }
  0x48   : > { %549 = vst [vmem:[#allocation2 + $0x20] sm:$0xff] (!%p2002_p12), %v2474_v0  ;;  %550 = vst [vmem:[#allocation2 + $0x28] sm:$0xff] (!%p2002_p12), %v2474_v0 }
  0x49   : > { %551 = vst [vmem:[#allocation2 + $0x30] sm:$0xff] (!%p2002_p12), %v2474_v0  ;;  %552 = vst [vmem:[#allocation2 + $0x38] sm:$0xff] (!%p2002_p12), %v2474_v0 }
  0x4a   : > { %553 = vst [vmem:[#allocation2 + $0x40] sm:$0xff] (!%p2002_p12), %v2474_v0  ;;  %554 = vst [vmem:[#allocation2 + $0x48] sm:$0xff] (!%p2002_p12), %v2474_v0 }
  0x4b   : > { %555 = vst [vmem:[#allocation2 + $0x50] sm:$0xff] (!%p2002_p12), %v2474_v0  ;;  %556 = vst [vmem:[#allocation2 + $0x58] sm:$0xff] (!%p2002_p12), %v2474_v0 }
  0x4c   : > { %557 = vst [vmem:[#allocation2 + $0x60] sm:$0xff] (!%p2002_p12), %v2474_v0  ;;  %558 = vst [vmem:[#allocation2 + $0x68] sm:$0xff] (!%p2002_p12), %v2474_v0 }
  0x4d   : > { %559 = vst [vmem:[#allocation2 + $0x70] sm:$0xff] (!%p2002_p12), %v2474_v0  ;;  %560 = vst [vmem:[#allocation2 + $0x78] sm:$0xff] (!%p2002_p12), %v2474_v0 }
  0x4e   : > { %561 = vst [vmem:[#allocation2 + $0x80] sm:$0xff] %v2474_v0  ;;  %562 = vst [vmem:[#allocation2 + $0x88] sm:$0xff] %v2474_v0 }
  0x4f   : > { %563 = vst [vmem:[#allocation2 + $0x90] sm:$0xff] %v2474_v0  ;;  %564 = vst [vmem:[#allocation2 + $0x98] sm:$0xff] %v2474_v0 }
  0x50   : > { %565 = vst [vmem:[#allocation2 + $0xa0] sm:$0xff] %v2474_v0  ;;  %566 = vst [vmem:[#allocation2 + $0xa8] sm:$0xff] %v2474_v0 }
  0x51   : > { %567 = vst [vmem:[#allocation2 + $0xb0] sm:$0xff] %v2474_v0  ;;  %568 = vst [vmem:[#allocation2 + $0xb8] sm:$0xff] %v2474_v0 }
  0x52   : > { %569 = vst [vmem:[#allocation2 + $0xc0] sm:$0xff] %v2474_v0  ;;  %570 = vst [vmem:[#allocation2 + $0xc8] sm:$0xff] %v2474_v0 }
  0x53   : > { %571 = vst [vmem:[#allocation2 + $0xd0] sm:$0xff] %v2474_v0  ;;  %572 = vst [vmem:[#allocation2 + $0xd8] sm:$0xff] %v2474_v0 }
  0x54   : > { %573 = vst [vmem:[#allocation2 + $0xe0] sm:$0xff] %v2474_v0  ;;  %574 = vst [vmem:[#allocation2 + $0xe8] sm:$0xff] %v2474_v0 }
  0x55   : > { %575 = vst [vmem:[#allocation2 + $0xf0] sm:$0xff] %v2474_v0  ;;  %576 = vst [vmem:[#allocation2 + $0xf8] sm:$0xff] %v2474_v0 }
  0x56   : > { %577 = vst [vmem:[#allocation2 + $0x100] sm:$0xff] %v2474_v0  ;;  %578 = vst [vmem:[#allocation2 + $0x108] sm:$0xff] %v2474_v0 }
  0x57   : > { %579 = vst [vmem:[#allocation2 + $0x110] sm:$0xff] %v2474_v0  ;;  %580 = vst [vmem:[#allocation2 + $0x118] sm:$0xff] %v2474_v0 }
  0x58   : > { %581 = vst [vmem:[#allocation2 + $0x120] sm:$0xff] %v2474_v0  ;;  %582 = vst [vmem:[#allocation2 + $0x128] sm:$0xff] %v2474_v0 }
  0x59   : > { %583 = vst [vmem:[#allocation2 + $0x130] sm:$0xff] %v2474_v0  ;;  %584 = vst [vmem:[#allocation2 + $0x138] sm:$0xff] %v2474_v0 }
  0x5a   : > { %585 = vst [vmem:[#allocation2 + $0x140] sm:$0xff] %v2474_v0  ;;  %586 = vst [vmem:[#allocation2 + $0x148] sm:$0xff] %v2474_v0 }
  0x5b   : > { %587 = vst [vmem:[#allocation2 + $0x150] sm:$0xff] %v2474_v0  ;;  %588 = vst [vmem:[#allocation2 + $0x158] sm:$0xff] %v2474_v0 }
  0x5c   : > { %589 = vst [vmem:[#allocation2 + $0x160] sm:$0xff] %v2474_v0  ;;  %590 = vst [vmem:[#allocation2 + $0x168] sm:$0xff] %v2474_v0 }
  0x5d   : > { %591 = vst [vmem:[#allocation2 + $0x170] sm:$0xff] %v2474_v0  ;;  %592 = vst [vmem:[#allocation2 + $0x178] sm:$0xff] %v2474_v0 }
  0x5e   : > { %593 = vst [vmem:[#allocation2 + $0x180] sm:$0xff] %v2474_v0  ;;  %594 = vst [vmem:[#allocation2 + $0x188] sm:$0xff] %v2474_v0 }
  0x5f   : > { %595 = vst [vmem:[#allocation2 + $0x190] sm:$0xff] %v2474_v0  ;;  %596 = vst [vmem:[#allocation2 + $0x198] sm:$0xff] %v2474_v0 }
  0x60   : > { %597 = vst [vmem:[#allocation2 + $0x1a0] sm:$0xff] %v2474_v0  ;;  %598 = vst [vmem:[#allocation2 + $0x1a8] sm:$0xff] %v2474_v0 }
  0x61   : > { %599 = vst [vmem:[#allocation2 + $0x1b0] sm:$0xff] %v2474_v0  ;;  %600 = vst [vmem:[#allocation2 + $0x1b8] sm:$0xff] %v2474_v0 }
  0x62   : > { %601 = vst [vmem:[#allocation2 + $0x1c0] sm:$0xff] %v2474_v0  ;;  %602 = vst [vmem:[#allocation2 + $0x1c8] sm:$0xff] %v2474_v0 }
  0x63   : > { %603 = vst [vmem:[#allocation2 + $0x1d0] sm:$0xff] %v2474_v0  ;;  %604 = vst [vmem:[#allocation2 + $0x1d8] sm:$0xff] %v2474_v0 }
  0x64   : > { %605 = vst [vmem:[#allocation2 + $0x1e0] sm:$0xff] %v2474_v0  ;;  %606 = vst [vmem:[#allocation2 + $0x1e8] sm:$0xff] %v2474_v0 }
  0x65   : > { %607 = vst [vmem:[#allocation2 + $0x1f0] sm:$0xff] %v2474_v0  ;;  %608 = vst [vmem:[#allocation2 + $0x1f8] sm:$0xff] %v2474_v0 }
  0x66 PF: > { %v2178_v1 = vld [vmem:[%s2696_s26] sm:$0xff]   ;;  %v2475_v2 = vmov 0   ;;  %v2179_v3 = vld [vmem:[%s2696_s26 + $0x8] sm:$0xff]   ;;  %v2180_v4 = vld [vmem:[%s2696_s26 + $0x10] sm:$0xff]   ;;  %p2083_p13 = scmp.ne.s32.totalorder %s2456_s14, 1 }
  0x67   : > { %1185 = vmatprep.subr.bf16.mxu0 %v2475_v2  ;;  %2088 = vmatprep.subr.bf16.mxu1 %v2475_v2  ;;  %v2181_v5 = vld [vmem:[%s2696_s26 + $0x18] sm:$0xff]   ;;  %v2182_v6 = vld [vmem:[%s2696_s26 + $0x20] sm:$0xff]   ;;  %v2183_v8 = vld [vmem:[%s2696_s26 + $0x28] sm:$0xff]  }
  0x68   : > { %1186 = vmatpush1.bf16.msra.mxu0 %v2178_v1  ;;  %2104 = vmatpush1.bf16.msra.mxu1 %v2178_v1  ;;  %v2196_v7 = vld [vmem:[%s2703_s12 + $0x4] ss:$8 sps:$4 sm:$0xff]   ;;  %v2184_v10 = vld [vmem:[%s2696_s26 + $0x30] sm:$0xff]   ;;  %v2185_v11 = vld [vmem:[%s2696_s26 + $0x38] sm:$0xff]  }
  0x69   : > { %1187 = vmatprep.subr.bf16.mxu0 %v2475_v2  ;;  %2089 = vmatprep.subr.bf16.mxu1 %v2475_v2  ;;  %v2199_v9 = vld [vmem:[%s2703_s12 + $0x104] ss:$8 sps:$4 sm:$0xff]   ;;  %v2188_v14 = vld [vmem:[%s2696_s26 + $0x50] sm:$0xff]   ;;  %v2189_v15 = vld [vmem:[%s2696_s26 + $0x58] sm:$0xff]  }
  0x6a   : > { %1217 = vmatprep.mubr.bf16.mxu0 %v2196_v7  ;;  %1345 = vmatprep.mubr.bf16.mxu1 %v2199_v9  ;;  %v2186_v12 = vld [vmem:[%s2696_s26 + $0x40] sm:$0xff]   ;;  %v2187_v13 = vld [vmem:[%s2696_s26 + $0x48] sm:$0xff]   ;;  %v2192_v18 = vld [vmem:[%s2696_s26 + $0x70] sm:$0xff]  }
  0x6b   : > { %v2190_v16 = vld [vmem:[%s2696_s26 + $0x60] sm:$0xff]   ;;  %v2191_v17 = vld [vmem:[%s2696_s26 + $0x68] sm:$0xff]   ;;  %v2193_v19 = vld [vmem:[%s2696_s26 + $0x78] sm:$0xff]  }
  0x6c   : > { %1188 = vmatpush1.bf16.msra.mxu0 %v2179_v3  ;;  %2105 = vmatpush1.bf16.msra.mxu1 %v2179_v3  ;;  %v2194_v20 = vld [vmem:[%s2703_s12] ss:$8 sps:$4 sm:$0xff]   ;;  %v2200_v22 = vld [vmem:[%s2703_s12 + $0x14] ss:$8 sps:$4 sm:$0xff]   ;;  %v2204_v24 = vld [vmem:[%s2703_s12 + $0x10] ss:$8 sps:$4 sm:$0xff]  }
  0x6d   : > { %1189 = vmatprep.subr.bf16.mxu0 %v2475_v2  ;;  %2090 = vmatprep.subr.bf16.mxu1 %v2475_v2  ;;  %v2197_v21 = vld [vmem:[%s2703_s12 + $0x100] ss:$8 sps:$4 sm:$0xff]   ;;  %v2202_v23 = vld [vmem:[%s2703_s12 + $0x114] ss:$8 sps:$4 sm:$0xff]   ;;  %v2205_v25 = vld [vmem:[%s2703_s12 + $0x110] ss:$8 sps:$4 sm:$0xff]  }
  0x6e   : > { %v2206_v26 = vld [vmem:[%s2703_s12 + $0x24] ss:$8 sps:$4 sm:$0xff]   ;;  %v2210_v28 = vld [vmem:[%s2703_s12 + $0x20] ss:$8 sps:$4 sm:$0xff]   ;;  %v2212_v30 = vld [vmem:[%s2703_s12 + $0x34] ss:$8 sps:$4 sm:$0xff]  }
  0x6f   : > { %v2208_v27 = vld [vmem:[%s2703_s12 + $0x124] ss:$8 sps:$4 sm:$0xff]   ;;  %v2211_v29 = vld [vmem:[%s2703_s12 + $0x120] ss:$8 sps:$4 sm:$0xff]   ;;  %v2214_v31 = vld [vmem:[%s2703_s12 + $0x134] ss:$8 sps:$4 sm:$0xff]  }
  0x70   : > { %1190 = vmatpush1.bf16.msra.mxu0 %v2180_v4  ;;  %2106 = vmatpush1.bf16.msra.mxu1 %v2180_v4  ;;  %v2216_v32 = vld [vmem:[%s2703_s12 + $0x30] ss:$8 sps:$4 sm:$0xff]   ;;  %v2218_v34 = vld [vmem:[%s2703_s12 + $0x44] ss:$8 sps:$4 sm:$0xff]   ;;  %v2222_v36 = vld [vmem:[%s2703_s12 + $0x40] ss:$8 sps:$4 sm:$0xff]  }
  0x71   : > { %1191 = vmatprep.subr.bf16.mxu0 %v2475_v2  ;;  %2091 = vmatprep.subr.bf16.mxu1 %v2475_v2  ;;  %v2217_v33 = vld [vmem:[%s2703_s12 + $0x130] ss:$8 sps:$4 sm:$0xff]   ;;  %v2220_v35 = vld [vmem:[%s2703_s12 + $0x144] ss:$8 sps:$4 sm:$0xff]   ;;  %v2223_v37 = vld [vmem:[%s2703_s12 + $0x140] ss:$8 sps:$4 sm:$0xff]  }
  0x72   : > { %v2224_v38 = vld [vmem:[%s2703_s12 + $0x54] ss:$8 sps:$4 sm:$0xff]   ;;  %v2228_v40 = vld [vmem:[%s2703_s12 + $0x50] ss:$8 sps:$4 sm:$0xff]   ;;  %v2230_v42 = vld [vmem:[%s2703_s12 + $0x64] ss:$8 sps:$4 sm:$0xff]  }
  0x73   : > { %v2226_v39 = vld [vmem:[%s2703_s12 + $0x154] ss:$8 sps:$4 sm:$0xff]   ;;  %v2229_v41 = vld [vmem:[%s2703_s12 + $0x150] ss:$8 sps:$4 sm:$0xff]   ;;  %v2232_v43 = vld [vmem:[%s2703_s12 + $0x164] ss:$8 sps:$4 sm:$0xff]  }
  0x74   : > { %1192 = vmatpush1.bf16.msra.mxu0 %v2181_v5  ;;  %2107 = vmatpush1.bf16.msra.mxu1 %v2181_v5  ;;  %v2234_v44 = vld [vmem:[%s2703_s12 + $0x60] ss:$8 sps:$4 sm:$0xff]   ;;  %v2236_v46 = vld [vmem:[%s2703_s12 + $0x74] ss:$8 sps:$4 sm:$0xff]   ;;  %v2240_v48 = vld [vmem:[%s2703_s12 + $0x70] ss:$8 sps:$4 sm:$0xff]  }
  0x75   : > { %1193 = vmatprep.subr.bf16.mxu0 %v2475_v2  ;;  %2092 = vmatprep.subr.bf16.mxu1 %v2475_v2  ;;  %v2235_v45 = vld [vmem:[%s2703_s12 + $0x160] ss:$8 sps:$4 sm:$0xff]   ;;  %v2238_v47 = vld [vmem:[%s2703_s12 + $0x174] ss:$8 sps:$4 sm:$0xff]   ;;  %v2241_v49 = vld [vmem:[%s2703_s12 + $0x170] ss:$8 sps:$4 sm:$0xff]  }
  0x76   : > { %v2242_v50 = vld [vmem:[%s2703_s12 + $0x84] ss:$8 sps:$4 sm:$0xff]   ;;  %v2246_v52 = vld [vmem:[%s2703_s12 + $0x80] ss:$8 sps:$4 sm:$0xff]   ;;  %v2248_v54 = vld [vmem:[%s2703_s12 + $0x94] ss:$8 sps:$4 sm:$0xff]  }
  0x77   : > { %v2244_v51 = vld [vmem:[%s2703_s12 + $0x184] ss:$8 sps:$4 sm:$0xff]   ;;  %v2247_v53 = vld [vmem:[%s2703_s12 + $0x180] ss:$8 sps:$4 sm:$0xff]   ;;  %v2250_v55 = vld [vmem:[%s2703_s12 + $0x194] ss:$8 sps:$4 sm:$0xff]  }
  0x78   : > { %1194 = vmatpush1.bf16.msra.mxu0 %v2182_v6  ;;  %2108 = vmatpush1.bf16.msra.mxu1 %v2182_v6  ;;  %v2252_v56 = vld [vmem:[%s2703_s12 + $0x90] ss:$8 sps:$4 sm:$0xff]   ;;  %v2254_v58 = vld [vmem:[%s2703_s12 + $0xa4] ss:$8 sps:$4 sm:$0xff]   ;;  %v2258_v60 = vld [vmem:[%s2703_s12 + $0xa0] ss:$8 sps:$4 sm:$0xff]  }
  0x79   : > { %1195 = vmatprep.subr.bf16.mxu0 %v2475_v2  ;;  %2093 = vmatprep.subr.bf16.mxu1 %v2475_v2  ;;  %v2253_v57 = vld [vmem:[%s2703_s12 + $0x190] ss:$8 sps:$4 sm:$0xff]   ;;  %v2256_v59 = vld [vmem:[%s2703_s12 + $0x1a4] ss:$8 sps:$4 sm:$0xff]   ;;  %v2259_v61 = vld [vmem:[%s2703_s12 + $0x1a0] ss:$8 sps:$4 sm:$0xff]  }
  0x7a   : > { %v2260_v62 = vld [vmem:[%s2703_s12 + $0xb4] ss:$8 sps:$4 sm:$0xff]   ;;  %v2264_v0 = vld [vmem:[%s2703_s12 + $0xb0] ss:$8 sps:$4 sm:$0xff]   ;;  %v2268_v3 = vld [vmem:[%s2703_s12 + $0x1c4] ss:$8 sps:$4 sm:$0xff]  }
  0x7b   : > { %v2262_v63 = vld [vmem:[%s2703_s12 + $0x1b4] ss:$8 sps:$4 sm:$0xff]   ;;  %v2265_v1 = vld [vmem:[%s2703_s12 + $0x1b0] ss:$8 sps:$4 sm:$0xff]   ;;  %v2270_v4 = vld [vmem:[%s2703_s12 + $0xc0] ss:$8 sps:$4 sm:$0xff]  }
  0x7c   : > { %1196 = vmatpush1.bf16.msra.mxu0 %v2183_v8  ;;  %2109 = vmatpush1.bf16.msra.mxu1 %v2183_v8  ;;  %v2271_v5 = vld [vmem:[%s2703_s12 + $0x1c0] ss:$8 sps:$4 sm:$0xff]   ;;  %v2272_v6 = vld [vmem:[%s2703_s12 + $0xd4] ss:$8 sps:$4 sm:$0xff]   ;;  %v2276_v8 = vld [vmem:[%s2703_s12 + $0xd0] ss:$8 sps:$4 sm:$0xff]  }
  0x7d   : > { %1197 = vmatprep.subr.bf16.mxu0 %v2475_v2  ;;  %2094 = vmatprep.subr.bf16.mxu1 %v2475_v2  ;;  %v2274_v7 = vld [vmem:[%s2703_s12 + $0x1d4] ss:$8 sps:$4 sm:$0xff]   ;;  %v2277_v9 = vld [vmem:[%s2703_s12 + $0x1d0] ss:$8 sps:$4 sm:$0xff]  }
  0x80   : > { %1198 = vmatpush1.bf16.msra.mxu0 %v2184_v10  ;;  %2110 = vmatpush1.bf16.msra.mxu1 %v2184_v10  ;;  %v2278_v10 = vld [vmem:[%s2703_s12 + $0xe4] ss:$8 sps:$4 sm:$0xff]  }
  0x81   : > { %1199 = vmatprep.subr.bf16.mxu0 %v2475_v2  ;;  %2095 = vmatprep.subr.bf16.mxu1 %v2475_v2 }
  0x84   : > { %1200 = vmatpush1.bf16.msra.mxu0 %v2185_v11  ;;  %2111 = vmatpush1.bf16.msra.mxu1 %v2185_v11  ;;  %v2280_v11 = vld [vmem:[%s2703_s12 + $0x1e4] ss:$8 sps:$4 sm:$0xff]  }
  0x85   : > { %1201 = vmatprep.subr.bf16.mxu0 %v2475_v2  ;;  %2096 = vmatprep.subr.bf16.mxu1 %v2475_v2 }
  0x88   : > { %1202 = vmatpush1.bf16.msra.mxu0 %v2186_v12  ;;  %2112 = vmatpush1.bf16.msra.mxu1 %v2186_v12  ;;  %v2282_v12 = vld [vmem:[%s2703_s12 + $0xe0] ss:$8 sps:$4 sm:$0xff]  }
  0x89   : > { %1203 = vmatprep.subr.bf16.mxu0 %v2475_v2  ;;  %2097 = vmatprep.subr.bf16.mxu1 %v2475_v2 }
  0x8c   : > { %1204 = vmatpush1.bf16.msra.mxu0 %v2187_v13  ;;  %2113 = vmatpush1.bf16.msra.mxu1 %v2187_v13  ;;  %v2283_v13 = vld [vmem:[%s2703_s12 + $0x1e0] ss:$8 sps:$4 sm:$0xff]  }
  0x8d   : > { %1205 = vmatprep.subr.bf16.mxu0 %v2475_v2  ;;  %2098 = vmatprep.subr.bf16.mxu1 %v2475_v2 }
  0x90   : > { %1206 = vmatpush1.bf16.msra.mxu0 %v2188_v14  ;;  %2114 = vmatpush1.bf16.msra.mxu1 %v2188_v14  ;;  %v2284_v14 = vld [vmem:[%s2703_s12 + $0xf4] ss:$8 sps:$4 sm:$0xff]  }
  0x91   : > { %1207 = vmatprep.subr.bf16.mxu0 %v2475_v2  ;;  %2099 = vmatprep.subr.bf16.mxu1 %v2475_v2 }
  0x94   : > { %1208 = vmatpush1.bf16.msra.mxu0 %v2189_v15  ;;  %2115 = vmatpush1.bf16.msra.mxu1 %v2189_v15  ;;  %v2286_v15 = vld [vmem:[%s2703_s12 + $0x1f4] ss:$8 sps:$4 sm:$0xff]  }
  0x95   : > { %1209 = vmatprep.subr.bf16.mxu0 %v2475_v2  ;;  %2100 = vmatprep.subr.bf16.mxu1 %v2475_v2 }
  0x98   : > { %1210 = vmatpush1.bf16.msra.mxu0 %v2190_v16  ;;  %2116 = vmatpush1.bf16.msra.mxu1 %v2190_v16  ;;  %v2288_v16 = vld [vmem:[%s2703_s12 + $0xf0] ss:$8 sps:$4 sm:$0xff]  }
  0x99   : > { %1211 = vmatprep.subr.bf16.mxu0 %v2475_v2  ;;  %2101 = vmatprep.subr.bf16.mxu1 %v2475_v2 }
  0x9c   : > { %1212 = vmatpush1.bf16.msra.mxu0 %v2191_v17  ;;  %2117 = vmatpush1.bf16.msra.mxu1 %v2191_v17  ;;  %v2289_v17 = vld [vmem:[%s2703_s12 + $0x1f0] ss:$8 sps:$4 sm:$0xff]  }
  0x9d   : > { %1213 = vmatprep.subr.bf16.mxu0 %v2475_v2  ;;  %2102 = vmatprep.subr.bf16.mxu1 %v2475_v2 }
  0xa0   : > { %1214 = vmatpush1.bf16.msra.mxu0 %v2192_v18  ;;  %2118 = vmatpush1.bf16.msra.mxu1 %v2192_v18  ;;  %v609_v18 = vld [vmem:[#allocation2] sm:$0xff] }
  0xa1   : > { %1215 = vmatprep.subr.bf16.mxu0 %v2475_v2  ;;  %2103 = vmatprep.subr.bf16.mxu1 %v2475_v2  ;;  %v2266_v2 = vld [vmem:[%s2703_s12 + $0xc4] ss:$8 sps:$4 sm:$0xff]  }
  0xa4   : > { %1216 = vmatpush1.bf16.msra.mxu0 %v2193_v19  ;;  %2119 = vmatpush1.bf16.msra.mxu1 %v2193_v19  ;;  %v641_v19 = vld [vmem:[#allocation2 + $0x100] sm:$0xff] }
  0xa7   : > { %1218 = vmatmul.mubr.bf16.vlgmr.msra.gmra.mrb[0].mxu0 %v2194_v20  ;;  %1346 = vmatmul.mubr.bf16.vlgmr.msra.gmra.mrb[0].mxu1 %v2197_v21 }
  0xa8   : > { %1225 = vmatprep.mubr.bf16.mxu0 %v2200_v22  ;;  %1353 = vmatprep.mubr.bf16.mxu1 %v2202_v23  ;;  %v610_v22 = vld [vmem:[#allocation2 + $0x8] sm:$0xff] }
  0xa9   : > { %v642_v23 = vld [vmem:[#allocation2 + $0x108] sm:$0xff] }
  0xaf   : > { %1226 = vmatmul.mubr.bf16.gmra.mrb[4].mxu0 %v2204_v24  ;;  %1354 = vmatmul.mubr.bf16.gmra.mrb[4].mxu1 %v2205_v25 }
  0xb0   : > { %1233 = vmatprep.mubr.bf16.mxu0 %v2206_v26  ;;  %1361 = vmatprep.mubr.bf16.mxu1 %v2208_v27 }
  0xb7   : > { %1234 = vmatmul.mubr.bf16.gmra.mrb[8].mxu0 %v2210_v28  ;;  %1362 = vmatmul.mubr.bf16.gmra.mrb[8].mxu1 %v2211_v29 }
  0xb8   : > { %1241 = vmatprep.mubr.bf16.mxu0 %v2212_v30  ;;  %1369 = vmatprep.mubr.bf16.mxu1 %v2214_v31 }
  0xbf   : > { %1242 = vmatmul.mubr.bf16.gmra.mrb[12].mxu0 %v2216_v32  ;;  %1370 = vmatmul.mubr.bf16.gmra.mrb[12].mxu1 %v2217_v33 }
  0xc0   : > { %1249 = vmatprep.mubr.bf16.mxu0 %v2218_v34  ;;  %1377 = vmatprep.mubr.bf16.mxu1 %v2220_v35  ;;  %v611_v34 = vld [vmem:[#allocation2 + $0x10] sm:$0xff] }
  0xc1   : > { %v643_v35 = vld [vmem:[#allocation2 + $0x110] sm:$0xff] }
  0xc7   : > { %1250 = vmatmul.mubr.bf16.gmra.mrb[16].mxu0 %v2222_v36  ;;  %1378 = vmatmul.mubr.bf16.gmra.mrb[16].mxu1 %v2223_v37 }
  0xc8   : > { %1257 = vmatprep.mubr.bf16.mxu0 %v2224_v38  ;;  %1385 = vmatprep.mubr.bf16.mxu1 %v2226_v39  ;;  %v612_v38 = vld [vmem:[#allocation2 + $0x18] sm:$0xff] }
  0xc9   : > { %v644_v39 = vld [vmem:[#allocation2 + $0x118] sm:$0xff] }
  0xcf   : > { %1258 = vmatmul.mubr.bf16.gmra.mrb[20].mxu0 %v2228_v40  ;;  %1386 = vmatmul.mubr.bf16.gmra.mrb[20].mxu1 %v2229_v41 }
  0xd0   : > { %1265 = vmatprep.mubr.bf16.mxu0 %v2230_v42  ;;  %1393 = vmatprep.mubr.bf16.mxu1 %v2232_v43 }
  0xd7   : > { %1266 = vmatmul.mubr.bf16.gmra.mrb[24].mxu0 %v2234_v44  ;;  %1394 = vmatmul.mubr.bf16.gmra.mrb[24].mxu1 %v2235_v45 }
  0xd8   : > { %1273 = vmatprep.mubr.bf16.mxu0 %v2236_v46  ;;  %1401 = vmatprep.mubr.bf16.mxu1 %v2238_v47 }
  0xdf   : > { %1274 = vmatmul.mubr.bf16.gmra.mrb[28].mxu0 %v2240_v48  ;;  %1402 = vmatmul.mubr.bf16.gmra.mrb[28].mxu1 %v2241_v49 }
  0xe0   : > { %1281 = vmatprep.mubr.bf16.mxu0 %v2242_v50  ;;  %1409 = vmatprep.mubr.bf16.mxu1 %v2244_v51  ;;  %v613_v50 = vld [vmem:[#allocation2 + $0x20] sm:$0xff] }
  0xe1   : > { %v645_v51 = vld [vmem:[#allocation2 + $0x120] sm:$0xff] }
  0xe7   : > { %1282 = vmatmul.mubr.bf16.gmra.mrb[32].mxu0 %v2246_v52  ;;  %1410 = vmatmul.mubr.bf16.gmra.mrb[32].mxu1 %v2247_v53 }
  0xe8   : > { %1289 = vmatprep.mubr.bf16.mxu0 %v2248_v54  ;;  %1417 = vmatprep.mubr.bf16.mxu1 %v2250_v55  ;;  %v614_v54 = vld [vmem:[#allocation2 + $0x28] sm:$0xff] }
  0xe9   : > { %v646_v55 = vld [vmem:[#allocation2 + $0x128] sm:$0xff] }
  0xef   : > { %1290 = vmatmul.mubr.bf16.gmra.mrb[36].mxu0 %v2252_v56  ;;  %1418 = vmatmul.mubr.bf16.gmra.mrb[36].mxu1 %v2253_v57 }
  0xf0   : > { %1297 = vmatprep.mubr.bf16.mxu0 %v2254_v58  ;;  %1425 = vmatprep.mubr.bf16.mxu1 %v2256_v59 }
  0xf7   : > { %1298 = vmatmul.mubr.bf16.gmra.mrb[40].mxu0 %v2258_v60  ;;  %1426 = vmatmul.mubr.bf16.gmra.mrb[40].mxu1 %v2259_v61 }
  0xf8   : > { %1305 = vmatprep.mubr.bf16.mxu0 %v2260_v62  ;;  %1433 = vmatprep.mubr.bf16.mxu1 %v2262_v63 }
  0xff   : > { %1306 = vmatmul.mubr.bf16.gmra.mrb[44].mxu0 %v2264_v0  ;;  %1434 = vmatmul.mubr.bf16.gmra.mrb[44].mxu1 %v2265_v1 }
 0x100   : > { %1313 = vmatprep.mubr.bf16.mxu0 %v2266_v2  ;;  %1441 = vmatprep.mubr.bf16.mxu1 %v2268_v3  ;;  %v615_v2 = vld [vmem:[#allocation2 + $0x30] sm:$0xff] }
 0x101   : > { %v647_v3 = vld [vmem:[#allocation2 + $0x130] sm:$0xff] }
 0x107   : > { %1314 = vmatmul.mubr.bf16.gmra.mrb[48].mxu0 %v2270_v4  ;;  %1442 = vmatmul.mubr.bf16.gmra.mrb[48].mxu1 %v2271_v5 }
 0x108   : > { %1321 = vmatprep.mubr.bf16.mxu0 %v2272_v6  ;;  %1449 = vmatprep.mubr.bf16.mxu1 %v2274_v7  ;;  %v616_v6 = vld [vmem:[#allocation2 + $0x38] sm:$0xff] }
 0x109   : > { %v648_v7 = vld [vmem:[#allocation2 + $0x138] sm:$0xff] }
 0x10f   : > { %1322 = vmatmul.mubr.bf16.gmra.mrb[52].mxu0 %v2276_v8  ;;  %1450 = vmatmul.mubr.bf16.gmra.mrb[52].mxu1 %v2277_v9 }
 0x110   : > { %1329 = vmatprep.mubr.bf16.mxu0 %v2278_v10  ;;  %1457 = vmatprep.mubr.bf16.mxu1 %v2280_v11 }
 0x117   : > { %1330 = vmatmul.mubr.bf16.gmra.mrb[56].mxu0 %v2282_v12  ;;  %1458 = vmatmul.mubr.bf16.gmra.mrb[56].mxu1 %v2283_v13 }
 0x118   : > { %1337 = vmatprep.mubr.bf16.mxu0 %v2284_v14  ;;  %1465 = vmatprep.mubr.bf16.mxu1 %v2286_v15 }
 0x11f   : > { %1338 = vmatmul.mubr.bf16.gmra.mrb[60].mxu0 %v2288_v16  ;;  %1466 = vmatmul.mubr.bf16.gmra.mrb[60].mxu1 %v2289_v17 }
 0x17a   : > { %v1219_v20 = vpop.f32.mrb[0].mxu0  ;;  %v1347_v21 = vpop.f32.mrb[0].mxu1 }
 0x17b   : > { %v1474_v24 = vadd.f32 %v1219_v20, %v609_v18  ;;  %v1506_v25 = vadd.f32 %v1347_v21, %v641_v19  ;;  %v1221_v26 = vpop.f32.mrb[1].mxu0  ;;  %v1349_v27 = vpop.f32.mrb[1].mxu1  ;;  %v617_v18 = vld [vmem:[#allocation2 + $0x40] sm:$0xff] }
 0x17c   : > { %v1222_v28 = vpop.f32.mrb[2].mxu0  ;;  %v1350_v29 = vpop.f32.mrb[2].mxu1  ;;  %v649_v19 = vld [vmem:[#allocation2 + $0x140] sm:$0xff] }
 0x17d   : > { %1538 = vst [vmem:[#allocation2] sm:$0xff] %v1474_v24  ;;  %1570 = vst [vmem:[#allocation2 + $0x100] sm:$0xff] %v1506_v25  ;;  %v1475_v30 = vadd.f32 %v1222_v28, %v610_v22  ;;  %v1507_v31 = vadd.f32 %v1350_v29, %v642_v23  ;;  %v1224_v32 = vpop.f32.mrb[3].mxu0  ;;  %v1352_v33 = vpop.f32.mrb[3].mxu1  ;;  %v618_v22 = vld [vmem:[#allocation2 + $0x48] sm:$0xff] }
 0x17e   : > { %v650_v23 = vld [vmem:[#allocation2 + $0x148] sm:$0xff] }
 0x17f   : > { %1539 = vst [vmem:[#allocation2 + $0x8] sm:$0xff] %v1475_v30  ;;  %1571 = vst [vmem:[#allocation2 + $0x108] sm:$0xff] %v1507_v31 }
 0x182   : > { %v1227_v36 = vpop.f32.mrb[4].mxu0  ;;  %v1355_v37 = vpop.f32.mrb[4].mxu1 }
 0x183   : > { %v1476_v40 = vadd.f32 %v1227_v36, %v611_v34  ;;  %v1508_v41 = vadd.f32 %v1355_v37, %v643_v35  ;;  %v1229_v42 = vpop.f32.mrb[5].mxu0  ;;  %v1357_v43 = vpop.f32.mrb[5].mxu1  ;;  %v619_v34 = vld [vmem:[#allocation2 + $0x50] sm:$0xff] }
 0x184   : > { %v1230_v44 = vpop.f32.mrb[6].mxu0  ;;  %v1358_v45 = vpop.f32.mrb[6].mxu1  ;;  %v651_v35 = vld [vmem:[#allocation2 + $0x150] sm:$0xff] }
 0x185   : > { %1540 = vst [vmem:[#allocation2 + $0x10] sm:$0xff] %v1476_v40  ;;  %1572 = vst [vmem:[#allocation2 + $0x110] sm:$0xff] %v1508_v41  ;;  %v1477_v46 = vadd.f32 %v1230_v44, %v612_v38  ;;  %v1509_v47 = vadd.f32 %v1358_v45, %v644_v39  ;;  %v1232_v48 = vpop.f32.mrb[7].mxu0  ;;  %v1360_v49 = vpop.f32.mrb[7].mxu1  ;;  %v620_v38 = vld [vmem:[#allocation2 + $0x58] sm:$0xff] }
 0x186   : > { %v652_v39 = vld [vmem:[#allocation2 + $0x158] sm:$0xff] }
 0x187   : > { %1541 = vst [vmem:[#allocation2 + $0x18] sm:$0xff] %v1477_v46  ;;  %1573 = vst [vmem:[#allocation2 + $0x118] sm:$0xff] %v1509_v47 }
 0x18a   : > { %v1235_v52 = vpop.f32.mrb[8].mxu0  ;;  %v1363_v53 = vpop.f32.mrb[8].mxu1 }
 0x18b   : > { %v1478_v56 = vadd.f32 %v1235_v52, %v613_v50  ;;  %v1510_v57 = vadd.f32 %v1363_v53, %v645_v51  ;;  %v1237_v58 = vpop.f32.mrb[9].mxu0  ;;  %v1365_v59 = vpop.f32.mrb[9].mxu1  ;;  %v621_v50 = vld [vmem:[#allocation2 + $0x60] sm:$0xff] }
 0x18c   : > { %v1238_v60 = vpop.f32.mrb[10].mxu0  ;;  %v1366_v61 = vpop.f32.mrb[10].mxu1  ;;  %v653_v51 = vld [vmem:[#allocation2 + $0x160] sm:$0xff] }
 0x18d   : > { %1542 = vst [vmem:[#allocation2 + $0x20] sm:$0xff] %v1478_v56  ;;  %1574 = vst [vmem:[#allocation2 + $0x120] sm:$0xff] %v1510_v57  ;;  %v1479_v62 = vadd.f32 %v1238_v60, %v614_v54  ;;  %v1511_v63 = vadd.f32 %v1366_v61, %v646_v55  ;;  %v1240_v0 = vpop.f32.mrb[11].mxu0  ;;  %v1368_v1 = vpop.f32.mrb[11].mxu1  ;;  %v622_v54 = vld [vmem:[#allocation2 + $0x68] sm:$0xff] }
 0x18e   : > { %v654_v55 = vld [vmem:[#allocation2 + $0x168] sm:$0xff] }
 0x18f   : > { %1543 = vst [vmem:[#allocation2 + $0x28] sm:$0xff] %v1479_v62  ;;  %1575 = vst [vmem:[#allocation2 + $0x128] sm:$0xff] %v1511_v63 }
 0x192   : > { %v1243_v4 = vpop.f32.mrb[12].mxu0  ;;  %v1371_v5 = vpop.f32.mrb[12].mxu1 }
 0x193   : > { %v1480_v8 = vadd.f32 %v1243_v4, %v615_v2  ;;  %v1512_v9 = vadd.f32 %v1371_v5, %v647_v3  ;;  %v1245_v10 = vpop.f32.mrb[13].mxu0  ;;  %v1373_v11 = vpop.f32.mrb[13].mxu1  ;;  %v623_v2 = vld [vmem:[#allocation2 + $0x70] sm:$0xff] }
 0x194   : > { %v1246_v12 = vpop.f32.mrb[14].mxu0  ;;  %v1374_v13 = vpop.f32.mrb[14].mxu1  ;;  %v655_v3 = vld [vmem:[#allocation2 + $0x170] sm:$0xff] }
 0x195   : > { %1544 = vst [vmem:[#allocation2 + $0x30] sm:$0xff] %v1480_v8  ;;  %1576 = vst [vmem:[#allocation2 + $0x130] sm:$0xff] %v1512_v9  ;;  %v1481_v14 = vadd.f32 %v1246_v12, %v616_v6  ;;  %v1513_v15 = vadd.f32 %v1374_v13, %v648_v7  ;;  %v1248_v16 = vpop.f32.mrb[15].mxu0  ;;  %v1376_v17 = vpop.f32.mrb[15].mxu1  ;;  %v624_v6 = vld [vmem:[#allocation2 + $0x78] sm:$0xff] }
 0x196   : > { %v656_v7 = vld [vmem:[#allocation2 + $0x178] sm:$0xff] }
 0x197   : > { %1545 = vst [vmem:[#allocation2 + $0x38] sm:$0xff] %v1481_v14  ;;  %1577 = vst [vmem:[#allocation2 + $0x138] sm:$0xff] %v1513_v15 }
 0x19a   : > { %v1251_v20 = vpop.f32.mrb[16].mxu0  ;;  %v1379_v21 = vpop.f32.mrb[16].mxu1 }
 0x19b   : > { %v1482_v24 = vadd.f32 %v1251_v20, %v617_v18  ;;  %v1514_v25 = vadd.f32 %v1379_v21, %v649_v19  ;;  %v1253_v26 = vpop.f32.mrb[17].mxu0  ;;  %v1381_v27 = vpop.f32.mrb[17].mxu1  ;;  %v625_v18 = vld [vmem:[#allocation2 + $0x80] sm:$0xff] }
 0x19c   : > { %v1254_v28 = vpop.f32.mrb[18].mxu0  ;;  %v1382_v29 = vpop.f32.mrb[18].mxu1  ;;  %v657_v19 = vld [vmem:[#allocation2 + $0x180] sm:$0xff] }
 0x19d   : > { %1546 = vst [vmem:[#allocation2 + $0x40] sm:$0xff] %v1482_v24  ;;  %1578 = vst [vmem:[#allocation2 + $0x140] sm:$0xff] %v1514_v25  ;;  %v1483_v30 = vadd.f32 %v1254_v28, %v618_v22  ;;  %v1515_v31 = vadd.f32 %v1382_v29, %v650_v23  ;;  %v1256_v32 = vpop.f32.mrb[19].mxu0  ;;  %v1384_v33 = vpop.f32.mrb[19].mxu1  ;;  %v626_v22 = vld [vmem:[#allocation2 + $0x88] sm:$0xff] }
 0x19e   : > { %v658_v23 = vld [vmem:[#allocation2 + $0x188] sm:$0xff] }
 0x19f   : > { %1547 = vst [vmem:[#allocation2 + $0x48] sm:$0xff] %v1483_v30  ;;  %1579 = vst [vmem:[#allocation2 + $0x148] sm:$0xff] %v1515_v31 }
 0x1a2   : > { %v1259_v36 = vpop.f32.mrb[20].mxu0  ;;  %v1387_v37 = vpop.f32.mrb[20].mxu1 }
 0x1a3   : > { %v1484_v40 = vadd.f32 %v1259_v36, %v619_v34  ;;  %v1516_v41 = vadd.f32 %v1387_v37, %v651_v35  ;;  %v1261_v42 = vpop.f32.mrb[21].mxu0  ;;  %v1389_v43 = vpop.f32.mrb[21].mxu1  ;;  %v627_v34 = vld [vmem:[#allocation2 + $0x90] sm:$0xff] }
 0x1a4   : > { %v1262_v44 = vpop.f32.mrb[22].mxu0  ;;  %v1390_v45 = vpop.f32.mrb[22].mxu1  ;;  %v659_v35 = vld [vmem:[#allocation2 + $0x190] sm:$0xff] }
 0x1a5   : > { %1548 = vst [vmem:[#allocation2 + $0x50] sm:$0xff] %v1484_v40  ;;  %1580 = vst [vmem:[#allocation2 + $0x150] sm:$0xff] %v1516_v41  ;;  %v1485_v46 = vadd.f32 %v1262_v44, %v620_v38  ;;  %v1517_v47 = vadd.f32 %v1390_v45, %v652_v39  ;;  %v1264_v48 = vpop.f32.mrb[23].mxu0  ;;  %v1392_v49 = vpop.f32.mrb[23].mxu1  ;;  %v628_v38 = vld [vmem:[#allocation2 + $0x98] sm:$0xff] }
 0x1a6   : > { %v660_v39 = vld [vmem:[#allocation2 + $0x198] sm:$0xff] }
 0x1a7   : > { %1549 = vst [vmem:[#allocation2 + $0x58] sm:$0xff] %v1485_v46  ;;  %1581 = vst [vmem:[#allocation2 + $0x158] sm:$0xff] %v1517_v47 }
 0x1aa   : > { %v1267_v52 = vpop.f32.mrb[24].mxu0  ;;  %v1395_v53 = vpop.f32.mrb[24].mxu1 }
 0x1ab   : > { %v1486_v56 = vadd.f32 %v1267_v52, %v621_v50  ;;  %v1518_v57 = vadd.f32 %v1395_v53, %v653_v51  ;;  %v1269_v58 = vpop.f32.mrb[25].mxu0  ;;  %v1397_v59 = vpop.f32.mrb[25].mxu1  ;;  %v629_v50 = vld [vmem:[#allocation2 + $0xa0] sm:$0xff] }
 0x1ac   : > { %v1270_v60 = vpop.f32.mrb[26].mxu0  ;;  %v1398_v61 = vpop.f32.mrb[26].mxu1  ;;  %v661_v51 = vld [vmem:[#allocation2 + $0x1a0] sm:$0xff] }
 0x1ad   : > { %1550 = vst [vmem:[#allocation2 + $0x60] sm:$0xff] %v1486_v56  ;;  %1582 = vst [vmem:[#allocation2 + $0x160] sm:$0xff] %v1518_v57  ;;  %v1487_v62 = vadd.f32 %v1270_v60, %v622_v54  ;;  %v1519_v63 = vadd.f32 %v1398_v61, %v654_v55  ;;  %v1272_v0 = vpop.f32.mrb[27].mxu0  ;;  %v1400_v1 = vpop.f32.mrb[27].mxu1  ;;  %v630_v54 = vld [vmem:[#allocation2 + $0xa8] sm:$0xff] }
 0x1ae   : > { %v662_v55 = vld [vmem:[#allocation2 + $0x1a8] sm:$0xff] }
 0x1af   : > { %1551 = vst [vmem:[#allocation2 + $0x68] sm:$0xff] %v1487_v62  ;;  %1583 = vst [vmem:[#allocation2 + $0x168] sm:$0xff] %v1519_v63 }
 0x1b2   : > { %v1275_v4 = vpop.f32.mrb[28].mxu0  ;;  %v1403_v5 = vpop.f32.mrb[28].mxu1 }
 0x1b3   : > { %v1488_v8 = vadd.f32 %v1275_v4, %v623_v2  ;;  %v1520_v9 = vadd.f32 %v1403_v5, %v655_v3  ;;  %v1277_v10 = vpop.f32.mrb[29].mxu0  ;;  %v1405_v11 = vpop.f32.mrb[29].mxu1  ;;  %v631_v2 = vld [vmem:[#allocation2 + $0xb0] sm:$0xff] }
 0x1b4   : > { %v1278_v12 = vpop.f32.mrb[30].mxu0  ;;  %v1406_v13 = vpop.f32.mrb[30].mxu1  ;;  %v663_v3 = vld [vmem:[#allocation2 + $0x1b0] sm:$0xff] }
 0x1b5   : > { %1552 = vst [vmem:[#allocation2 + $0x70] sm:$0xff] %v1488_v8  ;;  %1584 = vst [vmem:[#allocation2 + $0x170] sm:$0xff] %v1520_v9  ;;  %v1489_v14 = vadd.f32 %v1278_v12, %v624_v6  ;;  %v1521_v15 = vadd.f32 %v1406_v13, %v656_v7  ;;  %v1280_v16 = vpop.f32.mrb[31].mxu0  ;;  %v1408_v17 = vpop.f32.mrb[31].mxu1  ;;  %v632_v6 = vld [vmem:[#allocation2 + $0xb8] sm:$0xff] }
 0x1b6   : > { %v664_v7 = vld [vmem:[#allocation2 + $0x1b8] sm:$0xff] }
 0x1b7   : > { %1553 = vst [vmem:[#allocation2 + $0x78] sm:$0xff] %v1489_v14  ;;  %1585 = vst [vmem:[#allocation2 + $0x178] sm:$0xff] %v1521_v15 }
 0x1ba   : > { %v1283_v20 = vpop.f32.mrb[32].mxu0  ;;  %v1411_v21 = vpop.f32.mrb[32].mxu1 }
 0x1bb   : > { %v1490_v24 = vadd.f32 %v1283_v20, %v625_v18  ;;  %v1522_v25 = vadd.f32 %v1411_v21, %v657_v19  ;;  %v1285_v26 = vpop.f32.mrb[33].mxu0  ;;  %v1413_v27 = vpop.f32.mrb[33].mxu1  ;;  %v633_v18 = vld [vmem:[#allocation2 + $0xc0] sm:$0xff] }
 0x1bc   : > { %v1286_v28 = vpop.f32.mrb[34].mxu0  ;;  %v1414_v29 = vpop.f32.mrb[34].mxu1  ;;  %v665_v19 = vld [vmem:[#allocation2 + $0x1c0] sm:$0xff] }
 0x1bd   : > { %1554 = vst [vmem:[#allocation2 + $0x80] sm:$0xff] %v1490_v24  ;;  %1586 = vst [vmem:[#allocation2 + $0x180] sm:$0xff] %v1522_v25  ;;  %v1491_v30 = vadd.f32 %v1286_v28, %v626_v22  ;;  %v1523_v31 = vadd.f32 %v1414_v29, %v658_v23  ;;  %v1288_v32 = vpop.f32.mrb[35].mxu0  ;;  %v1416_v33 = vpop.f32.mrb[35].mxu1  ;;  %v634_v22 = vld [vmem:[#allocation2 + $0xc8] sm:$0xff] }
 0x1be   : > { %v666_v23 = vld [vmem:[#allocation2 + $0x1c8] sm:$0xff] }
 0x1bf   : > { %1555 = vst [vmem:[#allocation2 + $0x88] sm:$0xff] %v1491_v30  ;;  %1587 = vst [vmem:[#allocation2 + $0x188] sm:$0xff] %v1523_v31 }
 0x1c2   : > { %v1291_v36 = vpop.f32.mrb[36].mxu0  ;;  %v1419_v37 = vpop.f32.mrb[36].mxu1 }
 0x1c3   : > { %v1492_v40 = vadd.f32 %v1291_v36, %v627_v34  ;;  %v1524_v41 = vadd.f32 %v1419_v37, %v659_v35  ;;  %v1293_v42 = vpop.f32.mrb[37].mxu0  ;;  %v1421_v43 = vpop.f32.mrb[37].mxu1  ;;  %v635_v34 = vld [vmem:[#allocation2 + $0xd0] sm:$0xff] }
 0x1c4   : > { %v1294_v44 = vpop.f32.mrb[38].mxu0  ;;  %v1422_v45 = vpop.f32.mrb[38].mxu1  ;;  %v667_v35 = vld [vmem:[#allocation2 + $0x1d0] sm:$0xff] }
 0x1c5   : > { %1556 = vst [vmem:[#allocation2 + $0x90] sm:$0xff] %v1492_v40  ;;  %1588 = vst [vmem:[#allocation2 + $0x190] sm:$0xff] %v1524_v41  ;;  %v1493_v46 = vadd.f32 %v1294_v44, %v628_v38  ;;  %v1525_v47 = vadd.f32 %v1422_v45, %v660_v39  ;;  %v1296_v48 = vpop.f32.mrb[39].mxu0  ;;  %v1424_v49 = vpop.f32.mrb[39].mxu1  ;;  %v636_v38 = vld [vmem:[#allocation2 + $0xd8] sm:$0xff] }
 0x1c6   : > { %v668_v39 = vld [vmem:[#allocation2 + $0x1d8] sm:$0xff] }
 0x1c7   : > { %1557 = vst [vmem:[#allocation2 + $0x98] sm:$0xff] %v1493_v46  ;;  %1589 = vst [vmem:[#allocation2 + $0x198] sm:$0xff] %v1525_v47 }
 0x1ca   : > { %v1299_v52 = vpop.f32.mrb[40].mxu0  ;;  %v1427_v53 = vpop.f32.mrb[40].mxu1 }
 0x1cb   : > { %v1494_v56 = vadd.f32 %v1299_v52, %v629_v50  ;;  %v1526_v57 = vadd.f32 %v1427_v53, %v661_v51  ;;  %v1301_v58 = vpop.f32.mrb[41].mxu0  ;;  %v1429_v59 = vpop.f32.mrb[41].mxu1  ;;  %v637_v50 = vld [vmem:[#allocation2 + $0xe0] sm:$0xff] }
 0x1cc   : > { %v1302_v60 = vpop.f32.mrb[42].mxu0  ;;  %v1430_v61 = vpop.f32.mrb[42].mxu1  ;;  %v669_v51 = vld [vmem:[#allocation2 + $0x1e0] sm:$0xff] }
 0x1cd   : > { %1558 = vst [vmem:[#allocation2 + $0xa0] sm:$0xff] %v1494_v56  ;;  %1590 = vst [vmem:[#allocation2 + $0x1a0] sm:$0xff] %v1526_v57  ;;  %v1495_v62 = vadd.f32 %v1302_v60, %v630_v54  ;;  %v1527_v63 = vadd.f32 %v1430_v61, %v662_v55  ;;  %v1304_v0 = vpop.f32.mrb[43].mxu0  ;;  %v1432_v1 = vpop.f32.mrb[43].mxu1  ;;  %v638_v54 = vld [vmem:[#allocation2 + $0xe8] sm:$0xff] }
 0x1ce   : > { %v670_v55 = vld [vmem:[#allocation2 + $0x1e8] sm:$0xff] }
 0x1cf   : > { %1559 = vst [vmem:[#allocation2 + $0xa8] sm:$0xff] %v1495_v62  ;;  %1591 = vst [vmem:[#allocation2 + $0x1a8] sm:$0xff] %v1527_v63 }
 0x1d2   : > { %v1307_v4 = vpop.f32.mrb[44].mxu0  ;;  %v1435_v5 = vpop.f32.mrb[44].mxu1 }
 0x1d3   : > { %v1496_v8 = vadd.f32 %v1307_v4, %v631_v2  ;;  %v1528_v9 = vadd.f32 %v1435_v5, %v663_v3  ;;  %v1309_v10 = vpop.f32.mrb[45].mxu0  ;;  %v1437_v11 = vpop.f32.mrb[45].mxu1  ;;  %v639_v2 = vld [vmem:[#allocation2 + $0xf0] sm:$0xff] }
 0x1d4   : > { %v1310_v12 = vpop.f32.mrb[46].mxu0  ;;  %v1438_v13 = vpop.f32.mrb[46].mxu1  ;;  %v671_v3 = vld [vmem:[#allocation2 + $0x1f0] sm:$0xff] }
 0x1d5   : > { %1560 = vst [vmem:[#allocation2 + $0xb0] sm:$0xff] %v1496_v8  ;;  %1592 = vst [vmem:[#allocation2 + $0x1b0] sm:$0xff] %v1528_v9  ;;  %v1497_v14 = vadd.f32 %v1310_v12, %v632_v6  ;;  %v1529_v15 = vadd.f32 %v1438_v13, %v664_v7  ;;  %v1312_v16 = vpop.f32.mrb[47].mxu0  ;;  %v1440_v17 = vpop.f32.mrb[47].mxu1  ;;  %v640_v6 = vld [vmem:[#allocation2 + $0xf8] sm:$0xff] }
 0x1d6   : > { %v672_v7 = vld [vmem:[#allocation2 + $0x1f8] sm:$0xff] }
 0x1d7   : > { %1561 = vst [vmem:[#allocation2 + $0xb8] sm:$0xff] %v1497_v14  ;;  %1593 = vst [vmem:[#allocation2 + $0x1b8] sm:$0xff] %v1529_v15 }
 0x1da   : > { %v1315_v20 = vpop.f32.mrb[48].mxu0  ;;  %v1443_v21 = vpop.f32.mrb[48].mxu1 }
 0x1db   : > { %v1498_v24 = vadd.f32 %v1315_v20, %v633_v18  ;;  %v1530_v25 = vadd.f32 %v1443_v21, %v665_v19  ;;  %v1317_v26 = vpop.f32.mrb[49].mxu0  ;;  %v1445_v27 = vpop.f32.mrb[49].mxu1  ;;  %v1606_v18 = vld [vmem:[#allocation2] sm:$0xff] (!%p2083_p13)  ;;  %v1607_v20 = vld [vmem:[#allocation2 + $0x8] sm:$0xff] (!%p2083_p13) }
 0x1dc   : > { %v1318_v28 = vpop.f32.mrb[50].mxu0  ;;  %v1446_v29 = vpop.f32.mrb[50].mxu1  ;;  %v2886_v19 = vld [vmem:[%s3039_s2] ss:$0 sm:$0xff] (!%p2083_p13) }
 0x1dd   : > { %1562 = vst [vmem:[#allocation2 + $0xc0] sm:$0xff] %v1498_v24  ;;  %1594 = vst [vmem:[#allocation2 + $0x1c0] sm:$0xff] %v1530_v25  ;;  %v1499_v30 = vadd.f32 %v1318_v28, %v634_v22  ;;  %v1531_v31 = vadd.f32 %v1446_v29, %v666_v23  ;;  %v1320_v32 = vpop.f32.mrb[51].mxu0  ;;  %v1448_v33 = vpop.f32.mrb[51].mxu1  ;;  %v1677_v21 = vadd.f32 (!%p2083_p13), %v2886_v19, %v1606_v18  ;;  %v1608_v23 = vld [vmem:[#allocation2 + $0x10] sm:$0xff] (!%p2083_p13)  ;;  %v1609_v24 = vld [vmem:[#allocation2 + $0x18] sm:$0xff] (!%p2083_p13) }
 0x1de   : > { %v1678_v22 = vadd.f32 (!%p2083_p13), %v2886_v19, %v1607_v20  ;;  %v1610_v25 = vld [vmem:[#allocation2 + $0x20] sm:$0xff] (!%p2083_p13)  ;;  %v1679_v26 = vadd.f32 (!%p2083_p13), %v2886_v19, %v1608_v23  ;;  %v1680_v27 = vadd.f32 (!%p2083_p13), %v2886_v19, %v1609_v24  ;;  %v1611_v28 = vld [vmem:[#allocation2 + $0x28] sm:$0xff] (!%p2083_p13)  ;;  %v1612_v29 = vld [vmem:[#allocation2 + $0x30] sm:$0xff] (!%p2083_p13) }
 0x1df   : > { %1563 = vst [vmem:[#allocation2 + $0xc8] sm:$0xff] %v1499_v30  ;;  %1595 = vst [vmem:[#allocation2 + $0x1c8] sm:$0xff] %v1531_v31  ;;  %2290 = vtanh.f32 (!%p2083_p13), %v1677_v21  ;;  %v1681_v30 = vadd.f32 (!%p2083_p13), %v2886_v19, %v1610_v25  ;;  %v1613_v31 = vld [vmem:[#allocation2 + $0x38] sm:$0xff] (!%p2083_p13)  ;;  %v1682_v32 = vadd.f32 (!%p2083_p13), %v2886_v19, %v1611_v28  ;;  %v1614_v33 = vld [vmem:[#allocation2 + $0x40] sm:$0xff] (!%p2083_p13) }
 0x1e0   : > { %2292 = vtanh.f32 (!%p2083_p13), %v1678_v22 }
 0x1e1   : > { %2294 = vtanh.f32 (!%p2083_p13), %v1679_v26 }
 0x1e2   : > { %v1323_v36 = vpop.f32.mrb[52].mxu0  ;;  %v1451_v37 = vpop.f32.mrb[52].mxu1  ;;  %2296 = vtanh.f32 (!%p2083_p13), %v1680_v27 }
 0x1e3   : > { %v1500_v40 = vadd.f32 %v1323_v36, %v635_v34  ;;  %v1532_v41 = vadd.f32 %v1451_v37, %v667_v35  ;;  %v1325_v42 = vpop.f32.mrb[53].mxu0  ;;  %v1453_v43 = vpop.f32.mrb[53].mxu1  ;;  %v1683_v34 = vadd.f32 (!%p2083_p13), %v2886_v19, %v1612_v29  ;;  %v1615_v35 = vld [vmem:[#allocation2 + $0x48] sm:$0xff] (!%p2083_p13)  ;;  %v1684_v36 = vadd.f32 (!%p2083_p13), %v2886_v19, %v1613_v31  ;;  %v1616_v37 = vld [vmem:[#allocation2 + $0x50] sm:$0xff] (!%p2083_p13) }
 0x1e4   : > { %v1326_v44 = vpop.f32.mrb[54].mxu0  ;;  %v1454_v45 = vpop.f32.mrb[54].mxu1  ;;  %2298 = vtanh.f32 (!%p2083_p13), %v1681_v30  ;;  %v1687_v42 = vadd.f32 (!%p2083_p13), %v2886_v19, %v1616_v37  ;;  %v1619_v43 = vld [vmem:[#allocation2 + $0x68] sm:$0xff] (!%p2083_p13) }
 0x1e5   : > { %1564 = vst [vmem:[#allocation2 + $0xd0] sm:$0xff] %v1500_v40  ;;  %1596 = vst [vmem:[#allocation2 + $0x1d0] sm:$0xff] %v1532_v41  ;;  %v1501_v46 = vadd.f32 %v1326_v44, %v636_v38  ;;  %v1533_v47 = vadd.f32 %v1454_v45, %v668_v39  ;;  %v1328_v48 = vpop.f32.mrb[55].mxu0  ;;  %v1456_v49 = vpop.f32.mrb[55].mxu1  ;;  %v1685_v38 = vadd.f32 (!%p2083_p13), %v2886_v19, %v1614_v33  ;;  %v1617_v39 = vld [vmem:[#allocation2 + $0x58] sm:$0xff] (!%p2083_p13)  ;;  %2300 = vtanh.f32 (!%p2083_p13), %v1682_v32  ;;  %v1618_v41 = vld [vmem:[#allocation2 + $0x60] sm:$0xff] (!%p2083_p13) }
 0x1e6   : > { %v1686_v40 = vadd.f32 (!%p2083_p13), %v2886_v19, %v1615_v35  ;;  %2302 = vtanh.f32 (!%p2083_p13), %v1683_v34  ;;  %v1688_v44 = vadd.f32 (!%p2083_p13), %v2886_v19, %v1617_v39  ;;  %v1620_v45 = vld [vmem:[#allocation2 + $0x70] sm:$0xff] (!%p2083_p13)  ;;  %v1690_v48 = vadd.f32 (!%p2083_p13), %v2886_v19, %v1619_v43  ;;  %v1622_v49 = vld [vmem:[#allocation2 + $0x80] sm:$0xff] (!%p2083_p13)  ;;  %v1639_v37 = vld [vmem:[#allocation2 + $0x108] sm:$0xff] (!%p2083_p13) }
 0x1e7   : > { %1565 = vst [vmem:[#allocation2 + $0xd8] sm:$0xff] %v1501_v46  ;;  %1597 = vst [vmem:[#allocation2 + $0x1d8] sm:$0xff] %v1533_v47  ;;  %2304 = vtanh.f32 (!%p2083_p13), %v1684_v36  ;;  %v1689_v46 = vadd.f32 (!%p2083_p13), %v2886_v19, %v1618_v41  ;;  %v1621_v47 = vld [vmem:[#allocation2 + $0x78] sm:$0xff] (!%p2083_p13)  ;;  %v1638_v34 = vld [vmem:[#allocation2 + $0x100] sm:$0xff] (!%p2083_p13) }
 0x1e8   : > { %2306 = vtanh.f32 (!%p2083_p13), %v1685_v38  ;;  %v1641_v43 = vld [vmem:[#allocation2 + $0x118] sm:$0xff] (!%p2083_p13) }
 0x1e9   : > { %2308 = vtanh.f32 (!%p2083_p13), %v1686_v40  ;;  %v1640_v40 = vld [vmem:[#allocation2 + $0x110] sm:$0xff] (!%p2083_p13) }
 0x1ea   : > { %v1331_v52 = vpop.f32.mrb[56].mxu0  ;;  %v1459_v53 = vpop.f32.mrb[56].mxu1  ;;  %2310 = vtanh.f32 (!%p2083_p13), %v1687_v42  ;;  %v1709_v42 = vadd.f32 (!%p2083_p13), %v2886_v19, %v1638_v34  ;;  %v1659_v34 = vld [vmem:[#allocation2 + $0x1a8] sm:$0xff] (!%p2083_p13) }
 0x1eb   : > { %v1502_v56 = vadd.f32 %v1331_v52, %v637_v50  ;;  %v1534_v57 = vadd.f32 %v1459_v53, %v669_v51  ;;  %v1333_v58 = vpop.f32.mrb[57].mxu0  ;;  %v1461_v59 = vpop.f32.mrb[57].mxu1  ;;  %v1691_v51 = vadd.f32 (!%p2083_p13), %v2886_v19, %v1620_v45  ;;  %v1623_v52 = vld [vmem:[#allocation2 + $0x88] sm:$0xff] (!%p2083_p13)  ;;  %2312 = vtanh.f32 (!%p2083_p13), %v1688_v44 }
 0x1ec   : > { %v1334_v60 = vpop.f32.mrb[58].mxu0  ;;  %v1462_v61 = vpop.f32.mrb[58].mxu1  ;;  %2314 = vtanh.f32 (!%p2083_p13), %v1689_v46  ;;  %v1625_v58 = vld [vmem:[#allocation2 + $0x98] sm:$0xff] (!%p2083_p13)  ;;  %v1710_v45 = vadd.f32 (!%p2083_p13), %v2886_v19, %v1639_v37  ;;  %v1642_v46 = vld [vmem:[#allocation2 + $0x120] sm:$0xff] (!%p2083_p13)  ;;  %v1660_v37 = vld [vmem:[#allocation2 + $0x1b0] sm:$0xff] (!%p2083_p13) }
 0x1ed   : > { %1566 = vst [vmem:[#allocation2 + $0xe0] sm:$0xff] %v1502_v56  ;;  %1598 = vst [vmem:[#allocation2 + $0x1e0] sm:$0xff] %v1534_v57  ;;  %v1503_v62 = vadd.f32 %v1334_v60, %v638_v54  ;;  %v1535_v63 = vadd.f32 %v1462_v61, %v670_v55  ;;  %v1336_v0 = vpop.f32.mrb[59].mxu0  ;;  %v1464_v1 = vpop.f32.mrb[59].mxu1  ;;  %v1692_v54 = vadd.f32 (!%p2083_p13), %v2886_v19, %v1621_v47  ;;  %v1624_v55 = vld [vmem:[#allocation2 + $0x90] sm:$0xff] (!%p2083_p13)  ;;  %2316 = vtanh.f32 (!%p2083_p13), %v1690_v48  ;;  %v1626_v61 = vld [vmem:[#allocation2 + $0xa0] sm:$0xff] (!%p2083_p13) }
 0x1ee   : > { %v2291_v50 = vpop.eup (!%p2083_p13), %2290  ;;  %v1693_v57 = vadd.f32 (!%p2083_p13), %v2886_v19, %v1622_v49  ;;  %v1694_v60 = vadd.f32 (!%p2083_p13), %v2886_v19, %v1623_v52  ;;  %2318 = vtanh.f32 (!%p2083_p13), %v1691_v51  ;;  %v1627_v0 = vld [vmem:[#allocation2 + $0xa8] sm:$0xff] (!%p2083_p13)  ;;  %v1633_v18 = vld [vmem:[#allocation2 + $0xd8] sm:$0xff] (!%p2083_p13)  ;;  %v1711_v48 = vadd.f32 (!%p2083_p13), %v2886_v19, %v1640_v40  ;;  %v1644_v52 = vld [vmem:[#allocation2 + $0x130] sm:$0xff] (!%p2083_p13) }
 0x1ef   : > { %1567 = vst [vmem:[#allocation2 + $0xe8] sm:$0xff] %v1503_v62  ;;  %1599 = vst [vmem:[#allocation2 + $0x1e8] sm:$0xff] %v1535_v63  ;;  %v2293_v53 = vpop.eup (!%p2083_p13), %2292  ;;  %v1695_v63 = vadd.f32 (!%p2083_p13), %v2886_v19, %v1624_v55  ;;  %2320 = vtanh.f32 (!%p2083_p13), %v1692_v54  ;;  %v1704_v27 = vadd.f32 (!%p2083_p13), %v2886_v19, %v1633_v18  ;;  %v1643_v49 = vld [vmem:[#allocation2 + $0x128] sm:$0xff] (!%p2083_p13)  ;;  %v1712_v51 = vadd.f32 (!%p2083_p13), %v2886_v19, %v1641_v43  ;;  %v1645_v55 = vld [vmem:[#allocation2 + $0x138] sm:$0xff] (!%p2083_p13) }
 0x1f0   : > { %1805 = vst [vmem:[%s2701_s30] sm:$0xff] (!%p2083_p13), %v2291_v50  ;;  %v2295_v56 = vpop.eup (!%p2083_p13), %2294  ;;  %1806 = vst [vmem:[%s2701_s30 + $0x8] sm:$0xff] (!%p2083_p13), %v2293_v53  ;;  %2322 = vtanh.f32 (!%p2083_p13), %v1693_v57  ;;  %v1713_v54 = vadd.f32 (!%p2083_p13), %v2886_v19, %v1642_v46  ;;  %v1714_v57 = vadd.f32 (!%p2083_p13), %v2886_v19, %v1643_v49  ;;  %v1654_v18 = vld [vmem:[#allocation2 + $0x180] sm:$0xff] (!%p2083_p13)  ;;  %v1661_v40 = vld [vmem:[#allocation2 + $0x1b8] sm:$0xff] (!%p2083_p13) }
 0x1f1   : > { %1605 = sbr.rel (%p2083_p13) target bundleno = 563 (0x233), region = 78  ;;  %v2297_v59 = vpop.eup (!%p2083_p13), %2296  ;;  %1807 = vst [vmem:[%s2701_s30 + $0x10] sm:$0xff] (!%p2083_p13), %v2295_v56  ;;  %2324 = vtanh.f32 (!%p2083_p13), %v1694_v60  ;;  %v1715_v60 = vadd.f32 (!%p2083_p13), %v2886_v19, %v1644_v52  ;;  %v1662_v43 = vld [vmem:[#allocation2 + $0x1c0] sm:$0xff] (!%p2083_p13)  ;;  %v1663_v46 = vld [vmem:[#allocation2 + $0x1c8] sm:$0xff] (!%p2083_p13)  ;;  %v1664_v49 = vld [vmem:[#allocation2 + $0x1d0] sm:$0xff] (!%p2083_p13) }
 0x1f2   : > { %v1339_v4 = vpop.f32.mrb[60].mxu0  ;;  %v1467_v5 = vpop.f32.mrb[60].mxu1  ;;  %1808 = vst [vmem:[%s2701_s30 + $0x18] sm:$0xff] (!%p2083_p13), %v2297_v59  ;;  %2326 = vtanh.f32 (!%p2083_p13), %v1695_v63  ;;  %v1716_v63 = vadd.f32 (!%p2083_p13), %v2886_v19, %v1645_v55  ;;  %v1665_v52 = vld [vmem:[#allocation2 + $0x1d8] sm:$0xff] (!%p2083_p13) }
 0x1f3   : > { %v1504_v8 = vadd.f32 %v1339_v4, %v639_v2  ;;  %v1536_v9 = vadd.f32 %v1467_v5, %v671_v3  ;;  %v1341_v10 = vpop.f32.mrb[61].mxu0  ;;  %v1469_v11 = vpop.f32.mrb[61].mxu1  ;;  %v1696_v2 = vadd.f32 (!%p2083_p13), %v2886_v19, %v1625_v58  ;;  %v1628_v3 = vld [vmem:[#allocation2 + $0xb0] sm:$0xff] (!%p2083_p13)  ;;  %v1697_v5 = vadd.f32 (!%p2083_p13), %v2886_v19, %v1626_v61  ;;  %v1646_v58 = vld [vmem:[#allocation2 + $0x140] sm:$0xff] (!%p2083_p13)  ;;  %v1647_v61 = vld [vmem:[#allocation2 + $0x148] sm:$0xff] (!%p2083_p13) }
 0x1f4   : > { %v1342_v12 = vpop.f32.mrb[62].mxu0  ;;  %v1470_v13 = vpop.f32.mrb[62].mxu1  ;;  %v1699_v11 = vadd.f32 (!%p2083_p13), %v2886_v19, %v1628_v3  ;;  %v1634_v22 = vld [vmem:[#allocation2 + $0xe0] sm:$0xff] (!%p2083_p13)  ;;  %v1649_v3 = vld [vmem:[#allocation2 + $0x158] sm:$0xff] (!%p2083_p13) }
 0x1f5   : > { %1568 = vst [vmem:[#allocation2 + $0xf0] sm:$0xff] %v1504_v8  ;;  %1600 = vst [vmem:[#allocation2 + $0x1f0] sm:$0xff] %v1536_v9  ;;  %v1505_v14 = vadd.f32 %v1342_v12, %v640_v6  ;;  %v1537_v15 = vadd.f32 %v1470_v13, %v672_v7  ;;  %v1344_v16 = vpop.f32.mrb[63].mxu0  ;;  %v1472_v17 = vpop.f32.mrb[63].mxu1  ;;  %v1629_v6 = vld [vmem:[#allocation2 + $0xb8] sm:$0xff] (!%p2083_p13)  ;;  %v1698_v8 = vadd.f32 (!%p2083_p13), %v2886_v19, %v1627_v0  ;;  %v1630_v9 = vld [vmem:[#allocation2 + $0xc0] sm:$0xff] (!%p2083_p13)  ;;  %2328 = vtanh.f32 (!%p2083_p13), %v1696_v2 }
 0x1f6   : > { %v2299_v62 = vpop.eup (!%p2083_p13), %2298  ;;  %v1631_v12 = vld [vmem:[#allocation2 + $0xc8] sm:$0xff] (!%p2083_p13)  ;;  %2330 = vtanh.f32 (!%p2083_p13), %v1697_v5  ;;  %v1701_v17 = vadd.f32 (!%p2083_p13), %v2886_v19, %v1630_v9  ;;  %v1705_v30 = vadd.f32 (!%p2083_p13), %v2886_v19, %v1634_v22  ;;  %v1648_v0 = vld [vmem:[#allocation2 + $0x150] sm:$0xff] (!%p2083_p13)  ;;  %v1717_v2 = vadd.f32 (!%p2083_p13), %v2886_v19, %v1646_v58  ;;  %v1666_v55 = vld [vmem:[#allocation2 + $0x1e0] sm:$0xff] (!%p2083_p13) }
 0x1f7   : > { %1569 = vst [vmem:[#allocation2 + $0xf8] sm:$0xff] %v1505_v14  ;;  %1601 = vst [vmem:[#allocation2 + $0x1f8] sm:$0xff] %v1537_v15  ;;  %v2301_v1 = vpop.eup (!%p2083_p13), %2300  ;;  %v1700_v14 = vadd.f32 (!%p2083_p13), %v2886_v19, %v1629_v6  ;;  %v1632_v15 = vld [vmem:[#allocation2 + $0xd0] sm:$0xff] (!%p2083_p13)  ;;  %2332 = vtanh.f32 (!%p2083_p13), %v1698_v8  ;;  %v1702_v21 = vadd.f32 (!%p2083_p13), %v2886_v19, %v1631_v12  ;;  %v1635_v25 = vld [vmem:[#allocation2 + $0xe8] sm:$0xff] (!%p2083_p13)  ;;  %v1718_v5 = vadd.f32 (!%p2083_p13), %v2886_v19, %v1647_v61 }
 0x1f8   : > { %1809 = vst [vmem:[%s2701_s30 + $0x20] sm:$0xff] %v2299_v62  ;;  %v2303_v4 = vpop.eup %2302  ;;  %1810 = vst [vmem:[%s2701_s30 + $0x28] sm:$0xff] %v2301_v1  ;;  %2334 = vtanh.f32 %v1699_v11  ;;  %v1703_v24 = vadd.f32 %v2886_v19, %v1632_v15  ;;  %v1706_v33 = vadd.f32 %v2886_v19, %v1635_v25  ;;  %v1650_v6 = vld [vmem:[#allocation2 + $0x160] sm:$0xff]  ;;  %v1719_v8 = vadd.f32 %v2886_v19, %v1648_v0  ;;  %v1651_v9 = vld [vmem:[#allocation2 + $0x168] sm:$0xff] }
 0x1f9   : > { %v2305_v7 = vpop.eup %2304  ;;  %1811 = vst [vmem:[%s2701_s30 + $0x30] sm:$0xff] %v2303_v4  ;;  %2336 = vtanh.f32 %v1700_v14  ;;  %v1720_v11 = vadd.f32 %v2886_v19, %v1649_v3  ;;  %v1652_v12 = vld [vmem:[#allocation2 + $0x170] sm:$0xff]  ;;  %v1721_v14 = vadd.f32 %v2886_v19, %v1650_v6  ;;  %v1653_v15 = vld [vmem:[#allocation2 + $0x178] sm:$0xff]  ;;  %v1655_v22 = vld [vmem:[#allocation2 + $0x188] sm:$0xff] }
 0x1fa   : > { %v2307_v10 = vpop.eup %2306  ;;  %1812 = vst [vmem:[%s2701_s30 + $0x38] sm:$0xff] %v2305_v7  ;;  %2338 = vtanh.f32 %v1701_v17  ;;  %v1722_v17 = vadd.f32 %v2886_v19, %v1651_v9  ;;  %v1656_v25 = vld [vmem:[#allocation2 + $0x190] sm:$0xff]  ;;  %v1667_v58 = vld [vmem:[#allocation2 + $0x1e8] sm:$0xff] }
 0x1fb   : > { %v2309_v13 = vpop.eup %2308  ;;  %1813 = vst [vmem:[%s2701_s30 + $0x40] sm:$0xff] %v2307_v10  ;;  %2340 = vtanh.f32 %v1702_v21  ;;  %v1723_v21 = vadd.f32 %v2886_v19, %v1652_v12 }
 0x1fc   : > { %v2311_v16 = vpop.eup %2310  ;;  %1814 = vst [vmem:[%s2701_s30 + $0x48] sm:$0xff] %v2309_v13  ;;  %v1636_v28 = vld [vmem:[#allocation2 + $0xf0] sm:$0xff]  ;;  %2342 = vtanh.f32 %v1703_v24  ;;  %v1724_v24 = vadd.f32 %v2886_v19, %v1653_v15 }
 0x1fd   : > { %v2313_v20 = vpop.eup %2312  ;;  %1815 = vst [vmem:[%s2701_s30 + $0x50] sm:$0xff] %v2311_v16  ;;  %v1707_v36 = vadd.f32 %v2886_v19, %v1636_v28  ;;  %2344 = vtanh.f32 %v1704_v27  ;;  %v1725_v27 = vadd.f32 %v2886_v19, %v1654_v18  ;;  %v1657_v28 = vld [vmem:[#allocation2 + $0x198] sm:$0xff]  ;;  %v1668_v61 = vld [vmem:[#allocation2 + $0x1f0] sm:$0xff] }
 0x1fe   : > { %v2315_v23 = vpop.eup %2314  ;;  %1816 = vst [vmem:[%s2701_s30 + $0x58] sm:$0xff] %v2313_v20  ;;  %v1637_v31 = vld [vmem:[#allocation2 + $0xf8] sm:$0xff]  ;;  %2346 = vtanh.f32 %v1705_v30  ;;  %v1726_v30 = vadd.f32 %v2886_v19, %v1655_v22 }
 0x1ff   : > { %v2317_v26 = vpop.eup %2316  ;;  %1817 = vst [vmem:[%s2701_s30 + $0x60] sm:$0xff] %v2315_v23  ;;  %v1708_v39 = vadd.f32 %v2886_v19, %v1637_v31  ;;  %2348 = vtanh.f32 %v1706_v33  ;;  %v1658_v31 = vld [vmem:[#allocation2 + $0x1a0] sm:$0xff]  ;;  %v1727_v33 = vadd.f32 %v2886_v19, %v1656_v25  ;;  %v1669_v0 = vld [vmem:[#allocation2 + $0x1f8] sm:$0xff] }
 0x200   : > { %v2319_v29 = vpop.eup %2318  ;;  %1818 = vst [vmem:[%s2701_s30 + $0x68] sm:$0xff] %v2317_v26  ;;  %2350 = vtanh.f32 %v1707_v36  ;;  %v1728_v36 = vadd.f32 %v2886_v19, %v1657_v28  ;;  %v1740_v6 = vadd.f32 %v2886_v19, %v1669_v0 }
 0x201   : > { %v2321_v32 = vpop.eup %2320  ;;  %1819 = vst [vmem:[%s2701_s30 + $0x70] sm:$0xff] %v2319_v29  ;;  %2352 = vtanh.f32 %v1708_v39  ;;  %v1729_v39 = vadd.f32 %v2886_v19, %v1658_v31 }
 0x202   : > { %v2323_v35 = vpop.eup %2322  ;;  %1820 = vst [vmem:[%s2701_s30 + $0x78] sm:$0xff] %v2321_v32  ;;  %2354 = vtanh.f32 %v1709_v42  ;;  %v1730_v42 = vadd.f32 %v2886_v19, %v1659_v34 }
 0x203   : > { %v2325_v38 = vpop.eup %2324  ;;  %1821 = vst [vmem:[%s2701_s30 + $0x80] sm:$0xff] %v2323_v35  ;;  %2356 = vtanh.f32 %v1710_v45  ;;  %v1731_v45 = vadd.f32 %v2886_v19, %v1660_v37 }
 0x204   : > { %v2327_v41 = vpop.eup %2326  ;;  %1822 = vst [vmem:[%s2701_s30 + $0x88] sm:$0xff] %v2325_v38  ;;  %2358 = vtanh.f32 %v1711_v48  ;;  %v1732_v48 = vadd.f32 %v2886_v19, %v1661_v40 }
 0x205   : > { %v2329_v44 = vpop.eup %2328  ;;  %1823 = vst [vmem:[%s2701_s30 + $0x90] sm:$0xff] %v2327_v41  ;;  %2360 = vtanh.f32 %v1712_v51  ;;  %v1733_v51 = vadd.f32 %v2886_v19, %v1662_v43 }
 0x206   : > { %v2331_v47 = vpop.eup %2330  ;;  %1824 = vst [vmem:[%s2701_s30 + $0x98] sm:$0xff] %v2329_v44  ;;  %2362 = vtanh.f32 %v1713_v54  ;;  %v1734_v54 = vadd.f32 %v2886_v19, %v1663_v46 }
 0x207   : > { %v2333_v50 = vpop.eup %2332  ;;  %1825 = vst [vmem:[%s2701_s30 + $0xa0] sm:$0xff] %v2331_v47  ;;  %2364 = vtanh.f32 %v1714_v57  ;;  %v1735_v57 = vadd.f32 %v2886_v19, %v1664_v49 }
 0x208   : > { %v2335_v53 = vpop.eup %2334  ;;  %1826 = vst [vmem:[%s2701_s30 + $0xa8] sm:$0xff] %v2333_v50  ;;  %2366 = vtanh.f32 %v1715_v60  ;;  %v1736_v60 = vadd.f32 %v2886_v19, %v1665_v52 }
 0x209   : > { %v2337_v56 = vpop.eup %2336  ;;  %1827 = vst [vmem:[%s2701_s30 + $0xb0] sm:$0xff] %v2335_v53  ;;  %2368 = vtanh.f32 %v1716_v63  ;;  %v1737_v63 = vadd.f32 %v2886_v19, %v1666_v55 }
 0x20a   : > { %v2339_v59 = vpop.eup %2338  ;;  %1828 = vst [vmem:[%s2701_s30 + $0xb8] sm:$0xff] %v2337_v56  ;;  %2370 = vtanh.f32 %v1717_v2  ;;  %v1738_v2 = vadd.f32 %v2886_v19, %v1667_v58 }
 0x20b   : > { %v2341_v62 = vpop.eup %2340  ;;  %1829 = vst [vmem:[%s2701_s30 + $0xc0] sm:$0xff] %v2339_v59  ;;  %2372 = vtanh.f32 %v1718_v5 }
 0x20c   : > { %v2343_v1 = vpop.eup %2342  ;;  %1830 = vst [vmem:[%s2701_s30 + $0xc8] sm:$0xff] %v2341_v62  ;;  %2374 = vtanh.f32 %v1719_v8 }
 0x20d   : > { %v2345_v4 = vpop.eup %2344  ;;  %1831 = vst [vmem:[%s2701_s30 + $0xd0] sm:$0xff] %v2343_v1  ;;  %2376 = vtanh.f32 %v1720_v11 }
 0x20e   : > { %v2347_v7 = vpop.eup %2346  ;;  %1832 = vst [vmem:[%s2701_s30 + $0xd8] sm:$0xff] %v2345_v4  ;;  %2378 = vtanh.f32 %v1721_v14  ;;  %v1739_v4 = vadd.f32 %v2886_v19, %v1668_v61 }
 0x20f   : > { %v2349_v10 = vpop.eup %2348  ;;  %1833 = vst [vmem:[%s2701_s30 + $0xe0] sm:$0xff] %v2347_v7  ;;  %2380 = vtanh.f32 %v1722_v17 }
 0x210   : > { %v2351_v13 = vpop.eup %2350  ;;  %1834 = vst [vmem:[%s2701_s30 + $0xe8] sm:$0xff] %v2349_v10  ;;  %2382 = vtanh.f32 %v1723_v21 }
 0x211   : > { %v2353_v16 = vpop.eup %2352  ;;  %1835 = vst [vmem:[%s2701_s30 + $0xf0] sm:$0xff] %v2351_v13  ;;  %2384 = vtanh.f32 %v1724_v24 }
 0x212   : > { %v2355_v20 = vpop.eup %2354  ;;  %1836 = vst [vmem:[%s2701_s30 + $0xf8] sm:$0xff] %v2353_v16  ;;  %2386 = vtanh.f32 %v1725_v27 }
 0x213   : > { %v2357_v23 = vpop.eup %2356  ;;  %1837 = vst [vmem:[%s2701_s30 + $0x100] sm:$0xff] %v2355_v20  ;;  %2388 = vtanh.f32 %v1726_v30 }
 0x214   : > { %v2359_v26 = vpop.eup %2358  ;;  %1838 = vst [vmem:[%s2701_s30 + $0x108] sm:$0xff] %v2357_v23  ;;  %2390 = vtanh.f32 %v1727_v33 }
 0x215   : > { %v2361_v29 = vpop.eup %2360  ;;  %1839 = vst [vmem:[%s2701_s30 + $0x110] sm:$0xff] %v2359_v26  ;;  %2392 = vtanh.f32 %v1728_v36 }
 0x216   : > { %v2363_v32 = vpop.eup %2362  ;;  %1840 = vst [vmem:[%s2701_s30 + $0x118] sm:$0xff] %v2361_v29  ;;  %2394 = vtanh.f32 %v1729_v39 }
 0x217   : > { %v2365_v35 = vpop.eup %2364  ;;  %1841 = vst [vmem:[%s2701_s30 + $0x120] sm:$0xff] %v2363_v32  ;;  %2396 = vtanh.f32 %v1730_v42 }
 0x218   : > { %v2367_v38 = vpop.eup %2366  ;;  %1842 = vst [vmem:[%s2701_s30 + $0x128] sm:$0xff] %v2365_v35  ;;  %2398 = vtanh.f32 %v1731_v45 }
 0x219   : > { %v2369_v41 = vpop.eup %2368  ;;  %1843 = vst [vmem:[%s2701_s30 + $0x130] sm:$0xff] %v2367_v38  ;;  %2400 = vtanh.f32 %v1732_v48 }
 0x21a   : > { %v2371_v44 = vpop.eup %2370  ;;  %1844 = vst [vmem:[%s2701_s30 + $0x138] sm:$0xff] %v2369_v41  ;;  %2402 = vtanh.f32 %v1733_v51 }
 0x21b   : > { %v2373_v47 = vpop.eup %2372  ;;  %1845 = vst [vmem:[%s2701_s30 + $0x140] sm:$0xff] %v2371_v44  ;;  %2404 = vtanh.f32 %v1734_v54 }
 0x21c   : > { %v2375_v50 = vpop.eup %2374  ;;  %1846 = vst [vmem:[%s2701_s30 + $0x148] sm:$0xff] %v2373_v47  ;;  %2406 = vtanh.f32 %v1735_v57 }
 0x21d   : > { %v2377_v53 = vpop.eup %2376  ;;  %1847 = vst [vmem:[%s2701_s30 + $0x150] sm:$0xff] %v2375_v50  ;;  %2408 = vtanh.f32 %v1736_v60 }
 0x21e   : > { %v2379_v56 = vpop.eup %2378  ;;  %1848 = vst [vmem:[%s2701_s30 + $0x158] sm:$0xff] %v2377_v53  ;;  %2410 = vtanh.f32 %v1737_v63 }
 0x21f   : > { %v2381_v59 = vpop.eup %2380  ;;  %1849 = vst [vmem:[%s2701_s30 + $0x160] sm:$0xff] %v2379_v56  ;;  %2412 = vtanh.f32 %v1738_v2 }
 0x220   : > { %v2383_v62 = vpop.eup %2382  ;;  %1850 = vst [vmem:[%s2701_s30 + $0x168] sm:$0xff] %v2381_v59  ;;  %2414 = vtanh.f32 %v1739_v4 }
 0x221   : > { %v2385_v1 = vpop.eup %2384  ;;  %1851 = vst [vmem:[%s2701_s30 + $0x170] sm:$0xff] %v2383_v62  ;;  %2416 = vtanh.f32 %v1740_v6 }
 0x222   : > { %v2387_v3 = vpop.eup %2386  ;;  %1852 = vst [vmem:[%s2701_s30 + $0x178] sm:$0xff] %v2385_v1 }
 0x223   : > { %v2389_v5 = vpop.eup %2388  ;;  %1853 = vst [vmem:[%s2701_s30 + $0x180] sm:$0xff] %v2387_v3 }
 0x224   : > { %v2391_v7 = vpop.eup %2390  ;;  %1854 = vst [vmem:[%s2701_s30 + $0x188] sm:$0xff] %v2389_v5 }
 0x225   : > { %v2393_v8 = vpop.eup %2392  ;;  %1855 = vst [vmem:[%s2701_s30 + $0x190] sm:$0xff] %v2391_v7 }
 0x226   : > { %v2395_v9 = vpop.eup %2394  ;;  %1856 = vst [vmem:[%s2701_s30 + $0x198] sm:$0xff] %v2393_v8 }
 0x227   : > { %v2397_v10 = vpop.eup %2396  ;;  %1857 = vst [vmem:[%s2701_s30 + $0x1a0] sm:$0xff] %v2395_v9 }
 0x228   : > { %v2399_v19 = vpop.eup %2398  ;;  %1858 = vst [vmem:[%s2701_s30 + $0x1a8] sm:$0xff] %v2397_v10 }
 0x229   : > { %v2401_v11 = vpop.eup %2400  ;;  %1859 = vst [vmem:[%s2701_s30 + $0x1b0] sm:$0xff] %v2399_v19 }
 0x22a   : > { %v2403_v12 = vpop.eup %2402  ;;  %1860 = vst [vmem:[%s2701_s30 + $0x1b8] sm:$0xff] %v2401_v11 }
 0x22b   : > { %v2405_v13 = vpop.eup %2404  ;;  %1861 = vst [vmem:[%s2701_s30 + $0x1c0] sm:$0xff] %v2403_v12 }
 0x22c   : > { %v2407_v14 = vpop.eup %2406  ;;  %1862 = vst [vmem:[%s2701_s30 + $0x1c8] sm:$0xff] %v2405_v13 }
 0x22d   : > { %v2409_v15 = vpop.eup %2408  ;;  %1863 = vst [vmem:[%s2701_s30 + $0x1d0] sm:$0xff] %v2407_v14 }
 0x22e   : > { %v2411_v16 = vpop.eup %2410  ;;  %1864 = vst [vmem:[%s2701_s30 + $0x1d8] sm:$0xff] %v2409_v15 }
 0x22f   : > { %v2413_v17 = vpop.eup %2412  ;;  %1865 = vst [vmem:[%s2701_s30 + $0x1e0] sm:$0xff] %v2411_v16 }
 0x230   : > { %v2415_v18 = vpop.eup %2414  ;;  %1866 = vst [vmem:[%s2701_s30 + $0x1e8] sm:$0xff] %v2413_v17 }
 0x231   : > { %v2417_v20 = vpop.eup %2416  ;;  %1867 = vst [vmem:[%s2701_s30 + $0x1f0] sm:$0xff] %v2415_v18 }
 0x232   : > { %1868 = vst [vmem:[%s2701_s30 + $0x1f8] sm:$0xff] %v2417_v20 }
 0x233 PF: > { %s13_s18 = sadd.s32 1, %s2472_s18   ;;  %s3041_s12 = smov %s2452_s13 }
 0x234   : > { %p10_p0 = scmp.ge.s32.totalorder %s13_s18, 10   ;;  %s3042_s13 = smov %s2547_s25 }
 0x235   : > { %s3043_s14 = smov %s2464_s16  ;;  %s3044_s15 = smov %s2468_s17 }
 0x236   : > { %s3045_s16 = smov %s3048_s19  ;;  %s3046_s17 = smov %s3052_s20 }
 0x237   :  { %12 = sbr.rel (!%p10_p0) target bundleno = 4 (0x4), region = 119 }

</bundles_post_ra>
